<compile_context>
chip_gen: v7x
topology: tpu7x:2x2x1
jax: 0.10.0
libtpu: 0.0.40
codegen_flags: <defaults>
</compile_context>

<pallas_src>
import functools

import numpy as np
import jax
import jax.numpy as jnp
from jax.experimental import pallas as pl
from jax.experimental.pallas import tpu as pltpu


# --------------------------------------------------------------------------- #
# DCT-I helpers (scipy.fft.dct / idct, type=1, norm=None semantics)
# --------------------------------------------------------------------------- #
def dct1_matrix(n):
    """Unnormalized DCT-I matrix C with y = C @ x  (scipy.fft.dct, type=1)."""
    k = np.arange(n, dtype=np.float64).reshape(-1, 1)
    m = np.arange(n, dtype=np.float64).reshape(1, -1)
    c = 2.0 * np.cos(np.pi * k * m / (n - 1))
    c[:, 0] = 1.0
    c[:, -1] = (-1.0) ** np.arange(n)
    return c


def idct1_matrix(n):
    """IDCT-I matrix D with x = D @ y  (scipy.fft.idct, type=1, norm=None)."""
    return dct1_matrix(n) / (2.0 * (n - 1))


# --------------------------------------------------------------------------- #
# Small helpers
# --------------------------------------------------------------------------- #
def _vstack(parts):
    return parts[0] if len(parts) == 1 else jnp.concatenate(parts, axis=0)


def _tree_sum_axis0(t):
    """Pairwise tree sum over the leading axis (independent f32 VPU adds)."""
    while t.shape[0] > 1:
        n = t.shape[0]
        half = n // 2
        head = t[:half] + t[half:2 * half]
        t = head if n == 2 * half else jnp.concatenate([head, t[2 * half:]], 0)
    return t[0]


def _num_tensorcores_per_device():
    """Heuristic TC-per-device count (perf-only: picks the batch folding)."""
    try:
        kind = jax.devices()[0].device_kind.lower()
    except Exception:
        return 1
    # v4 / v5p megacore and v7x expose 2 TensorCores per JAX device; the
    # "parallel" grid axis shards across them.  v5e / v6e are single-TC.
    if any(tag in kind for tag in ("v4", "v5p", "v7", "7x")):
        return 2
    return 1


def _probe_copy_kernel(x_ref, o_ref):
    o_ref[...] = x_ref[...] + 1.0


@functools.lru_cache(maxsize=None)
def _buffered_one_ok():
    """Probe whether pl.Buffered(1) single-buffering of a constant-index-map
    pallas_call input lowers & compiles on this jax/libtpu.  If not, fall back
    to default double-buffering (pure VMEM-headroom optimization)."""
    try:
        spec = pl.BlockSpec((8, 128), lambda i: (0, 0),
                            pipeline_mode=pl.Buffered(1))
        fn = pl.pallas_call(
            _probe_copy_kernel,
            out_shape=jax.ShapeDtypeStruct((16, 128), jnp.float32),
            grid=(2,),
            in_specs=[spec],
            out_specs=pl.BlockSpec((8, 128), lambda i: (i, 0)),
        )
        jax.jit(fn).lower(jnp.zeros((8, 128), jnp.float32)).compile()
        return True
    except Exception:
        return False


def _const_weight_spec(arr, single_buffer):
    """Whole-array block, constant index map (VMEM-resident weight)."""
    nd = arr.ndim
    idx = lambda i, _nd=nd: (0,) * _nd
    if single_buffer:
        try:
            return pl.BlockSpec(arr.shape, idx, pipeline_mode=pl.Buffered(1))
        except Exception:
            pass
    return pl.BlockSpec(arr.shape, idx)


# --------------------------------------------------------------------------- #
# Fused trunk kernel: fc0 -> n spectral/conv layers -> fc1 -> fc2
# --------------------------------------------------------------------------- #
def _fused_trunk_kernel(x_ref, fc0w_ref, fc0b_ref,
                        tf_ref, w3_ref, ti_ref, wc_ref, bc_ref,
                        fc1w_ref, fc1b_ref, fc2w_ref, fc2b_ref,
                        o_ref, *, n_layers, ci_chunk=8):
    f32, bf16 = jnp.float32, jnp.bfloat16
    nb = x_ref.shape[0]                     # batch elements folded in this step
    ci = w3_ref.shape[1]
    co = w3_ref.shape[2]
    nm = w3_ref.shape[3]

    # fc0 per folded batch element; channels on sublanes, space on lanes
    # (lane-dense S for every downstream matmul and the final store).
    h = _vstack([
        jnp.dot(fc0w_ref[...], x_ref[b].astype(bf16),
                preferred_element_type=f32) + fc0b_ref[...]
        for b in range(nb)])                                      # (nb*C0, S) f32

    for li in range(n_layers):                                    # static, short
        hb = h.astype(bf16)                                       # (nb*Ci, S)

        # SpectralConv2d forward DCT-I (Kron'd, mode truncation folded in):
        # one MXU matmul with M = nb*Ci (folded batch -> fewer vmatmul pushes).
        xd = jnp.dot(hb, tf_ref[li], preferred_element_type=f32)  # (nb*Ci, NM)

        # compl_mul2d ('im,iom->om') per batch element.  w3 is stored bf16
        # (halves its HBM->VMEM DMA and vld traffic) and upcast to f32 right
        # before the multiply; mul/accumulate stay f32.  ci is processed in
        # static chunks with a pairwise tree sum over the chunk axis and two
        # chunk-level accumulators -> bounded live vregs, no dependent chain.
        acc_parts = []
        for b in range(nb):
            xd_b = xd[b * ci:(b + 1) * ci]                        # (Ci, NM) f32
            acc0 = jnp.zeros((co, nm), f32)
            acc1 = jnp.zeros((co, nm), f32)
            for kc, i0 in enumerate(range(0, ci, ci_chunk)):
                cs = min(ci_chunk, ci - i0)
                w3c = w3_ref[li, i0:i0 + cs].astype(f32)          # (cs, Co, NM)
                t = xd_b[i0:i0 + cs, None, :] * w3c               # (cs, Co, NM)
                part = _tree_sum_axis0(t)                         # (Co, NM)
                if kc % 2 == 0:
                    acc0 = acc0 + part
                else:
                    acc1 = acc1 + part
            acc_parts.append(acc0 + acc1)
        acc = _vstack(acc_parts)                                  # (nb*Co, NM)

        # inverse DCT-I (zero padding of truncated modes folded into Ti):
        # one MXU matmul with M = nb*Co.
        x1 = jnp.dot(acc.astype(bf16), ti_ref[li],
                     preferred_element_type=f32)                  # (nb*Co, S)

        # 1x1 Conv1d: pointwise channel mix + bias, per batch element.
        x2 = _vstack([
            jnp.dot(wc_ref[li], hb[b * ci:(b + 1) * ci],
                    preferred_element_type=f32) + bc_ref[li]
            for b in range(nb)])                                  # (nb*Co, S)

        h = x1 + x2
        if li != n_layers - 1:
            h = jnp.tanh(h)

    # fc1 + tanh, then fc2, still in (C, S) layout -> lane-dense final store.
    # (fc2 is a tiny M=out_dim matmul; a VPU weighted-sum variant for v5e was
    #  considered but the MXU is idle here, so the dot is kept for generality.)
    c_last = fc1w_ref.shape[1]
    for b in range(nb):
        h_b = h[b * c_last:(b + 1) * c_last].astype(bf16)         # (C_last, S)
        h1 = jnp.tanh(jnp.dot(fc1w_ref[...], h_b,
                              preferred_element_type=f32) + fc1b_ref[...])
        y = jnp.dot(fc2w_ref[...], h1.astype(bf16),
                    preferred_element_type=f32) + fc2b_ref[...]   # (OUT, S)
        o_ref[b] = y


def dcnn2d_forward(x, params, batch_chunk=None):
    p = params
    b, sx, sy, in_dim = x.shape
    s = sx * sy

    tf_all, w3_all, ti_all = p["tf_all"], p["w3_all"], p["ti_all"]
    wc_all, bc_all = p["wc_all"], p["bc_all"]
    n_layers = tf_all.shape[0]
    out_dim = p["fc2_w_t"].shape[0]

    # Batch folding (perf review): one grid step per TensorCore's share of the
    # batch.  Single-TC chips fold everything into one step; multi-TC chips
    # keep one element per step so "parallel" spreads them across cores.
    if batch_chunk is None:
        n_tc = _num_tensorcores_per_device()
        batch_chunk = b // n_tc if b % n_tc == 0 else 1
        batch_chunk = max(1, min(batch_chunk, 8))
        while b % batch_chunk:
            batch_chunk -= 1
    assert b % batch_chunk == 0

    # Tiny one-off layout change of the *input* so the kernel sees lane-dense
    # (in_dim, S) blocks; the large activation tensor never leaves VMEM.
    x_t = x.transpose(0, 3, 1, 2).reshape(b, in_dim, s)

    kernel = functools.partial(_fused_trunk_kernel, n_layers=n_layers)

    weight_args = (p["fc0_w_t"], p["fc0_b_col"], tf_all, w3_all, ti_all,
                   wc_all, bc_all, p["fc1_w_t"], p["fc1_b_col"],
                   p["fc2_w_t"], p["fc2_b_col"])

    single_buffer = _buffered_one_ok()

    out = pl.pallas_call(
        kernel,
        out_shape=jax.ShapeDtypeStruct((b, out_dim, s), jnp.float32),
        grid=(b // batch_chunk,),
        in_specs=[pl.BlockSpec((batch_chunk, in_dim, s), lambda i: (i, 0, 0))]
                 + [_const_weight_spec(a, single_buffer) for a in weight_args],
        out_specs=pl.BlockSpec((batch_chunk, out_dim, s), lambda i: (i, 0, 0)),
        compiler_params=pltpu.CompilerParams(
            # one batch chunk per grid step; "parallel" lets a 2-TC chip run
            # chunks concurrently, while on single-TC chips the grid is a
            # single step (whole batch folded) with no pipeline overhead.
            dimension_semantics=("parallel",),
        ),
    )(x_t, *weight_args)

    # (B, OUT, S) -> (B, sx, sy, OUT); for OUT == 1 this is a pure reshape.
    return out.transpose(0, 2, 1).reshape(b, sx, sy, out_dim)


# --------------------------------------------------------------------------- #
# Parameters (deterministic synthetic init; shapes follow DCNN2d.__init__)
# --------------------------------------------------------------------------- #
def init_params(key, *, in_dim, layers, fc_dim, out_dim, modes1, modes2, sx, sy):
    n_spec = len(layers) - 1
    keys = iter(jax.random.split(key, 6 + 4 * n_spec))
    f32, bf16 = jnp.float32, jnp.bfloat16

    def linear_init(fan_in, fan_out):
        bound = 1.0 / np.sqrt(fan_in)
        w = jax.random.uniform(next(keys), (fan_in, fan_out), f32, -bound, bound)
        bvec = jax.random.uniform(next(keys), (fan_out,), f32, -bound, bound)
        return w, bvec

    fc0_w, fc0_b = linear_init(in_dim, layers[0])
    fc1_w, fc1_b = linear_init(layers[-1], fc_dim)
    fc2_w, fc2_b = linear_init(fc_dim, out_dim)

    # fused kernel stacks per-layer spectral weights -> uniform widths/modes
    # (true for the module's default layers=[width]*4).
    assert all(c == layers[0] for c in layers), "fused kernel: uniform widths"
    assert all(m == modes1[0] for m in modes1), "fused kernel: uniform modes1"
    assert all(m == modes2[0] for m in modes2), "fused kernel: uniform modes2"

    cx, cy = dct1_matrix(sx), dct1_matrix(sy)
    dx, dy = idct1_matrix(sx), idct1_matrix(sy)
    m2_0 = modes2[0]
    # forward: flat spatial (sx*sy) -> retained flat modes (sx*m2)
    tf = np.kron(cx.T, cy[:m2_0, :].T).astype(np.float32)
    # inverse: retained flat modes (sx*m2) -> flat spatial (sx*sy)
    ti = np.kron(dx.T, dy[:, :m2_0].T).astype(np.float32)

    tf_list, ti_list, w3_list, wc_list, bc_list, ref_layers = [], [], [], [], [], []
    for ci, co, m1, m2 in zip(layers, layers[1:], modes1, modes2):
        assert 2 * m1 <= sx and m2 <= sy // 2 + 1
        scale = 1.0 / (ci * co)
        w1 = scale * jax.random.uniform(next(keys), (ci, co, m1, m2), f32)
        w2 = scale * jax.random.uniform(next(keys), (ci, co, m1, m2), f32)
        sc = 1.0 / np.sqrt(ci)
        wc = jax.random.uniform(next(keys), (co, ci), f32, -sc, sc)
        bc = jax.random.uniform(next(keys), (co,), f32, -sc, sc)

        # merged spectral weight over the full x-mode range (torch indexing:
        # rows [:m1] <- weights1, rows [-m1:] <- weights2, zeros in between).
        w_full = jnp.zeros((ci, co, sx, m2), f32)
        w_full = w_full.at[:, :, :m1, :].set(w1)
        w_full = w_full.at[:, :, sx - m1:, :].set(w2)

        tf_list.append(tf)
        ti_list.append(ti)
        w3_list.append(w_full.reshape(ci, co, sx * m2))
        wc_list.append(wc)
        bc_list.append(bc.reshape(co, 1))

        ref_layers.append(dict(
            cx=jnp.asarray(cx, f32), cyt=jnp.asarray(cy[:m2, :].T, f32),
            dx=jnp.asarray(dx, f32), dyt=jnp.asarray(dy[:, :m2].T, f32),
            w_full=w_full, wc=wc, bc=bc))

    params = dict(
        # --- packed / dtype-optimized weights for the fused kernel -----------
        fc0_w_t=fc0_w.T.astype(bf16),                 # (C0, in_dim)
        fc0_b_col=fc0_b.reshape(-1, 1),               # (C0, 1) f32
        fc1_w_t=fc1_w.T.astype(bf16),                 # (FC, C_last)
        fc1_b_col=fc1_b.reshape(-1, 1),
        fc2_w_t=fc2_w.T.astype(bf16),                 # (OUT, FC)
        fc2_b_col=fc2_b.reshape(-1, 1),
        tf_all=jnp.asarray(np.stack(tf_list), bf16),  # (L, S, NM)
        ti_all=jnp.asarray(np.stack(ti_list), bf16),  # (L, NM, S)
        w3_all=jnp.stack(w3_list).astype(bf16),       # (L, Ci, Co, NM) bf16 store
        wc_all=jnp.stack(wc_list).astype(bf16),       # (L, Co, Ci)
        bc_all=jnp.stack(bc_list),                    # (L, Co, 1) f32
        # --- float32 originals for the references ----------------------------
        fc0_w=fc0_w, fc0_b=fc0_b, fc1_w=fc1_w, fc1_b=fc1_b,
        fc2_w=fc2_w, fc2_b=fc2_b, ref_layers=ref_layers,
    )
    return params


# --------------------------------------------------------------------------- #
# Pure-JAX references
# --------------------------------------------------------------------------- #
def matched_reference_forward(x, params):
    """Mirror of the fused kernel's math & dtype policy (bf16 MXU operands and
    bf16-stored w3 upcast to f32, f32 accumulation / elementwise): tight check
    of the Pallas plumbing."""
    p = params
    b, sx, sy, in_dim = x.shape
    s = sx * sy
    f32, bf16 = jnp.float32, jnp.bfloat16
    hp = jax.lax.Precision.HIGHEST

    xt = x.transpose(0, 3, 1, 2).reshape(b, in_dim, s)
    h = jnp.einsum("ci,bis->bcs", p["fc0_w_t"], xt.astype(bf16),
                   preferred_element_type=f32) + p["fc0_b_col"][None]
    n_layers = p["tf_all"].shape[0]
    for li in range(n_layers):
        hb = h.astype(bf16)
        xd = jnp.einsum("bcs,sm->bcm", hb, p["tf_all"][li],
                        preferred_element_type=f32)
        acc = jnp.einsum("bim,iom->bom", xd,
                         p["w3_all"][li].astype(f32), precision=hp)
        x1 = jnp.einsum("bom,ms->bos", acc.astype(bf16), p["ti_all"][li],
                        preferred_element_type=f32)
        x2 = jnp.einsum("oi,bis->bos", p["wc_all"][li], hb,
                        preferred_element_type=f32) + p["bc_all"][li][None]
        h = x1 + x2
        if li != n_layers - 1:
            h = jnp.tanh(h)
    h = jnp.tanh(jnp.einsum("fc,bcs->bfs", p["fc1_w_t"], h.astype(bf16),
                            preferred_element_type=f32) + p["fc1_b_col"][None])
    y = jnp.einsum("of,bfs->bos", p["fc2_w_t"], h.astype(bf16),
                   preferred_element_type=f32) + p["fc2_b_col"][None]
    return y.transpose(0, 2, 1).reshape(b, sx, sy, y.shape[1])


def reference_forward(x, params):
    """Full-float32 separable-DCT reference mirroring the torch op order."""
    p = params
    b, sx, sy, in_dim = x.shape
    hp = jax.lax.Precision.HIGHEST
    h = jnp.einsum("bxyi,ic->bxyc", x, p["fc0_w"], precision=hp) + p["fc0_b"]
    h = h.transpose(0, 3, 1, 2)                         # (B, C, sx, sy)
    n_layers = len(p["ref_layers"])
    for i, lp in enumerate(p["ref_layers"]):
        xy = jnp.einsum("bcmn,nj->bcmj", h, lp["cyt"], precision=hp)
        xd = jnp.einsum("km,bcmj->bckj", lp["cx"], xy, precision=hp)
        out = jnp.einsum("bikj,iokj->bokj", xd, lp["w_full"], precision=hp)
        t = jnp.einsum("bokj,jn->bokn", out, lp["dyt"], precision=hp)
        x1 = jnp.einsum("pk,bokn->bopn", lp["dx"], t, precision=hp)
        x2 = (jnp.einsum("oi,bimn->bomn", lp["wc"], h, precision=hp)
              + lp["bc"].reshape(1, -1, 1, 1))
        h = x1 + x2
        if i != n_layers - 1:
            h = jnp.tanh(h)
    h = h.transpose(0, 2, 3, 1)
    h = jnp.tanh(jnp.einsum("bxyc,cf->bxyf", h, p["fc1_w"], precision=hp)
                 + p["fc1_b"])
    h = jnp.einsum("bxyf,fo->bxyo", h, p["fc2_w"], precision=hp) + p["fc2_b"]
    return h


# --------------------------------------------------------------------------- #
if __name__ == "__main__":
    B, SX, SY = 2, 16, 16
    IN_DIM, OUT_DIM = 3, 1
    WIDTH, FC_DIM = 32, 64
    LAYERS = [WIDTH] * 4            # 3 spectral / conv layers
    MODES1 = [8, 8, 8]
    MODES2 = [8, 8, 8]

    key = jax.random.PRNGKey(0)
    pkey, xkey = jax.random.split(key)
    params = init_params(pkey, in_dim=IN_DIM, layers=LAYERS, fc_dim=FC_DIM,
                         out_dim=OUT_DIM, modes1=MODES1, modes2=MODES2,
                         sx=SX, sy=SY)
    x = jax.random.normal(xkey, (B, SX, SY, IN_DIM), dtype=jnp.float32)

    _ = _buffered_one_ok()          # prime the feature probe outside the trace

    out = jax.block_until_ready(jax.jit(dcnn2d_forward)(x, params))
    assert out.shape == (B, SX, SY, OUT_DIM), out.shape

    ref_match = jax.block_until_ready(jax.jit(matched_reference_forward)(x, params))
    ref_f32 = jax.block_until_ready(jax.jit(reference_forward)(x, params))

    err_match = float(jnp.max(jnp.abs(out - ref_match)))
    err_f32 = float(jnp.max(jnp.abs(out - ref_f32)))
    scale = max(1.0, float(jnp.max(jnp.abs(ref_f32))))
    # tight: kernel vs same-dtype-policy JAX math (checks the Pallas plumbing)
    assert err_match < 5e-3, f"kernel vs matched bf16 reference: {err_match}"
    # loose: kernel vs full-f32 separable-DCT reference (bf16 headroom)
    assert err_f32 < 5e-2 * scale, f"kernel vs f32 reference: {err_f32} / scale {scale}"
    print("KERNEL_OK")
</pallas_src>

<mosaic_0001>
module attributes {stable_mosaic.version = 11 : i64} {
  func.func @_fused_trunk_kernel(%arg0: i32, %arg1: memref<2x3x256xf32, #tpu.memory_space<vmem>>, %arg2: memref<32x3xbf16, #tpu.memory_space<vmem>>, %arg3: memref<32x1xf32, #tpu.memory_space<vmem>>, %arg4: memref<3x256x128xbf16, #tpu.memory_space<vmem>>, %arg5: memref<3x32x32x128xbf16, #tpu.memory_space<vmem>>, %arg6: memref<3x128x256xbf16, #tpu.memory_space<vmem>>, %arg7: memref<3x32x32xbf16, #tpu.memory_space<vmem>>, %arg8: memref<3x32x1xf32, #tpu.memory_space<vmem>>, %arg9: memref<64x32xbf16, #tpu.memory_space<vmem>>, %arg10: memref<64x1xf32, #tpu.memory_space<vmem>>, %arg11: memref<1x64xbf16, #tpu.memory_space<vmem>>, %arg12: memref<1x1xf32, #tpu.memory_space<vmem>>, %arg13: memref<2x1x256xf32, #tpu.memory_space<vmem>>) attributes {dimension_semantics = [#tpu.dimension_semantics<parallel>], iteration_bounds = array<i64: 1>, scalar_prefetch = 0 : i64, scratch_operands = 0 : i64, tpu.core_type = #tpu.core_type<tc>, window_params = [{transform_indices = @transform_0, window_bounds = array<i64: 2, 3, 256>}, {pipeline_mode = #tpu.pipeline_mode<synchronous>, transform_indices = @transform_1, window_bounds = array<i64: 32, 3>}, {pipeline_mode = #tpu.pipeline_mode<synchronous>, transform_indices = @transform_2, window_bounds = array<i64: 32, 1>}, {pipeline_mode = #tpu.pipeline_mode<synchronous>, transform_indices = @transform_3, window_bounds = array<i64: 3, 256, 128>}, {pipeline_mode = #tpu.pipeline_mode<synchronous>, transform_indices = @transform_4, window_bounds = array<i64: 3, 32, 32, 128>}, {pipeline_mode = #tpu.pipeline_mode<synchronous>, transform_indices = @transform_5, window_bounds = array<i64: 3, 128, 256>}, {pipeline_mode = #tpu.pipeline_mode<synchronous>, transform_indices = @transform_6, window_bounds = array<i64: 3, 32, 32>}, {pipeline_mode = #tpu.pipeline_mode<synchronous>, transform_indices = @transform_7, window_bounds = array<i64: 3, 32, 1>}, {pipeline_mode = #tpu.pipeline_mode<synchronous>, transform_indices = @transform_8, window_bounds = array<i64: 64, 32>}, {pipeline_mode = #tpu.pipeline_mode<synchronous>, transform_indices = @transform_9, window_bounds = array<i64: 64, 1>}, {pipeline_mode = #tpu.pipeline_mode<synchronous>, transform_indices = @transform_10, window_bounds = array<i64: 1, 64>}, {pipeline_mode = #tpu.pipeline_mode<synchronous>, transform_indices = @transform_11, window_bounds = array<i64: 1, 1>}, {transform_indices = @transform_12, window_bounds = array<i64: 2, 1, 256>}]} {
    %c0 = arith.constant 0 : index
    %c0_0 = arith.constant 0 : index
    %0 = vector.load %arg2[%c0, %c0_0] : memref<32x3xbf16, #tpu.memory_space<vmem>>, vector<32x3xbf16>
    %c0_1 = arith.constant 0 : index
    %c0_2 = arith.constant 0 : index
    %c0_3 = arith.constant 0 : index
    %1 = vector.load %arg1[%c0_1, %c0_2, %c0_3] : memref<2x3x256xf32, #tpu.memory_space<vmem>>, vector<1x3x256xf32>
    %2 = vector.shape_cast %1 : vector<1x3x256xf32> to vector<3x256xf32>
    %3 = arith.truncf %2 : vector<3x256xf32> to vector<3x256xbf16>
    %cst = arith.constant dense<0.000000e+00> : vector<32x256xf32>
    %4 = tpu.matmul %0, %3, %cst {dimension_numbers = #tpu.dot_dimension_numbers<[1], [0], [0], [1], [0, 0, 1, 1], [], []>} : vector<32x3xbf16>, vector<3x256xbf16>, vector<32x256xf32> -> vector<32x256xf32>
    %c0_4 = arith.constant 0 : index
    %c0_5 = arith.constant 0 : index
    %5 = vector.load %arg3[%c0_4, %c0_5] : memref<32x1xf32, #tpu.memory_space<vmem>>, vector<32x1xf32>
    %6 = vector.broadcast %5 : vector<32x1xf32> to vector<32x256xf32>
    %7 = arith.addf %4, %6 : vector<32x256xf32>
    %c0_6 = arith.constant 0 : index
    %c0_7 = arith.constant 0 : index
    %8 = vector.load %arg2[%c0_6, %c0_7] : memref<32x3xbf16, #tpu.memory_space<vmem>>, vector<32x3xbf16>
    %c1 = arith.constant 1 : index
    %c0_8 = arith.constant 0 : index
    %c0_9 = arith.constant 0 : index
    %9 = vector.load %arg1[%c1, %c0_8, %c0_9] : memref<2x3x256xf32, #tpu.memory_space<vmem>>, vector<1x3x256xf32>
    %10 = vector.shape_cast %9 : vector<1x3x256xf32> to vector<3x256xf32>
    %11 = arith.truncf %10 : vector<3x256xf32> to vector<3x256xbf16>
    %cst_10 = arith.constant dense<0.000000e+00> : vector<32x256xf32>
    %12 = tpu.matmul %8, %11, %cst_10 {dimension_numbers = #tpu.dot_dimension_numbers<[1], [0], [0], [1], [0, 0, 1, 1], [], []>} : vector<32x3xbf16>, vector<3x256xbf16>, vector<32x256xf32> -> vector<32x256xf32>
    %c0_11 = arith.constant 0 : index
    %c0_12 = arith.constant 0 : index
    %13 = vector.load %arg3[%c0_11, %c0_12] : memref<32x1xf32, #tpu.memory_space<vmem>>, vector<32x1xf32>
    %14 = vector.broadcast %13 : vector<32x1xf32> to vector<32x256xf32>
    %15 = arith.addf %12, %14 : vector<32x256xf32>
    %16 = tpu.concatenate %7, %15 in 0 : vector<32x256xf32>, vector<32x256xf32> -> vector<64x256xf32>
    %17 = arith.truncf %16 : vector<64x256xf32> to vector<64x256xbf16>
    %c0_13 = arith.constant 0 : index
    %c0_14 = arith.constant 0 : index
    %c0_15 = arith.constant 0 : index
    %18 = vector.load %arg4[%c0_13, %c0_14, %c0_15] : memref<3x256x128xbf16, #tpu.memory_space<vmem>>, vector<1x256x128xbf16>
    %19 = vector.shape_cast %18 : vector<1x256x128xbf16> to vector<256x128xbf16>
    %cst_16 = arith.constant dense<0.000000e+00> : vector<64x128xf32>
    %20 = tpu.matmul %17, %19, %cst_16 {dimension_numbers = #tpu.dot_dimension_numbers<[1], [0], [0], [1], [0, 0, 1, 1], [], []>} : vector<64x256xbf16>, vector<256x128xbf16>, vector<64x128xf32> -> vector<64x128xf32>
    %21 = vector.extract_strided_slice %20 {offsets = [0, 0], sizes = [32, 128], strides = [1, 1]} : vector<64x128xf32> to vector<32x128xf32>
    %cst_17 = arith.constant 0.000000e+00 : f32
    %22 = vector.broadcast %cst_17 : f32 to vector<32x128xf32>
    %cst_18 = arith.constant 0.000000e+00 : f32
    %23 = vector.broadcast %cst_18 : f32 to vector<32x128xf32>
    %c0_19 = arith.constant 0 : index
    %c0_20 = arith.constant 0 : index
    %c0_21 = arith.constant 0 : index
    %c0_22 = arith.constant 0 : index
    %24 = vector.load %arg5[%c0_19, %c0_20, %c0_21, %c0_22] : memref<3x32x32x128xbf16, #tpu.memory_space<vmem>>, vector<1x8x32x128xbf16>
    %25 = vector.shape_cast %24 : vector<1x8x32x128xbf16> to vector<8x32x128xbf16>
    %26 = arith.extf %25 : vector<8x32x128xbf16> to vector<8x32x128xf32>
    %27 = vector.extract_strided_slice %21 {offsets = [0, 0], sizes = [8, 128], strides = [1, 1]} : vector<32x128xf32> to vector<8x128xf32>
    %28 = vector.shape_cast %27 : vector<8x128xf32> to vector<8x1x128xf32>
    %29 = vector.broadcast %28 : vector<8x1x128xf32> to vector<8x32x128xf32>
    %30 = arith.mulf %29, %26 : vector<8x32x128xf32>
    %31 = vector.extract_strided_slice %30 {offsets = [0, 0, 0], sizes = [4, 32, 128], strides = [1, 1, 1]} : vector<8x32x128xf32> to vector<4x32x128xf32>
    %32 = vector.extract_strided_slice %30 {offsets = [4, 0, 0], sizes = [4, 32, 128], strides = [1, 1, 1]} : vector<8x32x128xf32> to vector<4x32x128xf32>
    %33 = arith.addf %31, %32 : vector<4x32x128xf32>
    %34 = vector.extract_strided_slice %33 {offsets = [0, 0, 0], sizes = [2, 32, 128], strides = [1, 1, 1]} : vector<4x32x128xf32> to vector<2x32x128xf32>
    %35 = vector.extract_strided_slice %33 {offsets = [2, 0, 0], sizes = [2, 32, 128], strides = [1, 1, 1]} : vector<4x32x128xf32> to vector<2x32x128xf32>
    %36 = arith.addf %34, %35 : vector<2x32x128xf32>
    %37 = vector.extract_strided_slice %36 {offsets = [0, 0, 0], sizes = [1, 32, 128], strides = [1, 1, 1]} : vector<2x32x128xf32> to vector<1x32x128xf32>
    %38 = vector.extract_strided_slice %36 {offsets = [1, 0, 0], sizes = [1, 32, 128], strides = [1, 1, 1]} : vector<2x32x128xf32> to vector<1x32x128xf32>
    %39 = arith.addf %37, %38 : vector<1x32x128xf32>
    %40 = vector.shape_cast %39 : vector<1x32x128xf32> to vector<32x128xf32>
    %41 = arith.addf %22, %40 : vector<32x128xf32>
    %c0_23 = arith.constant 0 : index
    %c8 = arith.constant 8 : index
    %c0_24 = arith.constant 0 : index
    %c0_25 = arith.constant 0 : index
    %42 = vector.load %arg5[%c0_23, %c8, %c0_24, %c0_25] : memref<3x32x32x128xbf16, #tpu.memory_space<vmem>>, vector<1x8x32x128xbf16>
    %43 = vector.shape_cast %42 : vector<1x8x32x128xbf16> to vector<8x32x128xbf16>
    %44 = arith.extf %43 : vector<8x32x128xbf16> to vector<8x32x128xf32>
    %45 = vector.extract_strided_slice %21 {offsets = [8, 0], sizes = [8, 128], strides = [1, 1]} : vector<32x128xf32> to vector<8x128xf32>
    %46 = vector.shape_cast %45 : vector<8x128xf32> to vector<8x1x128xf32>
    %47 = vector.broadcast %46 : vector<8x1x128xf32> to vector<8x32x128xf32>
    %48 = arith.mulf %47, %44 : vector<8x32x128xf32>
    %49 = vector.extract_strided_slice %48 {offsets = [0, 0, 0], sizes = [4, 32, 128], strides = [1, 1, 1]} : vector<8x32x128xf32> to vector<4x32x128xf32>
    %50 = vector.extract_strided_slice %48 {offsets = [4, 0, 0], sizes = [4, 32, 128], strides = [1, 1, 1]} : vector<8x32x128xf32> to vector<4x32x128xf32>
    %51 = arith.addf %49, %50 : vector<4x32x128xf32>
    %52 = vector.extract_strided_slice %51 {offsets = [0, 0, 0], sizes = [2, 32, 128], strides = [1, 1, 1]} : vector<4x32x128xf32> to vector<2x32x128xf32>
    %53 = vector.extract_strided_slice %51 {offsets = [2, 0, 0], sizes = [2, 32, 128], strides = [1, 1, 1]} : vector<4x32x128xf32> to vector<2x32x128xf32>
    %54 = arith.addf %52, %53 : vector<2x32x128xf32>
    %55 = vector.extract_strided_slice %54 {offsets = [0, 0, 0], sizes = [1, 32, 128], strides = [1, 1, 1]} : vector<2x32x128xf32> to vector<1x32x128xf32>
    %56 = vector.extract_strided_slice %54 {offsets = [1, 0, 0], sizes = [1, 32, 128], strides = [1, 1, 1]} : vector<2x32x128xf32> to vector<1x32x128xf32>
    %57 = arith.addf %55, %56 : vector<1x32x128xf32>
    %58 = vector.shape_cast %57 : vector<1x32x128xf32> to vector<32x128xf32>
    %59 = arith.addf %23, %58 : vector<32x128xf32>
    %c0_26 = arith.constant 0 : index
    %c16 = arith.constant 16 : index
    %c0_27 = arith.constant 0 : index
    %c0_28 = arith.constant 0 : index
    %60 = vector.load %arg5[%c0_26, %c16, %c0_27, %c0_28] : memref<3x32x32x128xbf16, #tpu.memory_space<vmem>>, vector<1x8x32x128xbf16>
    %61 = vector.shape_cast %60 : vector<1x8x32x128xbf16> to vector<8x32x128xbf16>
    %62 = arith.extf %61 : vector<8x32x128xbf16> to vector<8x32x128xf32>
    %63 = vector.extract_strided_slice %21 {offsets = [16, 0], sizes = [8, 128], strides = [1, 1]} : vector<32x128xf32> to vector<8x128xf32>
    %64 = vector.shape_cast %63 : vector<8x128xf32> to vector<8x1x128xf32>
    %65 = vector.broadcast %64 : vector<8x1x128xf32> to vector<8x32x128xf32>
    %66 = arith.mulf %65, %62 : vector<8x32x128xf32>
    %67 = vector.extract_strided_slice %66 {offsets = [0, 0, 0], sizes = [4, 32, 128], strides = [1, 1, 1]} : vector<8x32x128xf32> to vector<4x32x128xf32>
    %68 = vector.extract_strided_slice %66 {offsets = [4, 0, 0], sizes = [4, 32, 128], strides = [1, 1, 1]} : vector<8x32x128xf32> to vector<4x32x128xf32>
    %69 = arith.addf %67, %68 : vector<4x32x128xf32>
    %70 = vector.extract_strided_slice %69 {offsets = [0, 0, 0], sizes = [2, 32, 128], strides = [1, 1, 1]} : vector<4x32x128xf32> to vector<2x32x128xf32>
    %71 = vector.extract_strided_slice %69 {offsets = [2, 0, 0], sizes = [2, 32, 128], strides = [1, 1, 1]} : vector<4x32x128xf32> to vector<2x32x128xf32>
    %72 = arith.addf %70, %71 : vector<2x32x128xf32>
    %73 = vector.extract_strided_slice %72 {offsets = [0, 0, 0], sizes = [1, 32, 128], strides = [1, 1, 1]} : vector<2x32x128xf32> to vector<1x32x128xf32>
    %74 = vector.extract_strided_slice %72 {offsets = [1, 0, 0], sizes = [1, 32, 128], strides = [1, 1, 1]} : vector<2x32x128xf32> to vector<1x32x128xf32>
    %75 = arith.addf %73, %74 : vector<1x32x128xf32>
    %76 = vector.shape_cast %75 : vector<1x32x128xf32> to vector<32x128xf32>
    %77 = arith.addf %41, %76 : vector<32x128xf32>
    %c0_29 = arith.constant 0 : index
    %c24 = arith.constant 24 : index
    %c0_30 = arith.constant 0 : index
    %c0_31 = arith.constant 0 : index
    %78 = vector.load %arg5[%c0_29, %c24, %c0_30, %c0_31] : memref<3x32x32x128xbf16, #tpu.memory_space<vmem>>, vector<1x8x32x128xbf16>
    %79 = vector.shape_cast %78 : vector<1x8x32x128xbf16> to vector<8x32x128xbf16>
    %80 = arith.extf %79 : vector<8x32x128xbf16> to vector<8x32x128xf32>
    %81 = vector.extract_strided_slice %21 {offsets = [24, 0], sizes = [8, 128], strides = [1, 1]} : vector<32x128xf32> to vector<8x128xf32>
    %82 = vector.shape_cast %81 : vector<8x128xf32> to vector<8x1x128xf32>
    %83 = vector.broadcast %82 : vector<8x1x128xf32> to vector<8x32x128xf32>
    %84 = arith.mulf %83, %80 : vector<8x32x128xf32>
    %85 = vector.extract_strided_slice %84 {offsets = [0, 0, 0], sizes = [4, 32, 128], strides = [1, 1, 1]} : vector<8x32x128xf32> to vector<4x32x128xf32>
    %86 = vector.extract_strided_slice %84 {offsets = [4, 0, 0], sizes = [4, 32, 128], strides = [1, 1, 1]} : vector<8x32x128xf32> to vector<4x32x128xf32>
    %87 = arith.addf %85, %86 : vector<4x32x128xf32>
    %88 = vector.extract_strided_slice %87 {offsets = [0, 0, 0], sizes = [2, 32, 128], strides = [1, 1, 1]} : vector<4x32x128xf32> to vector<2x32x128xf32>
    %89 = vector.extract_strided_slice %87 {offsets = [2, 0, 0], sizes = [2, 32, 128], strides = [1, 1, 1]} : vector<4x32x128xf32> to vector<2x32x128xf32>
    %90 = arith.addf %88, %89 : vector<2x32x128xf32>
    %91 = vector.extract_strided_slice %90 {offsets = [0, 0, 0], sizes = [1, 32, 128], strides = [1, 1, 1]} : vector<2x32x128xf32> to vector<1x32x128xf32>
    %92 = vector.extract_strided_slice %90 {offsets = [1, 0, 0], sizes = [1, 32, 128], strides = [1, 1, 1]} : vector<2x32x128xf32> to vector<1x32x128xf32>
    %93 = arith.addf %91, %92 : vector<1x32x128xf32>
    %94 = vector.shape_cast %93 : vector<1x32x128xf32> to vector<32x128xf32>
    %95 = arith.addf %59, %94 : vector<32x128xf32>
    %96 = arith.addf %77, %95 : vector<32x128xf32>
    %97 = vector.extract_strided_slice %20 {offsets = [32, 0], sizes = [32, 128], strides = [1, 1]} : vector<64x128xf32> to vector<32x128xf32>
    %cst_32 = arith.constant 0.000000e+00 : f32
    %98 = vector.broadcast %cst_32 : f32 to vector<32x128xf32>
    %cst_33 = arith.constant 0.000000e+00 : f32
    %99 = vector.broadcast %cst_33 : f32 to vector<32x128xf32>
    %c0_34 = arith.constant 0 : index
    %c0_35 = arith.constant 0 : index
    %c0_36 = arith.constant 0 : index
    %c0_37 = arith.constant 0 : index
    %100 = vector.load %arg5[%c0_34, %c0_35, %c0_36, %c0_37] : memref<3x32x32x128xbf16, #tpu.memory_space<vmem>>, vector<1x8x32x128xbf16>
    %101 = vector.shape_cast %100 : vector<1x8x32x128xbf16> to vector<8x32x128xbf16>
    %102 = arith.extf %101 : vector<8x32x128xbf16> to vector<8x32x128xf32>
    %103 = vector.extract_strided_slice %97 {offsets = [0, 0], sizes = [8, 128], strides = [1, 1]} : vector<32x128xf32> to vector<8x128xf32>
    %104 = vector.shape_cast %103 : vector<8x128xf32> to vector<8x1x128xf32>
    %105 = vector.broadcast %104 : vector<8x1x128xf32> to vector<8x32x128xf32>
    %106 = arith.mulf %105, %102 : vector<8x32x128xf32>
    %107 = vector.extract_strided_slice %106 {offsets = [0, 0, 0], sizes = [4, 32, 128], strides = [1, 1, 1]} : vector<8x32x128xf32> to vector<4x32x128xf32>
    %108 = vector.extract_strided_slice %106 {offsets = [4, 0, 0], sizes = [4, 32, 128], strides = [1, 1, 1]} : vector<8x32x128xf32> to vector<4x32x128xf32>
    %109 = arith.addf %107, %108 : vector<4x32x128xf32>
    %110 = vector.extract_strided_slice %109 {offsets = [0, 0, 0], sizes = [2, 32, 128], strides = [1, 1, 1]} : vector<4x32x128xf32> to vector<2x32x128xf32>
    %111 = vector.extract_strided_slice %109 {offsets = [2, 0, 0], sizes = [2, 32, 128], strides = [1, 1, 1]} : vector<4x32x128xf32> to vector<2x32x128xf32>
    %112 = arith.addf %110, %111 : vector<2x32x128xf32>
    %113 = vector.extract_strided_slice %112 {offsets = [0, 0, 0], sizes = [1, 32, 128], strides = [1, 1, 1]} : vector<2x32x128xf32> to vector<1x32x128xf32>
    %114 = vector.extract_strided_slice %112 {offsets = [1, 0, 0], sizes = [1, 32, 128], strides = [1, 1, 1]} : vector<2x32x128xf32> to vector<1x32x128xf32>
    %115 = arith.addf %113, %114 : vector<1x32x128xf32>
    %116 = vector.shape_cast %115 : vector<1x32x128xf32> to vector<32x128xf32>
    %117 = arith.addf %98, %116 : vector<32x128xf32>
    %c0_38 = arith.constant 0 : index
    %c8_39 = arith.constant 8 : index
    %c0_40 = arith.constant 0 : index
    %c0_41 = arith.constant 0 : index
    %118 = vector.load %arg5[%c0_38, %c8_39, %c0_40, %c0_41] : memref<3x32x32x128xbf16, #tpu.memory_space<vmem>>, vector<1x8x32x128xbf16>
    %119 = vector.shape_cast %118 : vector<1x8x32x128xbf16> to vector<8x32x128xbf16>
    %120 = arith.extf %119 : vector<8x32x128xbf16> to vector<8x32x128xf32>
    %121 = vector.extract_strided_slice %97 {offsets = [8, 0], sizes = [8, 128], strides = [1, 1]} : vector<32x128xf32> to vector<8x128xf32>
    %122 = vector.shape_cast %121 : vector<8x128xf32> to vector<8x1x128xf32>
    %123 = vector.broadcast %122 : vector<8x1x128xf32> to vector<8x32x128xf32>
    %124 = arith.mulf %123, %120 : vector<8x32x128xf32>
    %125 = vector.extract_strided_slice %124 {offsets = [0, 0, 0], sizes = [4, 32, 128], strides = [1, 1, 1]} : vector<8x32x128xf32> to vector<4x32x128xf32>
    %126 = vector.extract_strided_slice %124 {offsets = [4, 0, 0], sizes = [4, 32, 128], strides = [1, 1, 1]} : vector<8x32x128xf32> to vector<4x32x128xf32>
    %127 = arith.addf %125, %126 : vector<4x32x128xf32>
    %128 = vector.extract_strided_slice %127 {offsets = [0, 0, 0], sizes = [2, 32, 128], strides = [1, 1, 1]} : vector<4x32x128xf32> to vector<2x32x128xf32>
    %129 = vector.extract_strided_slice %127 {offsets = [2, 0, 0], sizes = [2, 32, 128], strides = [1, 1, 1]} : vector<4x32x128xf32> to vector<2x32x128xf32>
    %130 = arith.addf %128, %129 : vector<2x32x128xf32>
    %131 = vector.extract_strided_slice %130 {offsets = [0, 0, 0], sizes = [1, 32, 128], strides = [1, 1, 1]} : vector<2x32x128xf32> to vector<1x32x128xf32>
    %132 = vector.extract_strided_slice %130 {offsets = [1, 0, 0], sizes = [1, 32, 128], strides = [1, 1, 1]} : vector<2x32x128xf32> to vector<1x32x128xf32>
    %133 = arith.addf %131, %132 : vector<1x32x128xf32>
    %134 = vector.shape_cast %133 : vector<1x32x128xf32> to vector<32x128xf32>
    %135 = arith.addf %99, %134 : vector<32x128xf32>
    %c0_42 = arith.constant 0 : index
    %c16_43 = arith.constant 16 : index
    %c0_44 = arith.constant 0 : index
    %c0_45 = arith.constant 0 : index
    %136 = vector.load %arg5[%c0_42, %c16_43, %c0_44, %c0_45] : memref<3x32x32x128xbf16, #tpu.memory_space<vmem>>, vector<1x8x32x128xbf16>
    %137 = vector.shape_cast %136 : vector<1x8x32x128xbf16> to vector<8x32x128xbf16>
    %138 = arith.extf %137 : vector<8x32x128xbf16> to vector<8x32x128xf32>
    %139 = vector.extract_strided_slice %97 {offsets = [16, 0], sizes = [8, 128], strides = [1, 1]} : vector<32x128xf32> to vector<8x128xf32>
    %140 = vector.shape_cast %139 : vector<8x128xf32> to vector<8x1x128xf32>
    %141 = vector.broadcast %140 : vector<8x1x128xf32> to vector<8x32x128xf32>
    %142 = arith.mulf %141, %138 : vector<8x32x128xf32>
    %143 = vector.extract_strided_slice %142 {offsets = [0, 0, 0], sizes = [4, 32, 128], strides = [1, 1, 1]} : vector<8x32x128xf32> to vector<4x32x128xf32>
    %144 = vector.extract_strided_slice %142 {offsets = [4, 0, 0], sizes = [4, 32, 128], strides = [1, 1, 1]} : vector<8x32x128xf32> to vector<4x32x128xf32>
    %145 = arith.addf %143, %144 : vector<4x32x128xf32>
    %146 = vector.extract_strided_slice %145 {offsets = [0, 0, 0], sizes = [2, 32, 128], strides = [1, 1, 1]} : vector<4x32x128xf32> to vector<2x32x128xf32>
    %147 = vector.extract_strided_slice %145 {offsets = [2, 0, 0], sizes = [2, 32, 128], strides = [1, 1, 1]} : vector<4x32x128xf32> to vector<2x32x128xf32>
    %148 = arith.addf %146, %147 : vector<2x32x128xf32>
    %149 = vector.extract_strided_slice %148 {offsets = [0, 0, 0], sizes = [1, 32, 128], strides = [1, 1, 1]} : vector<2x32x128xf32> to vector<1x32x128xf32>
    %150 = vector.extract_strided_slice %148 {offsets = [1, 0, 0], sizes = [1, 32, 128], strides = [1, 1, 1]} : vector<2x32x128xf32> to vector<1x32x128xf32>
    %151 = arith.addf %149, %150 : vector<1x32x128xf32>
    %152 = vector.shape_cast %151 : vector<1x32x128xf32> to vector<32x128xf32>
    %153 = arith.addf %117, %152 : vector<32x128xf32>
    %c0_46 = arith.constant 0 : index
    %c24_47 = arith.constant 24 : index
    %c0_48 = arith.constant 0 : index
    %c0_49 = arith.constant 0 : index
    %154 = vector.load %arg5[%c0_46, %c24_47, %c0_48, %c0_49] : memref<3x32x32x128xbf16, #tpu.memory_space<vmem>>, vector<1x8x32x128xbf16>
    %155 = vector.shape_cast %154 : vector<1x8x32x128xbf16> to vector<8x32x128xbf16>
    %156 = arith.extf %155 : vector<8x32x128xbf16> to vector<8x32x128xf32>
    %157 = vector.extract_strided_slice %97 {offsets = [24, 0], sizes = [8, 128], strides = [1, 1]} : vector<32x128xf32> to vector<8x128xf32>
    %158 = vector.shape_cast %157 : vector<8x128xf32> to vector<8x1x128xf32>
    %159 = vector.broadcast %158 : vector<8x1x128xf32> to vector<8x32x128xf32>
    %160 = arith.mulf %159, %156 : vector<8x32x128xf32>
    %161 = vector.extract_strided_slice %160 {offsets = [0, 0, 0], sizes = [4, 32, 128], strides = [1, 1, 1]} : vector<8x32x128xf32> to vector<4x32x128xf32>
    %162 = vector.extract_strided_slice %160 {offsets = [4, 0, 0], sizes = [4, 32, 128], strides = [1, 1, 1]} : vector<8x32x128xf32> to vector<4x32x128xf32>
    %163 = arith.addf %161, %162 : vector<4x32x128xf32>
    %164 = vector.extract_strided_slice %163 {offsets = [0, 0, 0], sizes = [2, 32, 128], strides = [1, 1, 1]} : vector<4x32x128xf32> to vector<2x32x128xf32>
    %165 = vector.extract_strided_slice %163 {offsets = [2, 0, 0], sizes = [2, 32, 128], strides = [1, 1, 1]} : vector<4x32x128xf32> to vector<2x32x128xf32>
    %166 = arith.addf %164, %165 : vector<2x32x128xf32>
    %167 = vector.extract_strided_slice %166 {offsets = [0, 0, 0], sizes = [1, 32, 128], strides = [1, 1, 1]} : vector<2x32x128xf32> to vector<1x32x128xf32>
    %168 = vector.extract_strided_slice %166 {offsets = [1, 0, 0], sizes = [1, 32, 128], strides = [1, 1, 1]} : vector<2x32x128xf32> to vector<1x32x128xf32>
    %169 = arith.addf %167, %168 : vector<1x32x128xf32>
    %170 = vector.shape_cast %169 : vector<1x32x128xf32> to vector<32x128xf32>
    %171 = arith.addf %135, %170 : vector<32x128xf32>
    %172 = arith.addf %153, %171 : vector<32x128xf32>
    %173 = tpu.concatenate %96, %172 in 0 : vector<32x128xf32>, vector<32x128xf32> -> vector<64x128xf32>
    %174 = arith.truncf %173 : vector<64x128xf32> to vector<64x128xbf16>
    %c0_50 = arith.constant 0 : index
    %c0_51 = arith.constant 0 : index
    %c0_52 = arith.constant 0 : index
    %175 = vector.load %arg6[%c0_50, %c0_51, %c0_52] : memref<3x128x256xbf16, #tpu.memory_space<vmem>>, vector<1x128x256xbf16>
    %176 = vector.shape_cast %175 : vector<1x128x256xbf16> to vector<128x256xbf16>
    %cst_53 = arith.constant dense<0.000000e+00> : vector<64x256xf32>
    %177 = tpu.matmul %174, %176, %cst_53 {dimension_numbers = #tpu.dot_dimension_numbers<[1], [0], [0], [1], [0, 0, 1, 1], [], []>} : vector<64x128xbf16>, vector<128x256xbf16>, vector<64x256xf32> -> vector<64x256xf32>
    %c0_54 = arith.constant 0 : index
    %c0_55 = arith.constant 0 : index
    %c0_56 = arith.constant 0 : index
    %178 = vector.load %arg7[%c0_54, %c0_55, %c0_56] : memref<3x32x32xbf16, #tpu.memory_space<vmem>>, vector<1x32x32xbf16>
    %179 = vector.shape_cast %178 : vector<1x32x32xbf16> to vector<32x32xbf16>
    %180 = vector.extract_strided_slice %17 {offsets = [0, 0], sizes = [32, 256], strides = [1, 1]} : vector<64x256xbf16> to vector<32x256xbf16>
    %cst_57 = arith.constant dense<0.000000e+00> : vector<32x256xf32>
    %181 = tpu.matmul %179, %180, %cst_57 {dimension_numbers = #tpu.dot_dimension_numbers<[1], [0], [0], [1], [0, 0, 1, 1], [], []>} : vector<32x32xbf16>, vector<32x256xbf16>, vector<32x256xf32> -> vector<32x256xf32>
    %c0_58 = arith.constant 0 : index
    %c0_59 = arith.constant 0 : index
    %c0_60 = arith.constant 0 : index
    %182 = vector.load %arg8[%c0_58, %c0_59, %c0_60] : memref<3x32x1xf32, #tpu.memory_space<vmem>>, vector<1x32x1xf32>
    %183 = vector.shape_cast %182 : vector<1x32x1xf32> to vector<32x1xf32>
    %184 = vector.broadcast %183 : vector<32x1xf32> to vector<32x256xf32>
    %185 = arith.addf %181, %184 : vector<32x256xf32>
    %c0_61 = arith.constant 0 : index
    %c0_62 = arith.constant 0 : index
    %c0_63 = arith.constant 0 : index
    %186 = vector.load %arg7[%c0_61, %c0_62, %c0_63] : memref<3x32x32xbf16, #tpu.memory_space<vmem>>, vector<1x32x32xbf16>
    %187 = vector.shape_cast %186 : vector<1x32x32xbf16> to vector<32x32xbf16>
    %188 = vector.extract_strided_slice %17 {offsets = [32, 0], sizes = [32, 256], strides = [1, 1]} : vector<64x256xbf16> to vector<32x256xbf16>
    %cst_64 = arith.constant dense<0.000000e+00> : vector<32x256xf32>
    %189 = tpu.matmul %187, %188, %cst_64 {dimension_numbers = #tpu.dot_dimension_numbers<[1], [0], [0], [1], [0, 0, 1, 1], [], []>} : vector<32x32xbf16>, vector<32x256xbf16>, vector<32x256xf32> -> vector<32x256xf32>
    %c0_65 = arith.constant 0 : index
    %c0_66 = arith.constant 0 : index
    %c0_67 = arith.constant 0 : index
    %190 = vector.load %arg8[%c0_65, %c0_66, %c0_67] : memref<3x32x1xf32, #tpu.memory_space<vmem>>, vector<1x32x1xf32>
    %191 = vector.shape_cast %190 : vector<1x32x1xf32> to vector<32x1xf32>
    %192 = vector.broadcast %191 : vector<32x1xf32> to vector<32x256xf32>
    %193 = arith.addf %189, %192 : vector<32x256xf32>
    %194 = tpu.concatenate %185, %193 in 0 : vector<32x256xf32>, vector<32x256xf32> -> vector<64x256xf32>
    %195 = arith.addf %177, %194 : vector<64x256xf32>
    %196 = math.tanh %195 : vector<64x256xf32>
    %197 = arith.truncf %196 : vector<64x256xf32> to vector<64x256xbf16>
    %c1_68 = arith.constant 1 : index
    %c0_69 = arith.constant 0 : index
    %c0_70 = arith.constant 0 : index
    %198 = vector.load %arg4[%c1_68, %c0_69, %c0_70] : memref<3x256x128xbf16, #tpu.memory_space<vmem>>, vector<1x256x128xbf16>
    %199 = vector.shape_cast %198 : vector<1x256x128xbf16> to vector<256x128xbf16>
    %cst_71 = arith.constant dense<0.000000e+00> : vector<64x128xf32>
    %200 = tpu.matmul %197, %199, %cst_71 {dimension_numbers = #tpu.dot_dimension_numbers<[1], [0], [0], [1], [0, 0, 1, 1], [], []>} : vector<64x256xbf16>, vector<256x128xbf16>, vector<64x128xf32> -> vector<64x128xf32>
    %201 = vector.extract_strided_slice %200 {offsets = [0, 0], sizes = [32, 128], strides = [1, 1]} : vector<64x128xf32> to vector<32x128xf32>
    %cst_72 = arith.constant 0.000000e+00 : f32
    %202 = vector.broadcast %cst_72 : f32 to vector<32x128xf32>
    %cst_73 = arith.constant 0.000000e+00 : f32
    %203 = vector.broadcast %cst_73 : f32 to vector<32x128xf32>
    %c1_74 = arith.constant 1 : index
    %c0_75 = arith.constant 0 : index
    %c0_76 = arith.constant 0 : index
    %c0_77 = arith.constant 0 : index
    %204 = vector.load %arg5[%c1_74, %c0_75, %c0_76, %c0_77] : memref<3x32x32x128xbf16, #tpu.memory_space<vmem>>, vector<1x8x32x128xbf16>
    %205 = vector.shape_cast %204 : vector<1x8x32x128xbf16> to vector<8x32x128xbf16>
    %206 = arith.extf %205 : vector<8x32x128xbf16> to vector<8x32x128xf32>
    %207 = vector.extract_strided_slice %201 {offsets = [0, 0], sizes = [8, 128], strides = [1, 1]} : vector<32x128xf32> to vector<8x128xf32>
    %208 = vector.shape_cast %207 : vector<8x128xf32> to vector<8x1x128xf32>
    %209 = vector.broadcast %208 : vector<8x1x128xf32> to vector<8x32x128xf32>
    %210 = arith.mulf %209, %206 : vector<8x32x128xf32>
    %211 = vector.extract_strided_slice %210 {offsets = [0, 0, 0], sizes = [4, 32, 128], strides = [1, 1, 1]} : vector<8x32x128xf32> to vector<4x32x128xf32>
    %212 = vector.extract_strided_slice %210 {offsets = [4, 0, 0], sizes = [4, 32, 128], strides = [1, 1, 1]} : vector<8x32x128xf32> to vector<4x32x128xf32>
    %213 = arith.addf %211, %212 : vector<4x32x128xf32>
    %214 = vector.extract_strided_slice %213 {offsets = [0, 0, 0], sizes = [2, 32, 128], strides = [1, 1, 1]} : vector<4x32x128xf32> to vector<2x32x128xf32>
    %215 = vector.extract_strided_slice %213 {offsets = [2, 0, 0], sizes = [2, 32, 128], strides = [1, 1, 1]} : vector<4x32x128xf32> to vector<2x32x128xf32>
    %216 = arith.addf %214, %215 : vector<2x32x128xf32>
    %217 = vector.extract_strided_slice %216 {offsets = [0, 0, 0], sizes = [1, 32, 128], strides = [1, 1, 1]} : vector<2x32x128xf32> to vector<1x32x128xf32>
    %218 = vector.extract_strided_slice %216 {offsets = [1, 0, 0], sizes = [1, 32, 128], strides = [1, 1, 1]} : vector<2x32x128xf32> to vector<1x32x128xf32>
    %219 = arith.addf %217, %218 : vector<1x32x128xf32>
    %220 = vector.shape_cast %219 : vector<1x32x128xf32> to vector<32x128xf32>
    %221 = arith.addf %202, %220 : vector<32x128xf32>
    %c1_78 = arith.constant 1 : index
    %c8_79 = arith.constant 8 : index
    %c0_80 = arith.constant 0 : index
    %c0_81 = arith.constant 0 : index
    %222 = vector.load %arg5[%c1_78, %c8_79, %c0_80, %c0_81] : memref<3x32x32x128xbf16, #tpu.memory_space<vmem>>, vector<1x8x32x128xbf16>
    %223 = vector.shape_cast %222 : vector<1x8x32x128xbf16> to vector<8x32x128xbf16>
    %224 = arith.extf %223 : vector<8x32x128xbf16> to vector<8x32x128xf32>
    %225 = vector.extract_strided_slice %201 {offsets = [8, 0], sizes = [8, 128], strides = [1, 1]} : vector<32x128xf32> to vector<8x128xf32>
    %226 = vector.shape_cast %225 : vector<8x128xf32> to vector<8x1x128xf32>
    %227 = vector.broadcast %226 : vector<8x1x128xf32> to vector<8x32x128xf32>
    %228 = arith.mulf %227, %224 : vector<8x32x128xf32>
    %229 = vector.extract_strided_slice %228 {offsets = [0, 0, 0], sizes = [4, 32, 128], strides = [1, 1, 1]} : vector<8x32x128xf32> to vector<4x32x128xf32>
    %230 = vector.extract_strided_slice %228 {offsets = [4, 0, 0], sizes = [4, 32, 128], strides = [1, 1, 1]} : vector<8x32x128xf32> to vector<4x32x128xf32>
    %231 = arith.addf %229, %230 : vector<4x32x128xf32>
    %232 = vector.extract_strided_slice %231 {offsets = [0, 0, 0], sizes = [2, 32, 128], strides = [1, 1, 1]} : vector<4x32x128xf32> to vector<2x32x128xf32>
    %233 = vector.extract_strided_slice %231 {offsets = [2, 0, 0], sizes = [2, 32, 128], strides = [1, 1, 1]} : vector<4x32x128xf32> to vector<2x32x128xf32>
    %234 = arith.addf %232, %233 : vector<2x32x128xf32>
    %235 = vector.extract_strided_slice %234 {offsets = [0, 0, 0], sizes = [1, 32, 128], strides = [1, 1, 1]} : vector<2x32x128xf32> to vector<1x32x128xf32>
    %236 = vector.extract_strided_slice %234 {offsets = [1, 0, 0], sizes = [1, 32, 128], strides = [1, 1, 1]} : vector<2x32x128xf32> to vector<1x32x128xf32>
    %237 = arith.addf %235, %236 : vector<1x32x128xf32>
    %238 = vector.shape_cast %237 : vector<1x32x128xf32> to vector<32x128xf32>
    %239 = arith.addf %203, %238 : vector<32x128xf32>
    %c1_82 = arith.constant 1 : index
    %c16_83 = arith.constant 16 : index
    %c0_84 = arith.constant 0 : index
    %c0_85 = arith.constant 0 : index
    %240 = vector.load %arg5[%c1_82, %c16_83, %c0_84, %c0_85] : memref<3x32x32x128xbf16, #tpu.memory_space<vmem>>, vector<1x8x32x128xbf16>
    %241 = vector.shape_cast %240 : vector<1x8x32x128xbf16> to vector<8x32x128xbf16>
    %242 = arith.extf %241 : vector<8x32x128xbf16> to vector<8x32x128xf32>
    %243 = vector.extract_strided_slice %201 {offsets = [16, 0], sizes = [8, 128], strides = [1, 1]} : vector<32x128xf32> to vector<8x128xf32>
    %244 = vector.shape_cast %243 : vector<8x128xf32> to vector<8x1x128xf32>
    %245 = vector.broadcast %244 : vector<8x1x128xf32> to vector<8x32x128xf32>
    %246 = arith.mulf %245, %242 : vector<8x32x128xf32>
    %247 = vector.extract_strided_slice %246 {offsets = [0, 0, 0], sizes = [4, 32, 128], strides = [1, 1, 1]} : vector<8x32x128xf32> to vector<4x32x128xf32>
    %248 = vector.extract_strided_slice %246 {offsets = [4, 0, 0], sizes = [4, 32, 128], strides = [1, 1, 1]} : vector<8x32x128xf32> to vector<4x32x128xf32>
    %249 = arith.addf %247, %248 : vector<4x32x128xf32>
    %250 = vector.extract_strided_slice %249 {offsets = [0, 0, 0], sizes = [2, 32, 128], strides = [1, 1, 1]} : vector<4x32x128xf32> to vector<2x32x128xf32>
    %251 = vector.extract_strided_slice %249 {offsets = [2, 0, 0], sizes = [2, 32, 128], strides = [1, 1, 1]} : vector<4x32x128xf32> to vector<2x32x128xf32>
    %252 = arith.addf %250, %251 : vector<2x32x128xf32>
    %253 = vector.extract_strided_slice %252 {offsets = [0, 0, 0], sizes = [1, 32, 128], strides = [1, 1, 1]} : vector<2x32x128xf32> to vector<1x32x128xf32>
    %254 = vector.extract_strided_slice %252 {offsets = [1, 0, 0], sizes = [1, 32, 128], strides = [1, 1, 1]} : vector<2x32x128xf32> to vector<1x32x128xf32>
    %255 = arith.addf %253, %254 : vector<1x32x128xf32>
    %256 = vector.shape_cast %255 : vector<1x32x128xf32> to vector<32x128xf32>
    %257 = arith.addf %221, %256 : vector<32x128xf32>
    %c1_86 = arith.constant 1 : index
    %c24_87 = arith.constant 24 : index
    %c0_88 = arith.constant 0 : index
    %c0_89 = arith.constant 0 : index
    %258 = vector.load %arg5[%c1_86, %c24_87, %c0_88, %c0_89] : memref<3x32x32x128xbf16, #tpu.memory_space<vmem>>, vector<1x8x32x128xbf16>
    %259 = vector.shape_cast %258 : vector<1x8x32x128xbf16> to vector<8x32x128xbf16>
    %260 = arith.extf %259 : vector<8x32x128xbf16> to vector<8x32x128xf32>
    %261 = vector.extract_strided_slice %201 {offsets = [24, 0], sizes = [8, 128], strides = [1, 1]} : vector<32x128xf32> to vector<8x128xf32>
    %262 = vector.shape_cast %261 : vector<8x128xf32> to vector<8x1x128xf32>
    %263 = vector.broadcast %262 : vector<8x1x128xf32> to vector<8x32x128xf32>
    %264 = arith.mulf %263, %260 : vector<8x32x128xf32>
    %265 = vector.extract_strided_slice %264 {offsets = [0, 0, 0], sizes = [4, 32, 128], strides = [1, 1, 1]} : vector<8x32x128xf32> to vector<4x32x128xf32>
    %266 = vector.extract_strided_slice %264 {offsets = [4, 0, 0], sizes = [4, 32, 128], strides = [1, 1, 1]} : vector<8x32x128xf32> to vector<4x32x128xf32>
    %267 = arith.addf %265, %266 : vector<4x32x128xf32>
    %268 = vector.extract_strided_slice %267 {offsets = [0, 0, 0], sizes = [2, 32, 128], strides = [1, 1, 1]} : vector<4x32x128xf32> to vector<2x32x128xf32>
    %269 = vector.extract_strided_slice %267 {offsets = [2, 0, 0], sizes = [2, 32, 128], strides = [1, 1, 1]} : vector<4x32x128xf32> to vector<2x32x128xf32>
    %270 = arith.addf %268, %269 : vector<2x32x128xf32>
    %271 = vector.extract_strided_slice %270 {offsets = [0, 0, 0], sizes = [1, 32, 128], strides = [1, 1, 1]} : vector<2x32x128xf32> to vector<1x32x128xf32>
    %272 = vector.extract_strided_slice %270 {offsets = [1, 0, 0], sizes = [1, 32, 128], strides = [1, 1, 1]} : vector<2x32x128xf32> to vector<1x32x128xf32>
    %273 = arith.addf %271, %272 : vector<1x32x128xf32>
    %274 = vector.shape_cast %273 : vector<1x32x128xf32> to vector<32x128xf32>
    %275 = arith.addf %239, %274 : vector<32x128xf32>
    %276 = arith.addf %257, %275 : vector<32x128xf32>
    %277 = vector.extract_strided_slice %200 {offsets = [32, 0], sizes = [32, 128], strides = [1, 1]} : vector<64x128xf32> to vector<32x128xf32>
    %cst_90 = arith.constant 0.000000e+00 : f32
    %278 = vector.broadcast %cst_90 : f32 to vector<32x128xf32>
    %cst_91 = arith.constant 0.000000e+00 : f32
    %279 = vector.broadcast %cst_91 : f32 to vector<32x128xf32>
    %c1_92 = arith.constant 1 : index
    %c0_93 = arith.constant 0 : index
    %c0_94 = arith.constant 0 : index
    %c0_95 = arith.constant 0 : index
    %280 = vector.load %arg5[%c1_92, %c0_93, %c0_94, %c0_95] : memref<3x32x32x128xbf16, #tpu.memory_space<vmem>>, vector<1x8x32x128xbf16>
    %281 = vector.shape_cast %280 : vector<1x8x32x128xbf16> to vector<8x32x128xbf16>
    %282 = arith.extf %281 : vector<8x32x128xbf16> to vector<8x32x128xf32>
    %283 = vector.extract_strided_slice %277 {offsets = [0, 0], sizes = [8, 128], strides = [1, 1]} : vector<32x128xf32> to vector<8x128xf32>
    %284 = vector.shape_cast %283 : vector<8x128xf32> to vector<8x1x128xf32>
    %285 = vector.broadcast %284 : vector<8x1x128xf32> to vector<8x32x128xf32>
    %286 = arith.mulf %285, %282 : vector<8x32x128xf32>
    %287 = vector.extract_strided_slice %286 {offsets = [0, 0, 0], sizes = [4, 32, 128], strides = [1, 1, 1]} : vector<8x32x128xf32> to vector<4x32x128xf32>
    %288 = vector.extract_strided_slice %286 {offsets = [4, 0, 0], sizes = [4, 32, 128], strides = [1, 1, 1]} : vector<8x32x128xf32> to vector<4x32x128xf32>
    %289 = arith.addf %287, %288 : vector<4x32x128xf32>
    %290 = vector.extract_strided_slice %289 {offsets = [0, 0, 0], sizes = [2, 32, 128], strides = [1, 1, 1]} : vector<4x32x128xf32> to vector<2x32x128xf32>
    %291 = vector.extract_strided_slice %289 {offsets = [2, 0, 0], sizes = [2, 32, 128], strides = [1, 1, 1]} : vector<4x32x128xf32> to vector<2x32x128xf32>
    %292 = arith.addf %290, %291 : vector<2x32x128xf32>
    %293 = vector.extract_strided_slice %292 {offsets = [0, 0, 0], sizes = [1, 32, 128], strides = [1, 1, 1]} : vector<2x32x128xf32> to vector<1x32x128xf32>
    %294 = vector.extract_strided_slice %292 {offsets = [1, 0, 0], sizes = [1, 32, 128], strides = [1, 1, 1]} : vector<2x32x128xf32> to vector<1x32x128xf32>
    %295 = arith.addf %293, %294 : vector<1x32x128xf32>
    %296 = vector.shape_cast %295 : vector<1x32x128xf32> to vector<32x128xf32>
    %297 = arith.addf %278, %296 : vector<32x128xf32>
    %c1_96 = arith.constant 1 : index
    %c8_97 = arith.constant 8 : index
    %c0_98 = arith.constant 0 : index
    %c0_99 = arith.constant 0 : index
    %298 = vector.load %arg5[%c1_96, %c8_97, %c0_98, %c0_99] : memref<3x32x32x128xbf16, #tpu.memory_space<vmem>>, vector<1x8x32x128xbf16>
    %299 = vector.shape_cast %298 : vector<1x8x32x128xbf16> to vector<8x32x128xbf16>
    %300 = arith.extf %299 : vector<8x32x128xbf16> to vector<8x32x128xf32>
    %301 = vector.extract_strided_slice %277 {offsets = [8, 0], sizes = [8, 128], strides = [1, 1]} : vector<32x128xf32> to vector<8x128xf32>
    %302 = vector.shape_cast %301 : vector<8x128xf32> to vector<8x1x128xf32>
    %303 = vector.broadcast %302 : vector<8x1x128xf32> to vector<8x32x128xf32>
    %304 = arith.mulf %303, %300 : vector<8x32x128xf32>
    %305 = vector.extract_strided_slice %304 {offsets = [0, 0, 0], sizes = [4, 32, 128], strides = [1, 1, 1]} : vector<8x32x128xf32> to vector<4x32x128xf32>
    %306 = vector.extract_strided_slice %304 {offsets = [4, 0, 0], sizes = [4, 32, 128], strides = [1, 1, 1]} : vector<8x32x128xf32> to vector<4x32x128xf32>
    %307 = arith.addf %305, %306 : vector<4x32x128xf32>
    %308 = vector.extract_strided_slice %307 {offsets = [0, 0, 0], sizes = [2, 32, 128], strides = [1, 1, 1]} : vector<4x32x128xf32> to vector<2x32x128xf32>
    %309 = vector.extract_strided_slice %307 {offsets = [2, 0, 0], sizes = [2, 32, 128], strides = [1, 1, 1]} : vector<4x32x128xf32> to vector<2x32x128xf32>
    %310 = arith.addf %308, %309 : vector<2x32x128xf32>
    %311 = vector.extract_strided_slice %310 {offsets = [0, 0, 0], sizes = [1, 32, 128], strides = [1, 1, 1]} : vector<2x32x128xf32> to vector<1x32x128xf32>
    %312 = vector.extract_strided_slice %310 {offsets = [1, 0, 0], sizes = [1, 32, 128], strides = [1, 1, 1]} : vector<2x32x128xf32> to vector<1x32x128xf32>
    %313 = arith.addf %311, %312 : vector<1x32x128xf32>
    %314 = vector.shape_cast %313 : vector<1x32x128xf32> to vector<32x128xf32>
    %315 = arith.addf %279, %314 : vector<32x128xf32>
    %c1_100 = arith.constant 1 : index
    %c16_101 = arith.constant 16 : index
    %c0_102 = arith.constant 0 : index
    %c0_103 = arith.constant 0 : index
    %316 = vector.load %arg5[%c1_100, %c16_101, %c0_102, %c0_103] : memref<3x32x32x128xbf16, #tpu.memory_space<vmem>>, vector<1x8x32x128xbf16>
    %317 = vector.shape_cast %316 : vector<1x8x32x128xbf16> to vector<8x32x128xbf16>
    %318 = arith.extf %317 : vector<8x32x128xbf16> to vector<8x32x128xf32>
    %319 = vector.extract_strided_slice %277 {offsets = [16, 0], sizes = [8, 128], strides = [1, 1]} : vector<32x128xf32> to vector<8x128xf32>
    %320 = vector.shape_cast %319 : vector<8x128xf32> to vector<8x1x128xf32>
    %321 = vector.broadcast %320 : vector<8x1x128xf32> to vector<8x32x128xf32>
    %322 = arith.mulf %321, %318 : vector<8x32x128xf32>
    %323 = vector.extract_strided_slice %322 {offsets = [0, 0, 0], sizes = [4, 32, 128], strides = [1, 1, 1]} : vector<8x32x128xf32> to vector<4x32x128xf32>
    %324 = vector.extract_strided_slice %322 {offsets = [4, 0, 0], sizes = [4, 32, 128], strides = [1, 1, 1]} : vector<8x32x128xf32> to vector<4x32x128xf32>
    %325 = arith.addf %323, %324 : vector<4x32x128xf32>
    %326 = vector.extract_strided_slice %325 {offsets = [0, 0, 0], sizes = [2, 32, 128], strides = [1, 1, 1]} : vector<4x32x128xf32> to vector<2x32x128xf32>
    %327 = vector.extract_strided_slice %325 {offsets = [2, 0, 0], sizes = [2, 32, 128], strides = [1, 1, 1]} : vector<4x32x128xf32> to vector<2x32x128xf32>
    %328 = arith.addf %326, %327 : vector<2x32x128xf32>
    %329 = vector.extract_strided_slice %328 {offsets = [0, 0, 0], sizes = [1, 32, 128], strides = [1, 1, 1]} : vector<2x32x128xf32> to vector<1x32x128xf32>
    %330 = vector.extract_strided_slice %328 {offsets = [1, 0, 0], sizes = [1, 32, 128], strides = [1, 1, 1]} : vector<2x32x128xf32> to vector<1x32x128xf32>
    %331 = arith.addf %329, %330 : vector<1x32x128xf32>
    %332 = vector.shape_cast %331 : vector<1x32x128xf32> to vector<32x128xf32>
    %333 = arith.addf %297, %332 : vector<32x128xf32>
    %c1_104 = arith.constant 1 : index
    %c24_105 = arith.constant 24 : index
    %c0_106 = arith.constant 0 : index
    %c0_107 = arith.constant 0 : index
    %334 = vector.load %arg5[%c1_104, %c24_105, %c0_106, %c0_107] : memref<3x32x32x128xbf16, #tpu.memory_space<vmem>>, vector<1x8x32x128xbf16>
    %335 = vector.shape_cast %334 : vector<1x8x32x128xbf16> to vector<8x32x128xbf16>
    %336 = arith.extf %335 : vector<8x32x128xbf16> to vector<8x32x128xf32>
    %337 = vector.extract_strided_slice %277 {offsets = [24, 0], sizes = [8, 128], strides = [1, 1]} : vector<32x128xf32> to vector<8x128xf32>
    %338 = vector.shape_cast %337 : vector<8x128xf32> to vector<8x1x128xf32>
    %339 = vector.broadcast %338 : vector<8x1x128xf32> to vector<8x32x128xf32>
    %340 = arith.mulf %339, %336 : vector<8x32x128xf32>
    %341 = vector.extract_strided_slice %340 {offsets = [0, 0, 0], sizes = [4, 32, 128], strides = [1, 1, 1]} : vector<8x32x128xf32> to vector<4x32x128xf32>
    %342 = vector.extract_strided_slice %340 {offsets = [4, 0, 0], sizes = [4, 32, 128], strides = [1, 1, 1]} : vector<8x32x128xf32> to vector<4x32x128xf32>
    %343 = arith.addf %341, %342 : vector<4x32x128xf32>
    %344 = vector.extract_strided_slice %343 {offsets = [0, 0, 0], sizes = [2, 32, 128], strides = [1, 1, 1]} : vector<4x32x128xf32> to vector<2x32x128xf32>
    %345 = vector.extract_strided_slice %343 {offsets = [2, 0, 0], sizes = [2, 32, 128], strides = [1, 1, 1]} : vector<4x32x128xf32> to vector<2x32x128xf32>
    %346 = arith.addf %344, %345 : vector<2x32x128xf32>
    %347 = vector.extract_strided_slice %346 {offsets = [0, 0, 0], sizes = [1, 32, 128], strides = [1, 1, 1]} : vector<2x32x128xf32> to vector<1x32x128xf32>
    %348 = vector.extract_strided_slice %346 {offsets = [1, 0, 0], sizes = [1, 32, 128], strides = [1, 1, 1]} : vector<2x32x128xf32> to vector<1x32x128xf32>
    %349 = arith.addf %347, %348 : vector<1x32x128xf32>
    %350 = vector.shape_cast %349 : vector<1x32x128xf32> to vector<32x128xf32>
    %351 = arith.addf %315, %350 : vector<32x128xf32>
    %352 = arith.addf %333, %351 : vector<32x128xf32>
    %353 = tpu.concatenate %276, %352 in 0 : vector<32x128xf32>, vector<32x128xf32> -> vector<64x128xf32>
    %354 = arith.truncf %353 : vector<64x128xf32> to vector<64x128xbf16>
    %c1_108 = arith.constant 1 : index
    %c0_109 = arith.constant 0 : index
    %c0_110 = arith.constant 0 : index
    %355 = vector.load %arg6[%c1_108, %c0_109, %c0_110] : memref<3x128x256xbf16, #tpu.memory_space<vmem>>, vector<1x128x256xbf16>
    %356 = vector.shape_cast %355 : vector<1x128x256xbf16> to vector<128x256xbf16>
    %cst_111 = arith.constant dense<0.000000e+00> : vector<64x256xf32>
    %357 = tpu.matmul %354, %356, %cst_111 {dimension_numbers = #tpu.dot_dimension_numbers<[1], [0], [0], [1], [0, 0, 1, 1], [], []>} : vector<64x128xbf16>, vector<128x256xbf16>, vector<64x256xf32> -> vector<64x256xf32>
    %c1_112 = arith.constant 1 : index
    %c0_113 = arith.constant 0 : index
    %c0_114 = arith.constant 0 : index
    %358 = vector.load %arg7[%c1_112, %c0_113, %c0_114] : memref<3x32x32xbf16, #tpu.memory_space<vmem>>, vector<1x32x32xbf16>
    %359 = vector.shape_cast %358 : vector<1x32x32xbf16> to vector<32x32xbf16>
    %360 = vector.extract_strided_slice %197 {offsets = [0, 0], sizes = [32, 256], strides = [1, 1]} : vector<64x256xbf16> to vector<32x256xbf16>
    %cst_115 = arith.constant dense<0.000000e+00> : vector<32x256xf32>
    %361 = tpu.matmul %359, %360, %cst_115 {dimension_numbers = #tpu.dot_dimension_numbers<[1], [0], [0], [1], [0, 0, 1, 1], [], []>} : vector<32x32xbf16>, vector<32x256xbf16>, vector<32x256xf32> -> vector<32x256xf32>
    %c1_116 = arith.constant 1 : index
    %c0_117 = arith.constant 0 : index
    %c0_118 = arith.constant 0 : index
    %362 = vector.load %arg8[%c1_116, %c0_117, %c0_118] : memref<3x32x1xf32, #tpu.memory_space<vmem>>, vector<1x32x1xf32>
    %363 = vector.shape_cast %362 : vector<1x32x1xf32> to vector<32x1xf32>
    %364 = vector.broadcast %363 : vector<32x1xf32> to vector<32x256xf32>
    %365 = arith.addf %361, %364 : vector<32x256xf32>
    %c1_119 = arith.constant 1 : index
    %c0_120 = arith.constant 0 : index
    %c0_121 = arith.constant 0 : index
    %366 = vector.load %arg7[%c1_119, %c0_120, %c0_121] : memref<3x32x32xbf16, #tpu.memory_space<vmem>>, vector<1x32x32xbf16>
    %367 = vector.shape_cast %366 : vector<1x32x32xbf16> to vector<32x32xbf16>
    %368 = vector.extract_strided_slice %197 {offsets = [32, 0], sizes = [32, 256], strides = [1, 1]} : vector<64x256xbf16> to vector<32x256xbf16>
    %cst_122 = arith.constant dense<0.000000e+00> : vector<32x256xf32>
    %369 = tpu.matmul %367, %368, %cst_122 {dimension_numbers = #tpu.dot_dimension_numbers<[1], [0], [0], [1], [0, 0, 1, 1], [], []>} : vector<32x32xbf16>, vector<32x256xbf16>, vector<32x256xf32> -> vector<32x256xf32>
    %c1_123 = arith.constant 1 : index
    %c0_124 = arith.constant 0 : index
    %c0_125 = arith.constant 0 : index
    %370 = vector.load %arg8[%c1_123, %c0_124, %c0_125] : memref<3x32x1xf32, #tpu.memory_space<vmem>>, vector<1x32x1xf32>
    %371 = vector.shape_cast %370 : vector<1x32x1xf32> to vector<32x1xf32>
    %372 = vector.broadcast %371 : vector<32x1xf32> to vector<32x256xf32>
    %373 = arith.addf %369, %372 : vector<32x256xf32>
    %374 = tpu.concatenate %365, %373 in 0 : vector<32x256xf32>, vector<32x256xf32> -> vector<64x256xf32>
    %375 = arith.addf %357, %374 : vector<64x256xf32>
    %376 = math.tanh %375 : vector<64x256xf32>
    %377 = arith.truncf %376 : vector<64x256xf32> to vector<64x256xbf16>
    %c2 = arith.constant 2 : index
    %c0_126 = arith.constant 0 : index
    %c0_127 = arith.constant 0 : index
    %378 = vector.load %arg4[%c2, %c0_126, %c0_127] : memref<3x256x128xbf16, #tpu.memory_space<vmem>>, vector<1x256x128xbf16>
    %379 = vector.shape_cast %378 : vector<1x256x128xbf16> to vector<256x128xbf16>
    %cst_128 = arith.constant dense<0.000000e+00> : vector<64x128xf32>
    %380 = tpu.matmul %377, %379, %cst_128 {dimension_numbers = #tpu.dot_dimension_numbers<[1], [0], [0], [1], [0, 0, 1, 1], [], []>} : vector<64x256xbf16>, vector<256x128xbf16>, vector<64x128xf32> -> vector<64x128xf32>
    %381 = vector.extract_strided_slice %380 {offsets = [0, 0], sizes = [32, 128], strides = [1, 1]} : vector<64x128xf32> to vector<32x128xf32>
    %cst_129 = arith.constant 0.000000e+00 : f32
    %382 = vector.broadcast %cst_129 : f32 to vector<32x128xf32>
    %cst_130 = arith.constant 0.000000e+00 : f32
    %383 = vector.broadcast %cst_130 : f32 to vector<32x128xf32>
    %c2_131 = arith.constant 2 : index
    %c0_132 = arith.constant 0 : index
    %c0_133 = arith.constant 0 : index
    %c0_134 = arith.constant 0 : index
    %384 = vector.load %arg5[%c2_131, %c0_132, %c0_133, %c0_134] : memref<3x32x32x128xbf16, #tpu.memory_space<vmem>>, vector<1x8x32x128xbf16>
    %385 = vector.shape_cast %384 : vector<1x8x32x128xbf16> to vector<8x32x128xbf16>
    %386 = arith.extf %385 : vector<8x32x128xbf16> to vector<8x32x128xf32>
    %387 = vector.extract_strided_slice %381 {offsets = [0, 0], sizes = [8, 128], strides = [1, 1]} : vector<32x128xf32> to vector<8x128xf32>
    %388 = vector.shape_cast %387 : vector<8x128xf32> to vector<8x1x128xf32>
    %389 = vector.broadcast %388 : vector<8x1x128xf32> to vector<8x32x128xf32>
    %390 = arith.mulf %389, %386 : vector<8x32x128xf32>
    %391 = vector.extract_strided_slice %390 {offsets = [0, 0, 0], sizes = [4, 32, 128], strides = [1, 1, 1]} : vector<8x32x128xf32> to vector<4x32x128xf32>
    %392 = vector.extract_strided_slice %390 {offsets = [4, 0, 0], sizes = [4, 32, 128], strides = [1, 1, 1]} : vector<8x32x128xf32> to vector<4x32x128xf32>
    %393 = arith.addf %391, %392 : vector<4x32x128xf32>
    %394 = vector.extract_strided_slice %393 {offsets = [0, 0, 0], sizes = [2, 32, 128], strides = [1, 1, 1]} : vector<4x32x128xf32> to vector<2x32x128xf32>
    %395 = vector.extract_strided_slice %393 {offsets = [2, 0, 0], sizes = [2, 32, 128], strides = [1, 1, 1]} : vector<4x32x128xf32> to vector<2x32x128xf32>
    %396 = arith.addf %394, %395 : vector<2x32x128xf32>
    %397 = vector.extract_strided_slice %396 {offsets = [0, 0, 0], sizes = [1, 32, 128], strides = [1, 1, 1]} : vector<2x32x128xf32> to vector<1x32x128xf32>
    %398 = vector.extract_strided_slice %396 {offsets = [1, 0, 0], sizes = [1, 32, 128], strides = [1, 1, 1]} : vector<2x32x128xf32> to vector<1x32x128xf32>
    %399 = arith.addf %397, %398 : vector<1x32x128xf32>
    %400 = vector.shape_cast %399 : vector<1x32x128xf32> to vector<32x128xf32>
    %401 = arith.addf %382, %400 : vector<32x128xf32>
    %c2_135 = arith.constant 2 : index
    %c8_136 = arith.constant 8 : index
    %c0_137 = arith.constant 0 : index
    %c0_138 = arith.constant 0 : index
    %402 = vector.load %arg5[%c2_135, %c8_136, %c0_137, %c0_138] : memref<3x32x32x128xbf16, #tpu.memory_space<vmem>>, vector<1x8x32x128xbf16>
    %403 = vector.shape_cast %402 : vector<1x8x32x128xbf16> to vector<8x32x128xbf16>
    %404 = arith.extf %403 : vector<8x32x128xbf16> to vector<8x32x128xf32>
    %405 = vector.extract_strided_slice %381 {offsets = [8, 0], sizes = [8, 128], strides = [1, 1]} : vector<32x128xf32> to vector<8x128xf32>
    %406 = vector.shape_cast %405 : vector<8x128xf32> to vector<8x1x128xf32>
    %407 = vector.broadcast %406 : vector<8x1x128xf32> to vector<8x32x128xf32>
    %408 = arith.mulf %407, %404 : vector<8x32x128xf32>
    %409 = vector.extract_strided_slice %408 {offsets = [0, 0, 0], sizes = [4, 32, 128], strides = [1, 1, 1]} : vector<8x32x128xf32> to vector<4x32x128xf32>
    %410 = vector.extract_strided_slice %408 {offsets = [4, 0, 0], sizes = [4, 32, 128], strides = [1, 1, 1]} : vector<8x32x128xf32> to vector<4x32x128xf32>
    %411 = arith.addf %409, %410 : vector<4x32x128xf32>
    %412 = vector.extract_strided_slice %411 {offsets = [0, 0, 0], sizes = [2, 32, 128], strides = [1, 1, 1]} : vector<4x32x128xf32> to vector<2x32x128xf32>
    %413 = vector.extract_strided_slice %411 {offsets = [2, 0, 0], sizes = [2, 32, 128], strides = [1, 1, 1]} : vector<4x32x128xf32> to vector<2x32x128xf32>
    %414 = arith.addf %412, %413 : vector<2x32x128xf32>
    %415 = vector.extract_strided_slice %414 {offsets = [0, 0, 0], sizes = [1, 32, 128], strides = [1, 1, 1]} : vector<2x32x128xf32> to vector<1x32x128xf32>
    %416 = vector.extract_strided_slice %414 {offsets = [1, 0, 0], sizes = [1, 32, 128], strides = [1, 1, 1]} : vector<2x32x128xf32> to vector<1x32x128xf32>
    %417 = arith.addf %415, %416 : vector<1x32x128xf32>
    %418 = vector.shape_cast %417 : vector<1x32x128xf32> to vector<32x128xf32>
    %419 = arith.addf %383, %418 : vector<32x128xf32>
    %c2_139 = arith.constant 2 : index
    %c16_140 = arith.constant 16 : index
    %c0_141 = arith.constant 0 : index
    %c0_142 = arith.constant 0 : index
    %420 = vector.load %arg5[%c2_139, %c16_140, %c0_141, %c0_142] : memref<3x32x32x128xbf16, #tpu.memory_space<vmem>>, vector<1x8x32x128xbf16>
    %421 = vector.shape_cast %420 : vector<1x8x32x128xbf16> to vector<8x32x128xbf16>
    %422 = arith.extf %421 : vector<8x32x128xbf16> to vector<8x32x128xf32>
    %423 = vector.extract_strided_slice %381 {offsets = [16, 0], sizes = [8, 128], strides = [1, 1]} : vector<32x128xf32> to vector<8x128xf32>
    %424 = vector.shape_cast %423 : vector<8x128xf32> to vector<8x1x128xf32>
    %425 = vector.broadcast %424 : vector<8x1x128xf32> to vector<8x32x128xf32>
    %426 = arith.mulf %425, %422 : vector<8x32x128xf32>
    %427 = vector.extract_strided_slice %426 {offsets = [0, 0, 0], sizes = [4, 32, 128], strides = [1, 1, 1]} : vector<8x32x128xf32> to vector<4x32x128xf32>
    %428 = vector.extract_strided_slice %426 {offsets = [4, 0, 0], sizes = [4, 32, 128], strides = [1, 1, 1]} : vector<8x32x128xf32> to vector<4x32x128xf32>
    %429 = arith.addf %427, %428 : vector<4x32x128xf32>
    %430 = vector.extract_strided_slice %429 {offsets = [0, 0, 0], sizes = [2, 32, 128], strides = [1, 1, 1]} : vector<4x32x128xf32> to vector<2x32x128xf32>
    %431 = vector.extract_strided_slice %429 {offsets = [2, 0, 0], sizes = [2, 32, 128], strides = [1, 1, 1]} : vector<4x32x128xf32> to vector<2x32x128xf32>
    %432 = arith.addf %430, %431 : vector<2x32x128xf32>
    %433 = vector.extract_strided_slice %432 {offsets = [0, 0, 0], sizes = [1, 32, 128], strides = [1, 1, 1]} : vector<2x32x128xf32> to vector<1x32x128xf32>
    %434 = vector.extract_strided_slice %432 {offsets = [1, 0, 0], sizes = [1, 32, 128], strides = [1, 1, 1]} : vector<2x32x128xf32> to vector<1x32x128xf32>
    %435 = arith.addf %433, %434 : vector<1x32x128xf32>
    %436 = vector.shape_cast %435 : vector<1x32x128xf32> to vector<32x128xf32>
    %437 = arith.addf %401, %436 : vector<32x128xf32>
    %c2_143 = arith.constant 2 : index
    %c24_144 = arith.constant 24 : index
    %c0_145 = arith.constant 0 : index
    %c0_146 = arith.constant 0 : index
    %438 = vector.load %arg5[%c2_143, %c24_144, %c0_145, %c0_146] : memref<3x32x32x128xbf16, #tpu.memory_space<vmem>>, vector<1x8x32x128xbf16>
    %439 = vector.shape_cast %438 : vector<1x8x32x128xbf16> to vector<8x32x128xbf16>
    %440 = arith.extf %439 : vector<8x32x128xbf16> to vector<8x32x128xf32>
    %441 = vector.extract_strided_slice %381 {offsets = [24, 0], sizes = [8, 128], strides = [1, 1]} : vector<32x128xf32> to vector<8x128xf32>
    %442 = vector.shape_cast %441 : vector<8x128xf32> to vector<8x1x128xf32>
    %443 = vector.broadcast %442 : vector<8x1x128xf32> to vector<8x32x128xf32>
    %444 = arith.mulf %443, %440 : vector<8x32x128xf32>
    %445 = vector.extract_strided_slice %444 {offsets = [0, 0, 0], sizes = [4, 32, 128], strides = [1, 1, 1]} : vector<8x32x128xf32> to vector<4x32x128xf32>
    %446 = vector.extract_strided_slice %444 {offsets = [4, 0, 0], sizes = [4, 32, 128], strides = [1, 1, 1]} : vector<8x32x128xf32> to vector<4x32x128xf32>
    %447 = arith.addf %445, %446 : vector<4x32x128xf32>
    %448 = vector.extract_strided_slice %447 {offsets = [0, 0, 0], sizes = [2, 32, 128], strides = [1, 1, 1]} : vector<4x32x128xf32> to vector<2x32x128xf32>
    %449 = vector.extract_strided_slice %447 {offsets = [2, 0, 0], sizes = [2, 32, 128], strides = [1, 1, 1]} : vector<4x32x128xf32> to vector<2x32x128xf32>
    %450 = arith.addf %448, %449 : vector<2x32x128xf32>
    %451 = vector.extract_strided_slice %450 {offsets = [0, 0, 0], sizes = [1, 32, 128], strides = [1, 1, 1]} : vector<2x32x128xf32> to vector<1x32x128xf32>
    %452 = vector.extract_strided_slice %450 {offsets = [1, 0, 0], sizes = [1, 32, 128], strides = [1, 1, 1]} : vector<2x32x128xf32> to vector<1x32x128xf32>
    %453 = arith.addf %451, %452 : vector<1x32x128xf32>
    %454 = vector.shape_cast %453 : vector<1x32x128xf32> to vector<32x128xf32>
    %455 = arith.addf %419, %454 : vector<32x128xf32>
    %456 = arith.addf %437, %455 : vector<32x128xf32>
    %457 = vector.extract_strided_slice %380 {offsets = [32, 0], sizes = [32, 128], strides = [1, 1]} : vector<64x128xf32> to vector<32x128xf32>
    %cst_147 = arith.constant 0.000000e+00 : f32
    %458 = vector.broadcast %cst_147 : f32 to vector<32x128xf32>
    %cst_148 = arith.constant 0.000000e+00 : f32
    %459 = vector.broadcast %cst_148 : f32 to vector<32x128xf32>
    %c2_149 = arith.constant 2 : index
    %c0_150 = arith.constant 0 : index
    %c0_151 = arith.constant 0 : index
    %c0_152 = arith.constant 0 : index
    %460 = vector.load %arg5[%c2_149, %c0_150, %c0_151, %c0_152] : memref<3x32x32x128xbf16, #tpu.memory_space<vmem>>, vector<1x8x32x128xbf16>
    %461 = vector.shape_cast %460 : vector<1x8x32x128xbf16> to vector<8x32x128xbf16>
    %462 = arith.extf %461 : vector<8x32x128xbf16> to vector<8x32x128xf32>
    %463 = vector.extract_strided_slice %457 {offsets = [0, 0], sizes = [8, 128], strides = [1, 1]} : vector<32x128xf32> to vector<8x128xf32>
    %464 = vector.shape_cast %463 : vector<8x128xf32> to vector<8x1x128xf32>
    %465 = vector.broadcast %464 : vector<8x1x128xf32> to vector<8x32x128xf32>
    %466 = arith.mulf %465, %462 : vector<8x32x128xf32>
    %467 = vector.extract_strided_slice %466 {offsets = [0, 0, 0], sizes = [4, 32, 128], strides = [1, 1, 1]} : vector<8x32x128xf32> to vector<4x32x128xf32>
    %468 = vector.extract_strided_slice %466 {offsets = [4, 0, 0], sizes = [4, 32, 128], strides = [1, 1, 1]} : vector<8x32x128xf32> to vector<4x32x128xf32>
    %469 = arith.addf %467, %468 : vector<4x32x128xf32>
    %470 = vector.extract_strided_slice %469 {offsets = [0, 0, 0], sizes = [2, 32, 128], strides = [1, 1, 1]} : vector<4x32x128xf32> to vector<2x32x128xf32>
    %471 = vector.extract_strided_slice %469 {offsets = [2, 0, 0], sizes = [2, 32, 128], strides = [1, 1, 1]} : vector<4x32x128xf32> to vector<2x32x128xf32>
    %472 = arith.addf %470, %471 : vector<2x32x128xf32>
    %473 = vector.extract_strided_slice %472 {offsets = [0, 0, 0], sizes = [1, 32, 128], strides = [1, 1, 1]} : vector<2x32x128xf32> to vector<1x32x128xf32>
    %474 = vector.extract_strided_slice %472 {offsets = [1, 0, 0], sizes = [1, 32, 128], strides = [1, 1, 1]} : vector<2x32x128xf32> to vector<1x32x128xf32>
    %475 = arith.addf %473, %474 : vector<1x32x128xf32>
    %476 = vector.shape_cast %475 : vector<1x32x128xf32> to vector<32x128xf32>
    %477 = arith.addf %458, %476 : vector<32x128xf32>
    %c2_153 = arith.constant 2 : index
    %c8_154 = arith.constant 8 : index
    %c0_155 = arith.constant 0 : index
    %c0_156 = arith.constant 0 : index
    %478 = vector.load %arg5[%c2_153, %c8_154, %c0_155, %c0_156] : memref<3x32x32x128xbf16, #tpu.memory_space<vmem>>, vector<1x8x32x128xbf16>
    %479 = vector.shape_cast %478 : vector<1x8x32x128xbf16> to vector<8x32x128xbf16>
    %480 = arith.extf %479 : vector<8x32x128xbf16> to vector<8x32x128xf32>
    %481 = vector.extract_strided_slice %457 {offsets = [8, 0], sizes = [8, 128], strides = [1, 1]} : vector<32x128xf32> to vector<8x128xf32>
    %482 = vector.shape_cast %481 : vector<8x128xf32> to vector<8x1x128xf32>
    %483 = vector.broadcast %482 : vector<8x1x128xf32> to vector<8x32x128xf32>
    %484 = arith.mulf %483, %480 : vector<8x32x128xf32>
    %485 = vector.extract_strided_slice %484 {offsets = [0, 0, 0], sizes = [4, 32, 128], strides = [1, 1, 1]} : vector<8x32x128xf32> to vector<4x32x128xf32>
    %486 = vector.extract_strided_slice %484 {offsets = [4, 0, 0], sizes = [4, 32, 128], strides = [1, 1, 1]} : vector<8x32x128xf32> to vector<4x32x128xf32>
    %487 = arith.addf %485, %486 : vector<4x32x128xf32>
    %488 = vector.extract_strided_slice %487 {offsets = [0, 0, 0], sizes = [2, 32, 128], strides = [1, 1, 1]} : vector<4x32x128xf32> to vector<2x32x128xf32>
    %489 = vector.extract_strided_slice %487 {offsets = [2, 0, 0], sizes = [2, 32, 128], strides = [1, 1, 1]} : vector<4x32x128xf32> to vector<2x32x128xf32>
    %490 = arith.addf %488, %489 : vector<2x32x128xf32>
    %491 = vector.extract_strided_slice %490 {offsets = [0, 0, 0], sizes = [1, 32, 128], strides = [1, 1, 1]} : vector<2x32x128xf32> to vector<1x32x128xf32>
    %492 = vector.extract_strided_slice %490 {offsets = [1, 0, 0], sizes = [1, 32, 128], strides = [1, 1, 1]} : vector<2x32x128xf32> to vector<1x32x128xf32>
    %493 = arith.addf %491, %492 : vector<1x32x128xf32>
    %494 = vector.shape_cast %493 : vector<1x32x128xf32> to vector<32x128xf32>
    %495 = arith.addf %459, %494 : vector<32x128xf32>
    %c2_157 = arith.constant 2 : index
    %c16_158 = arith.constant 16 : index
    %c0_159 = arith.constant 0 : index
    %c0_160 = arith.constant 0 : index
    %496 = vector.load %arg5[%c2_157, %c16_158, %c0_159, %c0_160] : memref<3x32x32x128xbf16, #tpu.memory_space<vmem>>, vector<1x8x32x128xbf16>
    %497 = vector.shape_cast %496 : vector<1x8x32x128xbf16> to vector<8x32x128xbf16>
    %498 = arith.extf %497 : vector<8x32x128xbf16> to vector<8x32x128xf32>
    %499 = vector.extract_strided_slice %457 {offsets = [16, 0], sizes = [8, 128], strides = [1, 1]} : vector<32x128xf32> to vector<8x128xf32>
    %500 = vector.shape_cast %499 : vector<8x128xf32> to vector<8x1x128xf32>
    %501 = vector.broadcast %500 : vector<8x1x128xf32> to vector<8x32x128xf32>
    %502 = arith.mulf %501, %498 : vector<8x32x128xf32>
    %503 = vector.extract_strided_slice %502 {offsets = [0, 0, 0], sizes = [4, 32, 128], strides = [1, 1, 1]} : vector<8x32x128xf32> to vector<4x32x128xf32>
    %504 = vector.extract_strided_slice %502 {offsets = [4, 0, 0], sizes = [4, 32, 128], strides = [1, 1, 1]} : vector<8x32x128xf32> to vector<4x32x128xf32>
    %505 = arith.addf %503, %504 : vector<4x32x128xf32>
    %506 = vector.extract_strided_slice %505 {offsets = [0, 0, 0], sizes = [2, 32, 128], strides = [1, 1, 1]} : vector<4x32x128xf32> to vector<2x32x128xf32>
    %507 = vector.extract_strided_slice %505 {offsets = [2, 0, 0], sizes = [2, 32, 128], strides = [1, 1, 1]} : vector<4x32x128xf32> to vector<2x32x128xf32>
    %508 = arith.addf %506, %507 : vector<2x32x128xf32>
    %509 = vector.extract_strided_slice %508 {offsets = [0, 0, 0], sizes = [1, 32, 128], strides = [1, 1, 1]} : vector<2x32x128xf32> to vector<1x32x128xf32>
    %510 = vector.extract_strided_slice %508 {offsets = [1, 0, 0], sizes = [1, 32, 128], strides = [1, 1, 1]} : vector<2x32x128xf32> to vector<1x32x128xf32>
    %511 = arith.addf %509, %510 : vector<1x32x128xf32>
    %512 = vector.shape_cast %511 : vector<1x32x128xf32> to vector<32x128xf32>
    %513 = arith.addf %477, %512 : vector<32x128xf32>
    %c2_161 = arith.constant 2 : index
    %c24_162 = arith.constant 24 : index
    %c0_163 = arith.constant 0 : index
    %c0_164 = arith.constant 0 : index
    %514 = vector.load %arg5[%c2_161, %c24_162, %c0_163, %c0_164] : memref<3x32x32x128xbf16, #tpu.memory_space<vmem>>, vector<1x8x32x128xbf16>
    %515 = vector.shape_cast %514 : vector<1x8x32x128xbf16> to vector<8x32x128xbf16>
    %516 = arith.extf %515 : vector<8x32x128xbf16> to vector<8x32x128xf32>
    %517 = vector.extract_strided_slice %457 {offsets = [24, 0], sizes = [8, 128], strides = [1, 1]} : vector<32x128xf32> to vector<8x128xf32>
    %518 = vector.shape_cast %517 : vector<8x128xf32> to vector<8x1x128xf32>
    %519 = vector.broadcast %518 : vector<8x1x128xf32> to vector<8x32x128xf32>
    %520 = arith.mulf %519, %516 : vector<8x32x128xf32>
    %521 = vector.extract_strided_slice %520 {offsets = [0, 0, 0], sizes = [4, 32, 128], strides = [1, 1, 1]} : vector<8x32x128xf32> to vector<4x32x128xf32>
    %522 = vector.extract_strided_slice %520 {offsets = [4, 0, 0], sizes = [4, 32, 128], strides = [1, 1, 1]} : vector<8x32x128xf32> to vector<4x32x128xf32>
    %523 = arith.addf %521, %522 : vector<4x32x128xf32>
    %524 = vector.extract_strided_slice %523 {offsets = [0, 0, 0], sizes = [2, 32, 128], strides = [1, 1, 1]} : vector<4x32x128xf32> to vector<2x32x128xf32>
    %525 = vector.extract_strided_slice %523 {offsets = [2, 0, 0], sizes = [2, 32, 128], strides = [1, 1, 1]} : vector<4x32x128xf32> to vector<2x32x128xf32>
    %526 = arith.addf %524, %525 : vector<2x32x128xf32>
    %527 = vector.extract_strided_slice %526 {offsets = [0, 0, 0], sizes = [1, 32, 128], strides = [1, 1, 1]} : vector<2x32x128xf32> to vector<1x32x128xf32>
    %528 = vector.extract_strided_slice %526 {offsets = [1, 0, 0], sizes = [1, 32, 128], strides = [1, 1, 1]} : vector<2x32x128xf32> to vector<1x32x128xf32>
    %529 = arith.addf %527, %528 : vector<1x32x128xf32>
    %530 = vector.shape_cast %529 : vector<1x32x128xf32> to vector<32x128xf32>
    %531 = arith.addf %495, %530 : vector<32x128xf32>
    %532 = arith.addf %513, %531 : vector<32x128xf32>
    %533 = tpu.concatenate %456, %532 in 0 : vector<32x128xf32>, vector<32x128xf32> -> vector<64x128xf32>
    %534 = arith.truncf %533 : vector<64x128xf32> to vector<64x128xbf16>
    %c2_165 = arith.constant 2 : index
    %c0_166 = arith.constant 0 : index
    %c0_167 = arith.constant 0 : index
    %535 = vector.load %arg6[%c2_165, %c0_166, %c0_167] : memref<3x128x256xbf16, #tpu.memory_space<vmem>>, vector<1x128x256xbf16>
    %536 = vector.shape_cast %535 : vector<1x128x256xbf16> to vector<128x256xbf16>
    %cst_168 = arith.constant dense<0.000000e+00> : vector<64x256xf32>
    %537 = tpu.matmul %534, %536, %cst_168 {dimension_numbers = #tpu.dot_dimension_numbers<[1], [0], [0], [1], [0, 0, 1, 1], [], []>} : vector<64x128xbf16>, vector<128x256xbf16>, vector<64x256xf32> -> vector<64x256xf32>
    %c2_169 = arith.constant 2 : index
    %c0_170 = arith.constant 0 : index
    %c0_171 = arith.constant 0 : index
    %538 = vector.load %arg7[%c2_169, %c0_170, %c0_171] : memref<3x32x32xbf16, #tpu.memory_space<vmem>>, vector<1x32x32xbf16>
    %539 = vector.shape_cast %538 : vector<1x32x32xbf16> to vector<32x32xbf16>
    %540 = vector.extract_strided_slice %377 {offsets = [0, 0], sizes = [32, 256], strides = [1, 1]} : vector<64x256xbf16> to vector<32x256xbf16>
    %cst_172 = arith.constant dense<0.000000e+00> : vector<32x256xf32>
    %541 = tpu.matmul %539, %540, %cst_172 {dimension_numbers = #tpu.dot_dimension_numbers<[1], [0], [0], [1], [0, 0, 1, 1], [], []>} : vector<32x32xbf16>, vector<32x256xbf16>, vector<32x256xf32> -> vector<32x256xf32>
    %c2_173 = arith.constant 2 : index
    %c0_174 = arith.constant 0 : index
    %c0_175 = arith.constant 0 : index
    %542 = vector.load %arg8[%c2_173, %c0_174, %c0_175] : memref<3x32x1xf32, #tpu.memory_space<vmem>>, vector<1x32x1xf32>
    %543 = vector.shape_cast %542 : vector<1x32x1xf32> to vector<32x1xf32>
    %544 = vector.broadcast %543 : vector<32x1xf32> to vector<32x256xf32>
    %545 = arith.addf %541, %544 : vector<32x256xf32>
    %c2_176 = arith.constant 2 : index
    %c0_177 = arith.constant 0 : index
    %c0_178 = arith.constant 0 : index
    %546 = vector.load %arg7[%c2_176, %c0_177, %c0_178] : memref<3x32x32xbf16, #tpu.memory_space<vmem>>, vector<1x32x32xbf16>
    %547 = vector.shape_cast %546 : vector<1x32x32xbf16> to vector<32x32xbf16>
    %548 = vector.extract_strided_slice %377 {offsets = [32, 0], sizes = [32, 256], strides = [1, 1]} : vector<64x256xbf16> to vector<32x256xbf16>
    %cst_179 = arith.constant dense<0.000000e+00> : vector<32x256xf32>
    %549 = tpu.matmul %547, %548, %cst_179 {dimension_numbers = #tpu.dot_dimension_numbers<[1], [0], [0], [1], [0, 0, 1, 1], [], []>} : vector<32x32xbf16>, vector<32x256xbf16>, vector<32x256xf32> -> vector<32x256xf32>
    %c2_180 = arith.constant 2 : index
    %c0_181 = arith.constant 0 : index
    %c0_182 = arith.constant 0 : index
    %550 = vector.load %arg8[%c2_180, %c0_181, %c0_182] : memref<3x32x1xf32, #tpu.memory_space<vmem>>, vector<1x32x1xf32>
    %551 = vector.shape_cast %550 : vector<1x32x1xf32> to vector<32x1xf32>
    %552 = vector.broadcast %551 : vector<32x1xf32> to vector<32x256xf32>
    %553 = arith.addf %549, %552 : vector<32x256xf32>
    %554 = tpu.concatenate %545, %553 in 0 : vector<32x256xf32>, vector<32x256xf32> -> vector<64x256xf32>
    %555 = arith.addf %537, %554 : vector<64x256xf32>
    %556 = vector.extract_strided_slice %555 {offsets = [0, 0], sizes = [32, 256], strides = [1, 1]} : vector<64x256xf32> to vector<32x256xf32>
    %557 = arith.truncf %556 : vector<32x256xf32> to vector<32x256xbf16>
    %c0_183 = arith.constant 0 : index
    %c0_184 = arith.constant 0 : index
    %558 = vector.load %arg9[%c0_183, %c0_184] : memref<64x32xbf16, #tpu.memory_space<vmem>>, vector<64x32xbf16>
    %cst_185 = arith.constant dense<0.000000e+00> : vector<64x256xf32>
    %559 = tpu.matmul %558, %557, %cst_185 {dimension_numbers = #tpu.dot_dimension_numbers<[1], [0], [0], [1], [0, 0, 1, 1], [], []>} : vector<64x32xbf16>, vector<32x256xbf16>, vector<64x256xf32> -> vector<64x256xf32>
    %c0_186 = arith.constant 0 : index
    %c0_187 = arith.constant 0 : index
    %560 = vector.load %arg10[%c0_186, %c0_187] : memref<64x1xf32, #tpu.memory_space<vmem>>, vector<64x1xf32>
    %561 = vector.broadcast %560 : vector<64x1xf32> to vector<64x256xf32>
    %562 = arith.addf %559, %561 : vector<64x256xf32>
    %563 = math.tanh %562 : vector<64x256xf32>
    %c0_188 = arith.constant 0 : index
    %c0_189 = arith.constant 0 : index
    %564 = vector.load %arg11[%c0_188, %c0_189] : memref<1x64xbf16, #tpu.memory_space<vmem>>, vector<1x64xbf16>
    %565 = arith.truncf %563 : vector<64x256xf32> to vector<64x256xbf16>
    %cst_190 = arith.constant dense<0.000000e+00> : vector<1x256xf32>
    %566 = tpu.matmul %564, %565, %cst_190 {dimension_numbers = #tpu.dot_dimension_numbers<[1], [0], [0], [1], [0, 0, 1, 1], [], []>} : vector<1x64xbf16>, vector<64x256xbf16>, vector<1x256xf32> -> vector<1x256xf32>
    %c0_191 = arith.constant 0 : index
    %c0_192 = arith.constant 0 : index
    %567 = vector.load %arg12[%c0_191, %c0_192] : memref<1x1xf32, #tpu.memory_space<vmem>>, vector<1x1xf32>
    %568 = vector.broadcast %567 : vector<1x1xf32> to vector<1x256xf32>
    %569 = arith.addf %566, %568 : vector<1x256xf32>
    %c0_193 = arith.constant 0 : index
    %c0_194 = arith.constant 0 : index
    %c0_195 = arith.constant 0 : index
    %570 = vector.load %arg13[%c0_193, %c0_194, %c0_195] : memref<2x1x256xf32, #tpu.memory_space<vmem>>, vector<1x1x256xf32>
    %571 = vector.shape_cast %570 : vector<1x1x256xf32> to vector<1x256xf32>
    %572 = vector.shape_cast %569 : vector<1x256xf32> to vector<1x1x256xf32>
    tpu.vector_store %arg13[%c0_193, %c0_194, %c0_195], %572 {strides = array<i32>} : memref<2x1x256xf32, #tpu.memory_space<vmem>>, vector<1x1x256xf32>,
    %573 = vector.extract_strided_slice %555 {offsets = [32, 0], sizes = [32, 256], strides = [1, 1]} : vector<64x256xf32> to vector<32x256xf32>
    %574 = arith.truncf %573 : vector<32x256xf32> to vector<32x256xbf16>
    %c0_196 = arith.constant 0 : index
    %c0_197 = arith.constant 0 : index
    %575 = vector.load %arg9[%c0_196, %c0_197] : memref<64x32xbf16, #tpu.memory_space<vmem>>, vector<64x32xbf16>
    %cst_198 = arith.constant dense<0.000000e+00> : vector<64x256xf32>
    %576 = tpu.matmul %575, %574, %cst_198 {dimension_numbers = #tpu.dot_dimension_numbers<[1], [0], [0], [1], [0, 0, 1, 1], [], []>} : vector<64x32xbf16>, vector<32x256xbf16>, vector<64x256xf32> -> vector<64x256xf32>
    %c0_199 = arith.constant 0 : index
    %c0_200 = arith.constant 0 : index
    %577 = vector.load %arg10[%c0_199, %c0_200] : memref<64x1xf32, #tpu.memory_space<vmem>>, vector<64x1xf32>
    %578 = vector.broadcast %577 : vector<64x1xf32> to vector<64x256xf32>
    %579 = arith.addf %576, %578 : vector<64x256xf32>
    %580 = math.tanh %579 : vector<64x256xf32>
    %c0_201 = arith.constant 0 : index
    %c0_202 = arith.constant 0 : index
    %581 = vector.load %arg11[%c0_201, %c0_202] : memref<1x64xbf16, #tpu.memory_space<vmem>>, vector<1x64xbf16>
    %582 = arith.truncf %580 : vector<64x256xf32> to vector<64x256xbf16>
    %cst_203 = arith.constant dense<0.000000e+00> : vector<1x256xf32>
    %583 = tpu.matmul %581, %582, %cst_203 {dimension_numbers = #tpu.dot_dimension_numbers<[1], [0], [0], [1], [0, 0, 1, 1], [], []>} : vector<1x64xbf16>, vector<64x256xbf16>, vector<1x256xf32> -> vector<1x256xf32>
    %c0_204 = arith.constant 0 : index
    %c0_205 = arith.constant 0 : index
    %584 = vector.load %arg12[%c0_204, %c0_205] : memref<1x1xf32, #tpu.memory_space<vmem>>, vector<1x1xf32>
    %585 = vector.broadcast %584 : vector<1x1xf32> to vector<1x256xf32>
    %586 = arith.addf %583, %585 : vector<1x256xf32>
    %c1_206 = arith.constant 1 : index
    %c0_207 = arith.constant 0 : index
    %c0_208 = arith.constant 0 : index
    %587 = vector.load %arg13[%c1_206, %c0_207, %c0_208] : memref<2x1x256xf32, #tpu.memory_space<vmem>>, vector<1x1x256xf32>
    %588 = vector.shape_cast %587 : vector<1x1x256xf32> to vector<1x256xf32>
    %589 = vector.shape_cast %586 : vector<1x256xf32> to vector<1x1x256xf32>
    tpu.vector_store %arg13[%c1_206, %c0_207, %c0_208], %589 {strides = array<i32>} : memref<2x1x256xf32, #tpu.memory_space<vmem>>, vector<1x1x256xf32>,
    return
  }
  func.func @transform_0(%arg0: i32) -> (i32, i32, i32) {
    %c0_i32 = arith.constant 0 : i32
    %c0_i32_0 = arith.constant 0 : i32
    %c0_i32_1 = arith.constant 0 : i32
    return %arg0, %c0_i32, %c0_i32_0 : i32, i32, i32
  }
  func.func @transform_1(%arg0: i32) -> (i32, i32) {
    %c0_i32 = arith.constant 0 : i32
    %c0_i32_0 = arith.constant 0 : i32
    %c0_i32_1 = arith.constant 0 : i32
    return %c0_i32, %c0_i32_0 : i32, i32
  }
  func.func @transform_2(%arg0: i32) -> (i32, i32) {
    %c0_i32 = arith.constant 0 : i32
    %c0_i32_0 = arith.constant 0 : i32
    %c0_i32_1 = arith.constant 0 : i32
    return %c0_i32, %c0_i32_0 : i32, i32
  }
  func.func @transform_3(%arg0: i32) -> (i32, i32, i32) {
    %c0_i32 = arith.constant 0 : i32
    %c0_i32_0 = arith.constant 0 : i32
    %c0_i32_1 = arith.constant 0 : i32
    %c0_i32_2 = arith.constant 0 : i32
    return %c0_i32, %c0_i32_0, %c0_i32_1 : i32, i32, i32
  }
  func.func @transform_4(%arg0: i32) -> (i32, i32, i32, i32) {
    %c0_i32 = arith.constant 0 : i32
    %c0_i32_0 = arith.constant 0 : i32
    %c0_i32_1 = arith.constant 0 : i32
    %c0_i32_2 = arith.constant 0 : i32
    %c0_i32_3 = arith.constant 0 : i32
    return %c0_i32, %c0_i32_0, %c0_i32_1, %c0_i32_2 : i32, i32, i32, i32
  }
  func.func @transform_5(%arg0: i32) -> (i32, i32, i32) {
    %c0_i32 = arith.constant 0 : i32
    %c0_i32_0 = arith.constant 0 : i32
    %c0_i32_1 = arith.constant 0 : i32
    %c0_i32_2 = arith.constant 0 : i32
    return %c0_i32, %c0_i32_0, %c0_i32_1 : i32, i32, i32
  }
  func.func @transform_6(%arg0: i32) -> (i32, i32, i32) {
    %c0_i32 = arith.constant 0 : i32
    %c0_i32_0 = arith.constant 0 : i32
    %c0_i32_1 = arith.constant 0 : i32
    %c0_i32_2 = arith.constant 0 : i32
    return %c0_i32, %c0_i32_0, %c0_i32_1 : i32, i32, i32
  }
  func.func @transform_7(%arg0: i32) -> (i32, i32, i32) {
    %c0_i32 = arith.constant 0 : i32
    %c0_i32_0 = arith.constant 0 : i32
    %c0_i32_1 = arith.constant 0 : i32
    %c0_i32_2 = arith.constant 0 : i32
    return %c0_i32, %c0_i32_0, %c0_i32_1 : i32, i32, i32
  }
  func.func @transform_8(%arg0: i32) -> (i32, i32) {
    %c0_i32 = arith.constant 0 : i32
    %c0_i32_0 = arith.constant 0 : i32
    %c0_i32_1 = arith.constant 0 : i32
    return %c0_i32, %c0_i32_0 : i32, i32
  }
  func.func @transform_9(%arg0: i32) -> (i32, i32) {
    %c0_i32 = arith.constant 0 : i32
    %c0_i32_0 = arith.constant 0 : i32
    %c0_i32_1 = arith.constant 0 : i32
    return %c0_i32, %c0_i32_0 : i32, i32
  }
  func.func @transform_10(%arg0: i32) -> (i32, i32) {
    %c0_i32 = arith.constant 0 : i32
    %c0_i32_0 = arith.constant 0 : i32
    %c0_i32_1 = arith.constant 0 : i32
    return %c0_i32, %c0_i32_0 : i32, i32
  }
  func.func @transform_11(%arg0: i32) -> (i32, i32) {
    %c0_i32 = arith.constant 0 : i32
    %c0_i32_0 = arith.constant 0 : i32
    %c0_i32_1 = arith.constant 0 : i32
    return %c0_i32, %c0_i32_0 : i32, i32
  }
  func.func @transform_12(%arg0: i32) -> (i32, i32, i32) {
    %c0_i32 = arith.constant 0 : i32
    %c0_i32_0 = arith.constant 0 : i32
    %c0_i32_1 = arith.constant 0 : i32
    return %arg0, %c0_i32, %c0_i32_0 : i32, i32, i32
  }
}

</mosaic_0001>

<bundles_post_ra>
// kernel: dcnn2d_forward.1
= control target key start
LH: loop header
LB: loop body
LE: loop exit
PB: predicated region body
PF: predicated region fallthrough
CT: control target
= control target key end

     0   :  { %s13465_s0 = inlined_call_operand.vmem [shape: f32[2,3,256], index: 0, kind: input, shape index: {}]   ;;  %s13466_s1 = inlined_call_operand.vmem [shape: bf16[32,3], index: 1, kind: input, shape index: {}]   ;;  %s13467_s2 = inlined_call_operand.vmem [shape: f32[32,1], index: 2, kind: input, shape index: {}]   ;;  %s13468_s3 = inlined_call_operand.vmem [shape: bf16[3,256,128], index: 3, kind: input, shape index: {}]   ;;  %s13469_s4 = inlined_call_operand.hbm [shape: bf16[3,32,32,128], index: 4, kind: input, shape index: {}]   ;;  %s13470_s5 = inlined_call_operand.hbm [shape: bf16[3,128,256], index: 5, kind: input, shape index: {}]   ;;  %s13471_s6 = inlined_call_operand.hbm [shape: bf16[3,32,32], index: 6, kind: input, shape index: {}]   ;;  %s13472_s7 = inlined_call_operand.vmem [shape: f32[3,32,1], index: 7, kind: input, shape index: {}]   ;;  %s13473_s8 = inlined_call_operand.vmem [shape: bf16[64,32], index: 8, kind: input, shape index: {}]   ;;  %s13474_s9 = inlined_call_operand.vmem [shape: f32[64,1], index: 9, kind: input, shape index: {}]   ;;  %s13475_s10 = inlined_call_operand.vmem [shape: bf16[1,64], index: 10, kind: input, shape index: {}]   ;;  %s13476_s11 = inlined_call_operand.<no memory space> [shape: f32[1,1], index: 11, kind: input, shape index: {}]   ;;  %s13477_s12 = inlined_call_operand.vmem [shape: f32[2,1,256], index: 12, kind: output, shape index: {}]  }
   0x1   :  { %v17_v0 = vstv %s13476_s11 }
   0x2   :  { %18 = vst [vmem:[#allocation2] sm:$0x1] %v17_v0 }
   0x3   :  { %19 = vsyncpa [#allocation4], 0 }
   0x4   :  { %20 = vsyncpa [#allocation6], 0  ;;  %s8655_s23 = smov [#allocation5]   ;;  %s8585_s27 = scalar_lea.hbm %s13470_s5, 6144 }
   0x5   :  { %s46_s24 = sshll.u32 %s8655_s23, 4  ;;  %p8586_p0 = scmp.ne.s32.totalorder %s13470_s5, %s8585_s27  ;;  %s47_s24 = int_to_ptr.vmem [resolvable:$true] %s46_s24 }
   0x6   :  { %p8589_p1 = scmp.lt.u32.totalorder %s8585_s27, %s13470_s5 }
   0x8   :  { %p8591_p2 = pnand %p8589_p1, %p8586_p0 }
   0xa   :  { %8594 = shalt.err (!%p8591_p2)
}
   0xb   :  { %s8595_s11 = scalar_lea.vmem %s47_s24, 6144  ;;  %p8600_p4 = scmp.lt.s32.totalorder %s47_s24, %s47_s24 }
   0xc   :  { %p8596_p3 = scmp.ne.s32.totalorder %s47_s24, %s8595_s11  ;;  %p8601_p5 = scmp.lt.s32.totalorder %s8595_s11, %s8595_s11 }
   0xe   :  { %p8602_p6 = por %p8601_p5, %p8600_p4 }
  0x10   :  { %p8603_p7 = pnand %p8602_p6, %p8596_p3 }
  0x12   :  { %8606 = shalt.err (!%p8603_p7)
}
  0x13   :  { %s8656_s14 = smov 128   ;;  %s8657_s15 = smov 8  }
  0x14   :  { %52 = dma.hbm_to_vmem [thread:$0]  %s13470_s5, 6144, %s47_s24, [#allocation6], %s8656_s14, %s8656_s14, %s8657_s15  }
  0x15   :  { %s8658_s18 = smov [#allocation3]   ;;  %s8607_s22 = scalar_lea.hbm %s13469_s4, 24576 }
  0x16   :  { %s34_s19 = sshll.u32 %s8658_s18, 4  ;;  %p8608_p8 = scmp.ne.s32.totalorder %s13469_s4, %s8607_s22  ;;  %s35_s19 = int_to_ptr.vmem [resolvable:$true] %s34_s19 }
  0x17   :  { %p8611_p9 = scmp.lt.u32.totalorder %s8607_s22, %s13469_s4 }
  0x19   :  { %p8613_p10 = pnand %p8611_p9, %p8608_p8 }
  0x1b   :  { %8616 = shalt.err (!%p8613_p10)
}
  0x1c   :  { %s8617_s28 = scalar_lea.vmem %s35_s19, 24576  ;;  %p8622_p12 = scmp.lt.s32.totalorder %s35_s19, %s35_s19 }
  0x1d   :  { %p8618_p11 = scmp.ne.s32.totalorder %s35_s19, %s8617_s28  ;;  %p8623_p13 = scmp.lt.s32.totalorder %s8617_s28, %s8617_s28 }
  0x1f   :  { %p8624_p0 = por %p8623_p13, %p8622_p12 }
  0x21   :  { %p8625_p1 = pnand %p8624_p0, %p8618_p11 }
  0x23   :  { %8628 = shalt.err (!%p8625_p1)
}
  0x24   :  { %s8659_s5 = smov 64   ;;  %s8660_s24 = smov 4  }
  0x25   :  { %40 = dma.hbm_to_vmem [thread:$0]  %s13469_s4, 24576, %s35_s19, [#allocation4], %s8659_s5, %s8659_s5, %s8660_s24  }
  0x26   :  { %s8661_s13 = smov [#allocation7]   ;;  %s8629_s16 = scalar_lea.hbm %s13471_s6, 768 }
  0x27   :  { %s58_s11 = sshll.u32 %s8661_s13, 4  ;;  %p8630_p2 = scmp.ne.s32.totalorder %s13471_s6, %s8629_s16  ;;  %s59_s11 = int_to_ptr.vmem [resolvable:$true] %s58_s11 }
  0x28   :  { %p8633_p3 = scmp.lt.u32.totalorder %s8629_s16, %s13471_s6 }
  0x2a   :  { %p8635_p4 = pnand %p8633_p3, %p8630_p2 }
  0x2c   :  { %8638 = shalt.err (!%p8635_p4)
}
  0x2d   :  { %s8639_s22 = scalar_lea.vmem %s59_s11, 768  ;;  %p8644_p6 = scmp.lt.s32.totalorder %s59_s11, %s59_s11 }
  0x2e   :  { %p8640_p5 = scmp.ne.s32.totalorder %s59_s11, %s8639_s22  ;;  %p8645_p7 = scmp.lt.s32.totalorder %s8639_s22, %s8639_s22 }
  0x30   :  { %p8646_p8 = por %p8645_p7, %p8644_p6 }
  0x32   :  { %p8647_p9 = pnand %p8646_p8, %p8640_p5 }
  0x34   :  { %8650 = shalt.err (!%p8647_p9)
}
  0x35   :  { %64 = dma.hbm_to_vmem [thread:$0]  %s13471_s6, 768, %s59_s11, [#allocation6], %s8659_s5, %s8659_s5, %s8660_s24  }
  0x36   :  { %8651 = dma.done.wait [#allocation4], 24576  }
  0x37   :  { %8652 = vsyncadd [#allocation4], 4294942720 }
  0x38   :  { %8653 = dma.done.wait [#allocation6], 6912  }
  0x39   :  { %8654 = vsyncadd [#allocation6], 4294960384  ;;  %vm136_vm0 = vcmask 1040384   ;;  %v13479_v1 = vmov 0   ;;  %vm137_vm1 = vcmask 1041408   ;;  %v8663_v2 = vmov 65535  }
  0x3a   :  { %178 = vmatprep.mubr.bf16.mxu0 %v13479_v1  ;;  %244 = vmatprep.mubr.bf16.mxu1 %v13479_v1  ;;  %v138_v3 = vsel %vm136_vm0, 4294967295, %v8663_v2  ;;  %v89_v5 = vld [vmem:[%s13465_s0] sm:$0x77]  ;;  %v6919_v6 = vld [vmem:[%s13465_s0 + $0x8] sm:$0x77]  ;;  %v97_v14 = vld [vmem:[%s13467_s2 + $0x10] sm:$0xff] }
  0x3b   :  { %8317 = vset.pattern.permute.xlu0 %v13479_v1  ;;  %8318 = vset.pattern.permute.xlu1 %v13479_v1  ;;  %v139_v4 = vsel %vm137_vm1, %v138_v3, 0  ;;  %v91_v7 = vcombine.high %v89_v5, %v89_v5  ;;  %v202_v8 = vcombine.high %v6919_v6, %v6919_v6  ;;  %v93_v9 = vpack.c.bf16 %v89_v5, %v89_v5  ;;  %v95_v11 = vld [vmem:[%s13467_s2] sm:$0xff]  ;;  %v96_v19 = vld [vmem:[%s13467_s2 + $0x8] sm:$0xff]  ;;  %v98_v20 = vld [vmem:[%s13467_s2 + $0x18] sm:$0xff] }
  0x3c   :  { %v204_v10 = vpack.c.bf16 %v6919_v6, %v6919_v6  ;;  %101 = vperm.xlu0 %8317, %v95_v11   ;;  %111 = vperm.xlu1 %8318, %v97_v14   ;;  %v8321_v21 = vld [vmem:[%s13466_s1] sm:$0xff]   ;;  %vm129_vm2 = vcmask 23552   ;;  %v1990_v23 = vld [vmem:[%s13472_s7 + $0x8] sm:$0xff]  ;;  %v1991_v24 = vld [vmem:[%s13472_s7 + $0x10] sm:$0xff]  ;;  %vm2023_vm3 = vcmask 261120   ;;  %vm6577_vm4 = vcmask 523264  }
  0x3d   :  { %v94_v12 = vpack.c.bf16 %v91_v7, %v91_v7  ;;  %v205_v13 = vpack.c.bf16 %v202_v8, %v202_v8  ;;  %v141_v15 = vand.u32 %v139_v4, %v93_v9  ;;  %v1989_v22 = vld [vmem:[%s13472_s7] sm:$0xff]  ;;  %v1992_v25 = vld [vmem:[%s13472_s7 + $0x18] sm:$0xff]  ;;  %v8322_v26 = vld [vmem:[%s13466_s1 + $0x8] sm:$0xff]  }
  0x3e   :  { %v207_v16 = vand.u32 %v204_v10, %v139_v4  ;;  %v7008_v27 = vld [vmem:[%s13472_s7 + $0x20] sm:$0xff]  ;;  %v7009_v28 = vld [vmem:[%s13472_s7 + $0x28] sm:$0xff]  ;;  %v7010_v29 = vld [vmem:[%s13472_s7 + $0x30] sm:$0xff] }
  0x3f   :  { %v144_v17 = vand.u32 %v139_v4, %v94_v12  ;;  %v210_v18 = vand.u32 %v205_v13, %v139_v4  ;;  %v7011_v30 = vld [vmem:[%s13472_s7 + $0x38] sm:$0xff]  ;;  %v7082_v31 = vld [vmem:[%s13472_s7 + $0x40] sm:$0xff]  ;;  %v7083_v32 = vld [vmem:[%s13472_s7 + $0x48] sm:$0xff] }
  0x40   :  { %106 = vperm.xlu0 %8317, %v96_v19   ;;  %116 = vperm.xlu1 %8318, %v98_v20   ;;  %v7084_v33 = vld [vmem:[%s13472_s7 + $0x50] sm:$0xff]  ;;  %v7085_v34 = vld [vmem:[%s13472_s7 + $0x58] sm:$0xff]  ;;  %v6389_v35 = vld [vmem:[%s13474_s9] sm:$0xff] }
  0x41   :  { %146 = vmatprep.subr.bf16.mxu0 %v144_v17  ;;  %212 = vmatprep.subr.bf16.mxu1 %v210_v18  ;;  %v6390_v36 = vld [vmem:[%s13474_s9 + $0x8] sm:$0xff]  ;;  %v6391_v37 = vld [vmem:[%s13474_s9 + $0x10] sm:$0xff]  ;;  %v6392_v38 = vld [vmem:[%s13474_s9 + $0x18] sm:$0xff] }
  0x42   :  { %147 = vmatpush1.bf16.msra.mxu0 %v141_v15  ;;  %213 = vmatpush1.bf16.msra.mxu1 %v207_v16  ;;  %v6393_v39 = vld [vmem:[%s13474_s9 + $0x20] sm:$0xff]  ;;  %v6394_v40 = vld [vmem:[%s13474_s9 + $0x28] sm:$0xff]  ;;  %v6395_v41 = vld [vmem:[%s13474_s9 + $0x30] sm:$0xff] }
  0x43   :  { %v6396_v42 = vld [vmem:[%s13474_s9 + $0x38] sm:$0xff]  ;;  %v8323_v43 = vld [vmem:[%s13468_s3 + $0x40] sm:$0xff]   ;;  %v8325_v45 = vld [vmem:[%s13468_s3 + $0x48] sm:$0xff]  }
  0x44   :  { %1995 = vperm.xlu0 %8317, %v1989_v22   ;;  %2000 = vperm.xlu1 %8318, %v1990_v23   ;;  %v8324_v44 = vld [vmem:[%s13468_s3] sm:$0xff]   ;;  %v8326_v46 = vld [vmem:[%s13468_s3 + $0x8] sm:$0xff]   ;;  %v8327_v47 = vld [vmem:[%s13468_s3 + $0x50] sm:$0xff]  }
  0x45   :  { %6917 = vmatmul.mubr.msk.bf16.vlgmr.msra.gmra.mrb[0].mxu0 %vm129_vm2, %v8321_v21  ;;  %6920 = vmatmul.mubr.msk.bf16.vlgmr.msra.gmra.mrb[0].mxu1 %vm129_vm2, %v8321_v21  ;;  %v8328_v48 = vld [vmem:[%s13468_s3 + $0x10] sm:$0xff]   ;;  %v8329_v49 = vld [vmem:[%s13468_s3 + $0x58] sm:$0xff]   ;;  %v8331_v51 = vld [vmem:[%s13468_s3 + $0x60] sm:$0xff]  }
  0x46   :  { %188 = vmatprep.mubr.bf16.mxu0 %v13479_v1  ;;  %254 = vmatprep.mubr.bf16.mxu1 %v13479_v1  ;;  %v8330_v50 = vld [vmem:[%s13468_s3 + $0x18] sm:$0xff]   ;;  %v8332_v52 = vld [vmem:[%s13468_s3 + $0x20] sm:$0xff]   ;;  %v8333_v55 = vld [vmem:[%s13468_s3 + $0x68] sm:$0xff]  }
  0x47   :  { %8075 = vmatprep.subr.bf16.mxu0 %v8323_v43  ;;  %v6567_v53 = vld [vmem:[#allocation2] sm:$0x1]  ;;  %v8334_v56 = vld [vmem:[%s13468_s3 + $0x28] sm:$0xff]   ;;  %v8335_v57 = vld [vmem:[%s13468_s3 + $0x70] sm:$0xff]  }
  0x48   :  { %2005 = vperm.xlu0 %8317, %v1991_v24   ;;  %2010 = vperm.xlu1 %8318, %v1992_v25   ;;  %v6835_v54 = vld [vmem:[#allocation2] sm:$0x1]  ;;  %v8336_v58 = vld [vmem:[%s13468_s3 + $0x30] sm:$0xff]   ;;  %v8337_v59 = vld [vmem:[%s13468_s3 + $0x78] sm:$0xff]  }
  0x49   :  { %8076 = vmatpush3.bf16.msra.mxu0 %v8324_v44  ;;  %v8338_v60 = vld [vmem:[%s13468_s3 + $0x38] sm:$0xff]   ;;  %v8340_v43 = vld [vmem:[#allocation7 + $0x8] sm:$0xff]  }
  0x4a   :  { %8077 = vmatprep.subr.bf16.mxu0 %v8325_v45  ;;  %v8343_v44 = vld [vmem:[#allocation5 + $0x4] ss:$8 sps:$4 sm:$0xff]   ;;  %v8341_v45 = vld [vmem:[#allocation5] ss:$8 sps:$4 sm:$0xff]  }
  0x4c   :  { %4040 = vperm.xlu0 %8317, %v7008_v27   ;;  %4045 = vperm.xlu1 %8318, %v7009_v28  }
  0x4d   :  { %6918 = vmatmul.mubr.msk.bf16.gmra.mrb[4].mxu0 %vm129_vm2, %v8322_v26  ;;  %6921 = vmatmul.mubr.msk.bf16.gmra.mrb[4].mxu1 %vm129_vm2, %v8322_v26 }
  0x4e   :  { %2062 = vmatprep.mubr.bf16.mxu1 %v13479_v1  ;;  %8078 = vmatpush3.bf16.msra.mxu0 %v8326_v46  ;;  %v8346_v46 = vld [vmem:[#allocation5 + $0x14] ss:$8 sps:$4 sm:$0xff]  }
  0x4f   :  { %8079 = vmatprep.subr.bf16.mxu0 %v8327_v47  ;;  %v8344_v47 = vld [vmem:[#allocation5 + $0x10] ss:$8 sps:$4 sm:$0xff]  }
  0x50   :  { %4050 = vperm.xlu0 %8317, %v7010_v29   ;;  %4055 = vperm.xlu1 %8318, %v7011_v30  }
  0x52   :  { %8080 = vmatpush3.bf16.msra.mxu0 %v8328_v48  ;;  %v8349_v48 = vld [vmem:[#allocation5 + $0x24] ss:$8 sps:$4 sm:$0xff]  }
  0x53   :  { %8081 = vmatprep.subr.bf16.mxu0 %v8329_v49  ;;  %v8347_v49 = vld [vmem:[#allocation5 + $0x20] ss:$8 sps:$4 sm:$0xff]  }
  0x54   :  { %6084 = vperm.xlu0 %8317, %v7082_v31   ;;  %6089 = vperm.xlu1 %8318, %v7083_v32  }
  0x56   :  { %8082 = vmatpush3.bf16.msra.mxu0 %v8330_v50  ;;  %v8352_v50 = vld [vmem:[#allocation5 + $0x34] ss:$8 sps:$4 sm:$0xff]  }
  0x57   :  { %8083 = vmatprep.subr.bf16.mxu0 %v8331_v51  ;;  %v8350_v51 = vld [vmem:[#allocation5 + $0x30] ss:$8 sps:$4 sm:$0xff]  }
  0x58   :  { %6094 = vperm.xlu0 %8317, %v7084_v33   ;;  %6099 = vperm.xlu1 %8318, %v7085_v34  }
  0x5a   :  { %8084 = vmatpush3.bf16.msra.mxu0 %v8332_v52  ;;  %v8355_v52 = vld [vmem:[#allocation5 + $0x44] ss:$8 sps:$4 sm:$0xff]  }
  0x5b   :  { %8085 = vmatprep.subr.bf16.mxu0 %v8333_v55  ;;  %v8356_v55 = vld [vmem:[#allocation5 + $0x50] ss:$8 sps:$4 sm:$0xff]  }
  0x5c   :  { %6399 = vperm.xlu0 %8317, %v6389_v35   ;;  %6404 = vperm.xlu1 %8318, %v6390_v36  }
  0x5e   :  { %8086 = vmatpush3.bf16.msra.mxu0 %v8334_v56  ;;  %v8361_v56 = vld [vmem:[#allocation5 + $0x64] ss:$8 sps:$4 sm:$0xff]  }
  0x5f   :  { %8087 = vmatprep.subr.bf16.mxu0 %v8335_v57  ;;  %v8359_v57 = vld [vmem:[#allocation5 + $0x60] ss:$8 sps:$4 sm:$0xff]  }
  0x60   :  { %6409 = vperm.xlu0 %8317, %v6391_v37   ;;  %6414 = vperm.xlu1 %8318, %v6392_v38  }
  0x62   :  { %8088 = vmatpush3.bf16.msra.mxu0 %v8336_v58  ;;  %v8364_v58 = vld [vmem:[#allocation5 + $0x74] ss:$8 sps:$4 sm:$0xff]  }
  0x63   :  { %8089 = vmatprep.subr.bf16.mxu0 %v8337_v59  ;;  %v8362_v59 = vld [vmem:[#allocation5 + $0x70] ss:$8 sps:$4 sm:$0xff]  }
  0x64   :  { %6419 = vperm.xlu0 %8317, %v6393_v39   ;;  %6424 = vperm.xlu1 %8318, %v6394_v40  }
  0x66   :  { %8090 = vmatpush3.bf16.msra.mxu0 %v8338_v60  ;;  %v13478_v60 = vlaneseq }
  0x68   :  { %6429 = vperm.xlu0 %8317, %v6395_v41   ;;  %6434 = vperm.xlu1 %8318, %v6396_v42  }
  0x6c   :  { %6667 = vperm.xlu0 %8317, %v6389_v35   ;;  %6672 = vperm.xlu1 %8318, %v6390_v36  }
  0x70   :  { %6677 = vperm.xlu0 %8317, %v6391_v37   ;;  %6682 = vperm.xlu1 %8318, %v6392_v38  }
  0x74   :  { %6687 = vperm.xlu0 %8317, %v6393_v39   ;;  %6692 = vperm.xlu1 %8318, %v6394_v40  }
  0x78   :  { %6697 = vperm.xlu0 %8317, %v6395_v41   ;;  %6702 = vperm.xlu1 %8318, %v6396_v42   ;;  %v8339_v42 = vld [vmem:[#allocation7] sm:$0xff]  }
  0x7c   :  { %6570 = vperm.xlu0 %8317, %v6567_v53   ;;  %6838 = vperm.xlu1 %8318, %v6835_v54   ;;  %v8353_v53 = vld [vmem:[#allocation5 + $0x40] ss:$8 sps:$4 sm:$0xff]   ;;  %v8358_v54 = vld [vmem:[#allocation5 + $0x54] ss:$8 sps:$4 sm:$0xff]  }
  0xbb   :  { %v102_v61 = vpop.permute.xlu0 %101  ;;  %v112_v63 = vpop.permute.xlu1 %111 }
  0xbf   :  { %v107_v62 = vpop.permute.xlu0 %106  ;;  %v117_v21 = vpop.permute.xlu1 %116 }
 0x118   :  { %v180_v0 = vpop.f32.mrb[0].mxu0  ;;  %v246_v2 = vpop.f32.mrb[0].mxu1 }
 0x119   :  { %v182_v3 = vpop.f32.mrb[1].mxu0  ;;  %v248_v4 = vpop.f32.mrb[1].mxu1  ;;  %v181_v7 = vadd.f32 %v180_v0, %v102_v61  ;;  %v247_v8 = vadd.f32 %v246_v2, %v102_v61  ;;  %v8921_v2 = vld [vmem:[#allocation3] sm:$0xff]  }
 0x11a   :  { %v184_v5 = vpop.f32.mrb[2].mxu0  ;;  %v250_v6 = vpop.f32.mrb[2].mxu1  ;;  %v183_v13 = vadd.f32 %v182_v3, %v102_v61  ;;  %v249_v14 = vadd.f32 %v248_v4, %v102_v61  ;;  %v8664_v61 = vmov 1966171168   ;;  %14117 = vst [vmem:[#allocation10_spill] sm:$0xff] %v8921_v2  ;;  %v8923_v3 = vld [vmem:[#allocation3 + $0x8] sm:$0xff]  }
 0x11b   :  { %v185_v9 = vadd.f32 %v184_v5, %v107_v62  ;;  %v251_v10 = vadd.f32 %v250_v6, %v107_v62  ;;  %v186_v11 = vpop.f32.mrb[3].mxu0  ;;  %v252_v12 = vpop.f32.mrb[3].mxu1  ;;  %14118 = vst [vmem:[#allocation11_spill] sm:$0xff] %v8923_v3  ;;  %v8925_v4 = vld [vmem:[#allocation3 + $0x10] sm:$0xff]   ;;  %v8927_v5 = vld [vmem:[#allocation3 + $0x20] sm:$0xff]  }
 0x11c   :  { %v187_v15 = vadd.f32 %v186_v11, %v107_v62  ;;  %v253_v16 = vadd.f32 %v252_v12, %v107_v62  ;;  %v533_v62 = vunpack.c.l.s4 %v8664_v61  ;;  %14119 = vst [vmem:[#allocation12_spill] sm:$0xff] %v8925_v4  ;;  %14120 = vst [vmem:[#allocation13_spill] sm:$0xff] %v8927_v5  ;;  %v8929_v6 = vld [vmem:[#allocation3 + $0x30] sm:$0xff]  }
 0x11d   :  { %v265_v17 = vpack.c.bf16 %v185_v9, %v181_v7  ;;  %v269_v18 = vpack.c.bf16 %v251_v10, %v247_v8  ;;  %14121 = vst [vmem:[#allocation14_spill] sm:$0xff] %v8929_v6  ;;  %v8934_v9 = vld [vmem:[#allocation3 + $0x40] sm:$0xff]   ;;  %v8936_v10 = vld [vmem:[#allocation3 + $0x50] sm:$0xff]   ;;  %v9128_v8 = vld [vmem:[#allocation3 + $0x138] sm:$0xff]  }
 0x11e   :  { %v266_v19 = vpack.c.bf16 %v187_v15, %v183_v13  ;;  %v270_v20 = vpack.c.bf16 %v253_v16, %v249_v14  ;;  %v534_v0 = vunpack.c.0.s8 %v533_v62  ;;  %14123 = vst [vmem:[#allocation16_spill] sm:$0xff] %v8934_v9  ;;  %14124 = vst [vmem:[#allocation17_spill] sm:$0xff] %v8936_v10  ;;  %v8944_v16 = vld [vmem:[#allocation3 + $0x60] sm:$0xff]   ;;  %v9018_v61 = vld [vmem:[#allocation3 + $0x170] sm:$0xff]  }
 0x11f   :  { %14126 = vst [vmem:[#allocation19_spill] sm:$0xff] %v8944_v16  ;;  %14141 = vst [vmem:[#allocation34_spill] sm:$0xff] %v9018_v61  ;;  %v9050_v62 = vld [vmem:[#allocation3 + $0x1e0] sm:$0xff]   ;;  %v9112_v15 = vld [vmem:[#allocation3 + $0xf8] sm:$0xff]  }
 0x120   :  { %v190_v22 = vpop.f32.mrb[4].mxu0  ;;  %v256_v23 = vpop.f32.mrb[4].mxu1  ;;  %433 = vmatprep.mubr.bf16.mxu0 %v266_v19  ;;  %2030 = vmatprep.subr.bf16.mxu1 %v266_v19  ;;  %14148 = vst [vmem:[#allocation41_spill] sm:$0xff] %v9050_v62  ;;  %14163 = vst [vmem:[#allocation56_spill] sm:$0xff] %v9112_v15  ;;  %v9120_v13 = vld [vmem:[#allocation3 + $0x128] sm:$0xff]  }
 0x121   :  { %v192_v24 = vpop.f32.mrb[5].mxu0  ;;  %v258_v25 = vpop.f32.mrb[5].mxu1  ;;  %434 = vmatmul.mubr.bf16.vlgmr.msra.gmra.mrb[8].mxu0 %v265_v17  ;;  %2031 = vmatpush1.bf16.msra.mxu1 %v265_v17  ;;  %v191_v28 = vadd.f32 %v190_v22, %v112_v63  ;;  %v257_v29 = vadd.f32 %v256_v23, %v112_v63  ;;  %v8946_v17 = vld [vmem:[#allocation3 + $0x70] sm:$0xff]   ;;  %v8952_v22 = vld [vmem:[#allocation3 + $0x80] sm:$0xff]   ;;  %v8954_v23 = vld [vmem:[#allocation3 + $0x88] sm:$0xff]   ;;  %14165 = vst [vmem:[#allocation58_spill] sm:$0xff] %v9120_v13 }
 0x122   :  { %v194_v26 = vpop.f32.mrb[6].mxu0  ;;  %v260_v27 = vpop.f32.mrb[6].mxu1  ;;  %v193_v34 = vadd.f32 %v192_v24, %v112_v63  ;;  %v259_v35 = vadd.f32 %v258_v25, %v112_v63  ;;  %v536_v63 = vshrl.u32 %v13478_v60, 7  ;;  %14127 = vst [vmem:[#allocation20_spill] sm:$0xff] %v8946_v17  ;;  %v9008_v60 = vld [vmem:[#allocation3 + $0x140] sm:$0xff]   ;;  %v9104_v25 = vld [vmem:[#allocation3 + $0xd8] sm:$0xff]  }
 0x123   :  { %v195_v30 = vadd.f32 %v194_v26, %v117_v21  ;;  %v261_v31 = vadd.f32 %v260_v27, %v117_v21  ;;  %v196_v32 = vpop.f32.mrb[7].mxu0  ;;  %v262_v33 = vpop.f32.mrb[7].mxu1  ;;  %14138 = vst [vmem:[#allocation31_spill] sm:$0xff] %v9008_v60  ;;  %v9096_v27 = vld [vmem:[#allocation3 + $0xb8] sm:$0xff]   ;;  %14161 = vst [vmem:[#allocation54_spill] sm:$0xff] %v9104_v25 }
 0x124   :  { %v197_v36 = vadd.f32 %v196_v32, %v117_v21  ;;  %v263_v37 = vadd.f32 %v262_v33, %v117_v21  ;;  %v8931_v7 = vsub.s32 0, %v536_v63  ;;  %v8938_v11 = vsub.s32 %v534_v0, %v536_v63  ;;  %v9034_v63 = vld [vmem:[#allocation3 + $0x1a0] sm:$0xff]   ;;  %v9064_v33 = vld [vmem:[#allocation3 + $0x28] sm:$0xff]   ;;  %v9072_v21 = vld [vmem:[#allocation3 + $0x38] sm:$0xff]   ;;  %14159 = vst [vmem:[#allocation52_spill] sm:$0xff] %v9096_v27 }
 0x125   :  { %v267_v38 = vpack.c.bf16 %v195_v30, %v191_v28  ;;  %v271_v39 = vpack.c.bf16 %v261_v31, %v257_v29  ;;  %v8960_v28 = vld [vmem:[#allocation3 + $0x90] sm:$0xff]   ;;  %v8962_v29 = vld [vmem:[#allocation3 + $0xa0] sm:$0xff]   ;;  %14144 = vst [vmem:[#allocation37_spill] sm:$0xff] %v9034_v63  ;;  %14151 = vst [vmem:[#allocation44_spill] sm:$0xff] %v9064_v33 }
 0x126   :  { %v268_v40 = vpack.c.bf16 %v197_v36, %v193_v34  ;;  %v272_v41 = vpack.c.bf16 %v263_v37, %v259_v35  ;;  %14122 = vst [vmem:[#allocation15_spill] sm:$0xff] %v8931_v7  ;;  %14125 = vst [vmem:[#allocation18_spill] sm:$0xff] %v8938_v11  ;;  %v8968_v34 = vld [vmem:[#allocation3 + $0xb0] sm:$0xff]   ;;  %v8970_v35 = vld [vmem:[#allocation3 + $0xc0] sm:$0xff]  }
 0x127   :  { %14128 = vst [vmem:[#allocation21_spill] sm:$0xff] %v8960_v28  ;;  %14129 = vst [vmem:[#allocation22_spill] sm:$0xff] %v8962_v29  ;;  %v9056_v37 = vld [vmem:[#allocation3 + $0x1f0] sm:$0xff]   ;;  %v9066_v0 = vld [vmem:[#allocation3 + $0x48] sm:$0xff]  }
 0x128   :  { %441 = vmatprep.mubr.bf16.mxu0 %v268_v40  ;;  %2032 = vmatprep.subr.bf16.mxu1 %v268_v40  ;;  %14130 = vst [vmem:[#allocation23_spill] sm:$0xff] %v8968_v34  ;;  %14131 = vst [vmem:[#allocation24_spill] sm:$0xff] %v8970_v35  ;;  %v8976_v40 = vld [vmem:[#allocation3 + $0xd0] sm:$0xff]   ;;  %v9080_v32 = vld [vmem:[#allocation3 + $0x68] sm:$0xff]  }
 0x129   :  { %442 = vmatmul.mubr.bf16.gmra.mrb[12].mxu0 %v267_v38  ;;  %2033 = vmatpush1.bf16.msra.mxu1 %v267_v38  ;;  %14132 = vst [vmem:[#allocation25_spill] sm:$0xff] %v8976_v40  ;;  %14149 = vst [vmem:[#allocation42_spill] sm:$0xff] %v9056_v37  ;;  %v9088_v30 = vld [vmem:[#allocation3 + $0x98] sm:$0xff]  }
 0x12a   :  { %449 = vmatprep.mubr.bf16.mxu0 %v270_v20  ;;  %2083 = vmatprep.subr.bf16.mxu1 %v270_v20  ;;  %14152 = vst [vmem:[#allocation45_spill] sm:$0xff] %v9066_v0  ;;  %14153 = vst [vmem:[#allocation46_spill] sm:$0xff] %v9072_v21  ;;  %v9114_v38 = vld [vmem:[#allocation3 + $0x118] sm:$0xff]   ;;  %v9122_v20 = vld [vmem:[#allocation3 + $0x148] sm:$0xff]   ;;  %v14185_v21 = vunpack.c.h.bf16 %v8921_v2 }
 0x12b   :  { %14155 = vst [vmem:[#allocation48_spill] sm:$0xff] %v9080_v32  ;;  %14157 = vst [vmem:[#allocation50_spill] sm:$0xff] %v9088_v30  ;;  %v9130_v24 = vld [vmem:[#allocation3 + $0x158] sm:$0xff]  }
 0x12c   :  { %6940 = vmatmul.mubr.msk.bf16.vlgmr.msra.gmra.mrb[8].mxu1 %vm2023_vm3, %v8339_v42  ;;  %14164 = vst [vmem:[#allocation57_spill] sm:$0xff] %v9114_v38  ;;  %14166 = vst [vmem:[#allocation59_spill] sm:$0xff] %v9122_v20  ;;  %v9142_v27 = vld [vmem:[#allocation3 + $0x178] sm:$0xff]  }
 0x12d   :  { %2084 = vmatpush1.bf16.msra.mxu1 %v269_v18  ;;  %2072 = vmatprep.mubr.bf16.mxu1 %v13479_v1  ;;  %14167 = vst [vmem:[#allocation60_spill] sm:$0xff] %v9128_v8  ;;  %14168 = vst [vmem:[#allocation61_spill] sm:$0xff] %v9130_v24  ;;  %v9144_v26 = vld [vmem:[#allocation3 + $0x198] sm:$0xff]  }
 0x12e   :  { %2085 = vmatprep.subr.bf16.mxu1 %v272_v41  ;;  %14170 = vst [vmem:[#allocation63_spill] sm:$0xff] %v9142_v27  ;;  %14171 = vst [vmem:[#allocation64_spill] sm:$0xff] %v9144_v26  ;;  %v9155_v30 = vld [vmem:[#allocation3 + $0x1b8] sm:$0xff]  }
 0x12f   :  { %14173 = vst [vmem:[#allocation66_spill] sm:$0xff] %v9155_v30  ;;  %v9165_v13 = vld [vmem:[#allocation3 + $0x1d8] sm:$0xff]  }
 0x130   :  { %14175 = vst [vmem:[#allocation68_spill] sm:$0xff] %v9165_v13 }
 0x131   :  { %450 = vmatmul.mubr.bf16.gmra.mrb[16].mxu0 %v269_v18  ;;  %2086 = vmatpush1.bf16.msra.mxu1 %v271_v39  ;;  %v9150_v18 = vld [vmem:[#allocation3 + $0x1a8] sm:$0xff]  }
 0x132   :  { %457 = vmatprep.mubr.bf16.mxu0 %v272_v41  ;;  %2216 = vmatprep.subr.bf16.mxu1 %v8343_v44  ;;  %v8978_v41 = vld [vmem:[#allocation3 + $0xe0] sm:$0xff]   ;;  %v9098_v44 = vld [vmem:[#allocation3 + $0xc8] sm:$0xff]   ;;  %14172 = vst [vmem:[#allocation65_spill] sm:$0xff] %v9150_v18 }
 0x133   :  { %14133 = vst [vmem:[#allocation26_spill] sm:$0xff] %v8978_v41  ;;  %14160 = vst [vmem:[#allocation53_spill] sm:$0xff] %v9098_v44 }
 0x134   :  { %6941 = vmatmul.mubr.msk.bf16.gmra.mrb[12].mxu1 %vm2023_vm3, %v8340_v43 }
 0x135   :  { %2115 = vmatprep.mubr.bf16.mxu1 %v13479_v1 }
 0x139   :  { %458 = vmatmul.mubr.bf16.gmra.mrb[20].mxu0 %v271_v39  ;;  %v9048_v39 = vld [vmem:[#allocation3 + $0x1d0] sm:$0xff]  }
 0x13a   :  { %14147 = vst [vmem:[#allocation40_spill] sm:$0xff] %v9048_v39 }
 0x13c   :  { %6942 = vmatmul.mubr.msk.bf16.vlgmr.msra.gmra.mrb[16].mxu1 %vm2023_vm3, %v8339_v42  ;;  %v9090_v42 = vld [vmem:[#allocation3 + $0xa8] sm:$0xff]  }
 0x13d   :  { %2125 = vmatprep.mubr.bf16.mxu1 %v13479_v1  ;;  %2217 = vmatpush1.bf16.msra.mxu1 %v8341_v45  ;;  %v9032_v45 = vld [vmem:[#allocation3 + $0x190] sm:$0xff]   ;;  %14158 = vst [vmem:[#allocation51_spill] sm:$0xff] %v9090_v42  ;;  %v9136_v42 = vld [vmem:[#allocation3 + $0x168] sm:$0xff]  }
 0x13e   :  { %2218 = vmatprep.subr.bf16.mxu1 %v8346_v46  ;;  %v8984_v46 = vld [vmem:[#allocation3 + $0xf0] sm:$0xff]   ;;  %14143 = vst [vmem:[#allocation36_spill] sm:$0xff] %v9032_v45  ;;  %14169 = vst [vmem:[#allocation62_spill] sm:$0xff] %v9136_v42 }
 0x13f   :  { %14134 = vst [vmem:[#allocation27_spill] sm:$0xff] %v8984_v46 }
 0x141   :  { %2219 = vmatpush1.bf16.msra.mxu1 %v8344_v47  ;;  %v8986_v47 = vld [vmem:[#allocation3 + $0x100] sm:$0xff]  }
 0x142   :  { %2220 = vmatprep.subr.bf16.mxu1 %v8349_v48  ;;  %v9042_v48 = vld [vmem:[#allocation3 + $0x1c0] sm:$0xff]  }
 0x143   :  { %14146 = vst [vmem:[#allocation39_spill] sm:$0xff] %v9042_v48 }
 0x144   :  { %6943 = vmatmul.mubr.msk.bf16.gmra.mrb[20].mxu1 %vm2023_vm3, %v8340_v43  ;;  %v9040_v43 = vld [vmem:[#allocation3 + $0x1b0] sm:$0xff]  }
 0x145   :  { %2248 = vmatprep.mubr.bf16.mxu1 %v13479_v1  ;;  %2221 = vmatpush1.bf16.msra.mxu1 %v8347_v49  ;;  %v9010_v1 = vld [vmem:[#allocation3 + $0x150] sm:$0xff]   ;;  %14145 = vst [vmem:[#allocation38_spill] sm:$0xff] %v9040_v43  ;;  %v9058_v49 = vld [vmem:[#allocation3 + $0x18] sm:$0xff]  }
 0x146   :  { %2222 = vmatprep.subr.bf16.mxu1 %v8352_v50  ;;  %14139 = vst [vmem:[#allocation32_spill] sm:$0xff] %v9010_v1  ;;  %14150 = vst [vmem:[#allocation43_spill] sm:$0xff] %v9058_v49  ;;  %v9106_v50 = vld [vmem:[#allocation3 + $0xe8] sm:$0xff]  }
 0x147   :  { %14162 = vst [vmem:[#allocation55_spill] sm:$0xff] %v9106_v50 }
 0x149   :  { %2223 = vmatpush1.bf16.msra.mxu1 %v8350_v51  ;;  %v9024_v51 = vld [vmem:[#allocation3 + $0x180] sm:$0xff]  }
 0x14a   :  { %2224 = vmatprep.subr.bf16.mxu1 %v8355_v52  ;;  %v8992_v52 = vld [vmem:[#allocation3 + $0x108] sm:$0xff]  }
 0x14d   :  { %2225 = vmatpush1.bf16.msra.mxu1 %v8353_v53  ;;  %v8994_v53 = vld [vmem:[#allocation3 + $0x110] sm:$0xff]  }
 0x14e   :  { %2226 = vmatprep.subr.bf16.mxu1 %v8358_v54  ;;  %14135 = vst [vmem:[#allocation28_spill] sm:$0xff] %v8994_v53  ;;  %v9026_v54 = vld [vmem:[#allocation3 + $0x188] sm:$0xff]  }
 0x14f   :  { %14142 = vst [vmem:[#allocation35_spill] sm:$0xff] %v9026_v54 }
 0x151   :  { %2227 = vmatpush1.bf16.msra.mxu1 %v8356_v55  ;;  %v9082_v55 = vld [vmem:[#allocation3 + $0x78] sm:$0xff]  }
 0x152   :  { %2228 = vmatprep.subr.bf16.mxu1 %v8361_v56  ;;  %v9016_v56 = vld [vmem:[#allocation3 + $0x160] sm:$0xff]   ;;  %14156 = vst [vmem:[#allocation49_spill] sm:$0xff] %v9082_v55  ;;  %v9157_v55 = vld [vmem:[#allocation3 + $0x1c8] sm:$0xff]  }
 0x153   :  { %14140 = vst [vmem:[#allocation33_spill] sm:$0xff] %v9016_v56  ;;  %14174 = vst [vmem:[#allocation67_spill] sm:$0xff] %v9157_v55 }
 0x155   :  { %2229 = vmatpush1.bf16.msra.mxu1 %v8359_v57  ;;  %v9074_v57 = vld [vmem:[#allocation3 + $0x58] sm:$0xff]  }
 0x156   :  { %2230 = vmatprep.subr.bf16.mxu1 %v8364_v58  ;;  %v9000_v58 = vld [vmem:[#allocation3 + $0x120] sm:$0xff]   ;;  %14154 = vst [vmem:[#allocation47_spill] sm:$0xff] %v9074_v57 }
 0x157   :  { %14136 = vst [vmem:[#allocation29_spill] sm:$0xff] %v9000_v58 }
 0x159   :  { %2231 = vmatpush1.bf16.msra.mxu1 %v8362_v59  ;;  %v9002_v59 = vld [vmem:[#allocation3 + $0x130] sm:$0xff]  }
 0x15a   :  { %14137 = vst [vmem:[#allocation30_spill] sm:$0xff] %v9002_v59 }
 0x1f4   :  { %v8091_v36 = vpop.f32.mrb[8].mxu0 }
 0x1f5   :  { %v8092_v14 = vpop.f32.mrb[9].mxu0 }
 0x1f6   :  { %v8093_v19 = vadd.f32 %v8092_v14, %v8091_v36  ;;  %v8094_v38 = vpop.f32.mrb[10].mxu0 }
 0x1f7   :  { %v8095_v31 = vpop.f32.mrb[11].mxu0 }
 0x1f8   :  { %v531_v36 = vcombine.high %v8093_v19, %v8093_v19  ;;  %v538_v12 = vrot.slane %v8093_v19, %v8938_v11  ;;  %v8096_v24 = vadd.f32 %v8095_v31, %v8094_v38  ;;  %v9174_v31 = vld [vmem:[#allocation3 + $0x1e8] sm:$0xff]   ;;  %v9176_v38 = vld [vmem:[#allocation3 + $0x1f8] sm:$0xff]  }
 0x1f9   :  { %14176 = vst [vmem:[#allocation69_spill] sm:$0xff] %v9174_v31  ;;  %14177 = vst [vmem:[#allocation70_spill] sm:$0xff] %v9176_v38 }
 0x1fa   :  { %v545_v50 = vrot.slane %v531_v36, %v8938_v11  ;;  %v546_v27 = vcombine.high %v538_v12, %v538_v12  ;;  %v554_v14 = vrot.slane %v538_v12, %v8938_v11  ;;  %v750_v25 = vcombine.high %v8096_v24, %v8096_v24 }
 0x1fb   :  { %v757_v42 = vrot.slane %v8096_v24, %v8938_v11 }
 0x1fc   :  { %v547_v30 = vcombine.high %v545_v50, %v545_v50  ;;  %v561_v15 = vrot.slane %v545_v50, %v8938_v11  ;;  %v568_v36 = vrot.slane %v546_v27, %v8938_v11  ;;  %v576_v18 = vcombine.high %v554_v14, %v554_v14  ;;  %v9183_v12 = vpop.f32.mrb[12].mxu0 }
 0x1fd   :  { %v583_v19 = vrot.slane %v554_v14, %v8931_v7  ;;  %v9186_v55 = vpop.f32.mrb[13].mxu0  ;;  %v764_v14 = vrot.slane %v750_v25, %v8938_v11  ;;  %v765_v57 = vcombine.high %v757_v42, %v757_v42  ;;  %v14184_v25 = vunpack.c.l.bf16 %v8921_v2 }
 0x1fe   :  { %v575_v44 = vrot.slane %v547_v30, %v8938_v11  ;;  %v577_v13 = vcombine.high %v561_v15, %v561_v15  ;;  %v578_v20 = vcombine.high %v568_v36, %v568_v36  ;;  %v9193_v50 = vrot.slane %v568_v36, %v8931_v7  ;;  %v9195_v27 = vpop.f32.mrb[14].mxu0 }
 0x1ff   :  { %v9198_v32 = vrot.slane %v561_v15, %v8931_v7  ;;  %v9201_v26 = vpop.f32.mrb[15].mxu0  ;;  %v9205_v30 = vrot.slane %v576_v18, %v8931_v7  ;;  %v620_v0 = vmul.f32 %v14184_v25, %v583_v19  ;;  %v621_v33 = vmul.f32 %v14185_v21, %v583_v19 }
 0x200   :  { %14178 = vst [vmem:[#allocation71_spill] sm:$0xff] %v9193_v50  ;;  %v579_v8 = vcombine.high %v575_v44, %v575_v44  ;;  %v9208_v31 = vrot.slane %v575_v44, %v8931_v7  ;;  %v9211_v36 = vrot.slane %v577_v13, %v8931_v7  ;;  %v9214_v15 = vrot.slane %v578_v20, %v8931_v7 }
 0x201   :  { %14179 = vst [vmem:[#allocation72_spill] sm:$0xff] %v9198_v32  ;;  %14180 = vst [vmem:[#allocation73_spill] sm:$0xff] %v9205_v30  ;;  %v773_v24 = vrot.slane %v757_v42, %v8938_v11  ;;  %v14187_v44 = vunpack.c.l.bf16 %v8923_v3  ;;  %v14189_v13 = vunpack.c.h.bf16 %v8923_v3  ;;  %v14191_v20 = vunpack.c.l.bf16 %v8925_v4 }
 0x202   :  { %14181 = vst [vmem:[#allocation74_spill] sm:$0xff] %v9208_v31  ;;  %14182 = vst [vmem:[#allocation75_spill] sm:$0xff] %v9211_v36  ;;  %v9222_v18 = vrot.slane %v579_v8, %v8931_v7  ;;  %v14192_v21 = vunpack.c.h.bf16 %v8925_v4  ;;  %v14193_v8 = vunpack.c.l.bf16 %v8934_v9  ;;  %v14197_v4 = vunpack.c.h.bf16 %v8936_v10 }
 0x203   :  { %14183 = vst [vmem:[#allocation76_spill] sm:$0xff] %v9214_v15  ;;  %v9226_v38 = vmul.f32 %v14187_v44, %v583_v19  ;;  %v9230_v49 = vmul.f32 %v14189_v13, %v583_v19  ;;  %v624_v25 = vmul.f32 %v14191_v20, %v9193_v50  ;;  %v14194_v44 = vunpack.c.h.bf16 %v8934_v9 }
 0x204   :  { %14186 = vst [vmem:[#allocation77_spill] sm:$0xff] %v9222_v18  ;;  %v625_v2 = vmul.f32 %v14192_v21, %v9193_v50  ;;  %v636_v42 = vmul.f32 %v14193_v8, %v9198_v32  ;;  %v14195_v19 = vunpack.c.l.bf16 %v8936_v10  ;;  %v641_v21 = vmul.f32 %v14197_v4, %v9208_v31 }
 0x205   :  { %14188 = vst [vmem:[#allocation78_spill] sm:$0xff] %v9226_v38  ;;  %14190 = vst [vmem:[#allocation79_spill] sm:$0xff] %v9230_v49  ;;  %v637_v38 = vmul.f32 %v14194_v44, %v9198_v32  ;;  %v14196_v49 = vunpack.c.l.bf16 %v8927_v5  ;;  %v14198_v50 = vunpack.c.l.bf16 %v8944_v16  ;;  %v14199_v9 = vunpack.c.h.bf16 %v8944_v16  ;;  %v9259_v32 = vpop.f32.mrb[16].mxu0 }
 0x206   :  { %v640_v13 = vmul.f32 %v14195_v19, %v9208_v31  ;;  %v14200_v19 = vunpack.c.h.bf16 %v8927_v5  ;;  %v14202_v4 = vunpack.c.h.bf16 %v8929_v6  ;;  %v8104_v16 = vpop.f32.mrb[17].mxu0  ;;  %v652_v43 = vadd.f32 %v636_v42, %v620_v0 }
 0x207   :  { %v628_v20 = vmul.f32 %v14196_v49, %v9205_v30  ;;  %v644_v8 = vmul.f32 %v14198_v50, %v9211_v36  ;;  %v645_v44 = vmul.f32 %v14199_v9, %v9211_v36  ;;  %v14201_v49 = vunpack.c.l.bf16 %v8929_v6 }
 0x208   :  { %v629_v3 = vmul.f32 %v14200_v19, %v9205_v30  ;;  %v633_v10 = vmul.f32 %v14202_v4, %v9214_v15  ;;  %v14203_v50 = vunpack.c.l.bf16 %v8946_v17  ;;  %v14204_v9 = vunpack.c.h.bf16 %v8946_v17  ;;  %v8106_v30 = vpop.f32.mrb[18].mxu0 }
 0x209   :  { %v632_v37 = vmul.f32 %v14201_v49, %v9214_v15  ;;  %v653_v5 = vadd.f32 %v637_v38, %v621_v33  ;;  %v9276_v19 = vadd.f32 %v640_v13, %v624_v25  ;;  %v660_v63 = vadd.f32 %v644_v8, %v628_v20  ;;  %v8107_v6 = vpop.f32.mrb[19].mxu0 }
 0x20a   :  { %v648_v31 = vmul.f32 %v14203_v50, %v9222_v18  ;;  %v649_v36 = vmul.f32 %v14204_v9, %v9222_v18  ;;  %v766_v49 = vcombine.high %v764_v14, %v764_v14  ;;  %v780_v62 = vrot.slane %v764_v14, %v8938_v11 }
 0x20b   :  { %v787_v4 = vrot.slane %v765_v57, %v8938_v11  ;;  %v9280_v15 = vadd.f32 %v641_v21, %v625_v2  ;;  %v661_v50 = vadd.f32 %v645_v44, %v629_v3  ;;  %v795_v39 = vcombine.high %v773_v24, %v773_v24 }
 0x20c   :  { %v802_v48 = vrot.slane %v773_v24, %v8931_v7  ;;  %v794_v9 = vrot.slane %v766_v49, %v8938_v11  ;;  %v796_v0 = vcombine.high %v780_v62, %v780_v62  ;;  %v9287_v25 = vadd.f32 %v648_v31, %v632_v37 }
 0x20d   :  { %v797_v33 = vcombine.high %v787_v4, %v787_v4  ;;  %v9285_v38 = vrot.slane %v787_v4, %v8931_v7  ;;  %v9289_v42 = vadd.f32 %v649_v36, %v633_v10  ;;  %v9292_v57 = vrot.slane %v795_v39, %v8931_v7 }
 0x20e   :  { %v9295_v2 = vrot.slane %v780_v62, %v8931_v7  ;;  %v9297_v3 = vadd.f32 %v660_v63, %v652_v43  ;;  %v798_v24 = vcombine.high %v794_v9, %v794_v9  ;;  %v9300_v14 = vrot.slane %v794_v9, %v8931_v7  ;;  %v8109_v43 = vpop.f32.mrb[20].mxu0 }
 0x20f   :  { %14205 = vst [vmem:[#allocation80_spill] sm:$0xff] %v9285_v38  ;;  %14206 = vst [vmem:[#allocation81_spill] sm:$0xff] %v9292_v57  ;;  %v9303_v13 = vrot.slane %v796_v0, %v8931_v7  ;;  %v9305_v20 = vadd.f32 %v661_v50, %v653_v5  ;;  %v9308_v10 = vrot.slane %v797_v33, %v8931_v7  ;;  %v14211_v37 = vunpack.c.l.bf16 %v8952_v22  ;;  %v8110_v4 = vpop.f32.mrb[21].mxu0 }
 0x210   :  { %14207 = vst [vmem:[#allocation82_spill] sm:$0xff] %v9295_v2  ;;  %14208 = vst [vmem:[#allocation83_spill] sm:$0xff] %v9300_v14  ;;  %v14212_v62 = vunpack.c.h.bf16 %v8952_v22  ;;  %v9315_v63 = vrot.slane %v798_v24, %v8931_v7  ;;  %v14214_v36 = vunpack.c.l.bf16 %v8954_v23  ;;  %v14216_v5 = vunpack.c.h.bf16 %v8954_v23 }
 0x211   :  { %14209 = vst [vmem:[#allocation84_spill] sm:$0xff] %v9303_v13  ;;  %14210 = vst [vmem:[#allocation85_spill] sm:$0xff] %v9308_v10  ;;  %v839_v39 = vmul.f32 %v14211_v37, %v802_v48  ;;  %v14218_v44 = vunpack.c.l.bf16 %v8960_v28  ;;  %v14219_v50 = vunpack.c.h.bf16 %v8960_v28  ;;  %v14220_v0 = vunpack.c.l.bf16 %v8962_v29 }
 0x212   :  { %v840_v31 = vmul.f32 %v14212_v62, %v802_v48  ;;  %14213 = vst [vmem:[#allocation86_spill] sm:$0xff] %v9315_v63  ;;  %v9319_v21 = vmul.f32 %v14214_v36, %v802_v48  ;;  %v9323_v8 = vmul.f32 %v14216_v5, %v802_v48  ;;  %v14221_v24 = vunpack.c.l.bf16 %v8970_v35  ;;  %v9340_v36 = vpop.f32.mrb[22].mxu0 }
 0x213   :  { %v843_v49 = vmul.f32 %v14218_v44, %v9285_v38  ;;  %v844_v9 = vmul.f32 %v14219_v50, %v9285_v38  ;;  %v847_v33 = vmul.f32 %v14220_v0, %v9292_v57  ;;  %v14222_v48 = vunpack.c.h.bf16 %v8970_v35  ;;  %v9354_v35 = vpop.f32.mrb[23].mxu0 }
 0x214   :  { %14215 = vst [vmem:[#allocation87_spill] sm:$0xff] %v9319_v21  ;;  %14217 = vst [vmem:[#allocation88_spill] sm:$0xff] %v9323_v8  ;;  %v855_v37 = vmul.f32 %v14221_v24, %v9295_v2  ;;  %v14223_v5 = vunpack.c.l.bf16 %v8976_v40  ;;  %v14224_v50 = vunpack.c.h.bf16 %v8976_v40  ;;  %v14225_v0 = vunpack.c.l.bf16 %v8978_v41 }
 0x215   :  { %v856_v62 = vmul.f32 %v14222_v48, %v9295_v2  ;;  %v14226_v24 = vunpack.c.h.bf16 %v8978_v41  ;;  %v14227_v48 = vunpack.c.h.bf16 %v8962_v29 }
 0x216   :  { %v859_v44 = vmul.f32 %v14223_v5, %v9300_v14  ;;  %v860_v28 = vmul.f32 %v14224_v50, %v9300_v14  ;;  %v863_v17 = vmul.f32 %v14225_v0, %v9303_v13  ;;  %v14228_v5 = vunpack.c.l.bf16 %v8968_v34 }
 0x217   :  { %v864_v8 = vmul.f32 %v14226_v24, %v9303_v13  ;;  %v848_v21 = vmul.f32 %v14227_v48, %v9292_v57  ;;  %v14229_v50 = vunpack.c.h.bf16 %v8968_v34  ;;  %v14230_v0 = vunpack.c.l.bf16 %v8984_v46 }
 0x218   :  { %v851_v2 = vmul.f32 %v14228_v5, %v9308_v10  ;;  %v14231_v24 = vunpack.c.h.bf16 %v8984_v46  ;;  %v871_v13 = vadd.f32 %v855_v37, %v839_v39  ;;  %v872_v38 = vadd.f32 %v856_v62, %v840_v31 }
 0x219   :  { %v852_v40 = vmul.f32 %v14229_v50, %v9308_v10  ;;  %v867_v14 = vmul.f32 %v14230_v0, %v9315_v63  ;;  %v879_v29 = vadd.f32 %v863_v17, %v847_v33  ;;  %v880_v48 = vadd.f32 %v864_v8, %v848_v21 }
 0x21a   :  { %v868_v41 = vmul.f32 %v14231_v24, %v9315_v63  ;;  %v8099_v57 = vadd.f32 %v9186_v55, %v9183_v12  ;;  %v8102_v5 = vadd.f32 %v9201_v26, %v9195_v27  ;;  %v8105_v50 = vadd.f32 %v8104_v16, %v9259_v32 }
 0x21b   :  { %v9376_v34 = vadd.f32 %v859_v44, %v843_v49  ;;  %v9378_v10 = vadd.f32 %v860_v28, %v844_v9  ;;  %v9380_v0 = vadd.f32 %v8107_v6, %v8106_v30  ;;  %v9382_v46 = vadd.f32 %v8110_v4, %v8109_v43 }
 0x21c   :  { %v9384_v39 = vadd.f32 %v867_v14, %v851_v2  ;;  %v969_v17 = vcombine.high %v8099_v57, %v8099_v57  ;;  %v976_v31 = vrot.slane %v8099_v57, %v8938_v11  ;;  %v1188_v21 = vcombine.high %v8102_v5, %v8102_v5 }
 0x21d   :  { %v9387_v55 = vadd.f32 %v868_v41, %v852_v40  ;;  %v9389_v12 = vadd.f32 %v879_v29, %v871_v13  ;;  %v1195_v16 = vrot.slane %v8102_v5, %v8938_v11  ;;  %v1346_v26 = vcombine.high %v8105_v50, %v8105_v50 }
 0x21e   :  { %v9392_v32 = vadd.f32 %v880_v48, %v872_v38  ;;  %v983_v6 = vrot.slane %v969_v17, %v8938_v11  ;;  %v984_v28 = vcombine.high %v976_v31, %v976_v31  ;;  %v992_v27 = vrot.slane %v976_v31, %v8938_v11 }
 0x21f   :  { %v1202_v30 = vrot.slane %v1188_v21, %v8938_v11  ;;  %v9398_v2 = vrot.slane %v8105_v50, %v8938_v11  ;;  %v9404_v29 = vrot.slane %v9380_v0, %v8938_v11  ;;  %v1203_v43 = vcombine.high %v1195_v16, %v1195_v16 }
 0x220   :  { %v985_v41 = vcombine.high %v983_v6, %v983_v6  ;;  %v999_v38 = vrot.slane %v983_v6, %v8938_v11  ;;  %v1006_v57 = vrot.slane %v984_v28, %v8938_v11  ;;  %v1014_v14 = vcombine.high %v992_v27, %v992_v27 }
 0x221   :  { %v1021_v13 = vrot.slane %v992_v27, %v8931_v7  ;;  %v1211_v8 = vrot.slane %v1195_v16, %v8938_v11  ;;  %v9411_v49 = vrot.slane %v1346_v26, %v8938_v11  ;;  %v1204_v24 = vcombine.high %v1202_v30, %v1202_v30 }
 0x222   :  { %v1013_v4 = vrot.slane %v985_v41, %v8938_v11  ;;  %v1015_v9 = vcombine.high %v999_v38, %v999_v38  ;;  %v1016_v33 = vcombine.high %v1006_v57, %v1006_v57  ;;  %v9415_v37 = vrot.slane %v1006_v57, %v8931_v7 }
 0x223   :  { %v9418_v62 = vrot.slane %v1014_v14, %v8931_v7  ;;  %v9421_v44 = vrot.slane %v999_v38, %v8931_v7  ;;  %v1218_v31 = vrot.slane %v1202_v30, %v8938_v11  ;;  %v14238_v16 = vunpack.c.l.bf16 %v8986_v47 }
 0x224   :  { %14232 = vst [vmem:[#allocation89_spill] sm:$0xff] %v9415_v37  ;;  %v1017_v5 = vcombine.high %v1013_v4, %v1013_v4  ;;  %v9426_v50 = vrot.slane %v1013_v4, %v8931_v7  ;;  %v9429_v17 = vrot.slane %v1015_v9, %v8931_v7  ;;  %v9433_v21 = vrot.slane %v1016_v33, %v8931_v7 }
 0x225   :  { %14233 = vst [vmem:[#allocation90_spill] sm:$0xff] %v9418_v62  ;;  %14234 = vst [vmem:[#allocation91_spill] sm:$0xff] %v9421_v44  ;;  %v1058_v26 = vmul.f32 %v14238_v16, %v1021_v13  ;;  %v14239_v6 = vunpack.c.h.bf16 %v8986_v47  ;;  %v1225_v27 = vrot.slane %v1203_v43, %v8938_v11  ;;  %v14240_v38 = vunpack.c.l.bf16 %v8992_v52 }
 0x226   :  { %14235 = vst [vmem:[#allocation92_spill] sm:$0xff] %v9426_v50  ;;  %14236 = vst [vmem:[#allocation93_spill] sm:$0xff] %v9429_v17  ;;  %v9441_v41 = vrot.slane %v1017_v5, %v8931_v7  ;;  %v14242_v30 = vunpack.c.h.bf16 %v8992_v52  ;;  %v14244_v4 = vunpack.c.l.bf16 %v8994_v53  ;;  %v14245_v33 = vunpack.c.h.bf16 %v8994_v53 }
 0x227   :  { %14237 = vst [vmem:[#allocation94_spill] sm:$0xff] %v9433_v21  ;;  %v1059_v28 = vmul.f32 %v14239_v6, %v1021_v13  ;;  %v9445_v57 = vmul.f32 %v14240_v38, %v1021_v13  ;;  %v14246_v43 = vunpack.c.l.bf16 %v9000_v58  ;;  %v14247_v6 = vunpack.c.l.bf16 %v9008_v60 }
 0x228   :  { %v9449_v14 = vmul.f32 %v14242_v30, %v1021_v13  ;;  %v1062_v9 = vmul.f32 %v14244_v4, %v9415_v37  ;;  %v1063_v16 = vmul.f32 %v14245_v33, %v9415_v37  ;;  %v14248_v13 = vunpack.c.h.bf16 %v9008_v60 }
 0x229   :  { %14241 = vst [vmem:[#allocation95_spill] sm:$0xff] %v9445_v57  ;;  %v1066_v5 = vmul.f32 %v14246_v43, %v9418_v62  ;;  %v1074_v38 = vmul.f32 %v14247_v6, %v9421_v44  ;;  %v14249_v40 = vunpack.c.l.bf16 %v9010_v1  ;;  %v14250_v48 = vunpack.c.h.bf16 %v9010_v1 }
 0x22a   :  { %14243 = vst [vmem:[#allocation96_spill] sm:$0xff] %v9449_v14  ;;  %v1075_v30 = vmul.f32 %v14248_v13, %v9421_v44  ;;  %v14251_v53 = vunpack.c.l.bf16 %v9016_v56  ;;  %v14252_v14 = vunpack.c.h.bf16 %v9016_v56  ;;  %v14253_v60 = vunpack.c.h.bf16 %v9000_v58 }
 0x22b   :  { %v1078_v4 = vmul.f32 %v14249_v40, %v9426_v50  ;;  %v1079_v33 = vmul.f32 %v14250_v48, %v9426_v50  ;;  %v14254_v57 = vunpack.c.l.bf16 %v9002_v59  ;;  %v14255_v1 = vunpack.c.h.bf16 %v9002_v59 }
 0x22c   :  { %v1082_v43 = vmul.f32 %v14251_v53, %v9429_v17  ;;  %v1083_v6 = vmul.f32 %v14252_v14, %v9429_v17  ;;  %v1067_v13 = vmul.f32 %v14253_v60, %v9418_v62  ;;  %v14256_v50 = vunpack.c.l.bf16 %v9018_v61 }
 0x22d   :  { %v1070_v40 = vmul.f32 %v14254_v57, %v9433_v21  ;;  %v1071_v48 = vmul.f32 %v14255_v1, %v9433_v21  ;;  %v14257_v56 = vunpack.c.h.bf16 %v9018_v61  ;;  %v1090_v17 = vadd.f32 %v1074_v38, %v1058_v26  ;;  %v14282_v61 = vld [vmem:[#allocation38_spill] sm:$0xff] }
 0x22e   :  { %v1086_v53 = vmul.f32 %v14256_v50, %v9441_v41  ;;  %v1091_v44 = vadd.f32 %v1075_v30, %v1059_v28  ;;  %v1098_v58 = vadd.f32 %v1082_v43, %v1066_v5  ;;  %v1099_v60 = vadd.f32 %v1083_v6, %v1067_v13  ;;  %v14270_v13 = vld [vmem:[#allocation39_spill] sm:$0xff] }
 0x22f   :  { %v1087_v14 = vmul.f32 %v14257_v56, %v9441_v41  ;;  %v1232_v62 = vrot.slane %v1204_v24, %v8938_v11  ;;  %v1233_v37 = vcombine.high %v1211_v8, %v1211_v8  ;;  %v1234_v57 = vcombine.high %v1218_v31, %v1218_v31 }
 0x230   :  { %v9494_v63 = vadd.f32 %v1078_v4, %v1062_v9  ;;  %v9496_v59 = vadd.f32 %v1079_v33, %v1063_v16  ;;  %v1235_v1 = vcombine.high %v1225_v27, %v1225_v27  ;;  %v1240_v21 = vrot.slane %v1211_v8, %v8931_v7 }
 0x231   :  { %v9499_v50 = vadd.f32 %v1086_v53, %v1070_v40  ;;  %v1236_v18 = vcombine.high %v1232_v62, %v1232_v62  ;;  %v9502_v56 = vrot.slane %v1225_v27, %v8931_v7  ;;  %v9505_v26 = vrot.slane %v1218_v31, %v8931_v7 }
 0x232   :  { %v9507_v28 = vadd.f32 %v1087_v14, %v1071_v48  ;;  %v9509_v24 = vadd.f32 %v1098_v58, %v1090_v17  ;;  %v9512_v9 = vrot.slane %v1232_v62, %v8931_v7  ;;  %v9515_v16 = vrot.slane %v1234_v57, %v8931_v7 }
 0x233   :  { %14258 = vst [vmem:[#allocation97_spill] sm:$0xff] %v9505_v26  ;;  %v9517_v8 = vadd.f32 %v1099_v60, %v1091_v44  ;;  %v9520_v5 = vrot.slane %v1233_v37, %v8931_v7  ;;  %v9523_v27 = vrot.slane %v1235_v1, %v8931_v7  ;;  %v14262_v31 = vunpack.c.l.bf16 %v9024_v51  ;;  %v14273_v60 = vld [vmem:[#allocation40_spill] sm:$0xff] }
 0x234   :  { %14259 = vst [vmem:[#allocation98_spill] sm:$0xff] %v9512_v9  ;;  %14260 = vst [vmem:[#allocation99_spill] sm:$0xff] %v9515_v16  ;;  %v9528_v58 = vrot.slane %v1236_v18, %v8931_v7  ;;  %v14263_v62 = vunpack.c.h.bf16 %v9024_v51  ;;  %v14264_v30 = vunpack.c.l.bf16 %v9026_v54  ;;  %v14266_v44 = vunpack.c.h.bf16 %v9026_v54 }
 0x235   :  { %14261 = vst [vmem:[#allocation100_spill] sm:$0xff] %v9520_v5  ;;  %v1277_v38 = vmul.f32 %v14262_v31, %v1240_v21  ;;  %v14268_v33 = vunpack.c.l.bf16 %v9032_v45  ;;  %v14269_v6 = vunpack.c.h.bf16 %v9032_v45  ;;  %v14271_v40 = vunpack.c.l.bf16 %v14270_v13 }
 0x236   :  { %v1278_v17 = vmul.f32 %v14263_v62, %v1240_v21  ;;  %v9534_v4 = vmul.f32 %v14264_v30, %v1240_v21  ;;  %v9538_v37 = vmul.f32 %v14266_v44, %v1240_v21  ;;  %v14272_v53 = vunpack.c.h.bf16 %v14270_v13  ;;  %v14276_v62 = vld [vmem:[#allocation41_spill] sm:$0xff] }
 0x237   :  { %v1281_v43 = vmul.f32 %v14268_v33, %v9502_v56  ;;  %v1282_v18 = vmul.f32 %v14269_v6, %v9502_v56  ;;  %v1293_v48 = vmul.f32 %v14271_v40, %v9505_v26  ;;  %v14274_v21 = vunpack.c.l.bf16 %v14273_v60  ;;  %v14279_v40 = vld [vmem:[#allocation37_spill] sm:$0xff] }
 0x238   :  { %14265 = vst [vmem:[#allocation101_spill] sm:$0xff] %v9534_v4  ;;  %14267 = vst [vmem:[#allocation102_spill] sm:$0xff] %v9538_v37  ;;  %v1294_v14 = vmul.f32 %v14272_v53, %v9505_v26  ;;  %v14275_v1 = vunpack.c.h.bf16 %v14273_v60  ;;  %v14277_v30 = vunpack.c.l.bf16 %v14276_v62  ;;  %v14278_v33 = vunpack.c.h.bf16 %v14276_v62  ;;  %v14285_v4 = vld [vmem:[#allocation42_spill] sm:$0xff] }
 0x239   :  { %v1297_v57 = vmul.f32 %v14274_v21, %v9512_v9  ;;  %v14280_v13 = vunpack.c.l.bf16 %v14279_v40  ;;  %v14281_v45 = vunpack.c.h.bf16 %v14279_v40  ;;  %v14283_v60 = vunpack.c.l.bf16 %v14282_v61 }
 0x23a   :  { %v1298_v31 = vmul.f32 %v14275_v1, %v9512_v9  ;;  %v1301_v44 = vmul.f32 %v14277_v30, %v9515_v16  ;;  %v1302_v6 = vmul.f32 %v14278_v33, %v9515_v16  ;;  %v14284_v37 = vunpack.c.h.bf16 %v14282_v61 }
 0x23b   :  { %v1285_v53 = vmul.f32 %v14280_v13, %v9520_v5  ;;  %v1286_v21 = vmul.f32 %v14281_v45, %v9520_v5  ;;  %v1289_v1 = vmul.f32 %v14283_v60, %v9523_v27  ;;  %v14286_v62 = vunpack.c.l.bf16 %v14285_v4 }
 0x23c   :  { %v1290_v30 = vmul.f32 %v14284_v37, %v9523_v27  ;;  %v14287_v16 = vunpack.c.h.bf16 %v14285_v4  ;;  %v1309_v9 = vadd.f32 %v1293_v48, %v1277_v38  ;;  %v1310_v26 = vadd.f32 %v1294_v14, %v1278_v17  ;;  %v8365_v37 = vld [vmem:[%s13468_s3 + $0xc0] sm:$0xff]  }
 0x23d   :  { %v1305_v33 = vmul.f32 %v14286_v62, %v9528_v58  ;;  %v1317_v40 = vadd.f32 %v1301_v44, %v1285_v53  ;;  %v1318_v45 = vadd.f32 %v1302_v6, %v1286_v21  ;;  %v1362_v5 = vcombine.high %v9411_v49, %v9411_v49  ;;  %v9592_v62 = vld [vmem:[%s13468_s3 + $0x80] sm:$0xff]   ;;  %8115 = vmatprep.subr.bf16.mxu0 %v8365_v37 }
 0x23e   :  { %v1306_v13 = vmul.f32 %v14287_v16, %v9528_v58  ;;  %v1369_v60 = vrot.slane %v9398_v2, %v8938_v11  ;;  %v9597_v16 = vld [vmem:[%s13468_s3 + $0xc8] sm:$0xff]   ;;  %v9599_v38 = vadd.f32 %v1297_v57, %v1281_v43  ;;  %v9601_v17 = vadd.f32 %v1298_v31, %v1282_v18  ;;  %8116 = vmatpush3.bf16.msra.mxu0 %v9592_v62 }
 0x23f   :  { %v1376_v48 = vrot.slane %v9411_v49, %v8938_v11  ;;  %v14288_v14 = vcombine.high %v9398_v2, %v9398_v2  ;;  %v1390_v6 = vrot.slane %v1362_v5, %v8938_v11  ;;  %v14289_v43 = vcombine.high %v9380_v0, %v9380_v0  ;;  %v9623_v2 = vld [vmem:[%s13468_s3 + $0x88] sm:$0xff]   ;;  %8117 = vmatprep.subr.bf16.mxu0 %v9597_v16 }
 0x240   :  { %v1391_v53 = vcombine.high %v1369_v60, %v1369_v60  ;;  %v1398_v21 = vrot.slane %v1369_v60, %v8931_v7  ;;  %v9615_v18 = vadd.f32 %v1305_v33, %v1289_v1  ;;  %v9617_v31 = vadd.f32 %v1306_v13, %v1290_v30  ;;  %v9639_v30 = vld [vmem:[%s13468_s3 + $0xd0] sm:$0xff]   ;;  %8195 = vmatprep.subr.bf16.mxu1 %v8365_v37 }
 0x241   :  { %v1383_v44 = vrot.slane %v14288_v14, %v8938_v11  ;;  %v1514_v57 = vrot.slane %v14289_v43, %v8938_v11  ;;  %v1392_v49 = vcombine.high %v1376_v48, %v1376_v48  ;;  %v9625_v5 = vadd.f32 %v1317_v40, %v1309_v9  ;;  %v14293_v9 = vld [vmem:[#allocation10_spill] sm:$0xff] }
 0x242   :  { %v9627_v60 = vadd.f32 %v1318_v45, %v1310_v26  ;;  %v9633_v1 = vrot.slane %v1376_v48, %v8931_v7  ;;  %v1394_v33 = vcombine.high %v1390_v6, %v1390_v6  ;;  %v9642_v13 = vrot.slane %v1391_v53, %v8931_v7  ;;  %8118 = vmatpush3.bf16.msra.mxu0 %v9623_v2 }
 0x243   :  { %v1393_v4 = vcombine.high %v1383_v44, %v1383_v44  ;;  %v9630_v0 = vrot.slane %v1383_v44, %v8931_v7  ;;  %v9645_v26 = vrot.slane %v1390_v6, %v8931_v7  ;;  %v14294_v40 = vunpack.c.l.bf16 %v14293_v9  ;;  %v14300_v6 = vld [vmem:[#allocation11_spill] sm:$0xff]  ;;  %8119 = vmatprep.subr.bf16.mxu0 %v9639_v30 }
 0x244   :  { %14290 = vst [vmem:[#allocation103_spill] sm:$0xff] %v9633_v1  ;;  %14291 = vst [vmem:[#allocation104_spill] sm:$0xff] %v9642_v13  ;;  %v9655_v14 = vrot.slane %v1392_v49, %v8931_v7  ;;  %v1515_v44 = vcombine.high %v9404_v29, %v9404_v29  ;;  %v1516_v43 = vcombine.high %v1514_v57, %v1514_v57  ;;  %v14298_v53 = vunpack.c.h.bf16 %v14293_v9  ;;  %v9674_v49 = vld [vmem:[%s13468_s3 + $0x90] sm:$0xff]  }
 0x245   :  { %14292 = vst [vmem:[#allocation105_spill] sm:$0xff] %v9645_v26  ;;  %v9649_v45 = vmul.f32 %v14294_v40, %v1398_v21  ;;  %v9652_v48 = vrot.slane %v1393_v4, %v8931_v7  ;;  %v14301_v26 = vunpack.c.l.bf16 %v14300_v6  ;;  %v1523_v37 = vrot.slane %v9404_v29, %v8938_v11  ;;  %v9686_v29 = vld [vmem:[%s13468_s3 + $0xd8] sm:$0xff]  }
 0x246   :  { %14297 = vst [vmem:[#allocation107_spill] sm:$0xff] %v9655_v14  ;;  %v9661_v61 = vmul.f32 %v14298_v53, %v1398_v21  ;;  %v1530_v4 = vrot.slane %v1514_v57, %v8938_v11  ;;  %v1537_v9 = vrot.slane %v1515_v44, %v8938_v11  ;;  %v1544_v40 = vrot.slane %v1516_v43, %v8938_v11 }
 0x247   :  { %14295 = vst [vmem:[#allocation10_spill] sm:$0xff] %v9649_v45  ;;  %14296 = vst [vmem:[#allocation106_spill] sm:$0xff] %v9652_v48  ;;  %v9665_v1 = vmul.f32 %v14301_v26, %v1398_v21  ;;  %v1654_v26 = vcombine.high %v9382_v46, %v9382_v46  ;;  %v8114_v53 = vadd.f32 %v9354_v35, %v9340_v36  ;;  %v14303_v45 = vunpack.c.h.bf16 %v14300_v6 }
 0x248   :  { %14299 = vst [vmem:[#allocation108_spill] sm:$0xff] %v9661_v61  ;;  %v1545_v57 = vcombine.high %v1523_v37, %v1523_v37  ;;  %v1552_v61 = vrot.slane %v1523_v37, %v8931_v7  ;;  %v1661_v44 = vrot.slane %v9382_v46, %v8938_v11  ;;  %v9692_v43 = vrot.slane %v1394_v33, %v8931_v7 }
 0x249   :  { %14302 = vst [vmem:[#allocation11_spill] sm:$0xff] %v9665_v1  ;;  %v1546_v1 = vcombine.high %v1530_v4, %v1530_v4  ;;  %v9696_v35 = vmul.f32 %v14303_v45, %v1398_v21  ;;  %v1547_v36 = vcombine.high %v1537_v9, %v1537_v9  ;;  %v1548_v48 = vcombine.high %v1544_v40, %v1544_v40 }
 0x24a   :  { %v9699_v14 = vrot.slane %v1537_v9, %v8931_v7  ;;  %v9702_v13 = vrot.slane %v1530_v4, %v8931_v7  ;;  %v9705_v37 = vrot.slane %v1544_v40, %v8931_v7  ;;  %v672_v46 = vadd.f32 %v9287_v25, %v9276_v19  ;;  %8120 = vmatpush3.bf16.msra.mxu0 %v9674_v49 }
 0x24b   :  { %14304 = vst [vmem:[#allocation109_spill] sm:$0xff] %v9696_v35  ;;  %v9711_v33 = vrot.slane %v1545_v57, %v8931_v7  ;;  %v9714_v21 = vrot.slane %v1546_v1, %v8931_v7  ;;  %v14308_v45 = vunpack.c.l.bf16 %v8952_v22  ;;  %v14310_v4 = vunpack.c.h.bf16 %v8952_v22  ;;  %8121 = vmatprep.subr.bf16.mxu0 %v9686_v29 }
 0x24c   :  { %14305 = vst [vmem:[#allocation110_spill] sm:$0xff] %v9702_v13  ;;  %14306 = vst [vmem:[#allocation111_spill] sm:$0xff] %v9705_v37  ;;  %v1668_v19 = vrot.slane %v1654_v26, %v8938_v11  ;;  %v1669_v25 = vcombine.high %v1661_v44, %v1661_v44  ;;  %v1677_v40 = vrot.slane %v1661_v44, %v8938_v11  ;;  %v14315_v44 = vunpack.c.h.bf16 %v8954_v23 }
 0x24d   :  { %14307 = vst [vmem:[#allocation112_spill] sm:$0xff] %v9714_v21  ;;  %v9718_v6 = vmul.f32 %v14308_v45, %v1552_v61  ;;  %v9722_v9 = vmul.f32 %v14310_v4, %v1552_v61  ;;  %v1808_v57 = vcombine.high %v8114_v53, %v8114_v53  ;;  %v9728_v35 = vrot.slane %v1547_v36, %v8931_v7 }
 0x24e   :  { %v9731_v1 = vrot.slane %v1548_v48, %v8931_v7  ;;  %v14313_v45 = vunpack.c.l.bf16 %v8954_v23  ;;  %v1815_v22 = vrot.slane %v8114_v53, %v8938_v11  ;;  %v1670_v4 = vcombine.high %v1668_v19, %v1668_v19 }
 0x24f   :  { %14309 = vst [vmem:[#allocation113_spill] sm:$0xff] %v9718_v6  ;;  %14311 = vst [vmem:[#allocation114_spill] sm:$0xff] %v9722_v9  ;;  %v1684_v9 = vrot.slane %v1668_v19, %v8938_v11  ;;  %v1691_v26 = vrot.slane %v1669_v25, %v8938_v11  ;;  %v1699_v21 = vcombine.high %v1677_v40, %v1677_v40 }
 0x250   :  { %14312 = vst [vmem:[#allocation115_spill] sm:$0xff] %v9731_v1  ;;  %v9735_v6 = vmul.f32 %v14313_v45, %v1552_v61  ;;  %v9742_v37 = vmul.f32 %v14315_v44, %v1552_v61  ;;  %v1706_v36 = vrot.slane %v1677_v40, %v8931_v7  ;;  %v1822_v48 = vrot.slane %v1808_v57, %v8938_v11 }
 0x251   :  { %v673_v45 = vadd.f32 %v9289_v42, %v9280_v15  ;;  %v1701_v53 = vcombine.high %v1691_v26, %v1691_v26  ;;  %v1823_v1 = vcombine.high %v1815_v22, %v1815_v22  ;;  %v1831_v19 = vrot.slane %v1815_v22, %v8938_v11 }
 0x252   :  { %14314 = vst [vmem:[#allocation116_spill] sm:$0xff] %v9735_v6  ;;  %14316 = vst [vmem:[#allocation117_spill] sm:$0xff] %v9742_v37  ;;  %v1698_v6 = vrot.slane %v1670_v4, %v8938_v11  ;;  %v1700_v13 = vcombine.high %v1684_v9, %v1684_v9  ;;  %v9751_v25 = vrot.slane %v1691_v26, %v8931_v7  ;;  %v14317_v42 = vunpack.c.l.bf16 %v8986_v47 }
 0x253   :  { %v676_v23 = vadd.f32 %v672_v46, %v9297_v3  ;;  %v891_v61 = vadd.f32 %v9384_v39, %v9376_v34  ;;  %v9757_v57 = vrot.slane %v1699_v21, %v8931_v7  ;;  %v9760_v15 = vrot.slane %v1684_v9, %v8931_v7 }
 0x254   :  { %v1702_v40 = vcombine.high %v1698_v6, %v1698_v6  ;;  %v9764_v4 = vmul.f32 %v14317_v42, %v1706_v36  ;;  %v9767_v22 = vrot.slane %v1701_v53, %v8931_v7  ;;  %v14318_v26 = vunpack.c.h.bf16 %v8986_v47 }
 0x255   :  { %v1824_v46 = vcombine.high %v1822_v48, %v1822_v48  ;;  %v1838_v34 = vrot.slane %v1822_v48, %v8938_v11  ;;  %v9775_v39 = vrot.slane %v1698_v6, %v8931_v7  ;;  %v1845_v21 = vrot.slane %v1823_v1, %v8938_v11 }
 0x256   :  { %v9771_v3 = vmul.f32 %v14318_v26, %v1706_v36  ;;  %v1853_v9 = vcombine.high %v1831_v19, %v1831_v19  ;;  %v9779_v44 = vrot.slane %v1831_v19, %v8931_v7  ;;  %v9782_v42 = vrot.slane %v1700_v13, %v8931_v7 }
 0x257   :  { %v14321_v53 = vunpack.c.l.bf16 %v8992_v52  ;;  %v9789_v26 = vrot.slane %v1824_v46, %v8938_v11  ;;  %v1854_v48 = vcombine.high %v1838_v34, %v1838_v34  ;;  %v9792_v6 = vrot.slane %v1702_v40, %v8931_v7 }
 0x258   :  { %14319 = vst [vmem:[#allocation118_spill] sm:$0xff] %v9771_v3  ;;  %14320 = vst [vmem:[#allocation119_spill] sm:$0xff] %v9779_v44  ;;  %v14324_v1 = vunpack.c.h.bf16 %v8992_v52  ;;  %v1855_v19 = vcombine.high %v1845_v21, %v1845_v21  ;;  %v9799_v3 = vrot.slane %v1838_v34, %v8931_v7  ;;  %v9802_v13 = vrot.slane %v1845_v21, %v8931_v7 }
 0x259   :  { %v9786_v47 = vmul.f32 %v14321_v53, %v1706_v36  ;;  %14323 = vst [vmem:[#allocation121_spill] sm:$0xff] %v9792_v6  ;;  %v9805_v53 = vrot.slane %v1853_v9, %v8931_v7  ;;  %v14329_v46 = vunpack.c.l.bf16 %v9024_v51  ;;  %v677_v40 = vadd.f32 %v673_v45, %v9305_v20 }
 0x25a   :  { %v9796_v37 = vmul.f32 %v14324_v1, %v1706_v36  ;;  %14326 = vst [vmem:[#allocation123_spill] sm:$0xff] %v9799_v3  ;;  %14327 = vst [vmem:[#allocation124_spill] sm:$0xff] %v9802_v13  ;;  %v9817_v36 = vrot.slane %v9789_v26, %v8931_v7  ;;  %v9820_v34 = vrot.slane %v1854_v48, %v8931_v7  ;;  %v14334_v1 = vunpack.c.h.bf16 %v9024_v51 }
 0x25b   :  { %14322 = vst [vmem:[#allocation120_spill] sm:$0xff] %v9786_v47  ;;  %14328 = vst [vmem:[#allocation125_spill] sm:$0xff] %v9805_v53  ;;  %v9810_v11 = vmul.f32 %v14329_v46, %v9779_v44  ;;  %v892_v21 = vadd.f32 %v9387_v55, %v9378_v10  ;;  %v9825_v9 = vrot.slane %v1855_v19, %v8931_v7 }
 0x25c   :  { %14325 = vst [vmem:[#allocation122_spill] sm:$0xff] %v9796_v37  ;;  %14331 = vst [vmem:[#allocation127_spill] sm:$0xff] %v9817_v36  ;;  %v9830_v20 = vmul.f32 %v14334_v1, %v9779_v44  ;;  %v1110_v45 = vadd.f32 %v9499_v50, %v9494_v63  ;;  %v1111_v46 = vadd.f32 %v9507_v28, %v9496_v59  ;;  %v14336_v1 = vld [vmem:[#allocation71_spill] sm:$0xff] }
 0x25d   :  { %14330 = vst [vmem:[#allocation126_spill] sm:$0xff] %v9810_v11  ;;  %14332 = vst [vmem:[#allocation128_spill] sm:$0xff] %v9820_v34  ;;  %v895_v48 = vadd.f32 %v891_v61, %v9389_v12  ;;  %v896_v52 = vadd.f32 %v892_v21, %v9392_v32  ;;  %v1329_v10 = vadd.f32 %v9615_v18, %v9599_v38  ;;  %v14337_v37 = vld [vmem:[#allocation43_spill] sm:$0xff]  ;;  %v14340_v38 = vld [vmem:[#allocation73_spill] sm:$0xff] }
 0x25e   :  { %14333 = vst [vmem:[#allocation129_spill] sm:$0xff] %v9825_v9  ;;  %14335 = vst [vmem:[#allocation130_spill] sm:$0xff] %v9830_v20  ;;  %v1330_v55 = vadd.f32 %v9617_v31, %v9601_v17  ;;  %v1114_v51 = vadd.f32 %v1110_v45, %v9509_v24  ;;  %v1115_v19 = vadd.f32 %v1111_v46, %v9517_v8  ;;  %v14338_v63 = vunpack.c.l.bf16 %v14337_v37  ;;  %v14341_v18 = vld [vmem:[#allocation44_spill] sm:$0xff]  ;;  %v14345_v46 = vld [vmem:[#allocation46_spill] sm:$0xff] }
 0x25f   :  { %v14339_v59 = vunpack.c.h.bf16 %v14337_v37  ;;  %v1333_v32 = vadd.f32 %v1329_v10, %v9625_v5  ;;  %v14342_v61 = vunpack.c.l.bf16 %v14341_v18  ;;  %v14343_v24 = vunpack.c.h.bf16 %v14341_v18  ;;  %v14344_v45 = vld [vmem:[#allocation76_spill] sm:$0xff]  ;;  %v14351_v20 = vld [vmem:[#allocation74_spill] sm:$0xff]  ;;  %v14352_v11 = vld [vmem:[#allocation47_spill] sm:$0xff] }
 0x260   :  { %v626_v50 = vmul.f32 %v14338_v63, %v14336_v1  ;;  %v1334_v28 = vadd.f32 %v1330_v55, %v9627_v60  ;;  %v1118_v31 = vadd.f32 %v1114_v51, %v676_v23  ;;  %v1119_v21 = vadd.f32 %v1115_v19, %v677_v40  ;;  %v14347_v37 = vld [vmem:[#allocation72_spill] sm:$0xff]  ;;  %v14355_v51 = vld [vmem:[#allocation75_spill] sm:$0xff] }
 0x261   :  { %v627_v12 = vmul.f32 %v14339_v59, %v14336_v1  ;;  %v630_v17 = vmul.f32 %v14342_v61, %v14340_v38  ;;  %v631_v8 = vmul.f32 %v14343_v24, %v14340_v38  ;;  %v14346_v63 = vunpack.c.l.bf16 %v14345_v46  ;;  %v14348_v1 = vld [vmem:[#allocation45_spill] sm:$0xff]  ;;  %v14356_v19 = vld [vmem:[#allocation48_spill] sm:$0xff] }
 0x262   :  { %v14349_v59 = vunpack.c.l.bf16 %v14348_v1  ;;  %v1337_v10 = vadd.f32 %v1333_v32, %v895_v48  ;;  %v1338_v60 = vadd.f32 %v1334_v28, %v896_v52  ;;  %v14350_v55 = vunpack.c.h.bf16 %v14348_v1  ;;  %v14359_v32 = vld [vmem:[#allocation77_spill] sm:$0xff] }
 0x263   :  { %v634_v47 = vmul.f32 %v14346_v63, %v14344_v45  ;;  %v14353_v18 = vunpack.c.l.bf16 %v14352_v11  ;;  %v14354_v23 = vunpack.c.h.bf16 %v14352_v11  ;;  %v14357_v24 = vunpack.c.l.bf16 %v14356_v19  ;;  %v14360_v28 = vld [vmem:[#allocation49_spill] sm:$0xff]  ;;  %v14364_v11 = vld [vmem:[#allocation78_spill] sm:$0xff] }
 0x264   :  { %v638_v5 = vmul.f32 %v14349_v59, %v14347_v37  ;;  %v639_v61 = vmul.f32 %v14350_v55, %v14347_v37  ;;  %v14358_v48 = vunpack.c.h.bf16 %v14356_v19  ;;  %v14361_v59 = vunpack.c.l.bf16 %v14360_v28 }
 0x265   :  { %v642_v38 = vmul.f32 %v14353_v18, %v14351_v20  ;;  %v643_v40 = vmul.f32 %v14354_v23, %v14351_v20  ;;  %v646_v63 = vmul.f32 %v14357_v24, %v14355_v51  ;;  %v1341_v55 = vadd.f32 %v1337_v10, %v1118_v31  ;;  %v14367_v10 = vld [vmem:[#allocation79_spill] sm:$0xff] }
 0x266   :  { %v647_v52 = vmul.f32 %v14358_v48, %v14355_v51  ;;  %v650_v37 = vmul.f32 %v14361_v59, %v14359_v32  ;;  %v1342_v1 = vadd.f32 %v1338_v60, %v1119_v21  ;;  %v14362_v18 = vunpack.c.h.bf16 %v14345_v46  ;;  %v14368_v59 = vld [vmem:[#allocation80_spill] sm:$0xff] }
 0x267   :  { %v14363_v20 = vunpack.c.h.bf16 %v14360_v28  ;;  %v654_v24 = vadd.f32 %v638_v5, %v14364_v11  ;;  %v658_v34 = vadd.f32 %v642_v38, %v626_v50  ;;  %v659_v36 = vadd.f32 %v643_v40, %v627_v12 }
 0x268   :  { %v635_v9 = vmul.f32 %v14362_v18, %v14344_v45  ;;  %v662_v19 = vadd.f32 %v646_v63, %v630_v17  ;;  %v1965_v51 = vpack.c.bf16 %v1342_v1, %v1341_v55  ;;  %v663_v48 = vadd.f32 %v647_v52, %v631_v8  ;;  %v14369_v18 = vld [vmem:[#allocation50_spill] sm:$0xff]  ;;  %v14373_v17 = vld [vmem:[#allocation51_spill] sm:$0xff]  ;;  %v14378_v63 = vld [vmem:[#allocation53_spill] sm:$0xff] }
 0x269   :  { %v651_v23 = vmul.f32 %v14363_v20, %v14359_v32  ;;  %v666_v3 = vadd.f32 %v650_v37, %v634_v47  ;;  %v14365_v31 = vunpack.c.l.bf16 %v9026_v54  ;;  %v655_v45 = vadd.f32 %v639_v61, %v14367_v10  ;;  %v14382_v37 = vld [vmem:[#allocation52_spill] sm:$0xff]  ;;  %v14399_v54 = vld [vmem:[#allocation89_spill] sm:$0xff] }
 0x26a   :  { %v670_v60 = vadd.f32 %v662_v19, %v654_v24  ;;  %v14370_v32 = vunpack.c.l.bf16 %v14369_v18  ;;  %2249 = vmatmul.mubr.bf16.vlgmr.msra.gmra.mrb[8].mxu1 %v1965_v51  ;;  %v14371_v12 = vunpack.c.h.bf16 %v14369_v18  ;;  %v14374_v8 = vunpack.c.l.bf16 %v14373_v17  ;;  %v14377_v19 = vld [vmem:[#allocation82_spill] sm:$0xff] }
 0x26b   :  { %v667_v53 = vadd.f32 %v651_v23, %v635_v9  ;;  %v9892_v21 = vmul.f32 %v14365_v31, %v9779_v44  ;;  %v674_v11 = vadd.f32 %v666_v3, %v658_v34  ;;  %v14372_v9 = vld [vmem:[#allocation81_spill] sm:$0xff]  ;;  %v14375_v5 = vmov 0   ;;  %v14386_v31 = vld [vmem:[#allocation54_spill] sm:$0xff]  ;;  %8203 = vmatpush3.bf16.msra.mxu1 %v9592_v62 }
 0x26c   :  { %v845_v20 = vmul.f32 %v14370_v32, %v14368_v59  ;;  %v846_v47 = vmul.f32 %v14371_v12, %v14368_v59  ;;  %v849_v1 = vmul.f32 %v14374_v8, %v14372_v9  ;;  %2258 = vmatprep.mubr.bf16.mxu1 %v14375_v5  ;;  %v671_v38 = vadd.f32 %v663_v48, %v655_v45  ;;  %v14381_v34 = vld [vmem:[#allocation85_spill] sm:$0xff]  ;;  %v14385_v48 = vld [vmem:[#allocation83_spill] sm:$0xff]  ;;  %v14389_v12 = vld [vmem:[#allocation84_spill] sm:$0xff] }
 0x26d   :  { %14366 = vst [vmem:[#allocation71_spill] sm:$0xff] %v9892_v21  ;;  %v675_v50 = vadd.f32 %v667_v53, %v659_v36  ;;  %v14376_v61 = vunpack.c.h.bf16 %v14373_v17  ;;  %v14379_v52 = vunpack.c.l.bf16 %v14378_v63  ;;  %v14380_v53 = vunpack.c.h.bf16 %v14378_v63  ;;  %8196 = vmatprep.subr.bf16.mxu1 %v9597_v16 }
 0x26e   :  { %v14383_v55 = vunpack.c.l.bf16 %v14382_v37  ;;  %v14384_v24 = vunpack.c.h.bf16 %v14382_v37  ;;  %v14387_v10 = vunpack.c.l.bf16 %v14386_v31  ;;  %v14388_v59 = vunpack.c.h.bf16 %v14386_v31  ;;  %v14398_v31 = vld [vmem:[#allocation88_spill] sm:$0xff] }
 0x26f   :  { %v850_v40 = vmul.f32 %v14376_v61, %v14372_v9  ;;  %v857_v3 = vmul.f32 %v14379_v52, %v14377_v19  ;;  %v858_v36 = vmul.f32 %v14380_v53, %v14377_v19  ;;  %v14390_v9 = vld [vmem:[#allocation55_spill] sm:$0xff]  ;;  %v14393_v53 = vld [vmem:[#allocation86_spill] sm:$0xff]  ;;  %v679_v62 = vadd.f32 %v675_v50, %v671_v38  ;;  %8204 = vmatpush3.bf16.msra.mxu1 %v9623_v2 }
 0x270   :  { %v853_v23 = vmul.f32 %v14383_v55, %v14381_v34  ;;  %v854_v51 = vmul.f32 %v14384_v24, %v14381_v34  ;;  %v861_v45 = vmul.f32 %v14387_v10, %v14385_v48  ;;  %v862_v32 = vmul.f32 %v14388_v59, %v14385_v48  ;;  %v14394_v34 = vld [vmem:[#allocation56_spill] sm:$0xff]  ;;  %v14397_v59 = vld [vmem:[#allocation87_spill] sm:$0xff]  ;;  %v14403_v50 = vld [vmem:[#allocation90_spill] sm:$0xff]  ;;  %8197 = vmatprep.subr.bf16.mxu1 %v9639_v30 }
 0x271   :  { %v14391_v8 = vunpack.c.l.bf16 %v14390_v9  ;;  %v14392_v19 = vunpack.c.h.bf16 %v14390_v9  ;;  %v14395_v55 = vunpack.c.l.bf16 %v14394_v34  ;;  %v14396_v10 = vunpack.c.h.bf16 %v14394_v34  ;;  %v14404_v38 = vld [vmem:[#allocation58_spill] sm:$0xff]  ;;  %v14416_v30 = vld [vmem:[#allocation61_spill] sm:$0xff] }
 0x272   :  { %v678_v48 = vadd.f32 %v674_v11, %v670_v60  ;;  %v873_v37 = vadd.f32 %v857_v3, %v14397_v59  ;;  %v878_v18 = vadd.f32 %v862_v32, %v846_v47  ;;  %v14407_v3 = vld [vmem:[#allocation91_spill] sm:$0xff]  ;;  %v14420_v59 = vld [vmem:[#allocation62_spill] sm:$0xff] }
 0x273   :  { %v865_v61 = vmul.f32 %v14391_v8, %v14389_v12  ;;  %v866_v52 = vmul.f32 %v14392_v19, %v14389_v12  ;;  %v869_v24 = vmul.f32 %v14395_v55, %v14393_v53  ;;  %v870_v21 = vmul.f32 %v14396_v10, %v14393_v53  ;;  %v14400_v55 = vld [vmem:[#allocation57_spill] sm:$0xff]  ;;  %8205 = vmatpush3.bf16.msra.mxu1 %v9674_v49 }
 0x274   :  { %v874_v8 = vadd.f32 %v858_v36, %v14398_v31  ;;  %v877_v19 = vadd.f32 %v861_v45, %v845_v20  ;;  %v14401_v44 = vunpack.c.l.bf16 %v14400_v55  ;;  %v14402_v53 = vunpack.c.h.bf16 %v14400_v55  ;;  %v14408_v36 = vld [vmem:[#allocation59_spill] sm:$0xff]  ;;  %v14419_v10 = vld [vmem:[#allocation93_spill] sm:$0xff]  ;;  %8198 = vmatprep.subr.bf16.mxu1 %v9686_v29 }
 0x275   :  { %v881_v63 = vadd.f32 %v865_v61, %v849_v1  ;;  %v882_v17 = vadd.f32 %v866_v52, %v850_v40  ;;  %v885_v9 = vadd.f32 %v869_v24, %v853_v23  ;;  %v886_v12 = vadd.f32 %v870_v21, %v854_v51  ;;  %v14415_v61 = vld [vmem:[#allocation92_spill] sm:$0xff]  ;;  %v14432_v29 = vld [vmem:[#allocation65_spill] sm:$0xff] }
 0x276   :  { %v1064_v46 = vmul.f32 %v14401_v44, %v14399_v54  ;;  %v1065_v16 = vmul.f32 %v14402_v53, %v14399_v54  ;;  %v14405_v1 = vunpack.c.l.bf16 %v14404_v38  ;;  %v14406_v21 = vunpack.c.h.bf16 %v14404_v38 }
 0x277   :  { %v889_v60 = vadd.f32 %v881_v63, %v873_v37  ;;  %v890_v11 = vadd.f32 %v882_v17, %v874_v8  ;;  %v893_v47 = vadd.f32 %v885_v9, %v877_v19  ;;  %v894_v44 = vadd.f32 %v886_v12, %v878_v18  ;;  %v14411_v63 = vld [vmem:[#allocation94_spill] sm:$0xff]  ;;  %v14412_v37 = vld [vmem:[#allocation60_spill] sm:$0xff] }
 0x278   :  { %v1068_v40 = vmul.f32 %v14405_v1, %v14403_v50  ;;  %v1069_v20 = vmul.f32 %v14406_v21, %v14403_v50  ;;  %v14409_v23 = vunpack.c.l.bf16 %v14408_v36  ;;  %v14410_v2 = vunpack.c.h.bf16 %v14408_v36  ;;  %v14423_v50 = vld [vmem:[#allocation63_spill] sm:$0xff]  ;;  %v14511_v36 = vld [vmem:[#allocation28_spill] sm:$0xff] }
 0x279   :  { %v14413_v51 = vunpack.c.l.bf16 %v14412_v37  ;;  %v14414_v45 = vunpack.c.h.bf16 %v14412_v37  ;;  %v14417_v9 = vunpack.c.l.bf16 %v14416_v30  ;;  %v14418_v52 = vunpack.c.h.bf16 %v14416_v30  ;;  %v14428_v37 = vld [vmem:[#allocation64_spill] sm:$0xff] }
 0x27a   :  { %v1076_v54 = vmul.f32 %v14409_v23, %v14407_v3  ;;  %v1077_v17 = vmul.f32 %v14410_v2, %v14407_v3  ;;  %v14421_v8 = vunpack.c.l.bf16 %v14420_v59  ;;  %v14422_v19 = vunpack.c.h.bf16 %v14420_v59  ;;  %v14426_v2 = vld [vmem:[#allocation95_spill] sm:$0xff] }
 0x27b   :  { %v1072_v31 = vmul.f32 %v14413_v51, %v14411_v63  ;;  %v1073_v32 = vmul.f32 %v14414_v45, %v14411_v63  ;;  %v1080_v18 = vmul.f32 %v14417_v9, %v14415_v61  ;;  %v1081_v24 = vmul.f32 %v14418_v52, %v14415_v61  ;;  %v14427_v51 = vld [vmem:[#allocation96_spill] sm:$0xff] }
 0x27c   :  { %v1084_v12 = vmul.f32 %v14421_v8, %v14419_v10  ;;  %v1085_v53 = vmul.f32 %v14422_v19, %v14419_v10  ;;  %v14424_v1 = vunpack.c.l.bf16 %v14423_v50  ;;  %v14425_v3 = vunpack.c.h.bf16 %v14423_v50 }
 0x27d   :  { %v1092_v63 = vadd.f32 %v1076_v54, %v14426_v2  ;;  %v1093_v45 = vadd.f32 %v1077_v17, %v14427_v51  ;;  %v1096_v61 = vadd.f32 %v1080_v18, %v1064_v46  ;;  %v1097_v9 = vadd.f32 %v1081_v24, %v1065_v16  ;;  %v14431_v18 = vld [vmem:[#allocation100_spill] sm:$0xff] }
 0x27e   :  { %v1088_v21 = vmul.f32 %v14424_v1, %v9441_v41  ;;  %v1089_v23 = vmul.f32 %v14425_v3, %v9441_v41  ;;  %v1100_v52 = vadd.f32 %v1084_v12, %v1068_v40  ;;  %v1101_v10 = vadd.f32 %v1085_v53, %v1069_v20 }
 0x27f   :  { %v897_v59 = vadd.f32 %v893_v47, %v889_v60  ;;  %v898_v1 = vadd.f32 %v894_v44, %v890_v11  ;;  %v14429_v50 = vunpack.c.l.bf16 %v14428_v37  ;;  %v14430_v49 = vunpack.c.h.bf16 %v14428_v37  ;;  %v14435_v47 = vld [vmem:[#allocation97_spill] sm:$0xff]  ;;  %v14436_v44 = vld [vmem:[#allocation67_spill] sm:$0xff] }
 0x280   :  { %v1104_v8 = vadd.f32 %v1088_v21, %v1072_v31  ;;  %v1105_v19 = vadd.f32 %v1089_v23, %v1073_v32  ;;  %v1108_v3 = vadd.f32 %v1100_v52, %v1092_v63  ;;  %v1109_v17 = vadd.f32 %v1101_v10, %v1093_v45  ;;  %v14440_v21 = vld [vmem:[#allocation68_spill] sm:$0xff]  ;;  %v14443_v45 = vld [vmem:[#allocation99_spill] sm:$0xff] }
 0x281   :  { %v1283_v41 = vmul.f32 %v14429_v50, %v9502_v56  ;;  %v1284_v54 = vmul.f32 %v14430_v49, %v9502_v56  ;;  %v14433_v40 = vunpack.c.l.bf16 %v14432_v29  ;;  %v14434_v60 = vunpack.c.h.bf16 %v14432_v29  ;;  %v14439_v50 = vld [vmem:[#allocation98_spill] sm:$0xff] }
 0x282   :  { %v1112_v46 = vadd.f32 %v1104_v8, %v1096_v61  ;;  %v1113_v16 = vadd.f32 %v1105_v19, %v1097_v9  ;;  %v14437_v31 = vunpack.c.l.bf16 %v14436_v44  ;;  %v14438_v24 = vunpack.c.h.bf16 %v14436_v44  ;;  %v14444_v61 = vld [vmem:[#allocation69_spill] sm:$0xff]  ;;  %v14447_v19 = vld [vmem:[#allocation70_spill] sm:$0xff] }
 0x283   :  { %v1287_v20 = vmul.f32 %v14433_v40, %v14431_v18  ;;  %v1288_v11 = vmul.f32 %v14434_v60, %v14431_v18  ;;  %v14441_v23 = vunpack.c.l.bf16 %v14440_v21  ;;  %v14442_v63 = vunpack.c.h.bf16 %v14440_v21  ;;  %v14450_v40 = vld [vmem:[#allocation66_spill] sm:$0xff] }
 0x284   :  { %v1295_v32 = vmul.f32 %v14437_v31, %v14435_v47  ;;  %v1296_v56 = vmul.f32 %v14438_v24, %v14435_v47  ;;  %v1116_v12 = vadd.f32 %v1112_v46, %v1108_v3  ;;  %v1117_v53 = vadd.f32 %v1113_v16, %v1109_v17 }
 0x285   :  { %v1299_v2 = vmul.f32 %v14441_v23, %v14439_v50  ;;  %v1300_v51 = vmul.f32 %v14442_v63, %v14439_v50  ;;  %v14445_v9 = vunpack.c.l.bf16 %v14444_v61  ;;  %v14446_v10 = vunpack.c.h.bf16 %v14444_v61  ;;  %v14453_v50 = vld [vmem:[#allocation101_spill] sm:$0xff]  ;;  %v14454_v63 = vld [vmem:[#allocation102_spill] sm:$0xff] }
 0x286   :  { %v14448_v49 = vunpack.c.l.bf16 %v14447_v19  ;;  %v14449_v17 = vunpack.c.h.bf16 %v14447_v19  ;;  %v1120_v16 = vadd.f32 %v1116_v12, %v678_v48  ;;  %v1121_v18 = vadd.f32 %v1117_v53, %v679_v62  ;;  %v14455_v12 = vld [vmem:[#allocation12_spill] sm:$0xff] }
 0x287   :  { %v1303_v52 = vmul.f32 %v14445_v9, %v14443_v45  ;;  %v1304_v8 = vmul.f32 %v14446_v10, %v14443_v45  ;;  %v14451_v60 = vunpack.c.l.bf16 %v14450_v40  ;;  %v14452_v31 = vunpack.c.h.bf16 %v14450_v40 }
 0x288   :  { %v1307_v3 = vmul.f32 %v14448_v49, %v9528_v58  ;;  %v1308_v46 = vmul.f32 %v14449_v17, %v9528_v58  ;;  %v1311_v23 = vadd.f32 %v1295_v32, %v14453_v50  ;;  %v1312_v45 = vadd.f32 %v1296_v56, %v14454_v63  ;;  %v14458_v50 = vld [vmem:[#allocation104_spill] sm:$0xff]  ;;  %v14459_v56 = vld [vmem:[#allocation13_spill] sm:$0xff] }
 0x289   :  { %v1291_v47 = vmul.f32 %v14451_v60, %v9523_v27  ;;  %v1292_v24 = vmul.f32 %v14452_v31, %v9523_v27  ;;  %v1319_v9 = vadd.f32 %v1303_v52, %v1287_v20  ;;  %v1320_v10 = vadd.f32 %v1304_v8, %v1288_v11 }
 0x28a   :  { %v1315_v49 = vadd.f32 %v1299_v2, %v1283_v41  ;;  %v1316_v61 = vadd.f32 %v1300_v51, %v1284_v54  ;;  %v14456_v53 = vunpack.c.l.bf16 %v14455_v12  ;;  %v14457_v60 = vunpack.c.h.bf16 %v14455_v12  ;;  %v14462_v2 = vld [vmem:[#allocation103_spill] sm:$0xff]  ;;  %v14463_v51 = vld [vmem:[#allocation16_spill] sm:$0xff] }
 0x28b   :  { %v1323_v19 = vadd.f32 %v1307_v3, %v1291_v47  ;;  %v1324_v58 = vadd.f32 %v1308_v46, %v1292_v24  ;;  %v1327_v48 = vadd.f32 %v1319_v9, %v1311_v23  ;;  %v1328_v62 = vadd.f32 %v1320_v10, %v1312_v45  ;;  %v14466_v47 = vld [vmem:[#allocation105_spill] sm:$0xff]  ;;  %v14470_v10 = vld [vmem:[#allocation107_spill] sm:$0xff] }
 0x28c   :  { %v1439_v17 = vmul.f32 %v14456_v53, %v9630_v0  ;;  %v1440_v27 = vmul.f32 %v14457_v60, %v9630_v0  ;;  %v14460_v20 = vunpack.c.l.bf16 %v14459_v56  ;;  %v14461_v41 = vunpack.c.h.bf16 %v14459_v56  ;;  %v14467_v24 = vld [vmem:[#allocation17_spill] sm:$0xff]  ;;  %v14474_v56 = vld [vmem:[#allocation106_spill] sm:$0xff] }
 0x28d   :  { %v1331_v31 = vadd.f32 %v1323_v19, %v1315_v49  ;;  %v1332_v32 = vadd.f32 %v1324_v58, %v1316_v61  ;;  %v14464_v52 = vunpack.c.l.bf16 %v14463_v51  ;;  %v14465_v3 = vunpack.c.h.bf16 %v14463_v51  ;;  %v14471_v49 = vld [vmem:[#allocation19_spill] sm:$0xff] }
 0x28e   :  { %v1443_v11 = vmul.f32 %v14460_v20, %v14458_v50  ;;  %v1444_v54 = vmul.f32 %v14461_v41, %v14458_v50  ;;  %v14468_v19 = vunpack.c.l.bf16 %v14467_v24  ;;  %v14469_v23 = vunpack.c.h.bf16 %v14467_v24  ;;  %v14475_v20 = vld [vmem:[#allocation14_spill] sm:$0xff]  ;;  %v14478_v24 = vld [vmem:[#allocation20_spill] sm:$0xff] }
 0x28f   :  { %v1451_v8 = vmul.f32 %v14464_v52, %v14462_v2  ;;  %v1452_v46 = vmul.f32 %v14465_v3, %v14462_v2  ;;  %v1335_v45 = vadd.f32 %v1331_v31, %v1327_v48  ;;  %v1336_v9 = vadd.f32 %v1332_v32, %v1328_v62 }
 0x290   :  { %v1455_v61 = vmul.f32 %v14468_v19, %v14466_v47  ;;  %v1456_v63 = vmul.f32 %v14469_v23, %v14466_v47  ;;  %v14472_v58 = vunpack.c.l.bf16 %v14471_v49  ;;  %v14473_v53 = vunpack.c.h.bf16 %v14471_v49  ;;  %v14481_v49 = vld [vmem:[#allocation10_spill] sm:$0xff] }
 0x291   :  { %v14476_v41 = vunpack.c.l.bf16 %v14475_v20  ;;  %v14477_v52 = vunpack.c.h.bf16 %v14475_v20  ;;  %v14479_v48 = vunpack.c.l.bf16 %v14478_v24  ;;  %v14480_v31 = vunpack.c.h.bf16 %v14478_v24 }
 0x292   :  { %v1459_v12 = vmul.f32 %v14472_v58, %v14470_v10  ;;  %v1460_v60 = vmul.f32 %v14473_v53, %v14470_v10  ;;  %v1339_v19 = vadd.f32 %v1335_v45, %v897_v59  ;;  %v1340_v23 = vadd.f32 %v1336_v9, %v898_v1  ;;  %v14482_v53 = vld [vmem:[#allocation108_spill] sm:$0xff]  ;;  %v14484_v1 = vld [vmem:[#allocation21_spill] sm:$0xff]  ;;  %v14490_v9 = vld [vmem:[#allocation23_spill] sm:$0xff] }
 0x293   :  { %v1447_v51 = vmul.f32 %v14476_v41, %v14474_v56  ;;  %v1448_v3 = vmul.f32 %v14477_v52, %v14474_v56  ;;  %v1463_v62 = vmul.f32 %v14479_v48, %v9692_v43  ;;  %v1464_v32 = vmul.f32 %v14480_v31, %v9692_v43 }
 0x294   :  { %v1467_v58 = vadd.f32 %v1451_v8, %v14481_v49  ;;  %v1468_v21 = vadd.f32 %v1452_v46, %v14482_v53  ;;  %v1475_v44 = vadd.f32 %v1459_v12, %v1443_v11  ;;  %v1476_v41 = vadd.f32 %v1460_v60, %v1444_v54  ;;  %v14500_v49 = vld [vmem:[#allocation112_spill] sm:$0xff] }
 0x295   :  { %v1479_v40 = vadd.f32 %v1463_v62, %v1447_v51  ;;  %v1480_v29 = vadd.f32 %v1464_v32, %v1448_v3  ;;  %v1343_v20 = vadd.f32 %v1339_v19, %v1120_v16  ;;  %v1344_v52 = vadd.f32 %v1340_v23, %v1121_v18  ;;  %v14492_v51 = vld [vmem:[#allocation110_spill] sm:$0xff]  ;;  %v14493_v3 = vld [vmem:[#allocation24_spill] sm:$0xff] }
 0x296   :  { %v1471_v37 = vadd.f32 %v1455_v61, %v1439_v17  ;;  %v1472_v30 = vadd.f32 %v1456_v63, %v1440_v27  ;;  %v14483_v48 = vcombine.high %v9789_v26, %v9789_v26  ;;  %v1483_v59 = vadd.f32 %v1475_v44, %v1467_v58  ;;  %v14487_v27 = vld [vmem:[#allocation22_spill] sm:$0xff] }
 0x297   :  { %v14485_v8 = vunpack.c.l.bf16 %v14484_v1  ;;  %v14486_v11 = vunpack.c.h.bf16 %v14484_v1  ;;  %v1966_v46 = vpack.c.bf16 %v1344_v52, %v1343_v20  ;;  %v1484_v16 = vadd.f32 %v1476_v41, %v1468_v21  ;;  %v14497_v21 = vld [vmem:[#allocation25_spill] sm:$0xff]  ;;  %v14501_v58 = vld [vmem:[#allocation26_spill] sm:$0xff] }
 0x298   :  { %v10082_v24 = vrot.slane %v14483_v48, %v8931_v7  ;;  %v1487_v18 = vadd.f32 %v1479_v40, %v1471_v37  ;;  %v1488_v17 = vadd.f32 %v1480_v29, %v1472_v30  ;;  %v14488_v61 = vunpack.c.l.bf16 %v14487_v27  ;;  %v14496_v29 = vld [vmem:[#allocation111_spill] sm:$0xff] }
 0x299   :  { %v1593_v45 = vmul.f32 %v14485_v8, %v9699_v14  ;;  %v1594_v54 = vmul.f32 %v14486_v11, %v9699_v14  ;;  %v14489_v26 = vunpack.c.h.bf16 %v14487_v27  ;;  %v14491_v12 = vunpack.c.l.bf16 %v14490_v9  ;;  %2259 = vmatmul.mubr.bf16.gmra.mrb[12].mxu1 %v1966_v46  ;;  %v14505_v8 = vld [vmem:[#allocation115_spill] sm:$0xff] }
 0x29a   :  { %v1597_v63 = vmul.f32 %v14488_v61, %v9711_v33  ;;  %v14494_v62 = vunpack.c.l.bf16 %v14493_v3  ;;  %v14495_v37 = vunpack.c.h.bf16 %v14493_v3  ;;  %v14498_v40 = vunpack.c.l.bf16 %v14497_v21  ;;  %2268 = vmatprep.mubr.bf16.mxu1 %v14375_v5  ;;  %v14506_v11 = vld [vmem:[#allocation27_spill] sm:$0xff] }
 0x29b   :  { %v1598_v44 = vmul.f32 %v14489_v26, %v9711_v33  ;;  %v1601_v60 = vmul.f32 %v14491_v12, %v9728_v35  ;;  %v14499_v19 = vunpack.c.h.bf16 %v14497_v21  ;;  %v14502_v53 = vunpack.c.l.bf16 %v14501_v58 }
 0x29c   :  { %v1605_v31 = vmul.f32 %v14494_v62, %v14492_v51  ;;  %v1606_v30 = vmul.f32 %v14495_v37, %v14492_v51  ;;  %v1609_v32 = vmul.f32 %v14498_v40, %v14496_v29  ;;  %v14503_v20 = vunpack.c.h.bf16 %v14490_v9  ;;  %v14509_v62 = vld [vmem:[#allocation113_spill] sm:$0xff]  ;;  %v14510_v40 = vld [vmem:[#allocation114_spill] sm:$0xff] }
 0x29d   :  { %v1610_v23 = vmul.f32 %v14499_v19, %v14496_v29  ;;  %v1613_v41 = vmul.f32 %v14502_v53, %v14500_v49  ;;  %v14504_v48 = vunpack.c.h.bf16 %v14501_v58  ;;  %v14507_v46 = vunpack.c.l.bf16 %v14506_v11 }
 0x29e   :  { %v1602_v52 = vmul.f32 %v14503_v20, %v9728_v35  ;;  %v14508_v61 = vunpack.c.h.bf16 %v14506_v11  ;;  %v1491_v12 = vadd.f32 %v1487_v18, %v1483_v59  ;;  %v1492_v3 = vadd.f32 %v1488_v17, %v1484_v16  ;;  %v14514_v18 = vld [vmem:[#allocation29_spill] sm:$0xff]  ;;  %v14522_v11 = vld [vmem:[#allocation30_spill] sm:$0xff] }
 0x29f   :  { %v1614_v1 = vmul.f32 %v14504_v48, %v14500_v49  ;;  %v1617_v27 = vmul.f32 %v14507_v46, %v14505_v8  ;;  %v1621_v37 = vadd.f32 %v1605_v31, %v14509_v62  ;;  %v1629_v21 = vadd.f32 %v1613_v41, %v1597_v63 }
 0x2a0   :  { %v1618_v26 = vmul.f32 %v14508_v61, %v14505_v8  ;;  %v1622_v9 = vadd.f32 %v1606_v30, %v14510_v40  ;;  %v1625_v58 = vadd.f32 %v1609_v32, %v1593_v45  ;;  %v1626_v48 = vadd.f32 %v1610_v23, %v1594_v54  ;;  %v14517_v54 = vld [vmem:[#allocation31_spill] sm:$0xff] }
 0x2a1   :  { %v1630_v19 = vadd.f32 %v1614_v1, %v1598_v44  ;;  %v1633_v53 = vadd.f32 %v1617_v27, %v1601_v60  ;;  %v1637_v7 = vadd.f32 %v1629_v21, %v1621_v37  ;;  %v14512_v46 = vunpack.c.l.bf16 %v14511_v36  ;;  %v14525_v37 = vld [vmem:[#allocation33_spill] sm:$0xff] }
 0x2a2   :  { %v1634_v20 = vadd.f32 %v1618_v26, %v1602_v52  ;;  %v14513_v59 = vunpack.c.h.bf16 %v14511_v36  ;;  %v14515_v17 = vunpack.c.l.bf16 %v14514_v18  ;;  %v14516_v44 = vunpack.c.h.bf16 %v14514_v18  ;;  %v14520_v36 = vld [vmem:[#allocation32_spill] sm:$0xff] }
 0x2a3   :  { %v1747_v38 = vmul.f32 %v14512_v46, %v9751_v25  ;;  %v1638_v55 = vadd.f32 %v1630_v19, %v1622_v9  ;;  %v1641_v45 = vadd.f32 %v1633_v53, %v1625_v58  ;;  %v14518_v31 = vunpack.c.l.bf16 %v14517_v54  ;;  %v14529_v58 = vld [vmem:[#allocation34_spill] sm:$0xff] }
 0x2a4   :  { %v1748_v16 = vmul.f32 %v14513_v59, %v9751_v25  ;;  %v1751_v63 = vmul.f32 %v14515_v17, %v9757_v57  ;;  %v1752_v60 = vmul.f32 %v14516_v44, %v9757_v57  ;;  %v14519_v32 = vunpack.c.h.bf16 %v14517_v54  ;;  %v14532_v44 = vld [vmem:[#allocation118_spill] sm:$0xff] }
 0x2a5   :  { %v1759_v30 = vmul.f32 %v14518_v31, %v9760_v15  ;;  %v14521_v41 = vunpack.c.l.bf16 %v14520_v36  ;;  %v1642_v1 = vadd.f32 %v1634_v20, %v1626_v48  ;;  %v14523_v27 = vunpack.c.l.bf16 %v14522_v11 }
 0x2a6   :  { %v1760_v23 = vmul.f32 %v14519_v32, %v9760_v15  ;;  %v14524_v26 = vunpack.c.h.bf16 %v14520_v36  ;;  %v14526_v21 = vunpack.c.l.bf16 %v14525_v37  ;;  %v14527_v9 = vunpack.c.h.bf16 %v14522_v11 }
 0x2a7   :  { %v1763_v52 = vmul.f32 %v14521_v41, %v9775_v39  ;;  %v1755_v61 = vmul.f32 %v14523_v27, %v9767_v22  ;;  %v14528_v53 = vunpack.c.h.bf16 %v14525_v37  ;;  %v14530_v48 = vunpack.c.l.bf16 %v14529_v58 }
 0x2a8   :  { %v1764_v62 = vmul.f32 %v14524_v26, %v9775_v39  ;;  %v1767_v40 = vmul.f32 %v14526_v21, %v9782_v42  ;;  %v1756_v19 = vmul.f32 %v14527_v9, %v9767_v22  ;;  %v14531_v59 = vunpack.c.h.bf16 %v14529_v58  ;;  %v14533_v21 = vld [vmem:[#allocation36_spill] sm:$0xff] }
 0x2a9   :  { %v1768_v20 = vmul.f32 %v14528_v53, %v9782_v42  ;;  %v1771_v46 = vmul.f32 %v14530_v48, %v9792_v6  ;;  %v1775_v17 = vadd.f32 %v1759_v30, %v9764_v4  ;;  %v1776_v54 = vadd.f32 %v1760_v23, %v14532_v44  ;;  %v14536_v23 = vld [vmem:[#allocation125_spill] sm:$0xff] }
 0x2aa   :  { %v1772_v18 = vmul.f32 %v14531_v59, %v9792_v6  ;;  %v1779_v31 = vadd.f32 %v1763_v52, %v1747_v38  ;;  %v1783_v32 = vadd.f32 %v1767_v40, %v1751_v63  ;;  %v1780_v36 = vadd.f32 %v1764_v62, %v1748_v16  ;;  %v14537_v38 = vld [vmem:[#allocation37_spill] sm:$0xff]  ;;  %v14541_v52 = vld [vmem:[#allocation39_spill] sm:$0xff] }
 0x2ab   :  { %v1784_v41 = vadd.f32 %v1768_v20, %v1752_v60  ;;  %v1787_v11 = vadd.f32 %v1771_v46, %v1755_v61  ;;  %v1645_v26 = vadd.f32 %v1641_v45, %v1637_v7  ;;  %v14534_v9 = vunpack.c.l.bf16 %v14533_v21  ;;  %v14540_v45 = vld [vmem:[#allocation123_spill] sm:$0xff]  ;;  %v14545_v46 = vld [vmem:[#allocation40_spill] sm:$0xff] }
 0x2ac   :  { %v1788_v27 = vadd.f32 %v1772_v18, %v1756_v19  ;;  %v1791_v37 = vadd.f32 %v1783_v32, %v1775_v17  ;;  %v14535_v58 = vunpack.c.h.bf16 %v14533_v21  ;;  %v14538_v63 = vunpack.c.l.bf16 %v14537_v38  ;;  %v14544_v20 = vld [vmem:[#allocation127_spill] sm:$0xff]  ;;  %v14551_v21 = vld [vmem:[#allocation129_spill] sm:$0xff] }
 0x2ad   :  { %v1901_v53 = vmul.f32 %v14534_v9, %v9802_v13  ;;  %v1792_v59 = vadd.f32 %v1784_v41, %v1776_v54  ;;  %v1795_v4 = vadd.f32 %v1787_v11, %v1779_v31  ;;  %v14539_v60 = vunpack.c.h.bf16 %v14537_v38  ;;  %v14549_v41 = vld [vmem:[#allocation41_spill] sm:$0xff]  ;;  %v14552_v9 = vld [vmem:[#allocation38_spill] sm:$0xff] }
 0x2ae   :  { %v1902_v48 = vmul.f32 %v14535_v58, %v9802_v13  ;;  %v1796_v30 = vadd.f32 %v1788_v27, %v1780_v36  ;;  %v1905_v16 = vmul.f32 %v14538_v63, %v14536_v23  ;;  %v14542_v61 = vunpack.c.l.bf16 %v14541_v52  ;;  %v14548_v36 = vld [vmem:[#allocation128_spill] sm:$0xff] }
 0x2af   :  { %v1906_v7 = vmul.f32 %v14539_v60, %v14536_v23  ;;  %v14543_v40 = vunpack.c.h.bf16 %v14541_v52  ;;  %v14546_v18 = vunpack.c.l.bf16 %v14545_v46  ;;  %v1799_v44 = vadd.f32 %v1795_v4, %v1791_v37  ;;  %v14555_v52 = vld [vmem:[#allocation42_spill] sm:$0xff] }
 0x2b0   :  { %v1913_v62 = vmul.f32 %v14542_v61, %v14540_v45  ;;  %v1800_v54 = vadd.f32 %v1796_v30, %v1792_v59  ;;  %v14547_v31 = vunpack.c.h.bf16 %v14545_v46  ;;  %v14550_v11 = vunpack.c.l.bf16 %v14549_v41 }
 0x2b1   :  { %v1914_v19 = vmul.f32 %v14543_v40, %v14540_v45  ;;  %v1917_v17 = vmul.f32 %v14546_v18, %v14544_v20  ;;  %v14553_v58 = vunpack.c.l.bf16 %v14552_v9  ;;  %v14554_v63 = vunpack.c.h.bf16 %v14549_v41  ;;  %v14560_v45 = vld [vmem:[#allocation130_spill] sm:$0xff] }
 0x2b2   :  { %v1918_v32 = vmul.f32 %v14547_v31, %v14544_v20  ;;  %v1921_v27 = vmul.f32 %v14550_v11, %v14548_v36  ;;  %v14556_v37 = vunpack.c.l.bf16 %v14555_v52  ;;  %v14557_v4 = vunpack.c.h.bf16 %v14555_v52  ;;  %v14559_v31 = vld [vmem:[#allocation126_spill] sm:$0xff] }
 0x2b3   :  { %v1909_v38 = vmul.f32 %v14553_v58, %v14551_v21  ;;  %v1922_v60 = vmul.f32 %v14554_v63, %v14548_v36  ;;  %v1803_v61 = vadd.f32 %v1799_v44, %v1491_v12  ;;  %v1804_v40 = vadd.f32 %v1800_v54, %v1492_v3  ;;  %v14561_v12 = vld [vmem:[#allocation43_spill] sm:$0xff]  ;;  %v14563_v54 = vld [vmem:[#allocation44_spill] sm:$0xff] }
 0x2b4   :  { %v1925_v59 = vmul.f32 %v14556_v37, %v10082_v24  ;;  %v1926_v30 = vmul.f32 %v14557_v4, %v10082_v24  ;;  %v14558_v46 = vunpack.c.h.bf16 %v14552_v9  ;;  %v1929_v11 = vadd.f32 %v1913_v62, %v14559_v31  ;;  %v14576_v31 = vld [vmem:[#allocation46_spill] sm:$0xff] }
 0x2b5   :  { %v1933_v58 = vadd.f32 %v1917_v17, %v1901_v53  ;;  %v1937_v20 = vadd.f32 %v1921_v27, %v1905_v16  ;;  %v1938_v41 = vadd.f32 %v1922_v60, %v1906_v7  ;;  %v1646_v36 = vadd.f32 %v1642_v1, %v1638_v55  ;;  %v14566_v1 = vld [vmem:[#allocation45_spill] sm:$0xff]  ;;  %v14569_v17 = vld [vmem:[#allocation47_spill] sm:$0xff] }
 0x2b6   :  { %v1910_v18 = vmul.f32 %v14558_v46, %v14551_v21  ;;  %v1941_v63 = vadd.f32 %v1925_v59, %v1909_v38  ;;  %v1930_v23 = vadd.f32 %v1914_v19, %v14560_v45  ;;  %v1934_v37 = vadd.f32 %v1918_v32, %v1902_v48 }
 0x2b7   :  { %v1945_v6 = vadd.f32 %v1937_v20, %v1929_v11  ;;  %v14562_v3 = vunpack.c.l.bf16 %v14561_v12  ;;  %v14564_v9 = vunpack.c.l.bf16 %v14563_v54  ;;  %v14565_v16 = vunpack.c.h.bf16 %v14563_v54  ;;  %v14581_v54 = vld [vmem:[#allocation11_spill] sm:$0xff] }
 0x2b8   :  { %v1942_v13 = vadd.f32 %v1926_v30, %v1910_v18  ;;  %v1949_v52 = vadd.f32 %v1941_v63, %v1933_v58  ;;  %v1946_v62 = vadd.f32 %v1938_v41, %v1930_v23  ;;  %v14567_v48 = vunpack.c.l.bf16 %v14566_v1 }
 0x2b9   :  { %v1441_v44 = vmul.f32 %v14562_v3, %v9630_v0  ;;  %v1445_v4 = vmul.f32 %v14564_v9, %v14458_v50  ;;  %v1446_v55 = vmul.f32 %v14565_v16, %v14458_v50  ;;  %v14568_v19 = vunpack.c.h.bf16 %v14566_v1  ;;  %v14572_v50 = vld [vmem:[#allocation48_spill] sm:$0xff] }
 0x2ba   :  { %v1950_v53 = vadd.f32 %v1942_v13, %v1934_v37  ;;  %v1453_v7 = vmul.f32 %v14567_v48, %v14462_v2  ;;  %v1953_v45 = vadd.f32 %v1949_v52, %v1945_v6  ;;  %v14570_v32 = vunpack.c.l.bf16 %v14569_v17 }
 0x2bb   :  { %v1454_v20 = vmul.f32 %v14568_v19, %v14462_v2  ;;  %v14571_v13 = vunpack.c.h.bf16 %v14569_v17  ;;  %v14573_v60 = vunpack.c.l.bf16 %v14572_v50  ;;  %v14574_v6 = vunpack.c.h.bf16 %v14572_v50 }
 0x2bc   :  { %v1457_v27 = vmul.f32 %v14570_v32, %v14466_v47  ;;  %v1954_v38 = vadd.f32 %v1950_v53, %v1946_v62  ;;  %v14575_v2 = vunpack.c.l.bf16 %v14360_v28  ;;  %v1957_v18 = vadd.f32 %v1953_v45, %v1645_v26  ;;  %v14582_v45 = vld [vmem:[#allocation109_spill] sm:$0xff]  ;;  %v14583_v32 = vld [vmem:[#allocation119_spill] sm:$0xff] }
 0x2bd   :  { %v1458_v23 = vmul.f32 %v14571_v13, %v14466_v47  ;;  %v1461_v59 = vmul.f32 %v14573_v60, %v14470_v10  ;;  %v1462_v30 = vmul.f32 %v14574_v6, %v14470_v10  ;;  %v14577_v11 = vunpack.c.l.bf16 %v14576_v31 }
 0x2be   :  { %v1465_v46 = vmul.f32 %v14575_v2, %v9692_v43  ;;  %v14578_v47 = vunpack.c.h.bf16 %v14576_v31  ;;  %v14579_v63 = vunpack.c.h.bf16 %v14360_v28  ;;  %v1958_v52 = vadd.f32 %v1954_v38, %v1646_v36  ;;  %v14584_v28 = vld [vmem:[#allocation35_spill] sm:$0xff] }
 0x2bf   :  { %v1449_v58 = vmul.f32 %v14577_v11, %v14474_v56  ;;  %v14580_v10 = vunpack.c.h.bf16 %v14561_v12  ;;  %v1469_v9 = vadd.f32 %v1453_v7, %v14581_v54  ;;  %v1477_v26 = vadd.f32 %v1461_v59, %v1445_v4  ;;  %v14592_v59 = vld [vmem:[#allocation53_spill] sm:$0xff] }
 0x2c0   :  { %v1450_v41 = vmul.f32 %v14578_v47, %v14474_v56  ;;  %v1466_v37 = vmul.f32 %v14579_v63, %v9692_v43  ;;  %v1961_v62 = vadd.f32 %v1957_v18, %v1803_v61  ;;  %v1478_v53 = vadd.f32 %v1462_v30, %v1446_v55  ;;  %v14598_v47 = vld [vmem:[#allocation55_spill] sm:$0xff] }
 0x2c1   :  { %v1442_v3 = vmul.f32 %v14580_v10, %v9630_v0  ;;  %v1481_v16 = vadd.f32 %v1465_v46, %v1449_v58  ;;  %v1962_v48 = vadd.f32 %v1958_v52, %v1804_v40  ;;  %v1470_v19 = vadd.f32 %v1454_v20, %v14582_v45  ;;  %v14586_v0 = vld [vmem:[#allocation50_spill] sm:$0xff] }
 0x2c2   :  { %v1482_v1 = vadd.f32 %v1466_v37, %v1450_v41  ;;  %v1473_v56 = vadd.f32 %v1457_v27, %v1441_v44  ;;  %v14585_v43 = vunpack.c.h.bf16 %v14584_v28  ;;  %v1485_v13 = vadd.f32 %v1477_v26, %v1469_v9  ;;  %v14589_v44 = vld [vmem:[#allocation51_spill] sm:$0xff]  ;;  %v14595_v46 = vld [vmem:[#allocation54_spill] sm:$0xff] }
 0x2c3   :  { %v1474_v17 = vadd.f32 %v1458_v23, %v1442_v3  ;;  %v14587_v12 = vunpack.c.l.bf16 %v14586_v0  ;;  %v14588_v61 = vunpack.c.h.bf16 %v14586_v0  ;;  %v1967_v55 = vpack.c.bf16 %v1962_v48, %v1961_v62  ;;  %v14607_v48 = vld [vmem:[#allocation117_spill] sm:$0xff] }
 0x2c4   :  { %v10264_v36 = vmul.f32 %v14585_v43, %v14583_v32  ;;  %v1486_v40 = vadd.f32 %v1478_v53, %v1470_v19  ;;  %v1489_v38 = vadd.f32 %v1481_v16, %v1473_v56  ;;  %v14590_v27 = vunpack.c.l.bf16 %v14589_v44  ;;  %v14606_v16 = vld [vmem:[#allocation116_spill] sm:$0xff]  ;;  %v14608_v43 = vld [vmem:[#allocation57_spill] sm:$0xff] }
 0x2c5   :  { %v1595_v7 = vmul.f32 %v14587_v12, %v9699_v14  ;;  %v1596_v4 = vmul.f32 %v14588_v61, %v9699_v14  ;;  %v1490_v20 = vadd.f32 %v1482_v1, %v1474_v17  ;;  %v14591_v50 = vunpack.c.h.bf16 %v14589_v44  ;;  %2269 = vmatmul.mubr.bf16.gmra.mrb[16].mxu1 %v1967_v55  ;;  %v14611_v55 = vld [vmem:[#allocation58_spill] sm:$0xff] }
 0x2c6   :  { %v1599_v23 = vmul.f32 %v14590_v27, %v9711_v33  ;;  %v14593_v6 = vunpack.c.l.bf16 %v14592_v59  ;;  %v14594_v2 = vunpack.c.h.bf16 %v14592_v59  ;;  %v14596_v18 = vunpack.c.l.bf16 %v14595_v46  ;;  %2278 = vmatprep.mubr.bf16.mxu1 %v14375_v5 }
 0x2c7   :  { %v1600_v60 = vmul.f32 %v14591_v50, %v9711_v33  ;;  %v14597_v11 = vunpack.c.h.bf16 %v14595_v46  ;;  %v14599_v33 = vunpack.c.l.bf16 %v14598_v47  ;;  %v14600_v63 = vunpack.c.h.bf16 %v14598_v47 }
 0x2c8   :  { %v1607_v30 = vmul.f32 %v14593_v6, %v14492_v51  ;;  %v1608_v14 = vmul.f32 %v14594_v2, %v14492_v51  ;;  %v1611_v31 = vmul.f32 %v14596_v18, %v14496_v29  ;;  %v14601_v51 = vld [vmem:[#allocation52_spill] sm:$0xff]  ;;  %v14605_v26 = vunpack.c.h.bf16 %v14394_v34 }
 0x2c9   :  { %v1612_v58 = vmul.f32 %v14597_v11, %v14496_v29  ;;  %v1615_v41 = vmul.f32 %v14599_v33, %v14500_v49  ;;  %v1616_v37 = vmul.f32 %v14600_v63, %v14500_v49  ;;  %v14602_v52 = vunpack.c.l.bf16 %v14601_v51  ;;  %v14620_v2 = vld [vmem:[#allocation60_spill] sm:$0xff]  ;;  %v14626_v33 = vld [vmem:[#allocation121_spill] sm:$0xff] }
 0x2ca   :  { %v14603_v3 = vunpack.c.h.bf16 %v14601_v51  ;;  %v14604_v29 = vunpack.c.l.bf16 %v14394_v34  ;;  %v1620_v62 = vmul.f32 %v14605_v26, %v14505_v8  ;;  %v1493_v53 = vadd.f32 %v1489_v38, %v1485_v13 }
 0x2cb   :  { %v1603_v10 = vmul.f32 %v14602_v52, %v9728_v35  ;;  %v1494_v49 = vadd.f32 %v1490_v20, %v1486_v40  ;;  %v1623_v1 = vadd.f32 %v1607_v30, %v14606_v16  ;;  %v1624_v45 = vadd.f32 %v1608_v14, %v14607_v48  ;;  %v14614_v20 = vld [vmem:[#allocation59_spill] sm:$0xff]  ;;  %v14630_v52 = vld [vmem:[#allocation120_spill] sm:$0xff] }
 0x2cc   :  { %v1604_v54 = vmul.f32 %v14603_v3, %v9728_v35  ;;  %v1619_v9 = vmul.f32 %v14604_v29, %v14505_v8  ;;  %v1627_v19 = vadd.f32 %v1611_v31, %v1595_v7  ;;  %v1628_v56 = vadd.f32 %v1612_v58, %v1596_v4  ;;  %v14623_v31 = vld [vmem:[#allocation62_spill] sm:$0xff]  ;;  %v14632_v48 = vld [vmem:[#allocation124_spill] sm:$0xff] }
 0x2cd   :  { %v1631_v28 = vadd.f32 %v1615_v41, %v1599_v23  ;;  %v1632_v35 = vadd.f32 %v1616_v37, %v1600_v60  ;;  %v14609_v0 = vunpack.c.l.bf16 %v14608_v43  ;;  %v14610_v34 = vunpack.c.h.bf16 %v14608_v43  ;;  %v14627_v41 = vld [vmem:[#allocation63_spill] sm:$0xff]  ;;  %v14631_v3 = vld [vmem:[#allocation122_spill] sm:$0xff] }
 0x2ce   :  { %v1635_v17 = vadd.f32 %v1619_v9, %v1603_v10  ;;  %v1636_v32 = vadd.f32 %v1620_v62, %v1604_v54  ;;  %v14612_v40 = vunpack.c.l.bf16 %v14611_v55  ;;  %v14613_v7 = vunpack.c.h.bf16 %v14611_v55  ;;  %v14637_v55 = vld [vmem:[#allocation65_spill] sm:$0xff] }
 0x2cf   :  { %v1749_v12 = vmul.f32 %v14609_v0, %v9751_v25  ;;  %v1750_v8 = vmul.f32 %v14610_v34, %v9751_v25  ;;  %v14615_v44 = vunpack.c.l.bf16 %v14614_v20  ;;  %v14616_v23 = vunpack.c.h.bf16 %v14614_v20  ;;  %v14617_v25 = vld [vmem:[#allocation61_spill] sm:$0xff]  ;;  %v14640_v20 = vld [vmem:[#allocation66_spill] sm:$0xff] }
 0x2d0   :  { %v1643_v13 = vadd.f32 %v1635_v17, %v1627_v19  ;;  %v1644_v61 = vadd.f32 %v1636_v32, %v1628_v56  ;;  %v1753_v38 = vmul.f32 %v14612_v40, %v9757_v57  ;;  %v1754_v4 = vmul.f32 %v14613_v7, %v9757_v57  ;;  %v14636_v34 = vld [vmem:[#allocation125_spill] sm:$0xff] }
 0x2d1   :  { %v1761_v27 = vmul.f32 %v14615_v44, %v9760_v15  ;;  %v1762_v50 = vmul.f32 %v14616_v23, %v9760_v15  ;;  %v14618_v60 = vunpack.c.l.bf16 %v14617_v25  ;;  %v14619_v6 = vunpack.c.h.bf16 %v14617_v25  ;;  %v14643_v25 = vld [vmem:[#allocation123_spill] sm:$0xff] }
 0x2d2   :  { %v14621_v14 = vunpack.c.l.bf16 %v14620_v2  ;;  %v14622_v46 = vunpack.c.h.bf16 %v14620_v2  ;;  %v14624_v11 = vunpack.c.l.bf16 %v14623_v31  ;;  %v14625_v58 = vunpack.c.h.bf16 %v14623_v31 }
 0x2d3   :  { %v1765_v59 = vmul.f32 %v14618_v60, %v9775_v39  ;;  %v1766_v30 = vmul.f32 %v14619_v6, %v9775_v39  ;;  %v14628_v63 = vunpack.c.l.bf16 %v14627_v41  ;;  %v14629_v37 = vunpack.c.h.bf16 %v14627_v41  ;;  %v14644_v60 = vld [vmem:[#allocation67_spill] sm:$0xff] }
 0x2d4   :  { %v1757_v57 = vmul.f32 %v14621_v14, %v9767_v22  ;;  %v1758_v18 = vmul.f32 %v14622_v46, %v9767_v22  ;;  %v1769_v15 = vmul.f32 %v14624_v11, %v9782_v42  ;;  %v1770_v47 = vmul.f32 %v14625_v58, %v9782_v42  ;;  %v14633_v42 = vld [vmem:[#allocation64_spill] sm:$0xff]  ;;  %v14647_v14 = vld [vmem:[#allocation127_spill] sm:$0xff] }
 0x2d5   :  { %v1773_v39 = vmul.f32 %v14628_v63, %v14626_v33  ;;  %v1774_v51 = vmul.f32 %v14629_v37, %v14626_v33  ;;  %v1777_v10 = vadd.f32 %v1761_v27, %v14630_v52  ;;  %v1778_v22 = vadd.f32 %v1762_v50, %v14631_v3  ;;  %v14655_v37 = vld [vmem:[#allocation70_spill] sm:$0xff] }
 0x2d6   :  { %v1781_v54 = vadd.f32 %v1765_v59, %v1749_v12  ;;  %v1782_v29 = vadd.f32 %v1766_v30, %v1750_v8  ;;  %v1785_v9 = vadd.f32 %v1769_v15, %v1753_v38  ;;  %v1786_v26 = vadd.f32 %v1770_v47, %v1754_v4  ;;  %v14651_v47 = vld [vmem:[#allocation128_spill] sm:$0xff] }
 0x2d7   :  { %v1789_v62 = vadd.f32 %v1773_v39, %v1757_v57  ;;  %v1790_v16 = vadd.f32 %v1774_v51, %v1758_v18  ;;  %v14634_v19 = vunpack.c.l.bf16 %v14633_v42  ;;  %v14635_v17 = vunpack.c.h.bf16 %v14633_v42  ;;  %v14648_v57 = vld [vmem:[#allocation68_spill] sm:$0xff] }
 0x2d8   :  { %v1793_v43 = vadd.f32 %v1785_v9, %v1777_v10  ;;  %v1794_v0 = vadd.f32 %v1786_v26, %v1778_v22  ;;  %v14638_v40 = vunpack.c.l.bf16 %v14637_v55  ;;  %v14639_v12 = vunpack.c.h.bf16 %v14637_v55  ;;  %v14658_v22 = vld [vmem:[#allocation71_spill] sm:$0xff] }
 0x2d9   :  { %v1903_v56 = vmul.f32 %v14634_v19, %v14632_v48  ;;  %v1904_v32 = vmul.f32 %v14635_v17, %v14632_v48  ;;  %v1797_v38 = vadd.f32 %v1789_v62, %v1781_v54  ;;  %v1798_v4 = vadd.f32 %v1790_v16, %v1782_v29 }
 0x2da   :  { %v1907_v7 = vmul.f32 %v14638_v40, %v14636_v34  ;;  %v1908_v8 = vmul.f32 %v14639_v12, %v14636_v34  ;;  %v14641_v44 = vunpack.c.l.bf16 %v14640_v20  ;;  %v14642_v23 = vunpack.c.h.bf16 %v14640_v20 }
 0x2db   :  { %v14645_v59 = vunpack.c.l.bf16 %v14644_v60  ;;  %v14646_v30 = vunpack.c.h.bf16 %v14644_v60  ;;  %v14649_v46 = vunpack.c.l.bf16 %v14648_v57  ;;  %v14650_v31 = vunpack.c.h.bf16 %v14648_v57  ;;  %v2001_v60 = vpop.permute.xlu1 %2000 }
 0x2dc   :  { %v1911_v27 = vmul.f32 %v14641_v44, %v14551_v21  ;;  %v1912_v50 = vmul.f32 %v14642_v23, %v14551_v21  ;;  %v1801_v15 = vadd.f32 %v1797_v38, %v1793_v43  ;;  %v1802_v58 = vadd.f32 %v1798_v4, %v1794_v0  ;;  %v14652_v21 = vld [vmem:[#allocation69_spill] sm:$0xff] }
 0x2dd   :  { %v1915_v6 = vmul.f32 %v14645_v59, %v14643_v25  ;;  %v1916_v2 = vmul.f32 %v14646_v30, %v14643_v25  ;;  %v1919_v18 = vmul.f32 %v14649_v46, %v14647_v14  ;;  %v1920_v11 = vmul.f32 %v14650_v31, %v14647_v14 }
 0x2de   :  { %v14653_v33 = vunpack.c.l.bf16 %v14652_v21  ;;  %v14654_v63 = vunpack.c.h.bf16 %v14652_v21  ;;  %v14656_v51 = vunpack.c.l.bf16 %v14655_v37  ;;  %v14657_v10 = vunpack.c.h.bf16 %v14655_v37 }
 0x2df   :  { %v1931_v54 = vadd.f32 %v1915_v6, %v14658_v22  ;;  %v1932_v29 = vadd.f32 %v1916_v2, %v10264_v36  ;;  %v1805_v9 = vadd.f32 %v1801_v15, %v1493_v53  ;;  %v1806_v26 = vadd.f32 %v1802_v58, %v1494_v49  ;;  %v8372_v53 = vld [vmem:[%s13468_s3 + $0x98] sm:$0xff]  }
 0x2e0   :  { %v1923_v41 = vmul.f32 %v14653_v33, %v14651_v47  ;;  %v1924_v39 = vmul.f32 %v14654_v63, %v14651_v47  ;;  %v1927_v52 = vmul.f32 %v14656_v51, %v10082_v24  ;;  %v1928_v3 = vmul.f32 %v14657_v10, %v10082_v24  ;;  %8122 = vmatpush3.bf16.msra.mxu0 %v8372_v53 }
 0x2e1   :  { %v1935_v62 = vadd.f32 %v1919_v18, %v1903_v56  ;;  %v1936_v16 = vadd.f32 %v1920_v11, %v1904_v32  ;;  %v1639_v43 = vadd.f32 %v1631_v28, %v1623_v1  ;;  %v1640_v0 = vadd.f32 %v1632_v35, %v1624_v45  ;;  %8206 = vmatpush3.bf16.msra.mxu1 %v8372_v53  ;;  %v8373_v45 = vld [vmem:[%s13468_s3 + $0xe0] sm:$0xff]   ;;  %v8375_v35 = vld [vmem:[%s13468_s3 + $0xe8] sm:$0xff]   ;;  %v8378_v32 = vld [vmem:[%s13468_s3 + $0xb0] sm:$0xff]  }
 0x2e2   :  { %v1939_v48 = vadd.f32 %v1923_v41, %v1907_v7  ;;  %v1940_v42 = vadd.f32 %v1924_v39, %v1908_v8  ;;  %v1943_v19 = vadd.f32 %v1927_v52, %v1911_v27  ;;  %v1944_v17 = vadd.f32 %v1928_v3, %v1912_v50  ;;  %v8374_v28 = vld [vmem:[%s13468_s3 + $0xa0] sm:$0xff]   ;;  %8123 = vmatprep.subr.bf16.mxu0 %v8373_v45  ;;  %v8379_v7 = vld [vmem:[%s13468_s3 + $0xf8] sm:$0xff]   ;;  %v1996_v27 = vpop.permute.xlu0 %1995  ;;  %v2011_v41 = vpop.permute.xlu1 %2010 }
 0x2e3   :  { %v1647_v38 = vadd.f32 %v1643_v13, %v1639_v43  ;;  %v1648_v24 = vadd.f32 %v1644_v61, %v1640_v0  ;;  %8199 = vmatprep.subr.bf16.mxu1 %v8373_v45  ;;  %v8376_v13 = vld [vmem:[%s13468_s3 + $0xa8] sm:$0xff]   ;;  %v8377_v61 = vld [vmem:[%s13468_s3 + $0xf0] sm:$0xff]   ;;  %v8380_v8 = vld [vmem:[%s13468_s3 + $0xb8] sm:$0xff]  }
 0x2e4   :  { %v1947_v34 = vadd.f32 %v1939_v48, %v1931_v54  ;;  %v1948_v55 = vadd.f32 %v1940_v42, %v1932_v29  ;;  %v1951_v40 = vadd.f32 %v1943_v19, %v1935_v62  ;;  %v1952_v12 = vadd.f32 %v1944_v17, %v1936_v16  ;;  %8124 = vmatpush3.bf16.msra.mxu0 %v8374_v28 }
 0x2e5   :  { %8125 = vmatprep.subr.bf16.mxu0 %v8375_v35  ;;  %8207 = vmatpush3.bf16.msra.mxu1 %v8374_v28 }
 0x2e6   :  { %v1955_v4 = vadd.f32 %v1951_v40, %v1947_v34  ;;  %v1956_v20 = vadd.f32 %v1952_v12, %v1948_v55  ;;  %8200 = vmatprep.subr.bf16.mxu1 %v8375_v35  ;;  %v2006_v58 = vpop.permute.xlu0 %2005 }
 0x2e8   :  { %v1959_v44 = vadd.f32 %v1955_v4, %v1647_v38  ;;  %v1960_v36 = vadd.f32 %v1956_v20, %v1648_v24  ;;  %8126 = vmatpush3.bf16.msra.mxu0 %v8376_v13  ;;  %v8381_v24 = vld [vmem:[#allocation7 + $0x10] sm:$0xff]  }
 0x2e9   :  { %8208 = vmatpush3.bf16.msra.mxu1 %v8376_v13  ;;  %8127 = vmatprep.subr.bf16.mxu0 %v8377_v61 }
 0x2ea   :  { %v1963_v49 = vadd.f32 %v1959_v44, %v1805_v9  ;;  %v1964_v56 = vadd.f32 %v1960_v36, %v1806_v26  ;;  %8201 = vmatprep.subr.bf16.mxu1 %v8377_v61 }
 0x2ec   :  { %v1968_v1 = vpack.c.bf16 %v1964_v56, %v1963_v49  ;;  %8128 = vmatpush3.bf16.msra.mxu0 %v8378_v32 }
 0x2ed   :  { %8209 = vmatpush3.bf16.msra.mxu1 %v8378_v32  ;;  %8129 = vmatprep.subr.bf16.mxu0 %v8379_v7 }
 0x2ee   :  { %2279 = vmatmul.mubr.bf16.gmra.mrb[20].mxu1 %v1968_v1  ;;  %8202 = vmatprep.subr.bf16.mxu1 %v8379_v7  ;;  %v8382_v1 = vld [vmem:[#allocation7 + $0x18] sm:$0xff]  }
 0x2f0   :  { %8130 = vmatpush3.bf16.msra.mxu0 %v8380_v8 }
 0x2f1   :  { %8210 = vmatpush3.bf16.msra.mxu1 %v8380_v8  ;;  %v8383_v8 = vld [vmem:[#allocation5 + $0x80] ss:$8 sps:$4 sm:$0xff]  }
 0x33d   :  { %v2250_v23 = vpop.f32.mrb[8].mxu1 }
 0x33e   :  { %v8211_v50 = vadd.f32 %v2250_v23, %v1996_v27  ;;  %v2252_v25 = vpop.f32.mrb[9].mxu1  ;;  %v8386_v23 = vld [vmem:[#allocation5 + $0x90] ss:$8 sps:$4 sm:$0xff]  }
 0x33f   :  { %v8212_v59 = vadd.f32 %v2252_v25, %v1996_v27  ;;  %v2254_v6 = vpop.f32.mrb[10].mxu1  ;;  %v8391_v25 = vld [vmem:[#allocation5 + $0xa4] ss:$8 sps:$4 sm:$0xff]  }
 0x340   :  { %8457 = vtanh.f32 %v8211_v50  ;;  %v8213_v30 = vadd.f32 %v2254_v6, %v2001_v60  ;;  %v2256_v2 = vpop.f32.mrb[11].mxu1  ;;  %v8388_v50 = vld [vmem:[#allocation5 + $0x94] ss:$8 sps:$4 sm:$0xff]  }
 0x341   :  { %8459 = vtanh.f32 %v8212_v59  ;;  %v8214_v14 = vadd.f32 %v2256_v2, %v2001_v60  ;;  %v8392_v59 = vld [vmem:[#allocation5 + $0xb0] ss:$8 sps:$4 sm:$0xff]   ;;  %v8394_v6 = vld [vmem:[#allocation5 + $0xb4] ss:$8 sps:$4 sm:$0xff]   ;;  %v8397_v2 = vld [vmem:[#allocation5 + $0xc4] ss:$8 sps:$4 sm:$0xff]  }
 0x342   :  { %8461 = vtanh.f32 %v8213_v30  ;;  %v8395_v30 = vld [vmem:[#allocation5 + $0xc0] ss:$8 sps:$4 sm:$0xff]  }
 0x343   :  { %8463 = vtanh.f32 %v8214_v14  ;;  %v10435_v14 = vld [vmem:[#allocation3 + $0x200] sm:$0xff]  }
 0x344   :  { %14659 = vst [vmem:[#allocation73_spill] sm:$0xff] %v10435_v14 }
 0x34a   :  { %v8458_v57 = vpop.eup %8457 }
 0x34b   :  { %v8460_v46 = vpop.eup %8459 }
 0x34c   :  { %v8462_v18 = vpop.eup %8461 }
 0x34d   :  { %v8464_v31 = vpop.eup %8463  ;;  %v2305_v11 = vpack.c.bf16 %v8462_v18, %v8458_v57  ;;  %v10437_v57 = vld [vmem:[#allocation3 + $0x208] sm:$0xff]   ;;  %v10441_v18 = vld [vmem:[#allocation3 + $0x220] sm:$0xff]  }
 0x34e   :  { %v2306_v15 = vpack.c.bf16 %v8464_v31, %v8460_v46  ;;  %14660 = vst [vmem:[#allocation76_spill] sm:$0xff] %v10437_v57  ;;  %v10439_v46 = vld [vmem:[#allocation3 + $0x210] sm:$0xff]   ;;  %14662 = vst [vmem:[#allocation74_spill] sm:$0xff] %v10441_v18 }
 0x34f   :  { %14661 = vst [vmem:[#allocation72_spill] sm:$0xff] %v10439_v46  ;;  %v10443_v31 = vld [vmem:[#allocation3 + $0x230] sm:$0xff]  }
 0x350   :  { %2474 = vmatprep.mubr.bf16.mxu0 %v2306_v15  ;;  %4074 = vmatprep.subr.bf16.mxu0 %v2306_v15  ;;  %14663 = vst [vmem:[#allocation75_spill] sm:$0xff] %v10443_v31 }
 0x351   :  { %2475 = vmatmul.mubr.bf16.vlgmr.msra.gmra.mrb[24].mxu0 %v2305_v11 }
 0x352   :  { %4075 = vmatpush1.bf16.msra.mxu0 %v2305_v11  ;;  %v8400_v11 = vld [vmem:[#allocation5 + $0xd4] ss:$8 sps:$4 sm:$0xff]  }
 0x36c   :  { %v2260_v47 = vpop.f32.mrb[12].mxu1 }
 0x36d   :  { %v8215_v21 = vadd.f32 %v2260_v47, %v2006_v58  ;;  %v2262_v33 = vpop.f32.mrb[13].mxu1  ;;  %v10448_v47 = vld [vmem:[#allocation3 + $0x250] sm:$0xff]  }
 0x36e   :  { %v8216_v63 = vadd.f32 %v2262_v33, %v2006_v58  ;;  %v2264_v39 = vpop.f32.mrb[14].mxu1  ;;  %14665 = vst [vmem:[#allocation49_spill] sm:$0xff] %v10448_v47  ;;  %v10636_v33 = vld [vmem:[#allocation3 + $0x338] sm:$0xff]  }
 0x36f   :  { %8465 = vtanh.f32 %v8215_v21  ;;  %v8217_v37 = vadd.f32 %v2264_v39, %v2011_v41  ;;  %v2266_v51 = vpop.f32.mrb[15].mxu1  ;;  %v8398_v21 = vld [vmem:[#allocation5 + $0xd0] ss:$8 sps:$4 sm:$0xff]   ;;  %14711 = vst [vmem:[#allocation111_spill] sm:$0xff] %v10636_v33  ;;  %v10667_v33 = vld [vmem:[#allocation3 + $0x3c8] sm:$0xff]  }
 0x370   :  { %8467 = vtanh.f32 %v8216_v63  ;;  %v8218_v52 = vadd.f32 %v2266_v51, %v2011_v41  ;;  %v10456_v51 = vld [vmem:[#allocation3 + $0x270] sm:$0xff]   ;;  %v10630_v63 = vld [vmem:[#allocation3 + $0x328] sm:$0xff]   ;;  %14719 = vst [vmem:[#allocation114_spill] sm:$0xff] %v10667_v33 }
 0x371   :  { %8469 = vtanh.f32 %v8217_v37  ;;  %v10454_v37 = vld [vmem:[#allocation3 + $0x260] sm:$0xff]   ;;  %14667 = vst [vmem:[#allocation79_spill] sm:$0xff] %v10456_v51  ;;  %14710 = vst [vmem:[#allocation24_spill] sm:$0xff] %v10630_v63  ;;  %v10661_v63 = vld [vmem:[#allocation3 + $0x3a8] sm:$0xff]  }
 0x372   :  { %8471 = vtanh.f32 %v8218_v52  ;;  %14666 = vst [vmem:[#allocation78_spill] sm:$0xff] %v10454_v37  ;;  %v10622_v52 = vld [vmem:[#allocation3 + $0x2f8] sm:$0xff]   ;;  %14718 = vst [vmem:[#allocation113_spill] sm:$0xff] %v10661_v63 }
 0x373   :  { %14708 = vst [vmem:[#allocation23_spill] sm:$0xff] %v10622_v52  ;;  %v14716_v52 = vld [vmem:[#allocation18_spill] sm:$0xff] }
 0x379   :  { %v8466_v10 = vpop.eup %8465 }
 0x37a   :  { %v8468_v3 = vpop.eup %8467 }
 0x37b   :  { %v8470_v22 = vpop.eup %8469 }
 0x37c   :  { %v8472_v54 = vpop.eup %8471  ;;  %v2307_v29 = vpack.c.bf16 %v8470_v22, %v8466_v10 }
 0x37d   :  { %v2308_v9 = vpack.c.bf16 %v8472_v54, %v8468_v3  ;;  %v10462_v54 = vld [vmem:[#allocation3 + $0x280] sm:$0xff]   ;;  %v10614_v3 = vld [vmem:[#allocation3 + $0x2d8] sm:$0xff]  }
 0x37e   :  { %14668 = vst [vmem:[#allocation80_spill] sm:$0xff] %v10462_v54  ;;  %14706 = vst [vmem:[#allocation21_spill] sm:$0xff] %v10614_v3  ;;  %v10659_v3 = vld [vmem:[#allocation3 + $0x398] sm:$0xff]  }
 0x37f   :  { %2482 = vmatprep.mubr.bf16.mxu0 %v2308_v9  ;;  %4076 = vmatprep.subr.bf16.mxu0 %v2308_v9  ;;  %v10606_v9 = vld [vmem:[#allocation3 + $0x2b8] sm:$0xff]   ;;  %14717 = vst [vmem:[#allocation27_spill] sm:$0xff] %v10659_v3  ;;  %v10686_v3 = vld [vmem:[#allocation3 + $0x3e8] sm:$0xff]  }
 0x380   :  { %2483 = vmatmul.mubr.bf16.gmra.mrb[28].mxu0 %v2307_v29  ;;  %14704 = vst [vmem:[#allocation10_spill] sm:$0xff] %v10606_v9  ;;  %v10649_v9 = vld [vmem:[#allocation3 + $0x368] sm:$0xff]   ;;  %14722 = vst [vmem:[#allocation31_spill] sm:$0xff] %v10686_v3  ;;  %v14726_v3 = vunpack.c.h.bf16 %v10435_v14 }
 0x381   :  { %4077 = vmatpush1.bf16.msra.mxu0 %v2307_v29  ;;  %v10464_v29 = vld [vmem:[#allocation3 + $0x288] sm:$0xff]   ;;  %14714 = vst [vmem:[#allocation26_spill] sm:$0xff] %v10649_v9 }
 0x382   :  { %14669 = vst [vmem:[#allocation81_spill] sm:$0xff] %v10464_v29 }
 0x398   :  { %v2270_v26 = vpop.f32.mrb[16].mxu1 }
 0x399   :  { %v8219_v62 = vadd.f32 %v2270_v26, %v1996_v27  ;;  %v2272_v16 = vpop.f32.mrb[17].mxu1  ;;  %v10644_v26 = vld [vmem:[#allocation3 + $0x358] sm:$0xff]  }
 0x39a   :  { %v8220_v48 = vadd.f32 %v2272_v16, %v1996_v27  ;;  %v2274_v42 = vpop.f32.mrb[18].mxu1  ;;  %v8385_v27 = vld [vmem:[#allocation5 + $0x84] ss:$8 sps:$4 sm:$0xff]   ;;  %14713 = vst [vmem:[#allocation112_spill] sm:$0xff] %v10644_v26 }
 0x39b   :  { %8473 = vtanh.f32 %v8219_v62  ;;  %v8221_v19 = vadd.f32 %v2274_v42, %v2001_v60  ;;  %v2276_v17 = vpop.f32.mrb[19].mxu1  ;;  %v10472_v42 = vld [vmem:[#allocation3 + $0x2a0] sm:$0xff]   ;;  %v10598_v62 = vld [vmem:[#allocation3 + $0x278] sm:$0xff]  }
 0x39c   :  { %8475 = vtanh.f32 %v8220_v48  ;;  %v8222_v43 = vadd.f32 %v2276_v17, %v2001_v60  ;;  %v8389_v60 = vld [vmem:[#allocation5 + $0xa0] ss:$8 sps:$4 sm:$0xff]   ;;  %v10470_v48 = vld [vmem:[#allocation3 + $0x290] sm:$0xff]   ;;  %14671 = vst [vmem:[#allocation85_spill] sm:$0xff] %v10472_v42  ;;  %14702 = vst [vmem:[#allocation14_spill] sm:$0xff] %v10598_v62 }
 0x39d   :  { %8477 = vtanh.f32 %v8221_v19  ;;  %14670 = vst [vmem:[#allocation82_spill] sm:$0xff] %v10470_v48  ;;  %v8403_v19 = vld [vmem:[#allocation5 + $0xe4] ss:$8 sps:$4 sm:$0xff]  }
 0x39e   :  { %8479 = vtanh.f32 %v8222_v43  ;;  %v10590_v17 = vld [vmem:[#allocation3 + $0x268] sm:$0xff]  }
 0x39f   :  { %14700 = vst [vmem:[#allocation19_spill] sm:$0xff] %v10590_v17 }
 0x3a5   :  { %v8474_v0 = vpop.eup %8473 }
 0x3a6   :  { %v8476_v34 = vpop.eup %8475 }
 0x3a7   :  { %v8478_v55 = vpop.eup %8477 }
 0x3a8   :  { %v8480_v40 = vpop.eup %8479  ;;  %v2309_v12 = vpack.c.bf16 %v8478_v55, %v8474_v0  ;;  %v10478_v55 = vld [vmem:[#allocation3 + $0x2b0] sm:$0xff]   ;;  %v10582_v0 = vld [vmem:[#allocation3 + $0x238] sm:$0xff]  }
 0x3a9   :  { %v2310_v38 = vpack.c.bf16 %v8480_v40, %v8476_v34  ;;  %14672 = vst [vmem:[#allocation83_spill] sm:$0xff] %v10478_v55  ;;  %v10480_v40 = vld [vmem:[#allocation3 + $0x2c0] sm:$0xff]   ;;  %14698 = vst [vmem:[#allocation17_spill] sm:$0xff] %v10582_v0  ;;  %v10638_v34 = vld [vmem:[#allocation3 + $0x348] sm:$0xff]  }
 0x3aa   :  { %14673 = vst [vmem:[#allocation84_spill] sm:$0xff] %v10480_v40  ;;  %14712 = vst [vmem:[#allocation25_spill] sm:$0xff] %v10638_v34 }
 0x3ab   :  { %2490 = vmatprep.mubr.bf16.mxu0 %v2310_v38  ;;  %4127 = vmatprep.subr.bf16.mxu1 %v2310_v38  ;;  %v10574_v38 = vld [vmem:[#allocation3 + $0x228] sm:$0xff]  }
 0x3ac   :  { %2491 = vmatmul.mubr.bf16.gmra.mrb[32].mxu0 %v2309_v12  ;;  %14696 = vst [vmem:[#allocation16_spill] sm:$0xff] %v10574_v38 }
 0x3ad   :  { %4106 = vmatprep.mubr.bf16.mxu0 %v14375_v5 }
 0x3b4   :  { %7014 = vmatmul.mubr.msk.bf16.vlgmr.msra.gmra.mrb[36].mxu0 %vm2023_vm3, %v8381_v24 }
 0x3b5   :  { %4116 = vmatprep.mubr.bf16.mxu0 %v14375_v5 }
 0x3bc   :  { %7015 = vmatmul.mubr.msk.bf16.gmra.mrb[40].mxu0 %vm2023_vm3, %v8382_v1 }
 0x3c1   :  { %v2280_v4 = vpop.f32.mrb[20].mxu1 }
 0x3c2   :  { %v8223_v20 = vadd.f32 %v2280_v4, %v2006_v58  ;;  %v2282_v44 = vpop.f32.mrb[21].mxu1  ;;  %v10552_v4 = vld [vmem:[#allocation3 + $0x3c0] sm:$0xff]  }
 0x3c3   :  { %v8224_v36 = vadd.f32 %v2282_v44, %v2006_v58  ;;  %v2284_v53 = vpop.f32.mrb[22].mxu1  ;;  %v10446_v58 = vld [vmem:[#allocation3 + $0x240] sm:$0xff]   ;;  %v10486_v44 = vld [vmem:[#allocation3 + $0x2d0] sm:$0xff]   ;;  %14691 = vst [vmem:[#allocation102_spill] sm:$0xff] %v10552_v4 }
 0x3c4   :  { %8481 = vtanh.f32 %v8223_v20  ;;  %v8225_v49 = vadd.f32 %v2284_v53, %v2011_v41  ;;  %v2286_v56 = vpop.f32.mrb[23].mxu1  ;;  %14664 = vst [vmem:[#allocation77_spill] sm:$0xff] %v10446_v58  ;;  %14674 = vst [vmem:[#allocation86_spill] sm:$0xff] %v10486_v44  ;;  %v10490_v53 = vld [vmem:[#allocation3 + $0x2f0] sm:$0xff]   ;;  %v10534_v20 = vld [vmem:[#allocation3 + $0x380] sm:$0xff]  }
 0x3c5   :  { %8483 = vtanh.f32 %v8224_v36  ;;  %v8226_v45 = vadd.f32 %v2286_v56, %v2011_v41  ;;  %v10488_v36 = vld [vmem:[#allocation3 + $0x2e0] sm:$0xff]   ;;  %14676 = vst [vmem:[#allocation87_spill] sm:$0xff] %v10490_v53  ;;  %14686 = vst [vmem:[#allocation100_spill] sm:$0xff] %v10534_v20  ;;  %v10672_v41 = vld [vmem:[#allocation3 + $0x3b8] sm:$0xff]  }
 0x3c6   :  { %8485 = vtanh.f32 %v8225_v49  ;;  %14675 = vst [vmem:[#allocation56_spill] sm:$0xff] %v10488_v36  ;;  %v10520_v49 = vld [vmem:[#allocation3 + $0x350] sm:$0xff]   ;;  %v10544_v56 = vld [vmem:[#allocation3 + $0x3a0] sm:$0xff]   ;;  %14720 = vst [vmem:[#allocation28_spill] sm:$0xff] %v10672_v41 }
 0x3c7   :  { %8487 = vtanh.f32 %v8226_v45  ;;  %14683 = vst [vmem:[#allocation93_spill] sm:$0xff] %v10520_v49  ;;  %14689 = vst [vmem:[#allocation99_spill] sm:$0xff] %v10544_v56  ;;  %v10566_v45 = vld [vmem:[#allocation3 + $0x3f0] sm:$0xff]  }
 0x3c8   :  { %14694 = vst [vmem:[#allocation13_spill] sm:$0xff] %v10566_v45 }
 0x3ce   :  { %v8482_v28 = vpop.eup %8481 }
 0x3cf   :  { %v8484_v35 = vpop.eup %8483 }
 0x3d0   :  { %v8486_v13 = vpop.eup %8485 }
 0x3d1   :  { %v8488_v61 = vpop.eup %8487  ;;  %v2311_v32 = vpack.c.bf16 %v8486_v13, %v8482_v28  ;;  %v10496_v28 = vld [vmem:[#allocation3 + $0x300] sm:$0xff]   ;;  %v8406_v13 = vld [vmem:[#allocation5 + $0xf4] ss:$8 sps:$4 sm:$0xff]  }
 0x3d2   :  { %v2312_v7 = vpack.c.bf16 %v8488_v61, %v8484_v35  ;;  %14677 = vst [vmem:[#allocation88_spill] sm:$0xff] %v10496_v28  ;;  %v8404_v35 = vld [vmem:[#allocation5 + $0xf0] ss:$8 sps:$4 sm:$0xff]  }
 0x3d3   :  { %v10528_v61 = vld [vmem:[#allocation3 + $0x370] sm:$0xff]  }
 0x3d4   :  { %2498 = vmatprep.mubr.bf16.mxu1 %v2312_v7  ;;  %14685 = vst [vmem:[#allocation96_spill] sm:$0xff] %v10528_v61 }
 0x3d5   :  { %2499 = vmatmul.mubr.bf16.vlgmr.msra.gmra.mrb[24].mxu1 %v2311_v32 }
 0x3d6   :  { %4128 = vmatpush1.bf16.msra.mxu1 %v2309_v12  ;;  %4159 = vmatprep.mubr.bf16.mxu1 %v14375_v5  ;;  %v8401_v12 = vld [vmem:[#allocation5 + $0xe0] ss:$8 sps:$4 sm:$0xff]  }
 0x3d7   :  { %4129 = vmatprep.subr.bf16.mxu1 %v2312_v7  ;;  %v10542_v7 = vld [vmem:[#allocation3 + $0x390] sm:$0xff]  }
 0x3d8   :  { %14688 = vst [vmem:[#allocation98_spill] sm:$0xff] %v10542_v7 }
 0x3da   :  { %4130 = vmatpush1.bf16.msra.mxu1 %v2311_v32  ;;  %v10624_v32 = vld [vmem:[#allocation3 + $0x318] sm:$0xff]  }
 0x3db   :  { %4260 = vmatprep.subr.bf16.mxu1 %v8385_v27  ;;  %v10502_v27 = vld [vmem:[#allocation3 + $0x308] sm:$0xff]   ;;  %14709 = vst [vmem:[#allocation110_spill] sm:$0xff] %v10624_v32 }
 0x3dc   :  { %14678 = vst [vmem:[#allocation89_spill] sm:$0xff] %v10502_v27 }
 0x3dd   :  { %7016 = vmatmul.mubr.msk.bf16.vlgmr.msra.gmra.mrb[28].mxu1 %vm2023_vm3, %v8381_v24 }
 0x3de   :  { %4169 = vmatprep.mubr.bf16.mxu1 %v14375_v5  ;;  %4261 = vmatpush1.bf16.msra.mxu1 %v8383_v8  ;;  %v10568_v8 = vld [vmem:[#allocation3 + $0x218] sm:$0xff]  }
 0x3df   :  { %4262 = vmatprep.subr.bf16.mxu1 %v8388_v50  ;;  %v10526_v50 = vld [vmem:[#allocation3 + $0x360] sm:$0xff]   ;;  %14695 = vst [vmem:[#allocation103_spill] sm:$0xff] %v10568_v8 }
 0x3e0   :  { %14684 = vst [vmem:[#allocation95_spill] sm:$0xff] %v10526_v50 }
 0x3e2   :  { %4263 = vmatpush1.bf16.msra.mxu1 %v8386_v23  ;;  %v10504_v23 = vld [vmem:[#allocation3 + $0x310] sm:$0xff]  }
 0x3e3   :  { %4264 = vmatprep.subr.bf16.mxu1 %v8391_v25  ;;  %14679 = vst [vmem:[#allocation90_spill] sm:$0xff] %v10504_v23  ;;  %v10558_v25 = vld [vmem:[#allocation3 + $0x3d0] sm:$0xff]  }
 0x3e4   :  { %14692 = vst [vmem:[#allocation12_spill] sm:$0xff] %v10558_v25 }
 0x3e5   :  { %7017 = vmatmul.mubr.msk.bf16.gmra.mrb[32].mxu1 %vm2023_vm3, %v8382_v1  ;;  %v10536_v1 = vld [vmem:[#allocation3 + $0x388] sm:$0xff]  }
 0x3e6   :  { %4292 = vmatprep.mubr.bf16.mxu1 %v14375_v5  ;;  %4265 = vmatpush1.bf16.msra.mxu1 %v8389_v60  ;;  %14687 = vst [vmem:[#allocation97_spill] sm:$0xff] %v10536_v1  ;;  %v10592_v60 = vld [vmem:[#allocation3 + $0x298] sm:$0xff]  }
 0x3e7   :  { %4266 = vmatprep.subr.bf16.mxu1 %v8394_v6  ;;  %v10510_v6 = vld [vmem:[#allocation3 + $0x320] sm:$0xff]   ;;  %14701 = vst [vmem:[#allocation106_spill] sm:$0xff] %v10592_v60  ;;  %v14724_v60 = vld [vmem:[#allocation15_spill] sm:$0xff] }
 0x3e8   :  { %14680 = vst [vmem:[#allocation91_spill] sm:$0xff] %v10510_v6 }
 0x3ea   :  { %4267 = vmatpush1.bf16.msra.mxu1 %v8392_v59  ;;  %v10616_v59 = vld [vmem:[#allocation3 + $0x2e8] sm:$0xff]  }
 0x3eb   :  { %4268 = vmatprep.subr.bf16.mxu1 %v8397_v2  ;;  %v10550_v2 = vld [vmem:[#allocation3 + $0x3b0] sm:$0xff]   ;;  %14707 = vst [vmem:[#allocation22_spill] sm:$0xff] %v10616_v59 }
 0x3ec   :  { %14690 = vst [vmem:[#allocation101_spill] sm:$0xff] %v10550_v2 }
 0x3ee   :  { %4269 = vmatpush1.bf16.msra.mxu1 %v8395_v30  ;;  %v10512_v30 = vld [vmem:[#allocation3 + $0x330] sm:$0xff]  }
 0x3ef   :  { %4270 = vmatprep.subr.bf16.mxu1 %v8400_v11  ;;  %14681 = vst [vmem:[#allocation94_spill] sm:$0xff] %v10512_v30  ;;  %v10608_v11 = vld [vmem:[#allocation3 + $0x2c8] sm:$0xff]  }
 0x3f0   :  { %14705 = vst [vmem:[#allocation108_spill] sm:$0xff] %v10608_v11 }
 0x3f2   :  { %4271 = vmatpush1.bf16.msra.mxu1 %v8398_v21  ;;  %v10560_v21 = vld [vmem:[#allocation3 + $0x3e0] sm:$0xff]  }
 0x3f3   :  { %4272 = vmatprep.subr.bf16.mxu1 %v8403_v19  ;;  %14693 = vst [vmem:[#allocation104_spill] sm:$0xff] %v10560_v21  ;;  %v10576_v19 = vld [vmem:[#allocation3 + $0x248] sm:$0xff]   ;;  %v14740_v21 = vunpack.c.h.bf16 %v10448_v47 }
 0x3f4   :  { %14697 = vst [vmem:[#allocation105_spill] sm:$0xff] %v10576_v19 }
 0x3f6   :  { %4273 = vmatpush1.bf16.msra.mxu1 %v8401_v12  ;;  %v10518_v12 = vld [vmem:[#allocation3 + $0x340] sm:$0xff]  }
 0x3f7   :  { %4274 = vmatprep.subr.bf16.mxu1 %v8406_v13  ;;  %14682 = vst [vmem:[#allocation92_spill] sm:$0xff] %v10518_v12  ;;  %v10584_v13 = vld [vmem:[#allocation3 + $0x258] sm:$0xff]  }
 0x3f8   :  { %14699 = vst [vmem:[#allocation107_spill] sm:$0xff] %v10584_v13 }
 0x3fa   :  { %4275 = vmatpush1.bf16.msra.mxu1 %v8404_v35  ;;  %v10600_v35 = vld [vmem:[#allocation3 + $0x2a8] sm:$0xff]  }
 0x3fb   :  { %14703 = vst [vmem:[#allocation20_spill] sm:$0xff] %v10600_v35  ;;  %v10651_v35 = vld [vmem:[#allocation3 + $0x378] sm:$0xff]  }
 0x3fc   :  { %14715 = vst [vmem:[#allocation115_spill] sm:$0xff] %v10651_v35 }
 0x424   :  { %v8131_v43 = vpop.f32.mrb[24].mxu0 }
 0x425   :  { %v8132_v22 = vpop.f32.mrb[25].mxu0 }
 0x426   :  { %v8133_v24 = vadd.f32 %v8132_v22, %v8131_v43  ;;  %v8134_v11 = vpop.f32.mrb[26].mxu0 }
 0x427   :  { %v8135_v16 = vpop.f32.mrb[27].mxu0 }
 0x428   :  { %v2573_v43 = vcombine.high %v8133_v24, %v8133_v24  ;;  %v2580_v10 = vrot.slane %v8133_v24, %v14716_v52  ;;  %v8136_v32 = vadd.f32 %v8135_v16, %v8134_v11 }
 0x42a   :  { %v2587_v22 = vrot.slane %v2573_v43, %v14716_v52  ;;  %v2588_v24 = vcombine.high %v2580_v10, %v2580_v10  ;;  %v2596_v16 = vrot.slane %v2580_v10, %v14716_v52  ;;  %v10681_v10 = vld [vmem:[#allocation3 + $0x3d8] sm:$0xff]   ;;  %v2792_v63 = vcombine.high %v8136_v32, %v8136_v32 }
 0x42b   :  { %14721 = vst [vmem:[#allocation29_spill] sm:$0xff] %v10681_v10 }
 0x42c   :  { %v2589_v5 = vcombine.high %v2587_v22, %v2587_v22  ;;  %v2603_v9 = vrot.slane %v2587_v22, %v14716_v52  ;;  %v2610_v43 = vrot.slane %v2588_v24, %v14716_v52  ;;  %v2618_v11 = vcombine.high %v2596_v16, %v2596_v16  ;;  %v10690_v24 = vld [vmem:[#allocation3 + $0x3f8] sm:$0xff]  }
 0x42d   :  { %v2799_v22 = vrot.slane %v8136_v32, %v14716_v52  ;;  %14723 = vst [vmem:[#allocation32_spill] sm:$0xff] %v10690_v24  ;;  %v2625_v1 = vrot.slane %v2596_v16, %v14724_v60  ;;  %v2806_v33 = vrot.slane %v2792_v63, %v14716_v52  ;;  %v14729_v63 = vunpack.c.h.bf16 %v10437_v57 }
 0x42e   :  { %v2617_v15 = vrot.slane %v2589_v5, %v14716_v52  ;;  %v2620_v39 = vcombine.high %v2610_v43, %v2610_v43  ;;  %v2619_v26 = vcombine.high %v2603_v9, %v2603_v9  ;;  %v10696_v59 = vrot.slane %v2610_v43, %v14724_v60 }
 0x42f   :  { %v10701_v41 = vrot.slane %v2618_v11, %v14724_v60  ;;  %v10709_v35 = vrot.slane %v2603_v9, %v14724_v60  ;;  %v2807_v10 = vcombine.high %v2799_v22, %v2799_v22  ;;  %v14725_v11 = vunpack.c.l.bf16 %v10435_v14 }
 0x430   :  { %v2621_v34 = vcombine.high %v2617_v15, %v2617_v15  ;;  %v10704_v32 = vrot.slane %v2620_v39, %v14724_v60  ;;  %v10712_v43 = vrot.slane %v2617_v15, %v14724_v60  ;;  %v10716_v5 = vrot.slane %v2619_v26, %v14724_v60 }
 0x431   :  { %v2662_v39 = vmul.f32 %v14725_v11, %v2625_v1  ;;  %v2663_v16 = vmul.f32 %v14726_v3, %v2625_v1  ;;  %v2815_v27 = vrot.slane %v2799_v22, %v14716_v52  ;;  %v14727_v15 = vunpack.c.l.bf16 %v10437_v57 }
 0x432   :  { %v10724_v9 = vrot.slane %v2621_v34, %v14724_v60  ;;  %v10732_v45 = vmul.f32 %v14729_v63, %v2625_v1  ;;  %v14731_v26 = vunpack.c.l.bf16 %v10439_v46  ;;  %v14732_v3 = vunpack.c.h.bf16 %v10439_v46 }
 0x433   :  { %v10728_v24 = vmul.f32 %v14727_v15, %v2625_v1  ;;  %v14733_v34 = vunpack.c.l.bf16 %v10441_v18  ;;  %v14734_v15 = vunpack.c.h.bf16 %v10441_v18  ;;  %v14735_v1 = vunpack.c.l.bf16 %v10443_v31 }
 0x434   :  { %14730 = vst [vmem:[#allocation33_spill] sm:$0xff] %v10732_v45  ;;  %v2666_v11 = vmul.f32 %v14731_v26, %v10696_v59  ;;  %v2667_v14 = vmul.f32 %v14732_v3, %v10696_v59  ;;  %v14736_v57 = vunpack.c.h.bf16 %v10443_v31  ;;  %v14737_v46 = vunpack.c.l.bf16 %v10446_v58 }
 0x435   :  { %14728 = vst [vmem:[#allocation30_spill] sm:$0xff] %v10728_v24  ;;  %v2670_v22 = vmul.f32 %v14733_v34, %v10701_v41  ;;  %v2671_v24 = vmul.f32 %v14734_v15, %v10701_v41  ;;  %v2674_v63 = vmul.f32 %v14735_v1, %v10704_v32  ;;  %v14738_v45 = vunpack.c.h.bf16 %v10446_v58 }
 0x436   :  { %v2675_v26 = vmul.f32 %v14736_v57, %v10704_v32  ;;  %v2678_v3 = vmul.f32 %v14737_v46, %v10709_v35  ;;  %v14739_v18 = vunpack.c.l.bf16 %v10448_v47  ;;  %v2683_v1 = vmul.f32 %v14740_v21, %v10712_v43 }
 0x437   :  { %v2679_v34 = vmul.f32 %v14738_v45, %v10709_v35  ;;  %v2808_v25 = vcombine.high %v2806_v33, %v2806_v33  ;;  %v2822_v31 = vrot.slane %v2806_v33, %v14716_v52  ;;  %v2829_v57 = vrot.slane %v2807_v10, %v14716_v52 }
 0x438   :  { %v2682_v15 = vmul.f32 %v14739_v18, %v10712_v43  ;;  %v14741_v46 = vunpack.c.l.bf16 %v10454_v37  ;;  %v14742_v45 = vunpack.c.h.bf16 %v10454_v37  ;;  %v14743_v18 = vunpack.c.l.bf16 %v10456_v51 }
 0x439   :  { %v2837_v56 = vcombine.high %v2815_v27, %v2815_v27  ;;  %v14744_v21 = vunpack.c.h.bf16 %v10456_v51  ;;  %v2836_v33 = vrot.slane %v2808_v25, %v14716_v52  ;;  %v2838_v10 = vcombine.high %v2822_v31, %v2822_v31 }
 0x43a   :  { %v2686_v4 = vmul.f32 %v14741_v46, %v10716_v5  ;;  %v2687_v58 = vmul.f32 %v14742_v45, %v10716_v5  ;;  %v2690_v2 = vmul.f32 %v14743_v18, %v10724_v9  ;;  %v2839_v7 = vcombine.high %v2829_v57, %v2829_v57 }
 0x43b   :  { %v2691_v47 = vmul.f32 %v14744_v21, %v10724_v9  ;;  %v2694_v20 = vadd.f32 %v2678_v3, %v2662_v39  ;;  %v2695_v61 = vadd.f32 %v2679_v34, %v2663_v16  ;;  %v2844_v46 = vrot.slane %v2815_v27, %v14724_v60 }
 0x43c   :  { %v10781_v37 = vrot.slane %v2837_v56, %v14724_v60  ;;  %v2840_v45 = vcombine.high %v2836_v33, %v2836_v33  ;;  %v10784_v30 = vrot.slane %v2839_v7, %v14724_v60  ;;  %v10787_v18 = vrot.slane %v2836_v33, %v14724_v60 }
 0x43d   :  { %v10790_v21 = vrot.slane %v2838_v10, %v14724_v60  ;;  %v2698_v25 = vadd.f32 %v2682_v15, %v2666_v11  ;;  %v2699_v51 = vadd.f32 %v2683_v1, %v2667_v14  ;;  %v2702_v50 = vadd.f32 %v2686_v4, %v2670_v22 }
 0x43e   :  { %14745 = vst [vmem:[#allocation34_spill] sm:$0xff] %v10781_v37  ;;  %14746 = vst [vmem:[#allocation118_spill] sm:$0xff] %v10784_v30  ;;  %v10793_v16 = vrot.slane %v2822_v31, %v14724_v60  ;;  %v2703_v27 = vadd.f32 %v2687_v58, %v2671_v24  ;;  %v2706_v39 = vadd.f32 %v2690_v2, %v2674_v63  ;;  %v14752_v34 = vunpack.c.l.bf16 %v10462_v54 }
 0x43f   :  { %14747 = vst [vmem:[#allocation36_spill] sm:$0xff] %v10787_v18  ;;  %14748 = vst [vmem:[#allocation37_spill] sm:$0xff] %v10790_v21  ;;  %v10796_v56 = vrot.slane %v2829_v57, %v14724_v60  ;;  %v10799_v7 = vrot.slane %v2840_v45, %v14724_v60  ;;  %v2707_v3 = vadd.f32 %v2691_v47, %v2675_v26  ;;  %v14753_v11 = vunpack.c.l.bf16 %v10472_v42 }
 0x440   :  { %14749 = vst [vmem:[#allocation39_spill] sm:$0xff] %v10793_v16  ;;  %v2881_v33 = vmul.f32 %v14752_v34, %v2844_v46  ;;  %v14754_v31 = vunpack.c.l.bf16 %v10478_v55  ;;  %v14755_v58 = vunpack.c.l.bf16 %v10486_v44  ;;  %v14756_v24 = vunpack.c.l.bf16 %v10488_v36 }
 0x441   :  { %14750 = vst [vmem:[#allocation40_spill] sm:$0xff] %v10796_v56  ;;  %14751 = vst [vmem:[#allocation41_spill] sm:$0xff] %v10799_v7  ;;  %v2889_v14 = vmul.f32 %v14753_v11, %v10781_v37  ;;  %v14757_v47 = vunpack.c.h.bf16 %v10488_v36  ;;  %v14758_v26 = vunpack.c.l.bf16 %v10490_v53  ;;  %v14759_v1 = vunpack.c.h.bf16 %v10478_v55 }
 0x442   :  { %v2893_v4 = vmul.f32 %v14754_v31, %v10784_v30  ;;  %v2901_v2 = vmul.f32 %v14755_v58, %v10787_v18  ;;  %v2905_v22 = vmul.f32 %v14756_v24, %v10790_v21  ;;  %v14760_v10 = vunpack.c.l.bf16 %v10480_v40 }
 0x443   :  { %v2906_v63 = vmul.f32 %v14757_v47, %v10790_v21  ;;  %v2909_v15 = vmul.f32 %v14758_v26, %v10799_v7  ;;  %v2894_v57 = vmul.f32 %v14759_v1, %v10784_v30  ;;  %v14761_v34 = vunpack.c.h.bf16 %v10486_v44 }
 0x444   :  { %v2897_v45 = vmul.f32 %v14760_v10, %v10793_v16  ;;  %v14762_v31 = vunpack.c.h.bf16 %v10490_v53  ;;  %v14763_v24 = vunpack.c.l.bf16 %v10470_v48  ;;  %v14764_v26 = vunpack.c.h.bf16 %v10472_v42 }
 0x445   :  { %v2902_v11 = vmul.f32 %v14761_v34, %v10787_v18  ;;  %v14765_v36 = vunpack.c.h.bf16 %v10480_v40  ;;  %v2925_v55 = vadd.f32 %v2909_v15, %v2893_v4  ;;  %v14766_v44 = vunpack.c.h.bf16 %v10462_v54 }
 0x446   :  { %v2910_v58 = vmul.f32 %v14762_v31, %v10799_v7  ;;  %v2885_v47 = vmul.f32 %v14763_v24, %v10796_v56  ;;  %v2890_v1 = vmul.f32 %v14764_v26, %v10781_v37  ;;  %v14767_v53 = vunpack.c.h.bf16 %v10470_v48 }
 0x447   :  { %v2898_v10 = vmul.f32 %v14765_v36, %v10793_v16  ;;  %v2882_v34 = vmul.f32 %v14766_v44, %v2844_v46  ;;  %v2921_v7 = vadd.f32 %v2905_v22, %v2889_v14  ;;  %v2714_v30 = vadd.f32 %v2706_v39, %v2698_v25 }
 0x448   :  { %v2886_v31 = vmul.f32 %v14767_v53, %v10796_v56  ;;  %v2926_v21 = vadd.f32 %v2910_v58, %v2894_v57  ;;  %v2917_v18 = vadd.f32 %v2901_v2, %v2885_v47  ;;  %v2922_v24 = vadd.f32 %v2906_v63, %v2890_v1 }
 0x449   :  { %v2715_v6 = vadd.f32 %v2707_v3, %v2699_v51  ;;  %v2710_v42 = vadd.f32 %v2702_v50, %v2694_v20  ;;  %v2711_v26 = vadd.f32 %v2703_v27, %v2695_v61  ;;  %v2913_v37 = vadd.f32 %v2897_v45, %v2881_v33 }
 0x44a   :  { %v2918_v49 = vadd.f32 %v2902_v11, %v2886_v31  ;;  %v14768_v36 = vunpack.c.l.bf16 %v10464_v29  ;;  %v14770_v44 = vunpack.c.h.bf16 %v10464_v29  ;;  %v2914_v53 = vadd.f32 %v2898_v10, %v2882_v34 }
 0x44b   :  { %v2933_v22 = vadd.f32 %v2925_v55, %v2917_v18  ;;  %v2929_v2 = vadd.f32 %v2921_v7, %v2913_v37  ;;  %v14772_v20 = vunpack.c.l.bf16 %v10568_v8  ;;  %v10860_v39 = vadd.f32 %v2714_v30, %v2710_v42 }
 0x44c   :  { %v10849_v4 = vmul.f32 %v14768_v36, %v2844_v46  ;;  %v10853_v15 = vmul.f32 %v14770_v44, %v2844_v46  ;;  %v2934_v51 = vadd.f32 %v2926_v21, %v2918_v49  ;;  %v2930_v50 = vadd.f32 %v2922_v24, %v2914_v53 }
 0x44d   :  { %v10858_v61 = vmul.f32 %v14772_v20, %v10696_v59  ;;  %v10862_v3 = vadd.f32 %v2715_v6, %v2711_v26  ;;  %v14773_v46 = vunpack.c.h.bf16 %v10568_v8  ;;  %v14774_v49 = vunpack.c.l.bf16 %v10574_v38 }
 0x44e   :  { %14769 = vst [vmem:[#allocation129_spill] sm:$0xff] %v10849_v4  ;;  %14771 = vst [vmem:[#allocation38_spill] sm:$0xff] %v10853_v15  ;;  %v10875_v21 = vadd.f32 %v2933_v22, %v2929_v2  ;;  %v14775_v42 = vunpack.c.h.bf16 %v10574_v38  ;;  %v14777_v7 = vunpack.c.h.bf16 %v10582_v0  ;;  %v10894_v47 = vadd.f32 %v2934_v51, %v2930_v50 }
 0x44f   :  { %v10867_v33 = vmul.f32 %v14773_v46, %v10696_v59  ;;  %v10873_v18 = vmul.f32 %v14774_v49, %v10701_v41  ;;  %v14776_v59 = vunpack.c.l.bf16 %v10582_v0  ;;  %v14779_v10 = vunpack.c.h.bf16 %v10576_v19  ;;  %v14804_v0 = vld [vmem:[#allocation95_spill] sm:$0xff] }
 0x450   :  { %v10880_v6 = vmul.f32 %v14775_v42, %v10701_v41  ;;  %v10890_v57 = vmul.f32 %v14777_v7, %v10704_v32  ;;  %v14778_v41 = vunpack.c.l.bf16 %v10576_v19  ;;  %v14781_v24 = vunpack.c.h.bf16 %v10584_v13  ;;  %v14808_v19 = vld [vmem:[#allocation94_spill] sm:$0xff] }
 0x451   :  { %v10885_v30 = vmul.f32 %v14776_v59, %v10704_v32  ;;  %v10904_v34 = vmul.f32 %v14779_v10, %v10709_v35  ;;  %v14780_v32 = vunpack.c.l.bf16 %v10584_v13  ;;  %v14785_v46 = vunpack.c.h.bf16 %v10590_v17 }
 0x452   :  { %v10899_v1 = vmul.f32 %v14778_v41, %v10709_v35  ;;  %v10914_v26 = vmul.f32 %v14781_v24, %v10712_v43  ;;  %v14787_v49 = vunpack.c.h.bf16 %v10598_v62  ;;  %v14809_v38 = vunpack.c.l.bf16 %v14808_v19 }
 0x453   :  { %v8137_v40 = vpop.f32.mrb[28].mxu0  ;;  %v10909_v31 = vmul.f32 %v14780_v32, %v10712_v43  ;;  %v14793_v32 = vunpack.c.l.bf16 %v10496_v28  ;;  %v14810_v8 = vunpack.c.h.bf16 %v14808_v19 }
 0x454   :  { %v8138_v14 = vpop.f32.mrb[29].mxu0  ;;  %v10947_v42 = vmul.f32 %v14787_v49, %v10724_v9 }
 0x455   :  { %v8139_v63 = vadd.f32 %v8138_v14, %v8137_v40  ;;  %v8140_v25 = vpop.f32.mrb[30].mxu0 }
 0x456   :  { %v8141_v27 = vpop.f32.mrb[31].mxu0 }
 0x457   :  { %v3011_v37 = vcombine.high %v8139_v63, %v8139_v63  ;;  %v3018_v55 = vrot.slane %v8139_v63, %v14716_v52  ;;  %v8142_v40 = vadd.f32 %v8141_v27, %v8140_v25  ;;  %v14782_v63 = vunpack.c.l.bf16 %v10590_v17 }
 0x458   :  { %v14806_v17 = vunpack.c.h.bf16 %v14804_v0 }
 0x459   :  { %v3025_v45 = vrot.slane %v3011_v37, %v14716_v52  ;;  %v3026_v11 = vcombine.high %v3018_v55, %v3018_v55  ;;  %v3034_v58 = vrot.slane %v3018_v55, %v14716_v52  ;;  %v3230_v35 = vcombine.high %v8142_v40, %v8142_v40 }
 0x45a   :  { %v3237_v2 = vrot.slane %v8142_v40, %v14716_v52  ;;  %v10925_v25 = vmul.f32 %v14782_v63, %v10716_v5  ;;  %v10937_v37 = vmul.f32 %v14785_v46, %v10716_v5  ;;  %v14786_v55 = vunpack.c.l.bf16 %v10598_v62  ;;  %v14799_v46 = vld [vmem:[#allocation93_spill] sm:$0xff] }
 0x45b   :  { %v3027_v36 = vcombine.high %v3025_v45, %v3025_v45  ;;  %v3041_v44 = vrot.slane %v3025_v45, %v14716_v52  ;;  %v3048_v53 = vrot.slane %v3026_v11, %v14716_v52  ;;  %v3056_v14 = vcombine.high %v3034_v58, %v3034_v58 }
 0x45c   :  { %v10919_v22 = vrot.slane %v3034_v58, %v14724_v60  ;;  %v10942_v40 = vmul.f32 %v14786_v55, %v10724_v9  ;;  %v3244_v58 = vrot.slane %v3230_v35, %v14716_v52  ;;  %v3245_v41 = vcombine.high %v3237_v2, %v3237_v2 }
 0x45d   :  { %v3055_v43 = vrot.slane %v3027_v36, %v14716_v52  ;;  %v3057_v51 = vcombine.high %v3041_v44, %v3041_v44  ;;  %v3058_v20 = vcombine.high %v3048_v53, %v3048_v53  ;;  %v10929_v50 = vrot.slane %v3048_v53, %v14724_v60 }
 0x45e   :  { %v10932_v27 = vrot.slane %v3041_v44, %v14724_v60  ;;  %v10950_v7 = vrot.slane %v3056_v14, %v14724_v60  ;;  %v3253_v10 = vrot.slane %v3237_v2, %v14716_v52  ;;  %v3100_v24 = vmul.f32 %v14793_v32, %v10919_v22 }
 0x45f   :  { %14783 = vst [vmem:[#allocation42_spill] sm:$0xff] %v10929_v50  ;;  %v3059_v59 = vcombine.high %v3055_v43, %v3055_v43  ;;  %v10953_v45 = vrot.slane %v3055_v43, %v14724_v60  ;;  %v10956_v5 = vrot.slane %v3057_v51, %v14724_v60  ;;  %v10959_v11 = vrot.slane %v3058_v20, %v14724_v60 }
 0x460   :  { %14784 = vst [vmem:[#allocation126_spill] sm:$0xff] %v10932_v27  ;;  %14788 = vst [vmem:[#allocation130_spill] sm:$0xff] %v10950_v7  ;;  %v14794_v36 = vunpack.c.h.bf16 %v10496_v28  ;;  %v14795_v53 = vunpack.c.l.bf16 %v10504_v23  ;;  %v14796_v35 = vunpack.c.h.bf16 %v10504_v23  ;;  %v14797_v2 = vunpack.c.l.bf16 %v10518_v12 }
 0x461   :  { %14789 = vst [vmem:[#allocation43_spill] sm:$0xff] %v10953_v45  ;;  %14790 = vst [vmem:[#allocation44_spill] sm:$0xff] %v10956_v5  ;;  %v10964_v9 = vrot.slane %v3059_v59, %v14724_v60  ;;  %v14798_v51 = vunpack.c.h.bf16 %v10518_v12  ;;  %v14800_v55 = vunpack.c.l.bf16 %v14799_v46  ;;  %v14801_v59 = vld [vmem:[#allocation91_spill] sm:$0xff]  ;;  %v14805_v62 = vunpack.c.l.bf16 %v14804_v0 }
 0x462   :  { %14791 = vst [vmem:[#allocation45_spill] sm:$0xff] %v10959_v11  ;;  %v3101_v44 = vmul.f32 %v14794_v36, %v10919_v22  ;;  %v3104_v14 = vmul.f32 %v14795_v53, %v10929_v50  ;;  %v3105_v63 = vmul.f32 %v14796_v35, %v10929_v50  ;;  %v3116_v43 = vmul.f32 %v14797_v2, %v10932_v27 }
 0x463   :  { %14792 = vst [vmem:[#allocation47_spill] sm:$0xff] %v10964_v9  ;;  %v3117_v20 = vmul.f32 %v14798_v51, %v10932_v27  ;;  %v3120_v49 = vmul.f32 %v14800_v55, %v10953_v45  ;;  %v14802_v32 = vunpack.c.l.bf16 %v14801_v59  ;;  %v14803_v53 = vunpack.c.h.bf16 %v14799_v46  ;;  %v14811_v46 = vld [vmem:[#allocation96_spill] sm:$0xff] }
 0x464   :  { %v3124_v2 = vmul.f32 %v14805_v62, %v10956_v5  ;;  %v3125_v51 = vmul.f32 %v14806_v17, %v10956_v5  ;;  %v14807_v13 = vunpack.c.h.bf16 %v14801_v59  ;;  %v14812_v12 = vunpack.c.l.bf16 %v14811_v46 }
 0x465   :  { %v3108_v36 = vmul.f32 %v14802_v32, %v10950_v7  ;;  %v3121_v35 = vmul.f32 %v14803_v53, %v10953_v45  ;;  %v3112_v32 = vmul.f32 %v14809_v38, %v10959_v11  ;;  %v3113_v53 = vmul.f32 %v14810_v8, %v10959_v11 }
 0x466   :  { %v3109_v55 = vmul.f32 %v14807_v13, %v10950_v7  ;;  %v3128_v62 = vmul.f32 %v14812_v12, %v10964_v9  ;;  %v14813_v0 = vunpack.c.h.bf16 %v14811_v46  ;;  %v3132_v23 = vadd.f32 %v3116_v43, %v3100_v24  ;;  %v14838_v7 = vld [vmem:[#allocation13_spill] sm:$0xff] }
 0x467   :  { %v3133_v48 = vadd.f32 %v3117_v20, %v3101_v44  ;;  %v3136_v59 = vadd.f32 %v3120_v49, %v3104_v14  ;;  %v3137_v13 = vadd.f32 %v3121_v35, %v3105_v63  ;;  %v3246_v28 = vcombine.high %v3244_v58, %v3244_v58  ;;  %v14819_v49 = vld [vmem:[#allocation100_spill] sm:$0xff] }
 0x468   :  { %v3129_v17 = vmul.f32 %v14813_v0, %v10964_v9  ;;  %v3260_v5 = vrot.slane %v3244_v58, %v14716_v52  ;;  %v3267_v38 = vrot.slane %v3245_v41, %v14716_v52  ;;  %v3140_v45 = vadd.f32 %v3124_v2, %v3108_v36 }
 0x469   :  { %v3141_v19 = vadd.f32 %v3125_v51, %v3109_v55  ;;  %v3275_v8 = vcombine.high %v3253_v10, %v3253_v10  ;;  %v11017_v27 = vrot.slane %v3253_v10, %v14724_v60  ;;  %v3274_v12 = vrot.slane %v3246_v28, %v14716_v52 }
 0x46a   :  { %v3276_v11 = vcombine.high %v3260_v5, %v3260_v5  ;;  %v3277_v46 = vcombine.high %v3267_v38, %v3267_v38  ;;  %v11021_v0 = vrot.slane %v3267_v38, %v14724_v60  ;;  %v3144_v24 = vadd.f32 %v3128_v62, %v3112_v32  ;;  %v14829_v38 = vld [vmem:[#allocation102_spill] sm:$0xff] }
 0x46b   :  { %14814 = vst [vmem:[#allocation48_spill] sm:$0xff] %v11017_v27  ;;  %v3145_v44 = vadd.f32 %v3129_v17, %v3113_v53  ;;  %v11024_v14 = vrot.slane %v3275_v8, %v14724_v60  ;;  %v11027_v58 = vrot.slane %v3260_v5, %v14724_v60  ;;  %v3278_v41 = vcombine.high %v3274_v12, %v3274_v12 }
 0x46c   :  { %v11030_v63 = vrot.slane %v3277_v46, %v14724_v60  ;;  %v11033_v10 = vrot.slane %v3274_v12, %v14724_v60  ;;  %v11036_v28 = vrot.slane %v3276_v11, %v14724_v60  ;;  %v3148_v43 = vadd.f32 %v3140_v45, %v3132_v23  ;;  %v14822_v46 = vld [vmem:[#allocation98_spill] sm:$0xff]  ;;  %v14824_v11 = vld [vmem:[#allocation99_spill] sm:$0xff]  ;;  %v14827_v45 = vld [vmem:[#allocation101_spill] sm:$0xff] }
 0x46d   :  { %14815 = vst [vmem:[#allocation46_spill] sm:$0xff] %v11024_v14  ;;  %14816 = vst [vmem:[#allocation11_spill] sm:$0xff] %v11027_v58  ;;  %v3149_v20 = vadd.f32 %v3141_v19, %v3133_v48  ;;  %v14820_v36 = vunpack.c.l.bf16 %v14819_v49  ;;  %v14821_v5 = vunpack.c.h.bf16 %v14819_v49  ;;  %v11045_v51 = vrot.slane %v3278_v41, %v14724_v60 }
 0x46e   :  { %14817 = vst [vmem:[#allocation109_spill] sm:$0xff] %v11033_v10  ;;  %14818 = vst [vmem:[#allocation119_spill] sm:$0xff] %v11036_v28  ;;  %v14823_v55 = vunpack.c.l.bf16 %v14822_v46  ;;  %v14825_v53 = vunpack.c.l.bf16 %v14824_v11  ;;  %v14826_v48 = vunpack.c.h.bf16 %v14824_v11  ;;  %v14828_v62 = vunpack.c.l.bf16 %v14827_v45 }
 0x46f   :  { %v3319_v35 = vmul.f32 %v14820_v36, %v11017_v27  ;;  %v3320_v2 = vmul.f32 %v14821_v5, %v11017_v27  ;;  %v14830_v8 = vunpack.c.l.bf16 %v14829_v38  ;;  %v14831_v41 = vunpack.c.h.bf16 %v14829_v38  ;;  %v14832_v5 = vld [vmem:[#allocation12_spill] sm:$0xff] }
 0x470   :  { %v3323_v32 = vmul.f32 %v14823_v55, %v11021_v0  ;;  %v3327_v23 = vmul.f32 %v14825_v53, %v11024_v14  ;;  %v3328_v19 = vmul.f32 %v14826_v48, %v11024_v14  ;;  %v3331_v17 = vmul.f32 %v14828_v62, %v11030_v63  ;;  %v14835_v14 = vld [vmem:[#allocation104_spill] sm:$0xff] }
 0x471   :  { %v3335_v12 = vmul.f32 %v14830_v8, %v11027_v58  ;;  %v3336_v36 = vmul.f32 %v14831_v41, %v11027_v58  ;;  %v14833_v55 = vunpack.c.l.bf16 %v14832_v5  ;;  %v14834_v11 = vunpack.c.h.bf16 %v14832_v5 }
 0x472   :  { %v14836_v49 = vunpack.c.l.bf16 %v14835_v14  ;;  %v14837_v9 = vunpack.c.h.bf16 %v14835_v14  ;;  %v14839_v38 = vunpack.c.l.bf16 %v14838_v7  ;;  %v14840_v14 = vunpack.c.h.bf16 %v14822_v46 }
 0x473   :  { %v3339_v53 = vmul.f32 %v14833_v55, %v11033_v10  ;;  %v3340_v48 = vmul.f32 %v14834_v11, %v11033_v10  ;;  %v8407_v55 = vld [vmem:[%s13468_s3 + $0x140] sm:$0xff]   ;;  %v14841_v5 = vunpack.c.h.bf16 %v14827_v45  ;;  %v3351_v58 = vadd.f32 %v3335_v12, %v3319_v35  ;;  %v14843_v35 = vld [vmem:[#allocation30_spill] sm:$0xff] }
 0x474   :  { %v3343_v62 = vmul.f32 %v14836_v49, %v11036_v28  ;;  %v3344_v8 = vmul.f32 %v14837_v9, %v11036_v28  ;;  %v3347_v41 = vmul.f32 %v14839_v38, %v11045_v51  ;;  %v8408_v11 = vld [vmem:[%s13468_s3 + $0x100] sm:$0xff]   ;;  %v8409_v49 = vld [vmem:[%s13468_s3 + $0x148] sm:$0xff]   ;;  %v3324_v9 = vmul.f32 %v14840_v14, %v11021_v0  ;;  %8155 = vmatprep.subr.bf16.mxu0 %v8407_v55 }
 0x475   :  { %v3332_v38 = vmul.f32 %v14841_v5, %v11030_v63  ;;  %v14842_v28 = vunpack.c.h.bf16 %v14838_v7  ;;  %v3355_v50 = vadd.f32 %v3339_v53, %v3323_v32  ;;  %v3152_v27 = vadd.f32 %v3144_v24, %v3136_v59  ;;  %8156 = vmatpush3.bf16.msra.mxu0 %v8408_v11  ;;  %v8410_v14 = vld [vmem:[%s13468_s3 + $0x108] sm:$0xff]  }
 0x476   :  { %v3359_v15 = vadd.f32 %v3343_v62, %v3327_v23  ;;  %v3360_v4 = vadd.f32 %v3344_v8, %v3328_v19  ;;  %v3363_v29 = vadd.f32 %v3347_v41, %v3331_v17  ;;  %v3356_v16 = vadd.f32 %v3340_v48, %v3324_v9  ;;  %8157 = vmatprep.subr.bf16.mxu0 %v8409_v49  ;;  %v14851_v49 = vld [vmem:[#allocation73_spill] sm:$0xff] }
 0x477   :  { %v3348_v10 = vmul.f32 %v14842_v28, %v11045_v51  ;;  %v3153_v46 = vadd.f32 %v3145_v44, %v3137_v13  ;;  %v3352_v5 = vadd.f32 %v3336_v36, %v3320_v2  ;;  %v2696_v32 = vadd.f32 %v10899_v1, %v14843_v35  ;;  %v14844_v2 = vld [vmem:[#allocation33_spill] sm:$0xff] }
 0x478   :  { %v3367_v45 = vadd.f32 %v3359_v15, %v3351_v58  ;;  %v3371_v28 = vadd.f32 %v3363_v29, %v3355_v50  ;;  %v3156_v13 = vadd.f32 %v3152_v27, %v3148_v43  ;;  %v2697_v15 = vadd.f32 %v10904_v34, %v14844_v2  ;;  %v8413_v34 = vld [vmem:[%s13468_s3 + $0x158] sm:$0xff]  }
 0x479   :  { %v3364_v56 = vadd.f32 %v3348_v10, %v3332_v38  ;;  %v8411_v10 = vld [vmem:[%s13468_s3 + $0x150] sm:$0xff]   ;;  %v3157_v24 = vadd.f32 %v3153_v46, %v3149_v20  ;;  %v3368_v19 = vadd.f32 %v3360_v4, %v3352_v5  ;;  %v2700_v29 = vadd.f32 %v10909_v31, %v10858_v61  ;;  %8158 = vmatpush3.bf16.msra.mxu0 %v8410_v14 }
 0x47a   :  { %v3375_v12 = vadd.f32 %v3371_v28, %v3367_v45  ;;  %v3160_v36 = vadd.f32 %v3156_v13, %v10860_v39  ;;  %v2701_v61 = vadd.f32 %v10914_v26, %v10867_v33  ;;  %8159 = vmatprep.subr.bf16.mxu0 %v8411_v10  ;;  %v2708_v33 = vadd.f32 %v10942_v40, %v10885_v30  ;;  %v14845_v26 = vld [vmem:[#allocation89_spill] sm:$0xff]  ;;  %v14855_v10 = vld [vmem:[#allocation48_spill] sm:$0xff] }
 0x47b   :  { %v3372_v44 = vadd.f32 %v3364_v56, %v3356_v16  ;;  %v11116_v16 = vadd.f32 %v3157_v24, %v10862_v3  ;;  %v14846_v20 = vunpack.c.l.bf16 %v14845_v26  ;;  %v2704_v48 = vadd.f32 %v10925_v25, %v10873_v18 }
 0x47c   :  { %v3379_v4 = vadd.f32 %v3375_v12, %v10875_v21  ;;  %v14848_v62 = vunpack.c.h.bf16 %v14845_v26  ;;  %v14852_v9 = vunpack.c.l.bf16 %v14851_v49  ;;  %v14853_v14 = vunpack.c.h.bf16 %v14851_v49 }
 0x47d   :  { %v3376_v56 = vadd.f32 %v3372_v44, %v3368_v19  ;;  %v11137_v46 = vmul.f32 %v14846_v20, %v10919_v22  ;;  %v2716_v35 = vadd.f32 %v2708_v33, %v2700_v29  ;;  %v2712_v44 = vadd.f32 %v2704_v48, %v2696_v32 }
 0x47e   :  { %v11130_v21 = vadd.f32 %v3379_v4, %v3160_v36  ;;  %v11148_v8 = vmul.f32 %v14848_v62, %v10919_v22  ;;  %v2709_v22 = vadd.f32 %v10947_v42, %v10890_v57 }
 0x47f   :  { %v8143_v54 = vpop.f32.mrb[32].mxu0  ;;  %v11128_v43 = vadd.f32 %v3376_v56, %v10894_v47  ;;  %v2705_v47 = vadd.f32 %v10937_v37, %v10880_v6  ;;  %v11188_v4 = vadd.f32 %v2716_v35, %v2712_v44  ;;  %v14873_v44 = vld [vmem:[#allocation40_spill] sm:$0xff] }
 0x480   :  { %v8144_v7 = vpop.f32.mrb[33].mxu0 }
 0x481   :  { %v8145_v23 = vadd.f32 %v8144_v7, %v8143_v54  ;;  %v8146_v59 = vpop.f32.mrb[34].mxu0  ;;  %v8412_v54 = vld [vmem:[%s13468_s3 + $0x110] sm:$0xff]   ;;  %v2713_v2 = vadd.f32 %v2705_v47, %v2697_v15  ;;  %v14859_v15 = vld [vmem:[#allocation80_spill] sm:$0xff] }
 0x482   :  { %v8147_v17 = vpop.f32.mrb[35].mxu0  ;;  %8160 = vmatpush3.bf16.msra.mxu0 %v8412_v54  ;;  %v14863_v20 = vunpack.c.h.bf16 %v14859_v15 }
 0x483   :  { %v3388_v1 = vcombine.high %v8145_v23, %v8145_v23  ;;  %v3395_v50 = vrot.slane %v8145_v23, %v14716_v52  ;;  %v8148_v58 = vadd.f32 %v8147_v17, %v8146_v59  ;;  %8161 = vmatprep.subr.bf16.mxu0 %v8413_v34  ;;  %v14856_v23 = vld [vmem:[#allocation97_spill] sm:$0xff] }
 0x484   :  { %v14857_v59 = vunpack.c.l.bf16 %v14856_v23  ;;  %v14858_v57 = vunpack.c.h.bf16 %v14856_v23 }
 0x485   :  { %v3402_v39 = vrot.slane %v3388_v1, %v14716_v52  ;;  %v3403_v31 = vcombine.high %v3395_v50, %v3395_v50  ;;  %v3411_v27 = vrot.slane %v3395_v50, %v14716_v52  ;;  %v3542_v7 = vcombine.high %v8148_v58, %v8148_v58 }
 0x486   :  { %v3549_v3 = vrot.slane %v8148_v58, %v14716_v52  ;;  %v11175_v13 = vmul.f32 %v14857_v59, %v14855_v10  ;;  %v11180_v42 = vmul.f32 %v14858_v57, %v14855_v10  ;;  %v2717_v58 = vadd.f32 %v2709_v22, %v2701_v61 }
 0x487   :  { %v3404_v45 = vcombine.high %v3402_v39, %v3402_v39  ;;  %v11139_v53 = vpop.f32.mrb[36].mxu0  ;;  %v3425_v30 = vrot.slane %v3403_v31, %v14716_v52  ;;  %v3440_v40 = vrot.slane %v3411_v27, %v14724_v60  ;;  %v3556_v41 = vrot.slane %v3542_v7, %v14716_v52 }
 0x488   :  { %14847 = vst [vmem:[#allocation35_spill] sm:$0xff] %v11139_v53  ;;  %v11153_v55 = vpop.f32.mrb[37].mxu0  ;;  %v3418_v18 = vrot.slane %v3402_v39, %v14716_v52  ;;  %v3557_v25 = vcombine.high %v3549_v3, %v3549_v3  ;;  %v3565_v6 = vrot.slane %v3549_v3, %v14716_v52  ;;  %v3433_v24 = vcombine.high %v3411_v27, %v3411_v27  ;;  %v14898_v53 = vld [vmem:[#allocation23_spill] sm:$0xff] }
 0x489   :  { %14849 = vst [vmem:[#allocation50_spill] sm:$0xff] %v11153_v55  ;;  %v11157_v37 = vpop.f32.mrb[38].mxu0  ;;  %v3432_v11 = vrot.slane %v3404_v45, %v14716_v52  ;;  %v11164_v38 = vmul.f32 %v14852_v9, %v3440_v40  ;;  %v11168_v5 = vmul.f32 %v14853_v14, %v3440_v40  ;;  %v3435_v19 = vcombine.high %v3425_v30, %v3425_v30  ;;  %v14897_v55 = vld [vmem:[#allocation41_spill] sm:$0xff] }
 0x48a   :  { %14850 = vst [vmem:[#allocation51_spill] sm:$0xff] %v11157_v37  ;;  %v11170_v28 = vpop.f32.mrb[39].mxu0  ;;  %v3558_v17 = vcombine.high %v3556_v41, %v3556_v41  ;;  %v3572_v12 = vrot.slane %v3556_v41, %v14716_v52  ;;  %v3434_v1 = vcombine.high %v3418_v18, %v3418_v18  ;;  %v3579_v29 = vrot.slane %v3557_v25, %v14716_v52 }
 0x48b   :  { %14854 = vst [vmem:[#allocation53_spill] sm:$0xff] %v11170_v28  ;;  %v3594_v50 = vrot.slane %v3565_v6, %v14724_v60  ;;  %v3436_v36 = vcombine.high %v3432_v11, %v3432_v11  ;;  %v11186_v54 = vrot.slane %v3425_v30, %v14724_v60  ;;  %v3587_v56 = vcombine.high %v3565_v6, %v3565_v6  ;;  %v14866_v30 = vld [vmem:[#allocation76_spill] sm:$0xff]  ;;  %v14894_v28 = vld [vmem:[#allocation22_spill] sm:$0xff] }
 0x48c   :  { %v11191_v32 = vrot.slane %v3433_v24, %v14724_v60  ;;  %v3586_v34 = vrot.slane %v3558_v17, %v14716_v52  ;;  %v3588_v39 = vcombine.high %v3572_v12, %v3572_v12  ;;  %v14860_v31 = vunpack.c.l.bf16 %v14859_v15 }
 0x48d   :  { %v11201_v61 = vrot.slane %v3435_v19, %v14724_v60  ;;  %v11204_v3 = vrot.slane %v3418_v18, %v14724_v60  ;;  %v3589_v33 = vcombine.high %v3579_v29, %v3579_v29  ;;  %v11208_v45 = vmul.f32 %v14863_v20, %v3594_v50  ;;  %v14874_v19 = vld [vmem:[#allocation106_spill] sm:$0xff] }
 0x48e   :  { %v11196_v27 = vmul.f32 %v14860_v31, %v3594_v50  ;;  %v11213_v47 = vrot.slane %v3432_v11, %v14724_v60  ;;  %v11216_v62 = vrot.slane %v3434_v1, %v14724_v60  ;;  %v14867_v41 = vunpack.c.l.bf16 %v14866_v30  ;;  %v14881_v31 = vld [vmem:[#allocation118_spill] sm:$0xff] }
 0x48f   :  { %v11198_v7 = vpop.f32.mrb[40].mxu0  ;;  %14864 = vst [vmem:[#allocation52_spill] sm:$0xff] %v11208_v45  ;;  %v14869_v18 = vunpack.c.h.bf16 %v14866_v30  ;;  %v11229_v49 = vrot.slane %v3436_v36, %v14724_v60  ;;  %v11232_v9 = vrot.slane %v3579_v29, %v14724_v60  ;;  %v11235_v11 = vrot.slane %v3587_v56, %v14724_v60  ;;  %v14877_v36 = vld [vmem:[#allocation34_spill] sm:$0xff]  ;;  %v14878_v56 = vld [vmem:[#allocation20_spill] sm:$0xff] }
 0x490   :  { %14861 = vst [vmem:[#allocation54_spill] sm:$0xff] %v11196_v27  ;;  %14862 = vst [vmem:[#allocation55_spill] sm:$0xff] %v11198_v7  ;;  %v11210_v48 = vpop.f32.mrb[41].mxu0  ;;  %v11220_v25 = vmul.f32 %v14867_v41, %v3440_v40  ;;  %v11238_v14 = vrot.slane %v3572_v12, %v14724_v60  ;;  %v3590_v10 = vcombine.high %v3586_v34, %v3586_v34  ;;  %v14875_v17 = vunpack.c.l.bf16 %v14874_v19  ;;  %v14893_v7 = vld [vmem:[#allocation37_spill] sm:$0xff] }
 0x491   :  { %14865 = vst [vmem:[#allocation116_spill] sm:$0xff] %v11210_v48  ;;  %v11224_v6 = vmul.f32 %v14869_v18, %v3440_v40  ;;  %v11226_v22 = vpop.f32.mrb[42].mxu0  ;;  %v11243_v40 = vrot.slane %v3586_v34, %v14724_v60  ;;  %v11246_v59 = vrot.slane %v3588_v39, %v14724_v60  ;;  %v3384_v57 = vadd.f32 %v11128_v43, %v11116_v16 }
 0x492   :  { %14868 = vst [vmem:[#allocation117_spill] sm:$0xff] %v11220_v25  ;;  %14871 = vst [vmem:[#allocation58_spill] sm:$0xff] %v11226_v22  ;;  %v11240_v35 = vpop.f32.mrb[43].mxu0  ;;  %v11251_v24 = vrot.slane %v3589_v33, %v14724_v60  ;;  %v2887_v12 = vmul.f32 %v14875_v17, %v14873_v44  ;;  %v14876_v1 = vunpack.c.h.bf16 %v14874_v19  ;;  %v14879_v34 = vunpack.c.l.bf16 %v14878_v56  ;;  %v14882_v33 = vld [vmem:[#allocation10_spill] sm:$0xff]  ;;  %v14885_v17 = vld [vmem:[#allocation39_spill] sm:$0xff] }
 0x493   :  { %14870 = vst [vmem:[#allocation57_spill] sm:$0xff] %v11224_v6  ;;  %14872 = vst [vmem:[#allocation59_spill] sm:$0xff] %v11240_v35  ;;  %v4007_v39 = vpack.c.bf16 %v3384_v57, %v11130_v21  ;;  %v14880_v16 = vunpack.c.h.bf16 %v14878_v56  ;;  %v14883_v20 = vunpack.c.l.bf16 %v14882_v33  ;;  %v14884_v41 = vunpack.c.h.bf16 %v14882_v33  ;;  %v14889_v57 = vld [vmem:[#allocation36_spill] sm:$0xff]  ;;  %v14890_v22 = vld [vmem:[#allocation21_spill] sm:$0xff] }
 0x494   :  { %v2888_v29 = vmul.f32 %v14876_v1, %v14873_v44  ;;  %v2891_v15 = vmul.f32 %v14879_v34, %v14877_v36  ;;  %v14886_v44 = vld [vmem:[#allocation108_spill] sm:$0xff]  ;;  %v14891_v48 = vunpack.c.l.bf16 %v14890_v22  ;;  %v11306_v6 = vrot.slane %v3590_v10, %v14724_v60 }
 0x495   :  { %v2892_v43 = vmul.f32 %v14880_v16, %v14877_v36  ;;  %v2895_v30 = vmul.f32 %v14883_v20, %v14881_v31  ;;  %v2896_v18 = vmul.f32 %v14884_v41, %v14881_v31  ;;  %v14887_v1 = vunpack.c.l.bf16 %v14886_v44  ;;  %4293 = vmatmul.mubr.bf16.vlgmr.msra.gmra.mrb[36].mxu1 %v4007_v39 }
 0x496   :  { %v14888_v34 = vunpack.c.h.bf16 %v14886_v44  ;;  %v2903_v36 = vmul.f32 %v14891_v48, %v14889_v57  ;;  %v14892_v16 = vunpack.c.h.bf16 %v14890_v22  ;;  %v14895_v31 = vunpack.c.l.bf16 %v14894_v28  ;;  %v14901_v44 = vld [vmem:[#allocation81_spill] sm:$0xff] }
 0x497   :  { %v2899_v35 = vmul.f32 %v14887_v1, %v14885_v17  ;;  %v14896_v1 = vunpack.c.h.bf16 %v14894_v28  ;;  %v14900_v48 = vunpack.c.h.bf16 %v14898_v53  ;;  %v14902_v22 = vunpack.c.l.bf16 %v14901_v44 }
 0x498   :  { %v2900_v21 = vmul.f32 %v14888_v34, %v14885_v17  ;;  %v2904_v20 = vmul.f32 %v14892_v16, %v14889_v57  ;;  %v2907_v41 = vmul.f32 %v14895_v31, %v14893_v7  ;;  %v14899_v17 = vunpack.c.l.bf16 %v14898_v53 }
 0x499   :  { %v2908_v37 = vmul.f32 %v14896_v1, %v14893_v7  ;;  %v2912_v33 = vmul.f32 %v14900_v48, %v14897_v55  ;;  %v11298_v57 = vmul.f32 %v14902_v22, %v3594_v50  ;;  %v14904_v39 = vunpack.c.h.bf16 %v14901_v44  ;;  %v14907_v48 = vld [vmem:[#allocation129_spill] sm:$0xff] }
 0x49a   :  { %v2911_v34 = vmul.f32 %v14899_v17, %v14897_v55  ;;  %v14906_v31 = vmov 0   ;;  %v2919_v28 = vadd.f32 %v2903_v36, %v2887_v12  ;;  %v2920_v7 = vadd.f32 %v2904_v20, %v2888_v29  ;;  %v14920_v20 = vld [vmem:[#allocation126_spill] sm:$0xff] }
 0x49b   :  { %14903 = vst [vmem:[#allocation61_spill] sm:$0xff] %v11298_v57  ;;  %v11302_v16 = vmul.f32 %v14904_v39, %v3594_v50  ;;  %4302 = vmatprep.mubr.bf16.mxu1 %v14906_v31  ;;  %v2923_v1 = vadd.f32 %v2907_v41, %v2891_v15  ;;  %v2924_v56 = vadd.f32 %v2908_v37, %v2892_v43  ;;  %v14908_v57 = vld [vmem:[#allocation38_spill] sm:$0xff]  ;;  %v14921_v41 = vld [vmem:[#allocation25_spill] sm:$0xff] }
 0x49c   :  { %v2927_v19 = vadd.f32 %v2911_v34, %v2895_v30  ;;  %v2928_v17 = vadd.f32 %v2912_v33, %v2896_v18  ;;  %v11308_v55 = vadd.f32 %v2717_v58, %v2713_v2  ;;  %v2915_v22 = vadd.f32 %v2899_v35, %v14907_v48  ;;  %v14909_v39 = vld [vmem:[#allocation42_spill] sm:$0xff]  ;;  %v14914_v2 = vld [vmem:[#allocation24_spill] sm:$0xff]  ;;  %v14917_v18 = vld [vmem:[#allocation45_spill] sm:$0xff] }
 0x49d   :  { %14905 = vst [vmem:[#allocation60_spill] sm:$0xff] %v11302_v16  ;;  %v2916_v53 = vadd.f32 %v2900_v21, %v14908_v57  ;;  %v14910_v16 = vld [vmem:[#allocation110_spill] sm:$0xff]  ;;  %v14915_v58 = vunpack.c.l.bf16 %v14914_v2  ;;  %v14916_v35 = vunpack.c.h.bf16 %v14914_v2  ;;  %v14918_v21 = vld [vmem:[#allocation111_spill] sm:$0xff]  ;;  %v14922_v34 = vunpack.c.l.bf16 %v14921_v41 }
 0x49e   :  { %v2935_v44 = vadd.f32 %v2927_v19, %v2919_v28  ;;  %v2936_v50 = vadd.f32 %v2928_v17, %v2920_v7  ;;  %v14911_v25 = vunpack.c.l.bf16 %v14910_v16  ;;  %v14912_v37 = vunpack.c.h.bf16 %v14910_v16  ;;  %v14913_v33 = vld [vmem:[#allocation130_spill] sm:$0xff]  ;;  %v14924_v7 = vld [vmem:[#allocation43_spill] sm:$0xff] }
 0x49f   :  { %v2931_v43 = vadd.f32 %v2923_v1, %v2915_v22  ;;  %v2932_v10 = vadd.f32 %v2924_v56, %v2916_v53  ;;  %v3110_v30 = vmul.f32 %v14915_v58, %v14913_v33  ;;  %v3111_v28 = vmul.f32 %v14916_v35, %v14913_v33  ;;  %v14925_v1 = vld [vmem:[#allocation112_spill] sm:$0xff] }
 0x4a0   :  { %v3106_v12 = vmul.f32 %v14911_v25, %v14909_v39  ;;  %v3107_v29 = vmul.f32 %v14912_v37, %v14909_v39  ;;  %v14919_v36 = vunpack.c.l.bf16 %v14918_v21  ;;  %v3118_v57 = vmul.f32 %v14922_v34, %v14920_v20  ;;  %v14928_v35 = vld [vmem:[#allocation44_spill] sm:$0xff] }
 0x4a1   :  { %v14923_v53 = vunpack.c.h.bf16 %v14921_v41  ;;  %v14926_v17 = vunpack.c.l.bf16 %v14925_v1  ;;  %v11336_v37 = vadd.f32 %v2935_v44, %v2931_v43  ;;  %v14927_v33 = vunpack.c.h.bf16 %v14918_v21  ;;  %v14933_v43 = vld [vmem:[#allocation47_spill] sm:$0xff] }
 0x4a2   :  { %v3114_v25 = vmul.f32 %v14919_v36, %v14917_v18  ;;  %v14929_v36 = vld [vmem:[#allocation26_spill] sm:$0xff]  ;;  %v11344_v23 = vadd.f32 %v2936_v50, %v2932_v10 }
 0x4a3   :  { %v3119_v56 = vmul.f32 %v14923_v53, %v14920_v20  ;;  %v3122_v48 = vmul.f32 %v14926_v17, %v14924_v7  ;;  %v3115_v58 = vmul.f32 %v14927_v33, %v14917_v18  ;;  %v14930_v2 = vunpack.c.l.bf16 %v14929_v36 }
 0x4a4   :  { %v14931_v20 = vunpack.c.h.bf16 %v14925_v1 }
 0x4a5   :  { %v3126_v34 = vmul.f32 %v14930_v2, %v14928_v35  ;;  %v3134_v2 = vadd.f32 %v3118_v57, %v11137_v46 }
 0x4a6   :  { %v3123_v53 = vmul.f32 %v14931_v20, %v14924_v7  ;;  %v3135_v7 = vadd.f32 %v3119_v56, %v11148_v8  ;;  %v3138_v20 = vadd.f32 %v3122_v48, %v3106_v12 }
 0x4a7   :  { %v3142_v1 = vadd.f32 %v3126_v34, %v3110_v30 }
 0x4a8   :  { %v8149_v15 = vpop.f32.mrb[24].mxu1 }
 0x4a9   :  { %v8150_v19 = vpop.f32.mrb[25].mxu1  ;;  %v3150_v56 = vadd.f32 %v3142_v1, %v3134_v2 }
 0x4aa   :  { %v8151_v22 = vadd.f32 %v8150_v19, %v8149_v15  ;;  %v8152_v39 = vpop.f32.mrb[26].mxu1  ;;  %v14932_v15 = vunpack.c.h.bf16 %v14929_v36  ;;  %v14934_v19 = vld [vmem:[#allocation115_spill] sm:$0xff] }
 0x4ab   :  { %v8153_v16 = vpop.f32.mrb[27].mxu1  ;;  %v14935_v17 = vunpack.c.l.bf16 %v14934_v19  ;;  %v14936_v50 = vunpack.c.h.bf16 %v14934_v19  ;;  %v14959_v19 = vld [vmem:[#allocation113_spill] sm:$0xff] }
 0x4ac   :  { %v3127_v44 = vmul.f32 %v14932_v15, %v14928_v35  ;;  %v3696_v18 = vcombine.high %v8151_v22, %v8151_v22  ;;  %v3703_v33 = vrot.slane %v8151_v22, %v14716_v52  ;;  %v8154_v41 = vadd.f32 %v8153_v16, %v8152_v39 }
 0x4ad   :  { %v3130_v21 = vmul.f32 %v14935_v17, %v14933_v43  ;;  %v3131_v10 = vmul.f32 %v14936_v50, %v14933_v43  ;;  %v3139_v22 = vadd.f32 %v3123_v53, %v3107_v29 }
 0x4ae   :  { %v3710_v35 = vrot.slane %v3696_v18, %v14716_v52  ;;  %v3711_v15 = vcombine.high %v3703_v33, %v3703_v33  ;;  %v3719_v36 = vrot.slane %v3703_v33, %v14716_v52  ;;  %v3850_v17 = vcombine.high %v8154_v41, %v8154_v41 }
 0x4af   :  { %v3857_v45 = vrot.slane %v8154_v41, %v14716_v52  ;;  %v3143_v16 = vadd.f32 %v3127_v44, %v3111_v28  ;;  %v3146_v39 = vadd.f32 %v3130_v21, %v3114_v25  ;;  %v3147_v30 = vadd.f32 %v3131_v10, %v3115_v58  ;;  %v14938_v21 = vld [vmem:[#allocation88_spill] sm:$0xff] }
 0x4b0   :  { %v3712_v27 = vcombine.high %v3710_v35, %v3710_v35  ;;  %v3726_v43 = vrot.slane %v3710_v35, %v14716_v52  ;;  %v3733_v46 = vrot.slane %v3711_v15, %v14716_v52  ;;  %v3741_v57 = vcombine.high %v3719_v36, %v3719_v36 }
 0x4b1   :  { %v11367_v8 = vrot.slane %v3719_v36, %v14724_v60  ;;  %v3864_v12 = vrot.slane %v3850_v17, %v14716_v52  ;;  %v3865_v41 = vcombine.high %v3857_v45, %v3857_v45  ;;  %v3873_v29 = vrot.slane %v3857_v45, %v14716_v52 }
 0x4b2   :  { %v3740_v48 = vrot.slane %v3712_v27, %v14716_v52  ;;  %v3743_v34 = vcombine.high %v3733_v46, %v3733_v46  ;;  %v3742_v28 = vcombine.high %v3726_v43, %v3726_v43  ;;  %v14939_v25 = vunpack.c.l.bf16 %v14938_v21 }
 0x4b3   :  { %14937 = vst [vmem:[#allocation62_spill] sm:$0xff] %v11367_v8  ;;  %v14940_v36 = vunpack.c.h.bf16 %v14938_v21  ;;  %v3151_v18 = vadd.f32 %v3143_v16, %v3135_v7  ;;  %v11383_v1 = vrot.slane %v3733_v46, %v14724_v60  ;;  %v11386_v27 = vrot.slane %v3741_v57, %v14724_v60 }
 0x4b4   :  { %v11375_v53 = vmul.f32 %v14939_v25, %v11367_v8  ;;  %v3744_v58 = vcombine.high %v3740_v48, %v3740_v48  ;;  %v3154_v45 = vadd.f32 %v3146_v39, %v3138_v20  ;;  %v11389_v33 = vrot.slane %v3743_v34, %v14724_v60  ;;  %v14944_v34 = vld [vmem:[#allocation100_spill] sm:$0xff] }
 0x4b5   :  { %v11380_v44 = vmul.f32 %v14940_v36, %v11367_v8  ;;  %v11392_v50 = vrot.slane %v3726_v43, %v14724_v60  ;;  %v3866_v10 = vcombine.high %v3864_v12, %v3864_v12  ;;  %v3880_v2 = vrot.slane %v3864_v12, %v14716_v52 }
 0x4b6   :  { %v11396_v35 = vrot.slane %v3740_v48, %v14724_v60  ;;  %v3887_v7 = vrot.slane %v3865_v41, %v14716_v52  ;;  %v3895_v15 = vcombine.high %v3873_v29, %v3873_v29  ;;  %v11400_v17 = vrot.slane %v3873_v29, %v14724_v60 }
 0x4b7   :  { %v11403_v20 = vrot.slane %v3742_v28, %v14724_v60  ;;  %v11406_v16 = vrot.slane %v3866_v10, %v14716_v52  ;;  %v3896_v39 = vcombine.high %v3880_v2, %v3880_v2  ;;  %v3155_v43 = vadd.f32 %v3147_v30, %v3139_v22 }
 0x4b8   :  { %14941 = vst [vmem:[#allocation121_spill] sm:$0xff] %v11400_v17  ;;  %v11409_v46 = vrot.slane %v3744_v58, %v14724_v60  ;;  %v14942_v57 = vunpack.c.l.bf16 %v14845_v26  ;;  %v3897_v48 = vcombine.high %v3887_v7, %v3887_v7  ;;  %v14945_v41 = vunpack.c.l.bf16 %v14944_v34 }
 0x4b9   :  { %v11422_v28 = vrot.slane %v3887_v7, %v14724_v60  ;;  %v11425_v21 = vrot.slane %v3895_v15, %v14724_v60  ;;  %v11428_v22 = vrot.slane %v3880_v2, %v14724_v60  ;;  %v14950_v30 = vunpack.c.h.bf16 %v14944_v34 }
 0x4ba   :  { %v11414_v12 = vmul.f32 %v14942_v57, %v11367_v8  ;;  %v11419_v29 = vmul.f32 %v14945_v41, %v11400_v17  ;;  %v11439_v58 = vrot.slane %v11406_v16, %v14724_v60  ;;  %v11442_v10 = vrot.slane %v3896_v39, %v14724_v60  ;;  %v14955_v57 = vld [vmem:[#allocation27_spill] sm:$0xff] }
 0x4bb   :  { %14947 = vst [vmem:[#allocation122_spill] sm:$0xff] %v11422_v28  ;;  %14948 = vst [vmem:[#allocation124_spill] sm:$0xff] %v11425_v21  ;;  %v11433_v25 = vmul.f32 %v14950_v30, %v11400_v17  ;;  %v3158_v7 = vadd.f32 %v3154_v45, %v3150_v56  ;;  %v11445_v15 = vrot.slane %v3897_v48, %v14724_v60  ;;  %v14956_v34 = vunpack.c.l.bf16 %v14955_v57 }
 0x4bc   :  { %14943 = vst [vmem:[#allocation63_spill] sm:$0xff] %v11414_v12  ;;  %14946 = vst [vmem:[#allocation120_spill] sm:$0xff] %v11419_v29  ;;  %v3159_v2 = vadd.f32 %v3155_v43, %v3151_v18  ;;  %v14957_v30 = vunpack.c.h.bf16 %v14955_v57  ;;  %v14958_v12 = vld [vmem:[#allocation46_spill] sm:$0xff]  ;;  %v14960_v17 = vunpack.c.l.bf16 %v14959_v19  ;;  %v14961_v56 = vunpack.c.h.bf16 %v14959_v19  ;;  %v14962_v18 = vld [vmem:[#allocation28_spill] sm:$0xff] }
 0x4bd   :  { %14949 = vst [vmem:[#allocation64_spill] sm:$0xff] %v11428_v22  ;;  %14951 = vst [vmem:[#allocation125_spill] sm:$0xff] %v11433_v25  ;;  %v3325_v41 = vmul.f32 %v14956_v34, %v11021_v0  ;;  %v3162_v52 = vadd.f32 %v3158_v7, %v11188_v4  ;;  %v14963_v43 = vunpack.c.l.bf16 %v14962_v18  ;;  %v14964_v57 = vunpack.c.h.bf16 %v14962_v18  ;;  %v14966_v4 = vld [vmem:[#allocation114_spill] sm:$0xff]  ;;  %v14969_v19 = vld [vmem:[#allocation109_spill] sm:$0xff] }
 0x4be   :  { %14952 = vst [vmem:[#allocation65_spill] sm:$0xff] %v11439_v58  ;;  %14953 = vst [vmem:[#allocation66_spill] sm:$0xff] %v11442_v10  ;;  %v3326_v36 = vmul.f32 %v14957_v30, %v11021_v0  ;;  %v3329_v39 = vmul.f32 %v14960_v17, %v14958_v12  ;;  %v3330_v45 = vmul.f32 %v14961_v56, %v14958_v12  ;;  %v14965_v30 = vld [vmem:[#allocation11_spill] sm:$0xff]  ;;  %v14967_v7 = vunpack.c.l.bf16 %v14966_v4  ;;  %v14970_v12 = vld [vmem:[#allocation29_spill] sm:$0xff] }
 0x4bf   :  { %14954 = vst [vmem:[#allocation123_spill] sm:$0xff] %v11445_v15  ;;  %v3333_v48 = vmul.f32 %v14963_v43, %v11030_v63  ;;  %v3163_v34 = vadd.f32 %v3159_v2, %v11308_v55  ;;  %v3334_v0 = vmul.f32 %v14964_v57, %v11030_v63  ;;  %v14968_v17 = vunpack.c.h.bf16 %v14966_v4  ;;  %v14973_v2 = vld [vmem:[#allocation119_spill] sm:$0xff]  ;;  %v14977_v10 = vld [vmem:[#allocation32_spill] sm:$0xff] }
 0x4c0   :  { %v3337_v26 = vmul.f32 %v14967_v7, %v14965_v30  ;;  %v14971_v56 = vunpack.c.l.bf16 %v14970_v12  ;;  %v14972_v43 = vunpack.c.h.bf16 %v14970_v12  ;;  %v14974_v29 = vld [vmem:[#allocation31_spill] sm:$0xff]  ;;  %v14978_v4 = vunpack.c.l.bf16 %v14977_v10 }
 0x4c1   :  { %v3338_v8 = vmul.f32 %v14968_v17, %v14965_v30  ;;  %v14975_v18 = vunpack.c.l.bf16 %v14974_v29  ;;  %v14976_v57 = vunpack.c.h.bf16 %v14974_v29  ;;  %v14979_v17 = vunpack.c.h.bf16 %v14977_v10 }
 0x4c2   :  { %v3341_v25 = vmul.f32 %v14971_v56, %v14969_v19  ;;  %v3342_v55 = vmul.f32 %v14972_v43, %v14969_v19  ;;  %v3349_v30 = vmul.f32 %v14978_v4, %v11045_v51  ;;  %v3353_v58 = vadd.f32 %v3337_v26, %v11175_v13  ;;  %v14983_v26 = vld [vmem:[#allocation74_spill] sm:$0xff] }
 0x4c3   :  { %v3345_v63 = vmul.f32 %v14975_v18, %v14973_v2  ;;  %v3346_v7 = vmul.f32 %v14976_v57, %v14973_v2  ;;  %v3350_v56 = vmul.f32 %v14979_v17, %v11045_v51  ;;  %v3354_v19 = vadd.f32 %v3338_v8, %v11180_v42  ;;  %v14980_v2 = vld [vmem:[#allocation72_spill] sm:$0xff]  ;;  %v14992_v17 = vld [vmem:[#allocation49_spill] sm:$0xff] }
 0x4c4   :  { %v3357_v43 = vadd.f32 %v3341_v25, %v3325_v41  ;;  %v3358_v12 = vadd.f32 %v3342_v55, %v3326_v36  ;;  %v3365_v15 = vadd.f32 %v3349_v30, %v3333_v48  ;;  %v14981_v57 = vunpack.c.l.bf16 %v14980_v2 }
 0x4c5   :  { %v3361_v22 = vadd.f32 %v3345_v63, %v3329_v39  ;;  %v3362_v18 = vadd.f32 %v3346_v7, %v3330_v45  ;;  %v3366_v21 = vadd.f32 %v3350_v56, %v3334_v0  ;;  %v14982_v4 = vunpack.c.h.bf16 %v14980_v2  ;;  %v14986_v39 = vld [vmem:[#allocation75_spill] sm:$0xff] }
 0x4c6   :  { %v3481_v29 = vmul.f32 %v14981_v57, %v11186_v54  ;;  %v14984_v13 = vunpack.c.l.bf16 %v14983_v26  ;;  %v14985_v8 = vunpack.c.h.bf16 %v14983_v26  ;;  %v3373_v36 = vadd.f32 %v3365_v15, %v3357_v43 }
 0x4c7   :  { %v3482_v28 = vmul.f32 %v14982_v4, %v11186_v54  ;;  %v3369_v10 = vadd.f32 %v3361_v22, %v3353_v58  ;;  %v3370_v51 = vadd.f32 %v3362_v18, %v3354_v19  ;;  %v3374_v41 = vadd.f32 %v3366_v21, %v3358_v12  ;;  %v14989_v22 = vld [vmem:[#allocation77_spill] sm:$0xff]  ;;  %v14995_v18 = vld [vmem:[#allocation78_spill] sm:$0xff] }
 0x4c8   :  { %v3485_v42 = vmul.f32 %v14984_v13, %v11191_v32  ;;  %v3486_v25 = vmul.f32 %v14985_v8, %v11191_v32  ;;  %v14987_v45 = vunpack.c.l.bf16 %v14986_v39  ;;  %v14988_v0 = vunpack.c.h.bf16 %v14986_v39  ;;  %v14998_v13 = vld [vmem:[#allocation79_spill] sm:$0xff] }
 0x4c9   :  { %v14990_v58 = vunpack.c.l.bf16 %v14989_v22  ;;  %v14991_v7 = vunpack.c.h.bf16 %v14989_v22  ;;  %v14993_v15 = vunpack.c.l.bf16 %v14992_v17  ;;  %v14994_v12 = vunpack.c.h.bf16 %v14992_v17 }
 0x4ca   :  { %v3489_v48 = vmul.f32 %v14987_v45, %v11201_v61  ;;  %v3490_v55 = vmul.f32 %v14988_v0, %v11201_v61  ;;  %v3377_v19 = vadd.f32 %v3373_v36, %v3369_v10  ;;  %v3378_v43 = vadd.f32 %v3374_v41, %v3370_v51 }
 0x4cb   :  { %v3493_v63 = vmul.f32 %v14990_v58, %v11204_v3  ;;  %v3494_v30 = vmul.f32 %v14991_v7, %v11204_v3  ;;  %v3497_v21 = vmul.f32 %v14993_v15, %v11213_v47  ;;  %v3498_v56 = vmul.f32 %v14994_v12, %v11213_v47 }
 0x4cc   :  { %v14996_v2 = vunpack.c.l.bf16 %v14995_v18  ;;  %v14997_v4 = vunpack.c.h.bf16 %v14995_v18  ;;  %v14999_v8 = vunpack.c.l.bf16 %v14998_v13  ;;  %v15000_v45 = vunpack.c.h.bf16 %v14998_v13 }
 0x4cd   :  { %v3509_v22 = vadd.f32 %v3493_v63, %v11164_v38  ;;  %v3510_v10 = vadd.f32 %v3494_v30, %v11168_v5  ;;  %v3381_v51 = vadd.f32 %v3377_v19, %v11336_v37  ;;  %v3382_v36 = vadd.f32 %v3378_v43, %v11344_v23 }
 0x4ce   :  { %v3501_v57 = vmul.f32 %v14996_v2, %v11216_v62  ;;  %v3502_v26 = vmul.f32 %v14997_v4, %v11216_v62  ;;  %v3505_v39 = vmul.f32 %v14999_v8, %v11229_v49  ;;  %v3506_v0 = vmul.f32 %v15000_v45, %v11229_v49  ;;  %v15001_v4 = vld [vmem:[#allocation82_spill] sm:$0xff] }
 0x4cf   :  { %v3513_v41 = vadd.f32 %v3497_v21, %v3481_v29  ;;  %v3514_v58 = vadd.f32 %v3498_v56, %v3482_v28  ;;  %v3385_v18 = vadd.f32 %v3381_v51, %v3162_v52  ;;  %v3386_v2 = vadd.f32 %v3382_v36, %v3163_v34  ;;  %v15004_v28 = vld [vmem:[#allocation85_spill] sm:$0xff] }
 0x4d0   :  { %v3517_v7 = vadd.f32 %v3501_v57, %v3485_v42  ;;  %v3518_v17 = vadd.f32 %v3502_v26, %v3486_v25  ;;  %v3521_v15 = vadd.f32 %v3505_v39, %v3489_v48  ;;  %v3522_v12 = vadd.f32 %v3506_v0, %v3490_v55  ;;  %v15007_v48 = vld [vmem:[#allocation83_spill] sm:$0xff]  ;;  %v15010_v26 = vld [vmem:[#allocation84_spill] sm:$0xff] }
 0x4d1   :  { %v15002_v13 = vunpack.c.l.bf16 %v15001_v4  ;;  %v15003_v38 = vunpack.c.h.bf16 %v15001_v4  ;;  %v4008_v29 = vpack.c.bf16 %v3386_v2, %v3385_v18  ;;  %v15005_v42 = vunpack.c.l.bf16 %v15004_v28  ;;  %v15019_v2 = vld [vmem:[#allocation87_spill] sm:$0xff] }
 0x4d2   :  { %v3525_v63 = vadd.f32 %v3517_v7, %v3509_v22  ;;  %v3526_v37 = vadd.f32 %v3518_v17, %v3510_v10  ;;  %v3529_v30 = vadd.f32 %v3521_v15, %v3513_v41  ;;  %v3530_v23 = vadd.f32 %v3522_v12, %v3514_v58  ;;  %v15013_v10 = vld [vmem:[#allocation86_spill] sm:$0xff]  ;;  %v15016_v7 = vld [vmem:[#allocation56_spill] sm:$0xff] }
 0x4d3   :  { %v3635_v8 = vmul.f32 %v15002_v13, %v11232_v9  ;;  %v3636_v5 = vmul.f32 %v15003_v38, %v11232_v9  ;;  %v3639_v25 = vmul.f32 %v15005_v42, %v11235_v11  ;;  %v15006_v52 = vunpack.c.h.bf16 %v15004_v28  ;;  %4303 = vmatmul.mubr.bf16.gmra.mrb[40].mxu1 %v4008_v29 }
 0x4d4   :  { %v15008_v55 = vunpack.c.l.bf16 %v15007_v48  ;;  %v11554_v56 = vadd.f32 %v3529_v30, %v3525_v63  ;;  %v11556_v19 = vadd.f32 %v3530_v23, %v3526_v37  ;;  %v15009_v43 = vunpack.c.h.bf16 %v15007_v48  ;;  %4312 = vmatprep.mubr.bf16.mxu1 %v14906_v31  ;;  %v15022_v37 = vld [vmem:[#allocation54_spill] sm:$0xff]  ;;  %v15023_v23 = vld [vmem:[#allocation52_spill] sm:$0xff] }
 0x4d5   :  { %v3640_v34 = vmul.f32 %v15006_v52, %v11235_v11  ;;  %v15011_v39 = vunpack.c.l.bf16 %v15010_v26  ;;  %v15012_v0 = vunpack.c.h.bf16 %v15010_v26  ;;  %v15014_v51 = vunpack.c.l.bf16 %v15013_v10  ;;  %v15024_v26 = vld [vmem:[#allocation90_spill] sm:$0xff] }
 0x4d6   :  { %v3643_v21 = vmul.f32 %v15008_v55, %v11251_v24  ;;  %v3644_v57 = vmul.f32 %v15009_v43, %v11251_v24  ;;  %v15015_v41 = vunpack.c.h.bf16 %v15013_v10  ;;  %v15017_v17 = vunpack.c.l.bf16 %v15016_v7 }
 0x4d7   :  { %v3647_v45 = vmul.f32 %v15011_v39, %v11238_v14  ;;  %v3648_v22 = vmul.f32 %v15012_v0, %v11238_v14  ;;  %v3651_v36 = vmul.f32 %v15014_v51, %v11243_v40  ;;  %v15018_v12 = vunpack.c.h.bf16 %v15016_v7  ;;  %v15027_v7 = vld [vmem:[#allocation91_spill] sm:$0xff] }
 0x4d8   :  { %v3652_v58 = vmul.f32 %v15015_v41, %v11243_v40  ;;  %v3655_v15 = vmul.f32 %v15017_v17, %v11246_v59  ;;  %v15020_v4 = vunpack.c.l.bf16 %v15019_v2  ;;  %v15021_v38 = vunpack.c.h.bf16 %v15019_v2 }
 0x4d9   :  { %v3656_v18 = vmul.f32 %v15018_v12, %v11246_v59  ;;  %v3663_v30 = vadd.f32 %v3647_v45, %v15022_v37  ;;  %v3664_v29 = vadd.f32 %v3648_v22, %v15023_v23  ;;  %v3667_v28 = vadd.f32 %v3651_v36, %v3635_v8  ;;  %v15033_v12 = vld [vmem:[#allocation92_spill] sm:$0xff] }
 0x4da   :  { %v3659_v13 = vmul.f32 %v15020_v4, %v11306_v6  ;;  %v3660_v63 = vmul.f32 %v15021_v38, %v11306_v6  ;;  %v3668_v42 = vadd.f32 %v3652_v58, %v3636_v5  ;;  %v3671_v52 = vadd.f32 %v3655_v15, %v3639_v25  ;;  %v15036_v38 = vld [vmem:[#allocation93_spill] sm:$0xff] }
 0x4db   :  { %v3672_v48 = vadd.f32 %v3656_v18, %v3640_v34  ;;  %v15025_v39 = vunpack.c.l.bf16 %v15024_v26  ;;  %v15026_v51 = vunpack.c.h.bf16 %v15024_v26  ;;  %v15028_v45 = vunpack.c.l.bf16 %v15027_v7  ;;  %v15042_v26 = vld [vmem:[#allocation96_spill] sm:$0xff] }
 0x4dc   :  { %v3675_v55 = vadd.f32 %v3659_v13, %v3643_v21  ;;  %v3676_v43 = vadd.f32 %v3660_v63, %v3644_v57  ;;  %v3679_v10 = vadd.f32 %v3671_v52, %v3663_v30  ;;  %v15029_v8 = vunpack.c.h.bf16 %v15027_v7  ;;  %v15030_v57 = vld [vmem:[#allocation94_spill] sm:$0xff] }
 0x4dd   :  { %v3789_v0 = vmul.f32 %v15025_v39, %v11383_v1  ;;  %v3790_v41 = vmul.f32 %v15026_v51, %v11383_v1  ;;  %v3793_v17 = vmul.f32 %v15028_v45, %v11386_v27  ;;  %v3680_v25 = vadd.f32 %v3672_v48, %v3664_v29 }
 0x4de   :  { %v3794_v5 = vmul.f32 %v15029_v8, %v11386_v27  ;;  %v3683_v34 = vadd.f32 %v3675_v55, %v3667_v28  ;;  %v3684_v21 = vadd.f32 %v3676_v43, %v3668_v42  ;;  %v15031_v22 = vunpack.c.l.bf16 %v15030_v57  ;;  %v15039_v42 = vld [vmem:[#allocation95_spill] sm:$0xff] }
 0x4df   :  { %v15032_v58 = vunpack.c.h.bf16 %v15030_v57  ;;  %v15034_v18 = vunpack.c.l.bf16 %v15033_v12  ;;  %v15035_v4 = vunpack.c.h.bf16 %v15033_v12  ;;  %v15037_v63 = vunpack.c.l.bf16 %v15036_v38 }
 0x4e0   :  { %v3797_v36 = vmul.f32 %v15031_v22, %v11389_v33  ;;  %v11615_v30 = vadd.f32 %v3683_v34, %v3679_v10  ;;  %v11617_v23 = vadd.f32 %v3684_v21, %v3680_v25  ;;  %v15038_v29 = vunpack.c.h.bf16 %v15036_v38  ;;  %v15047_v38 = vld [vmem:[#allocation122_spill] sm:$0xff] }
 0x4e1   :  { %v3798_v15 = vmul.f32 %v15032_v58, %v11389_v33  ;;  %v3801_v2 = vmul.f32 %v15034_v18, %v11392_v50  ;;  %v3802_v13 = vmul.f32 %v15035_v4, %v11392_v50  ;;  %v3805_v37 = vmul.f32 %v15037_v63, %v11396_v35  ;;  %v15048_v63 = vld [vmem:[#allocation98_spill] sm:$0xff] }
 0x4e2   :  { %v3806_v28 = vmul.f32 %v15038_v29, %v11396_v35  ;;  %v15040_v52 = vunpack.c.l.bf16 %v15039_v42  ;;  %v15041_v55 = vunpack.c.h.bf16 %v15039_v42  ;;  %v15043_v39 = vunpack.c.l.bf16 %v15042_v26 }
 0x4e3   :  { %v15044_v10 = vunpack.c.h.bf16 %v15042_v26  ;;  %v3817_v45 = vadd.f32 %v3801_v2, %v11375_v53  ;;  %v15045_v8 = vcombine.high %v11406_v16, %v11406_v16  ;;  %v3818_v34 = vadd.f32 %v3802_v13, %v11380_v44  ;;  %v15051_v16 = vld [vmem:[#allocation124_spill] sm:$0xff] }
 0x4e4   :  { %v3809_v48 = vmul.f32 %v15040_v52, %v11403_v20  ;;  %v3810_v43 = vmul.f32 %v15041_v55, %v11403_v20  ;;  %v3813_v51 = vmul.f32 %v15043_v39, %v11409_v46  ;;  %v3821_v21 = vadd.f32 %v3805_v37, %v3789_v0  ;;  %v15052_v52 = vld [vmem:[#allocation99_spill] sm:$0xff] }
 0x4e5   :  { %v3814_v7 = vmul.f32 %v15044_v10, %v11409_v46  ;;  %v11639_v25 = vrot.slane %v15045_v8, %v14724_v60  ;;  %v3822_v22 = vadd.f32 %v3806_v28, %v3790_v41  ;;  %v15049_v29 = vunpack.c.l.bf16 %v15048_v63  ;;  %v15058_v28 = vld [vmem:[#allocation64_spill] sm:$0xff]  ;;  %v15076_v60 = vld [vmem:[#allocation62_spill] sm:$0xff] }
 0x4e6   :  { %v3825_v57 = vadd.f32 %v3809_v48, %v3793_v17  ;;  %v3826_v58 = vadd.f32 %v3810_v43, %v3794_v5  ;;  %v3829_v12 = vadd.f32 %v3813_v51, %v3797_v36  ;;  %v15050_v53 = vunpack.c.h.bf16 %v15048_v63  ;;  %v15055_v36 = vld [vmem:[#allocation123_spill] sm:$0xff]  ;;  %v15059_v48 = vld [vmem:[#allocation102_spill] sm:$0xff] }
 0x4e7   :  { %15046 = vst [vmem:[#allocation67_spill] sm:$0xff] %v11639_v25  ;;  %v3830_v18 = vadd.f32 %v3814_v7, %v3798_v15  ;;  %v3943_v42 = vmul.f32 %v15049_v29, %v15047_v38  ;;  %v15053_v55 = vunpack.c.l.bf16 %v15052_v52  ;;  %v15054_v41 = vunpack.c.h.bf16 %v15052_v52  ;;  %v15056_v15 = vld [vmem:[#allocation101_spill] sm:$0xff] }
 0x4e8   :  { %v3833_v4 = vadd.f32 %v3825_v57, %v3817_v45  ;;  %v3944_v2 = vmul.f32 %v15050_v53, %v15047_v38  ;;  %v3834_v44 = vadd.f32 %v3826_v58, %v3818_v34  ;;  %v3837_v0 = vadd.f32 %v3829_v12, %v3821_v21  ;;  %v15062_v7 = vld [vmem:[#allocation65_spill] sm:$0xff]  ;;  %v15063_v45 = vld [vmem:[#allocation12_spill] sm:$0xff]  ;;  %v15066_v12 = vld [vmem:[#allocation66_spill] sm:$0xff] }
 0x4e9   :  { %v3947_v26 = vmul.f32 %v15053_v55, %v15051_v16  ;;  %v3838_v17 = vadd.f32 %v3830_v18, %v3822_v22  ;;  %v3948_v5 = vmul.f32 %v15054_v41, %v15051_v16  ;;  %v15057_v13 = vunpack.c.l.bf16 %v15056_v15  ;;  %v15067_v18 = vld [vmem:[#allocation104_spill] sm:$0xff]  ;;  %v15070_v55 = vld [vmem:[#allocation13_spill] sm:$0xff] }
 0x4ea   :  { %v15060_v43 = vunpack.c.l.bf16 %v15059_v48  ;;  %v15061_v51 = vunpack.c.h.bf16 %v15059_v48  ;;  %v15064_v8 = vunpack.c.l.bf16 %v15063_v45  ;;  %v3841_v21 = vadd.f32 %v3837_v0, %v3833_v4  ;;  %v15073_v0 = vld [vmem:[#allocation120_spill] sm:$0xff] }
 0x4eb   :  { %v3951_v37 = vmul.f32 %v15057_v13, %v15055_v36  ;;  %v3842_v57 = vadd.f32 %v3838_v17, %v3834_v44  ;;  %v15065_v22 = vunpack.c.h.bf16 %v15063_v45  ;;  %v15068_v63 = vunpack.c.l.bf16 %v15067_v18 }
 0x4ec   :  { %v3955_v39 = vmul.f32 %v15060_v43, %v15058_v28  ;;  %v3956_v10 = vmul.f32 %v15061_v51, %v15058_v28  ;;  %v3959_v34 = vmul.f32 %v15064_v8, %v15062_v7  ;;  %v15069_v53 = vunpack.c.h.bf16 %v15067_v18  ;;  %v15075_v8 = vld [vmem:[#allocation125_spill] sm:$0xff] }
 0x4ed   :  { %v3960_v58 = vmul.f32 %v15065_v22, %v15062_v7  ;;  %v3963_v29 = vmul.f32 %v15068_v63, %v15066_v12  ;;  %v15071_v41 = vunpack.c.l.bf16 %v15070_v55  ;;  %v15072_v4 = vunpack.c.h.bf16 %v15070_v55 }
 0x4ee   :  { %v3964_v52 = vmul.f32 %v15069_v53, %v15066_v12  ;;  %v3971_v17 = vadd.f32 %v3955_v39, %v15073_v0  ;;  %v3845_v48 = vadd.f32 %v3841_v21, %v11554_v56  ;;  %v3846_v43 = vadd.f32 %v3842_v57, %v11556_v19  ;;  %v15077_v12 = vld [vmem:[#allocation89_spill] sm:$0xff] }
 0x4ef   :  { %v3967_v13 = vmul.f32 %v15071_v41, %v11639_v25  ;;  %v3968_v44 = vmul.f32 %v15072_v4, %v11639_v25  ;;  %v15074_v51 = vunpack.c.h.bf16 %v15056_v15  ;;  %v3972_v22 = vadd.f32 %v3956_v10, %v15075_v8  ;;  %v15079_v39 = vld [vmem:[#allocation121_spill] sm:$0xff]  ;;  %v15084_v10 = vld [vmem:[#allocation16_spill] sm:$0xff] }
 0x4f0   :  { %v3975_v18 = vadd.f32 %v3959_v34, %v3943_v42  ;;  %v3979_v63 = vadd.f32 %v3963_v29, %v3947_v26  ;;  %v3980_v53 = vadd.f32 %v3964_v52, %v3948_v5  ;;  %v15078_v55 = vunpack.c.h.bf16 %v15077_v12  ;;  %v15080_v0 = vld [vmem:[#allocation97_spill] sm:$0xff]  ;;  %v15082_v42 = vld [vmem:[#allocation103_spill] sm:$0xff] }
 0x4f1   :  { %v3952_v45 = vmul.f32 %v15074_v51, %v15055_v36  ;;  %v3983_v41 = vadd.f32 %v3967_v13, %v3951_v37  ;;  %v15081_v56 = vunpack.c.l.bf16 %v15080_v0  ;;  %v3976_v19 = vadd.f32 %v3960_v58, %v3944_v2  ;;  %v15087_v52 = vld [vmem:[#allocation105_spill] sm:$0xff] }
 0x4f2   :  { %v11691_v4 = vmul.f32 %v15078_v55, %v15076_v60  ;;  %v3987_v15 = vadd.f32 %v3979_v63, %v3971_v17  ;;  %v3988_v51 = vadd.f32 %v3980_v53, %v3972_v22  ;;  %v15083_v26 = vunpack.c.l.bf16 %v15082_v42 }
 0x4f3   :  { %v11696_v21 = vmul.f32 %v15081_v56, %v15079_v39  ;;  %v3984_v57 = vadd.f32 %v3968_v44, %v3952_v45  ;;  %v3991_v25 = vadd.f32 %v3983_v41, %v3975_v18  ;;  %v15085_v34 = vunpack.c.l.bf16 %v15084_v10  ;;  %v15090_v45 = vld [vmem:[#allocation107_spill] sm:$0xff] }
 0x4f4   :  { %v3483_v5 = vmul.f32 %v15083_v26, %v11186_v54  ;;  %v15086_v12 = vunpack.c.h.bf16 %v15084_v10  ;;  %v15088_v2 = vunpack.c.l.bf16 %v15087_v52  ;;  %v15089_v44 = vunpack.c.h.bf16 %v15087_v52  ;;  %v15098_v26 = vld [vmem:[#allocation17_spill] sm:$0xff] }
 0x4f5   :  { %v3992_v37 = vadd.f32 %v3984_v57, %v3976_v19  ;;  %v3487_v60 = vmul.f32 %v15085_v34, %v11191_v32  ;;  %v3995_v13 = vadd.f32 %v3991_v25, %v3987_v15  ;;  %v15091_v8 = vunpack.c.l.bf16 %v15090_v45  ;;  %v15096_v19 = vld [vmem:[#allocation14_spill] sm:$0xff] }
 0x4f6   :  { %v3488_v29 = vmul.f32 %v15086_v12, %v11191_v32  ;;  %v3495_v58 = vmul.f32 %v15088_v2, %v11204_v3  ;;  %v3496_v17 = vmul.f32 %v15089_v44, %v11204_v3  ;;  %v15092_v18 = vunpack.c.h.bf16 %v15090_v45  ;;  %v15093_v32 = vld [vmem:[#allocation19_spill] sm:$0xff]  ;;  %v15103_v44 = vld [vmem:[#allocation117_spill] sm:$0xff] }
 0x4f7   :  { %v3499_v22 = vmul.f32 %v15091_v8, %v11213_v47  ;;  %v3996_v53 = vadd.f32 %v3992_v37, %v3988_v51  ;;  %v15094_v41 = vunpack.c.l.bf16 %v15093_v32  ;;  %v15095_v25 = vunpack.c.h.bf16 %v15093_v32 }
 0x4f8   :  { %v3500_v63 = vmul.f32 %v15092_v18, %v11213_v47  ;;  %v15097_v3 = vunpack.c.l.bf16 %v15096_v19  ;;  %v3999_v15 = vadd.f32 %v3995_v13, %v11615_v30  ;;  %v15099_v10 = vunpack.c.l.bf16 %v15098_v26 }
 0x4f9   :  { %v3503_v55 = vmul.f32 %v15094_v41, %v11216_v62  ;;  %v3504_v56 = vmul.f32 %v15095_v25, %v11216_v62  ;;  %v15100_v47 = vunpack.c.h.bf16 %v15098_v26  ;;  %v15101_v37 = vunpack.c.h.bf16 %v15096_v19  ;;  %v15104_v25 = vld [vmem:[#allocation57_spill] sm:$0xff] }
 0x4fa   :  { %v3507_v57 = vmul.f32 %v15097_v3, %v11229_v49  ;;  %v3491_v34 = vmul.f32 %v15099_v10, %v11201_v61  ;;  %v4000_v62 = vadd.f32 %v3996_v53, %v11617_v23  ;;  %v15102_v52 = vunpack.c.h.bf16 %v15082_v42  ;;  %v15115_v10 = vld [vmem:[#allocation21_spill] sm:$0xff] }
 0x4fb   :  { %v3492_v51 = vmul.f32 %v15100_v47, %v11201_v61  ;;  %v3508_v12 = vmul.f32 %v15101_v37, %v11229_v49  ;;  %v3511_v30 = vadd.f32 %v3495_v58, %v15103_v44  ;;  %v3519_v13 = vadd.f32 %v3503_v55, %v3487_v60 }
 0x4fc   :  { %v3484_v2 = vmul.f32 %v15102_v52, %v11186_v54  ;;  %v4003_v45 = vadd.f32 %v3999_v15, %v3845_v48  ;;  %v3520_v8 = vadd.f32 %v3504_v56, %v3488_v29  ;;  %v3523_v18 = vadd.f32 %v3507_v57, %v3491_v34  ;;  %v15106_v54 = vld [vmem:[#allocation106_spill] sm:$0xff]  ;;  %v15112_v56 = vld [vmem:[#allocation108_spill] sm:$0xff] }
 0x4fd   :  { %v3524_v32 = vadd.f32 %v3508_v12, %v3492_v51  ;;  %v4004_v41 = vadd.f32 %v4000_v62, %v3846_v43  ;;  %v3512_v61 = vadd.f32 %v3496_v17, %v15104_v25  ;;  %v3515_v3 = vadd.f32 %v3499_v22, %v3483_v5  ;;  %v15109_v5 = vld [vmem:[#allocation20_spill] sm:$0xff]  ;;  %v15118_v12 = vld [vmem:[#allocation22_spill] sm:$0xff] }
 0x4fe   :  { %v3516_v26 = vadd.f32 %v3500_v63, %v3484_v2  ;;  %v15105_v49 = vunpack.c.h.bf16 %v15080_v0  ;;  %v3527_v53 = vadd.f32 %v3519_v13, %v3511_v30  ;;  %v15107_v42 = vunpack.c.l.bf16 %v15106_v54 }
 0x4ff   :  { %v15108_v48 = vunpack.c.h.bf16 %v15106_v54  ;;  %v4009_v29 = vpack.c.bf16 %v4004_v41, %v4003_v45  ;;  %v3528_v43 = vadd.f32 %v3520_v8, %v3512_v61  ;;  %v3531_v55 = vadd.f32 %v3523_v18, %v3515_v3  ;;  %v15127_v61 = vld [vmem:[#allocation61_spill] sm:$0xff] }
 0x500   :  { %v11747_v23 = vmul.f32 %v15105_v49, %v15079_v39  ;;  %v3637_v58 = vmul.f32 %v15107_v42, %v11232_v9  ;;  %v3532_v17 = vadd.f32 %v3524_v32, %v3516_v26  ;;  %v15110_v22 = vunpack.c.l.bf16 %v15109_v5  ;;  %v15128_v26 = vld [vmem:[#allocation60_spill] sm:$0xff] }
 0x501   :  { %v3638_v60 = vmul.f32 %v15108_v48, %v11232_v9  ;;  %v15111_v39 = vunpack.c.h.bf16 %v15109_v5  ;;  %v15113_v19 = vunpack.c.l.bf16 %v15112_v56  ;;  %v15114_v15 = vunpack.c.h.bf16 %v15112_v56  ;;  %4313 = vmatmul.mubr.bf16.gmra.mrb[28].mxu1 %v4009_v29 }
 0x502   :  { %v3641_v63 = vmul.f32 %v15110_v22, %v11235_v11  ;;  %v15116_v34 = vunpack.c.l.bf16 %v15115_v10  ;;  %v15117_v51 = vunpack.c.h.bf16 %v15115_v10  ;;  %v15120_v52 = vunpack.c.h.bf16 %v15118_v12  ;;  %4322 = vmatprep.mubr.bf16.mxu1 %v14906_v31  ;;  %v15129_v22 = vld [vmem:[#allocation110_spill] sm:$0xff]  ;;  %v15138_v10 = vld [vmem:[#allocation112_spill] sm:$0xff] }
 0x503   :  { %v3642_v0 = vmul.f32 %v15111_v39, %v11235_v11  ;;  %v3649_v57 = vmul.f32 %v15113_v19, %v11238_v14  ;;  %v3650_v9 = vmul.f32 %v15114_v15, %v11238_v14  ;;  %v15119_v11 = vunpack.c.l.bf16 %v15118_v12  ;;  %v15121_v14 = vld [vmem:[#allocation10_spill] sm:$0xff]  ;;  %v15135_v19 = vld [vmem:[#allocation25_spill] sm:$0xff]  ;;  %v15141_v12 = vld [vmem:[#allocation111_spill] sm:$0xff] }
 0x504   :  { %v3653_v47 = vmul.f32 %v15116_v34, %v11243_v40  ;;  %v3654_v37 = vmul.f32 %v15117_v51, %v11243_v40  ;;  %v3658_v2 = vmul.f32 %v15120_v52, %v11246_v59  ;;  %v15122_v44 = vunpack.c.l.bf16 %v15121_v14  ;;  %v15124_v40 = vld [vmem:[#allocation23_spill] sm:$0xff] }
 0x505   :  { %v3657_v62 = vmul.f32 %v15119_v11, %v11246_v59  ;;  %v15123_v13 = vunpack.c.h.bf16 %v15121_v14  ;;  %v15125_v8 = vunpack.c.l.bf16 %v15124_v40  ;;  %v15126_v32 = vunpack.c.h.bf16 %v15124_v40 }
 0x506   :  { %v3645_v30 = vmul.f32 %v15122_v44, %v11251_v24  ;;  %v3535_v25 = vadd.f32 %v3531_v55, %v3527_v53  ;;  %v3536_v59 = vadd.f32 %v3532_v17, %v3528_v43  ;;  %v11793_v3 = vadd.f32 %v3649_v57, %v15127_v61  ;;  %v15132_v17 = vld [vmem:[#allocation24_spill] sm:$0xff] }
 0x507   :  { %v3646_v45 = vmul.f32 %v15123_v13, %v11251_v24  ;;  %v3661_v18 = vmul.f32 %v15125_v8, %v11306_v6  ;;  %v3662_v41 = vmul.f32 %v15126_v32, %v11306_v6  ;;  %v11796_v49 = vadd.f32 %v3650_v9, %v15128_v26  ;;  %v15147_v13 = vld [vmem:[#allocation115_spill] sm:$0xff] }
 0x508   :  { %v3669_v54 = vadd.f32 %v3653_v47, %v3637_v58  ;;  %v3670_v42 = vadd.f32 %v3654_v37, %v3638_v60  ;;  %v3673_v29 = vadd.f32 %v3657_v62, %v3641_v63  ;;  %v3674_v5 = vadd.f32 %v3658_v2, %v3642_v0  ;;  %v15144_v2 = vld [vmem:[#allocation26_spill] sm:$0xff] }
 0x509   :  { %v3677_v48 = vadd.f32 %v3661_v18, %v3645_v30  ;;  %v3678_v24 = vadd.f32 %v3662_v41, %v3646_v45  ;;  %v15130_v39 = vunpack.c.l.bf16 %v15129_v22  ;;  %v15131_v6 = vunpack.c.h.bf16 %v15129_v22  ;;  %v15150_v18 = vld [vmem:[#allocation63_spill] sm:$0xff] }
 0x50a   :  { %v15133_v58 = vunpack.c.l.bf16 %v15132_v17  ;;  %v15134_v63 = vunpack.c.h.bf16 %v15132_v17  ;;  %v15136_v57 = vunpack.c.l.bf16 %v15135_v19  ;;  %v15137_v9 = vunpack.c.h.bf16 %v15135_v19  ;;  %v15157_v19 = vld [vmem:[#allocation28_spill] sm:$0xff] }
 0x50b   :  { %v3791_v56 = vmul.f32 %v15130_v39, %v11383_v1  ;;  %v3792_v53 = vmul.f32 %v15131_v6, %v11383_v1  ;;  %v11804_v43 = vadd.f32 %v3677_v48, %v3669_v54  ;;  %v11806_v55 = vadd.f32 %v3678_v24, %v3670_v42 }
 0x50c   :  { %v3795_v60 = vmul.f32 %v15133_v58, %v11386_v27  ;;  %v3796_v0 = vmul.f32 %v15134_v63, %v11386_v27  ;;  %v3803_v15 = vmul.f32 %v15136_v57, %v11392_v50  ;;  %v3804_v1 = vmul.f32 %v15137_v9, %v11392_v50  ;;  %v15154_v58 = vld [vmem:[#allocation113_spill] sm:$0xff] }
 0x50d   :  { %v15139_v34 = vunpack.c.l.bf16 %v15138_v10  ;;  %v15140_v51 = vunpack.c.h.bf16 %v15138_v10  ;;  %v15142_v11 = vunpack.c.l.bf16 %v15141_v12  ;;  %v15143_v62 = vunpack.c.h.bf16 %v15141_v12 }
 0x50e   :  { %v15145_v14 = vunpack.c.l.bf16 %v15144_v2  ;;  %v15146_v44 = vunpack.c.h.bf16 %v15144_v2  ;;  %v15148_v45 = vunpack.c.l.bf16 %v15147_v13  ;;  %v15149_v40 = vunpack.c.h.bf16 %v15147_v13  ;;  %v15166_v2 = vld [vmem:[#allocation66_spill] sm:$0xff]  ;;  %v15170_v13 = vld [vmem:[#allocation67_spill] sm:$0xff] }
 0x50f   :  { %v3807_v47 = vmul.f32 %v15139_v34, %v11396_v35  ;;  %v3808_v37 = vmul.f32 %v15140_v51, %v11396_v35  ;;  %v3799_v27 = vmul.f32 %v15142_v11, %v11389_v33  ;;  %v3800_v52 = vmul.f32 %v15143_v62, %v11389_v33 }
 0x510   :  { %v3811_v50 = vmul.f32 %v15145_v14, %v11403_v20  ;;  %v3812_v30 = vmul.f32 %v15146_v44, %v11403_v20  ;;  %v3815_v35 = vmul.f32 %v15148_v45, %v11409_v46  ;;  %v3816_v8 = vmul.f32 %v15149_v40, %v11409_v46  ;;  %v15151_v20 = vld [vmem:[#allocation27_spill] sm:$0xff]  ;;  %v15171_v45 = vld [vmem:[#allocation32_spill] sm:$0xff] }
 0x511   :  { %v3819_v32 = vadd.f32 %v3803_v15, %v15150_v18  ;;  %v3820_v33 = vadd.f32 %v3804_v1, %v11691_v4  ;;  %v3823_v41 = vadd.f32 %v3807_v47, %v3791_v56  ;;  %v3824_v61 = vadd.f32 %v3808_v37, %v3792_v53  ;;  %v15160_v1 = vld [vmem:[#allocation114_spill] sm:$0xff] }
 0x512   :  { %v3827_v26 = vadd.f32 %v3811_v50, %v3795_v60  ;;  %v3828_v54 = vadd.f32 %v3812_v30, %v3796_v0  ;;  %v3831_v42 = vadd.f32 %v3815_v35, %v3799_v27  ;;  %v3832_v48 = vadd.f32 %v3816_v8, %v3800_v52 }
 0x513   :  { %v15152_v24 = vunpack.c.l.bf16 %v15151_v20  ;;  %v15153_v39 = vunpack.c.h.bf16 %v15151_v20  ;;  %v15155_v63 = vunpack.c.l.bf16 %v15154_v58  ;;  %v15156_v56 = vunpack.c.h.bf16 %v15154_v58 }
 0x514   :  { %v3835_v17 = vadd.f32 %v3827_v26, %v3819_v32  ;;  %v3836_v46 = vadd.f32 %v3828_v54, %v3820_v33  ;;  %v3839_v60 = vadd.f32 %v3831_v42, %v3823_v41  ;;  %v3840_v0 = vadd.f32 %v3832_v48, %v3824_v61 }
 0x515   :  { %v3945_v22 = vmul.f32 %v15152_v24, %v15047_v38  ;;  %v3946_v6 = vmul.f32 %v15153_v39, %v15047_v38  ;;  %v3949_v4 = vmul.f32 %v15155_v63, %v15051_v16  ;;  %v3950_v53 = vmul.f32 %v15156_v56, %v15051_v16  ;;  %v15163_v16 = vld [vmem:[#allocation29_spill] sm:$0xff]  ;;  %v8415_v24 = vld [vmem:[%s13468_s3 + $0x160] sm:$0xff]  }
 0x516   :  { %v15158_v57 = vunpack.c.l.bf16 %v15157_v19  ;;  %v15159_v9 = vunpack.c.h.bf16 %v15157_v19  ;;  %v15161_v10 = vunpack.c.l.bf16 %v15160_v1  ;;  %v15162_v47 = vunpack.c.h.bf16 %v15160_v1  ;;  %v8416_v39 = vld [vmem:[%s13468_s3 + $0x120] sm:$0xff]   ;;  %v4041_v19 = vpop.permute.xlu0 %4040 }
 0x517   :  { %v15164_v37 = vunpack.c.l.bf16 %v15163_v16  ;;  %v15165_v11 = vunpack.c.h.bf16 %v15163_v16  ;;  %v3843_v62 = vadd.f32 %v3839_v60, %v3835_v17  ;;  %v3844_v52 = vadd.f32 %v3840_v0, %v3836_v46 }
 0x518   :  { %v3953_v15 = vmul.f32 %v15158_v57, %v15055_v36  ;;  %v3954_v38 = vmul.f32 %v15159_v9, %v15055_v36  ;;  %v3957_v34 = vmul.f32 %v15161_v10, %v15058_v28  ;;  %v3958_v51 = vmul.f32 %v15162_v47, %v15058_v28  ;;  %v15167_v36 = vld [vmem:[#allocation31_spill] sm:$0xff]  ;;  %v11923_v9 = vpop.permute.xlu1 %4045 }
 0x519   :  { %v3961_v12 = vmul.f32 %v15164_v37, %v15062_v7  ;;  %v3962_v27 = vmul.f32 %v15165_v11, %v15062_v7  ;;  %v15168_v14 = vunpack.c.l.bf16 %v15167_v36  ;;  %v15169_v44 = vunpack.c.h.bf16 %v15167_v36  ;;  %v8414_v28 = vld [vmem:[%s13468_s3 + $0x118] sm:$0xff]   ;;  %v15177_v37 = vld [vmem:[#allocation53_spill] sm:$0xff] }
 0x51a   :  { %v15172_v35 = vunpack.c.l.bf16 %v15171_v45  ;;  %v15173_v7 = vunpack.c.h.bf16 %v15171_v45  ;;  %v3973_v18 = vadd.f32 %v3957_v34, %v11696_v21  ;;  %v3974_v32 = vadd.f32 %v3958_v51, %v11747_v23  ;;  %8162 = vmatpush3.bf16.msra.mxu0 %v8414_v28  ;;  %v8417_v21 = vld [vmem:[%s13468_s3 + $0x168] sm:$0xff]   ;;  %v15174_v57 = vld [vmem:[#allocation35_spill] sm:$0xff] }
 0x51b   :  { %v3965_v50 = vmul.f32 %v15168_v14, %v15166_v2  ;;  %v3966_v30 = vmul.f32 %v15169_v44, %v15166_v2  ;;  %v3847_v33 = vadd.f32 %v3843_v62, %v3535_v25  ;;  %v3848_v41 = vadd.f32 %v3844_v52, %v3536_v59  ;;  %8163 = vmatprep.subr.bf16.mxu0 %v8415_v24  ;;  %v15176_v34 = vld [vmem:[#allocation51_spill] sm:$0xff] }
 0x51c   :  { %v3969_v40 = vmul.f32 %v15172_v35, %v15170_v13  ;;  %v3970_v8 = vmul.f32 %v15173_v7, %v15170_v13  ;;  %v3977_v61 = vadd.f32 %v3961_v12, %v3945_v22  ;;  %v3978_v26 = vadd.f32 %v3962_v27, %v3946_v6  ;;  %v4051_v13 = vpop.permute.xlu0 %4050  ;;  %v15178_v45 = vld [vmem:[#allocation55_spill] sm:$0xff]  ;;  %v15179_v7 = vld [vmem:[#allocation116_spill] sm:$0xff] }
 0x51d   :  { %v3981_v54 = vadd.f32 %v3965_v50, %v3949_v4  ;;  %v3982_v42 = vadd.f32 %v3966_v30, %v3950_v53  ;;  %v3681_v23 = vadd.f32 %v3673_v29, %v11793_v3  ;;  %v3682_v25 = vadd.f32 %v3674_v5, %v11796_v49  ;;  %v8418_v49 = vld [vmem:[%s13468_s3 + $0x128] sm:$0xff]   ;;  %v8419_v29 = vld [vmem:[%s13468_s3 + $0x170] sm:$0xff]  }
 0x51e   :  { %v3985_v48 = vadd.f32 %v3969_v40, %v3953_v15  ;;  %v3986_v20 = vadd.f32 %v3970_v8, %v3954_v38  ;;  %8164 = vmatpush3.bf16.msra.mxu0 %v8416_v39  ;;  %v8420_v5 = vld [vmem:[%s13468_s3 + $0x130] sm:$0xff]   ;;  %v4109_v15 = vadd.f32 %v15174_v57, %v4041_v19  ;;  %v4113_v47 = vadd.f32 %v15176_v34, %v11923_v9  ;;  %v4056_v40 = vpop.permute.xlu1 %4055 }
 0x51f   :  { %v3989_v59 = vadd.f32 %v3981_v54, %v3973_v18  ;;  %v3990_v22 = vadd.f32 %v3982_v42, %v3974_v32  ;;  %v3689_v46 = vadd.f32 %v11804_v43, %v3681_v23  ;;  %v3690_v58 = vadd.f32 %v11806_v55, %v3682_v25  ;;  %8165 = vmatprep.subr.bf16.mxu0 %v8417_v21  ;;  %v8421_v43 = vld [vmem:[%s13468_s3 + $0x178] sm:$0xff]  }
 0x520   :  { %v3993_v6 = vadd.f32 %v3985_v48, %v3977_v61  ;;  %v3994_v17 = vadd.f32 %v3986_v20, %v3978_v26  ;;  %v8422_v55 = vld [vmem:[%s13468_s3 + $0x138] sm:$0xff]   ;;  %v4115_v12 = vadd.f32 %v15177_v37, %v11923_v9  ;;  %v4119_v35 = vadd.f32 %v15178_v45, %v4051_v13  ;;  %v11945_v45 = vld [vmem:[#allocation3 + $0x400] sm:$0xff]  }
 0x521   :  { %v15175_v38 = vld [vmem:[#allocation50_spill] sm:$0xff]  ;;  %v4121_v8 = vadd.f32 %v15179_v7, %v4051_v13  ;;  %v15181_v26 = vld [vmem:[#allocation59_spill] sm:$0xff]  ;;  %15182 = vst [vmem:[#allocation127_spill] sm:$0xff] %v11945_v45  ;;  %v11951_v7 = vld [vmem:[#allocation3 + $0x420] sm:$0xff]  }
 0x522   :  { %v3997_v63 = vadd.f32 %v3993_v6, %v3989_v59  ;;  %v3998_v4 = vadd.f32 %v3994_v17, %v3990_v22  ;;  %8166 = vmatpush3.bf16.msra.mxu0 %v8418_v49  ;;  %v4111_v1 = vadd.f32 %v15175_v38, %v4041_v19  ;;  %v15180_v32 = vld [vmem:[#allocation58_spill] sm:$0xff]  ;;  %v4125_v54 = vadd.f32 %v15181_v26, %v4056_v40  ;;  %v12138_v26 = vld [vmem:[#allocation3 + $0x518] sm:$0xff]  }
 0x523   :  { %8167 = vmatprep.subr.bf16.mxu0 %v8419_v29  ;;  %15185 = vst [vmem:[#allocation69_spill] sm:$0xff] %v11951_v7  ;;  %15232 = vst [vmem:[#allocation52_spill] sm:$0xff] %v12138_v26  ;;  %v12169_v26 = vld [vmem:[#allocation3 + $0x578] sm:$0xff]  }
 0x524   :  { %v4001_v56 = vadd.f32 %v3997_v63, %v3689_v46  ;;  %v4002_v53 = vadd.f32 %v3998_v4, %v3690_v58  ;;  %15240 = vst [vmem:[#allocation96_spill] sm:$0xff] %v12169_v26 }
 0x526   :  { %v4005_v60 = vadd.f32 %v4001_v56, %v3847_v33  ;;  %v4006_v0 = vadd.f32 %v4002_v53, %v3848_v41  ;;  %8168 = vmatpush3.bf16.msra.mxu0 %v8420_v5  ;;  %v4123_v33 = vadd.f32 %v15180_v32, %v4056_v40  ;;  %v11956_v32 = vld [vmem:[#allocation3 + $0x440] sm:$0xff]  }
 0x527   :  { %8169 = vmatprep.subr.bf16.mxu0 %v8421_v43  ;;  %15187 = vst [vmem:[#allocation71_spill] sm:$0xff] %v11956_v32 }
 0x528   :  { %v4010_v3 = vpack.c.bf16 %v4006_v0, %v4005_v60 }
 0x52a   :  { %4323 = vmatmul.mubr.bf16.gmra.mrb[32].mxu1 %v4010_v3  ;;  %8170 = vmatpush3.bf16.msra.mxu0 %v8422_v55 }
 0x52b   :  { %6203 = vmatprep.mubr.bf16.mxu1 %v14906_v31 }
 0x568   :  { %v4294_v10 = vpop.f32.mrb[36].mxu1 }
 0x569   :  { %v4295_v51 = vadd.f32 %v4294_v10, %v4109_v15  ;;  %v4296_v16 = vpop.f32.mrb[37].mxu1 }
 0x56a   :  { %v4297_v11 = vadd.f32 %v4296_v16, %v4111_v1  ;;  %v4298_v27 = vpop.f32.mrb[38].mxu1 }
 0x56b   :  { %8489 = vtanh.f32 %v4295_v51  ;;  %v4299_v62 = vadd.f32 %v4298_v27, %v4113_v47  ;;  %v4300_v52 = vpop.f32.mrb[39].mxu1  ;;  %v8424_v27 = vld [vmem:[#allocation7 + $0x28] sm:$0xff]  }
 0x56c   :  { %8491 = vtanh.f32 %v4297_v11  ;;  %v4301_v2 = vadd.f32 %v4300_v52, %v4115_v12  ;;  %v8423_v11 = vld [vmem:[#allocation7 + $0x20] sm:$0xff]  }
 0x56d   :  { %8493 = vtanh.f32 %v4299_v62  ;;  %v8425_v62 = vld [vmem:[#allocation5 + $0x100] ss:$8 sps:$4 sm:$0xff]   ;;  %v8427_v52 = vld [vmem:[#allocation5 + $0x104] ss:$8 sps:$4 sm:$0xff]  }
 0x56e   :  { %8495 = vtanh.f32 %v4301_v2  ;;  %v8428_v2 = vld [vmem:[#allocation5 + $0x110] ss:$8 sps:$4 sm:$0xff]  }
 0x575   :  { %v8490_v36 = vpop.eup %8489 }
 0x576   :  { %v8492_v14 = vpop.eup %8491 }
 0x577   :  { %v8494_v50 = vpop.eup %8493 }
 0x578   :  { %v8496_v44 = vpop.eup %8495  ;;  %v4349_v30 = vpack.c.bf16 %v8494_v50, %v8490_v36  ;;  %v8430_v36 = vld [vmem:[#allocation5 + $0x114] ss:$8 sps:$4 sm:$0xff]   ;;  %v8431_v50 = vld [vmem:[#allocation5 + $0x120] ss:$8 sps:$4 sm:$0xff]  }
 0x579   :  { %v4350_v28 = vpack.c.bf16 %v8496_v44, %v8492_v14  ;;  %v8433_v14 = vld [vmem:[#allocation5 + $0x124] ss:$8 sps:$4 sm:$0xff]   ;;  %v8434_v44 = vld [vmem:[#allocation5 + $0x130] ss:$8 sps:$4 sm:$0xff]  }
 0x57b   :  { %4518 = vmatprep.mubr.bf16.mxu0 %v4350_v28  ;;  %6118 = vmatprep.subr.bf16.mxu0 %v4350_v28  ;;  %v8437_v28 = vld [vmem:[#allocation5 + $0x140] ss:$8 sps:$4 sm:$0xff]  }
 0x57c   :  { %4519 = vmatmul.mubr.bf16.vlgmr.msra.gmra.mrb[44].mxu0 %v4349_v30 }
 0x57d   :  { %6119 = vmatpush1.bf16.msra.mxu0 %v4349_v30  ;;  %v8436_v30 = vld [vmem:[#allocation5 + $0x134] ss:$8 sps:$4 sm:$0xff]  }
 0x5a6   :  { %v4304_v18 = vpop.f32.mrb[40].mxu1 }
 0x5a7   :  { %v4305_v41 = vadd.f32 %v4304_v18, %v4119_v35  ;;  %v4306_v61 = vpop.f32.mrb[41].mxu1  ;;  %v11947_v35 = vld [vmem:[#allocation3 + $0x408] sm:$0xff]  }
 0x5a8   :  { %v4307_v42 = vadd.f32 %v4306_v61, %v4121_v8  ;;  %v4308_v48 = vpop.f32.mrb[42].mxu1  ;;  %15183 = vst [vmem:[#allocation68_spill] sm:$0xff] %v11947_v35  ;;  %v11953_v8 = vld [vmem:[#allocation3 + $0x430] sm:$0xff]   ;;  %v12191_v61 = vld [vmem:[#allocation3 + $0x5d8] sm:$0xff]  }
 0x5a9   :  { %8497 = vtanh.f32 %v4305_v41  ;;  %v4309_v20 = vadd.f32 %v4308_v48, %v4123_v33  ;;  %v4310_v24 = vpop.f32.mrb[43].mxu1  ;;  %15186 = vst [vmem:[#allocation70_spill] sm:$0xff] %v11953_v8  ;;  %v11958_v33 = vld [vmem:[#allocation3 + $0x450] sm:$0xff]   ;;  %15244 = vst [vmem:[#allocation99_spill] sm:$0xff] %v12191_v61  ;;  %v15250_v61 = vunpack.c.l.bf16 %v11947_v35 }
 0x5aa   :  { %8499 = vtanh.f32 %v4307_v42  ;;  %v4311_v39 = vadd.f32 %v4310_v24, %v4125_v54  ;;  %15188 = vst [vmem:[#allocation30_spill] sm:$0xff] %v11958_v33  ;;  %v11964_v42 = vld [vmem:[#allocation3 + $0x460] sm:$0xff]   ;;  %v11966_v48 = vld [vmem:[#allocation3 + $0x470] sm:$0xff]   ;;  %v12174_v54 = vld [vmem:[#allocation3 + $0x5a8] sm:$0xff]  }
 0x5ab   :  { %8501 = vtanh.f32 %v4309_v20  ;;  %15189 = vst [vmem:[#allocation33_spill] sm:$0xff] %v11964_v42  ;;  %15190 = vst [vmem:[#allocation73_spill] sm:$0xff] %v11966_v48  ;;  %v12132_v20 = vld [vmem:[#allocation3 + $0x4f8] sm:$0xff]  }
 0x5ac   :  { %8503 = vtanh.f32 %v4311_v39  ;;  %15231 = vst [vmem:[#allocation54_spill] sm:$0xff] %v12132_v20  ;;  %v12140_v39 = vld [vmem:[#allocation3 + $0x528] sm:$0xff]   ;;  %15241 = vst [vmem:[#allocation122_spill] sm:$0xff] %v12174_v54  ;;  %v15247_v54 = vld [vmem:[#allocation15_spill] sm:$0xff] }
 0x5ad   :  { %15233 = vst [vmem:[#allocation90_spill] sm:$0xff] %v12140_v39  ;;  %v12176_v39 = vld [vmem:[#allocation3 + $0x5b8] sm:$0xff]  }
 0x5ae   :  { %15242 = vst [vmem:[#allocation98_spill] sm:$0xff] %v12176_v39 }
 0x5b3   :  { %v8498_v21 = vpop.eup %8497 }
 0x5b4   :  { %v8500_v23 = vpop.eup %8499 }
 0x5b5   :  { %v8502_v25 = vpop.eup %8501 }
 0x5b6   :  { %v8504_v59 = vpop.eup %8503  ;;  %v4351_v22 = vpack.c.bf16 %v8502_v25, %v8498_v21  ;;  %v11974_v25 = vld [vmem:[#allocation3 + $0x488] sm:$0xff]  }
 0x5b7   :  { %v4352_v6 = vpack.c.bf16 %v8504_v59, %v8500_v23  ;;  %v11972_v23 = vld [vmem:[#allocation3 + $0x480] sm:$0xff]   ;;  %15192 = vst [vmem:[#allocation80_spill] sm:$0xff] %v11974_v25  ;;  %v12146_v21 = vld [vmem:[#allocation3 + $0x548] sm:$0xff]  }
 0x5b8   :  { %15191 = vst [vmem:[#allocation48_spill] sm:$0xff] %v11972_v23  ;;  %15234 = vst [vmem:[#allocation91_spill] sm:$0xff] %v12146_v21 }
 0x5b9   :  { %4526 = vmatprep.mubr.bf16.mxu0 %v4352_v6  ;;  %6120 = vmatprep.subr.bf16.mxu0 %v4352_v6  ;;  %v12126_v6 = vld [vmem:[#allocation3 + $0x4e8] sm:$0xff]  }
 0x5ba   :  { %4527 = vmatmul.mubr.bf16.gmra.mrb[48].mxu0 %v4351_v22  ;;  %15230 = vst [vmem:[#allocation87_spill] sm:$0xff] %v12126_v6 }
 0x5bb   :  { %6121 = vmatpush1.bf16.msra.mxu0 %v4351_v22  ;;  %v12124_v22 = vld [vmem:[#allocation3 + $0x4d8] sm:$0xff]  }
 0x5bc   :  { %15229 = vst [vmem:[#allocation56_spill] sm:$0xff] %v12124_v22 }
 0x5d4   :  { %v4314_v17 = vpop.f32.mrb[28].mxu1 }
 0x5d5   :  { %v8243_v46 = vadd.f32 %v4314_v17, %v4041_v19  ;;  %v4316_v58 = vpop.f32.mrb[29].mxu1  ;;  %v12118_v17 = vld [vmem:[#allocation3 + $0x4c8] sm:$0xff]  }
 0x5d6   :  { %v8244_v63 = vadd.f32 %v4316_v58, %v4041_v19  ;;  %v4318_v4 = vpop.f32.mrb[30].mxu1  ;;  %v11982_v58 = vld [vmem:[#allocation3 + $0x4a0] sm:$0xff]   ;;  %15228 = vst [vmem:[#allocation86_spill] sm:$0xff] %v12118_v17 }
 0x5d7   :  { %8505 = vtanh.f32 %v8243_v46  ;;  %v8245_v56 = vadd.f32 %v4318_v4, %v11923_v9  ;;  %v4320_v53 = vpop.f32.mrb[31].mxu1  ;;  %v11980_v46 = vld [vmem:[#allocation3 + $0x490] sm:$0xff]   ;;  %15194 = vst [vmem:[#allocation40_spill] sm:$0xff] %v11982_v58 }
 0x5d8   :  { %8507 = vtanh.f32 %v8244_v63  ;;  %v8246_v60 = vadd.f32 %v4320_v53, %v11923_v9  ;;  %15193 = vst [vmem:[#allocation76_spill] sm:$0xff] %v11980_v46  ;;  %v12094_v53 = vld [vmem:[#allocation3 + $0x458] sm:$0xff]  }
 0x5d9   :  { %8509 = vtanh.f32 %v8245_v56  ;;  %15222 = vst [vmem:[#allocation78_spill] sm:$0xff] %v12094_v53  ;;  %v12108_v63 = vld [vmem:[#allocation3 + $0x478] sm:$0xff]  }
 0x5da   :  { %8511 = vtanh.f32 %v8246_v60  ;;  %v11988_v60 = vld [vmem:[#allocation3 + $0x4b0] sm:$0xff]   ;;  %15225 = vst [vmem:[#allocation85_spill] sm:$0xff] %v12108_v63  ;;  %v12116_v56 = vld [vmem:[#allocation3 + $0x4b8] sm:$0xff]  }
 0x5db   :  { %15195 = vst [vmem:[#allocation34_spill] sm:$0xff] %v11988_v60  ;;  %15227 = vst [vmem:[#allocation84_spill] sm:$0xff] %v12116_v56 }
 0x5e1   :  { %v8506_v0 = vpop.eup %8505 }
 0x5e2   :  { %v8508_v3 = vpop.eup %8507 }
 0x5e3   :  { %v8510_v49 = vpop.eup %8509 }
 0x5e4   :  { %v8512_v29 = vpop.eup %8511  ;;  %v4353_v5 = vpack.c.bf16 %v8510_v49, %v8506_v0  ;;  %v11990_v0 = vld [vmem:[#allocation3 + $0x4c0] sm:$0xff]   ;;  %v12086_v49 = vld [vmem:[#allocation3 + $0x448] sm:$0xff]  }
 0x5e5   :  { %v4354_v43 = vpack.c.bf16 %v8512_v29, %v8508_v3  ;;  %15196 = vst [vmem:[#allocation118_spill] sm:$0xff] %v11990_v0  ;;  %v8445_v29 = vld [vmem:[#allocation5 + $0x164] ss:$8 sps:$4 sm:$0xff]   ;;  %v12078_v3 = vld [vmem:[#allocation3 + $0x418] sm:$0xff]   ;;  %15220 = vst [vmem:[#allocation77_spill] sm:$0xff] %v12086_v49 }
 0x5e6   :  { %15218 = vst [vmem:[#allocation74_spill] sm:$0xff] %v12078_v3 }
 0x5e7   :  { %4534 = vmatprep.mubr.bf16.mxu0 %v4354_v43  ;;  %6171 = vmatprep.subr.bf16.mxu1 %v4354_v43  ;;  %v11996_v43 = vld [vmem:[#allocation3 + $0x4d0] sm:$0xff]  }
 0x5e8   :  { %4535 = vmatmul.mubr.bf16.gmra.mrb[52].mxu0 %v4353_v5  ;;  %6172 = vmatpush1.bf16.msra.mxu1 %v4353_v5  ;;  %15197 = vst [vmem:[#allocation39_spill] sm:$0xff] %v11996_v43  ;;  %v12036_v5 = vld [vmem:[#allocation3 + $0x560] sm:$0xff]  }
 0x5e9   :  { %15207 = vst [vmem:[#allocation126_spill] sm:$0xff] %v12036_v5 }
 0x5fd   :  { %v4324_v55 = vpop.f32.mrb[32].mxu1 }
 0x5fe   :  { %v8247_v19 = vadd.f32 %v4324_v55, %v4051_v13  ;;  %v4326_v57 = vpop.f32.mrb[33].mxu1  ;;  %v11998_v55 = vld [vmem:[#allocation3 + $0x4e0] sm:$0xff]  }
 0x5ff   :  { %v8248_v15 = vadd.f32 %v4326_v57, %v4051_v13  ;;  %v4328_v38 = vpop.f32.mrb[34].mxu1  ;;  %v8439_v13 = vld [vmem:[#allocation5 + $0x144] ss:$8 sps:$4 sm:$0xff]   ;;  %15198 = vst [vmem:[#allocation36_spill] sm:$0xff] %v11998_v55  ;;  %v12038_v57 = vld [vmem:[#allocation3 + $0x570] sm:$0xff]  }
 0x600   :  { %8513 = vtanh.f32 %v8247_v19  ;;  %v8249_v1 = vadd.f32 %v4328_v38, %v4056_v40  ;;  %v4330_v9 = vpop.f32.mrb[35].mxu1  ;;  %15208 = vst [vmem:[#allocation43_spill] sm:$0xff] %v12038_v57  ;;  %v12044_v19 = vld [vmem:[#allocation3 + $0x580] sm:$0xff]   ;;  %v12060_v38 = vld [vmem:[#allocation3 + $0x5b0] sm:$0xff]  }
 0x601   :  { %8515 = vtanh.f32 %v8248_v15  ;;  %v8250_v10 = vadd.f32 %v4330_v9, %v4056_v40  ;;  %v11949_v40 = vld [vmem:[#allocation3 + $0x410] sm:$0xff]   ;;  %v12006_v9 = vld [vmem:[#allocation3 + $0x500] sm:$0xff]   ;;  %15209 = vst [vmem:[#allocation44_spill] sm:$0xff] %v12044_v19  ;;  %15213 = vst [vmem:[#allocation46_spill] sm:$0xff] %v12060_v38 }
 0x602   :  { %8517 = vtanh.f32 %v8249_v1  ;;  %15184 = vst [vmem:[#allocation128_spill] sm:$0xff] %v11949_v40  ;;  %v12004_v1 = vld [vmem:[#allocation3 + $0x4f0] sm:$0xff]   ;;  %15200 = vst [vmem:[#allocation41_spill] sm:$0xff] %v12006_v9  ;;  %v12062_v15 = vld [vmem:[#allocation3 + $0x5c0] sm:$0xff]  }
 0x603   :  { %8519 = vtanh.f32 %v8250_v10  ;;  %15199 = vst [vmem:[#allocation37_spill] sm:$0xff] %v12004_v1  ;;  %v12046_v10 = vld [vmem:[#allocation3 + $0x588] sm:$0xff]   ;;  %15214 = vst [vmem:[#allocation11_spill] sm:$0xff] %v12062_v15 }
 0x604   :  { %15210 = vst [vmem:[#allocation47_spill] sm:$0xff] %v12046_v10  ;;  %v12151_v10 = vld [vmem:[#allocation3 + $0x538] sm:$0xff]  }
 0x605   :  { %15235 = vst [vmem:[#allocation94_spill] sm:$0xff] %v12151_v10 }
 0x60a   :  { %v8514_v34 = vpop.eup %8513 }
 0x60b   :  { %v8516_v47 = vpop.eup %8515 }
 0x60c   :  { %v8518_v51 = vpop.eup %8517 }
 0x60d   :  { %v8520_v16 = vpop.eup %8519  ;;  %v4355_v37 = vpack.c.bf16 %v8518_v51, %v8514_v34  ;;  %v8448_v51 = vld [vmem:[#allocation5 + $0x174] ss:$8 sps:$4 sm:$0xff]  }
 0x60e   :  { %v4356_v12 = vpack.c.bf16 %v8520_v16, %v8516_v47  ;;  %v12012_v16 = vld [vmem:[#allocation3 + $0x508] sm:$0xff]   ;;  %v8440_v47 = vld [vmem:[#allocation5 + $0x150] ss:$8 sps:$4 sm:$0xff]  }
 0x60f   :  { %15201 = vst [vmem:[#allocation81_spill] sm:$0xff] %v12012_v16  ;;  %v12092_v34 = vld [vmem:[#allocation3 + $0x438] sm:$0xff]  }
 0x610   :  { %4542 = vmatprep.mubr.bf16.mxu0 %v4356_v12  ;;  %6173 = vmatprep.subr.bf16.mxu1 %v4356_v12  ;;  %v12072_v12 = vld [vmem:[#allocation3 + $0x5f0] sm:$0xff]   ;;  %15221 = vst [vmem:[#allocation49_spill] sm:$0xff] %v12092_v34  ;;  %v12153_v16 = vld [vmem:[#allocation3 + $0x558] sm:$0xff]  }
 0x611   :  { %4543 = vmatmul.mubr.bf16.gmra.mrb[56].mxu0 %v4355_v37  ;;  %6174 = vmatpush1.bf16.msra.mxu1 %v4355_v37  ;;  %v12014_v37 = vld [vmem:[#allocation3 + $0x510] sm:$0xff]   ;;  %15217 = vst [vmem:[#allocation72_spill] sm:$0xff] %v12072_v12  ;;  %15236 = vst [vmem:[#allocation92_spill] sm:$0xff] %v12153_v16 }
 0x612   :  { %6150 = vmatprep.mubr.bf16.mxu0 %v14906_v31  ;;  %6304 = vmatprep.subr.bf16.mxu1 %v8427_v52  ;;  %15202 = vst [vmem:[#allocation129_spill] sm:$0xff] %v12014_v37  ;;  %v12020_v52 = vld [vmem:[#allocation3 + $0x520] sm:$0xff]   ;;  %v15237_v12 = vld [vmem:[#allocation18_spill] sm:$0xff]  ;;  %v15263_v37 = vunpack.c.h.bf16 %v11958_v33 }
 0x613   :  { %15203 = vst [vmem:[#allocation38_spill] sm:$0xff] %v12020_v52 }
 0x614   :  { %7090 = vmatmul.mubr.msk.bf16.vlgmr.msra.gmra.mrb[44].mxu1 %vm2023_vm3, %v8423_v11 }
 0x615   :  { %6213 = vmatprep.mubr.bf16.mxu1 %v14906_v31  ;;  %6305 = vmatpush1.bf16.msra.mxu1 %v8425_v62  ;;  %v8443_v62 = vld [vmem:[#allocation5 + $0x160] ss:$8 sps:$4 sm:$0xff]  }
 0x616   :  { %6306 = vmatprep.subr.bf16.mxu1 %v8430_v36  ;;  %v8442_v36 = vld [vmem:[#allocation5 + $0x154] ss:$8 sps:$4 sm:$0xff]  }
 0x619   :  { %7088 = vmatmul.mubr.msk.bf16.vlgmr.msra.gmra.mrb[60].mxu0 %vm2023_vm3, %v8423_v11  ;;  %6307 = vmatpush1.bf16.msra.mxu1 %v8428_v2  ;;  %v12022_v2 = vld [vmem:[#allocation3 + $0x530] sm:$0xff]  }
 0x61a   :  { %6160 = vmatprep.mubr.bf16.mxu0 %v14906_v31  ;;  %6308 = vmatprep.subr.bf16.mxu1 %v8433_v14  ;;  %15204 = vst [vmem:[#allocation42_spill] sm:$0xff] %v12022_v2  ;;  %v12068_v14 = vld [vmem:[#allocation3 + $0x5d0] sm:$0xff]  }
 0x61b   :  { %15215 = vst [vmem:[#allocation109_spill] sm:$0xff] %v12068_v14  ;;  %v8446_v11 = vld [vmem:[#allocation5 + $0x170] ss:$8 sps:$4 sm:$0xff]  }
 0x61c   :  { %7091 = vmatmul.mubr.msk.bf16.gmra.mrb[48].mxu1 %vm2023_vm3, %v8424_v27  ;;  %v12163_v14 = vld [vmem:[#allocation3 + $0x598] sm:$0xff]  }
 0x61d   :  { %6336 = vmatprep.mubr.bf16.mxu1 %v14906_v31  ;;  %6309 = vmatpush1.bf16.msra.mxu1 %v8431_v50  ;;  %v12100_v50 = vld [vmem:[#allocation3 + $0x468] sm:$0xff]   ;;  %15239 = vst [vmem:[#allocation95_spill] sm:$0xff] %v12163_v14 }
 0x61e   :  { %6310 = vmatprep.subr.bf16.mxu1 %v8436_v30  ;;  %v12052_v30 = vld [vmem:[#allocation3 + $0x590] sm:$0xff]   ;;  %15223 = vst [vmem:[#allocation79_spill] sm:$0xff] %v12100_v50 }
 0x61f   :  { %15211 = vst [vmem:[#allocation88_spill] sm:$0xff] %v12052_v30 }
 0x621   :  { %7089 = vmatmul.mubr.msk.bf16.gmra.mrb[64].mxu0 %vm2023_vm3, %v8424_v27  ;;  %6311 = vmatpush1.bf16.msra.mxu1 %v8434_v44  ;;  %v12054_v44 = vld [vmem:[#allocation3 + $0x5a0] sm:$0xff]  }
 0x622   :  { %6501 = vmatprep.mubr.bf16.mxu0 %v14906_v31  ;;  %6312 = vmatprep.subr.bf16.mxu1 %v8439_v13  ;;  %v12030_v13 = vld [vmem:[#allocation3 + $0x550] sm:$0xff]   ;;  %15212 = vst [vmem:[#allocation100_spill] sm:$0xff] %v12054_v44  ;;  %v12070_v27 = vld [vmem:[#allocation3 + $0x5e0] sm:$0xff]   ;;  %v12161_v31 = vld [vmem:[#allocation3 + $0x568] sm:$0xff]  }
 0x623   :  { %15206 = vst [vmem:[#allocation45_spill] sm:$0xff] %v12030_v13  ;;  %15216 = vst [vmem:[#allocation119_spill] sm:$0xff] %v12070_v27 }
 0x624   :  { %15238 = vst [vmem:[#allocation93_spill] sm:$0xff] %v12161_v31  ;;  %v12195_v31 = vld [vmem:[#allocation3 + $0x5e8] sm:$0xff]  }
 0x625   :  { %6313 = vmatpush1.bf16.msra.mxu1 %v8437_v28  ;;  %v12028_v28 = vld [vmem:[#allocation3 + $0x540] sm:$0xff]   ;;  %15245 = vst [vmem:[#allocation123_spill] sm:$0xff] %v12195_v31  ;;  %v15249_v31 = vunpack.c.h.bf16 %v11945_v45 }
 0x626   :  { %15205 = vst [vmem:[#allocation130_spill] sm:$0xff] %v12028_v28  ;;  %6314 = vmatprep.subr.bf16.mxu1 %v8442_v36 }
 0x629   :  { %6315 = vmatpush1.bf16.msra.mxu1 %v8440_v47  ;;  %v12084_v47 = vld [vmem:[#allocation3 + $0x428] sm:$0xff]  }
 0x62a   :  { %6316 = vmatprep.subr.bf16.mxu1 %v8445_v29  ;;  %15219 = vst [vmem:[#allocation75_spill] sm:$0xff] %v12084_v47  ;;  %v12110_v29 = vld [vmem:[#allocation3 + $0x4a8] sm:$0xff]  }
 0x62b   :  { %15226 = vst [vmem:[#allocation83_spill] sm:$0xff] %v12110_v29 }
 0x62d   :  { %6317 = vmatpush1.bf16.msra.mxu1 %v8443_v62  ;;  %v12102_v62 = vld [vmem:[#allocation3 + $0x498] sm:$0xff]  }
 0x62e   :  { %6318 = vmatprep.subr.bf16.mxu1 %v8448_v51  ;;  %15224 = vst [vmem:[#allocation82_spill] sm:$0xff] %v12102_v62 }
 0x631   :  { %6319 = vmatpush1.bf16.msra.mxu1 %v8446_v11 }
 0x64f   :  { %v8171_v36 = vpop.f32.mrb[44].mxu0 }
 0x650   :  { %v8172_v59 = vpop.f32.mrb[45].mxu0 }
 0x651   :  { %v8173_v51 = vadd.f32 %v8172_v59, %v8171_v36  ;;  %v8174_v18 = vpop.f32.mrb[46].mxu0 }
 0x652   :  { %v8175_v11 = vpop.f32.mrb[47].mxu0 }
 0x653   :  { %v4617_v36 = vcombine.high %v8173_v51, %v8173_v51  ;;  %v4624_v4 = vrot.slane %v8173_v51, %v15237_v12  ;;  %v8176_v27 = vadd.f32 %v8175_v11, %v8174_v18  ;;  %v12185_v11 = vld [vmem:[#allocation3 + $0x5c8] sm:$0xff]  }
 0x654   :  { %15243 = vst [vmem:[#allocation124_spill] sm:$0xff] %v12185_v11 }
 0x655   :  { %v4631_v59 = vrot.slane %v4617_v36, %v15237_v12  ;;  %v4632_v51 = vcombine.high %v4624_v4, %v4624_v4  ;;  %v4640_v18 = vrot.slane %v4624_v4, %v15237_v12  ;;  %v12197_v4 = vld [vmem:[#allocation3 + $0x5f8] sm:$0xff]   ;;  %v4836_v44 = vcombine.high %v8176_v27, %v8176_v27 }
 0x656   :  { %15246 = vst [vmem:[#allocation101_spill] sm:$0xff] %v12197_v4  ;;  %v4843_v16 = vrot.slane %v8176_v27, %v15237_v12 }
 0x657   :  { %v4633_v21 = vcombine.high %v4631_v59, %v4631_v59  ;;  %v4647_v36 = vrot.slane %v4631_v59, %v15237_v12  ;;  %v4654_v10 = vrot.slane %v4632_v51, %v15237_v12  ;;  %v4662_v14 = vcombine.high %v4640_v18, %v4640_v18 }
 0x658   :  { %v4669_v26 = vrot.slane %v4640_v18, %v15247_v54  ;;  %v4850_v30 = vrot.slane %v4836_v44, %v15237_v12 }
 0x659   :  { %v4661_v41 = vrot.slane %v4633_v21, %v15237_v12  ;;  %v4663_v59 = vcombine.high %v4647_v36, %v4647_v36  ;;  %v4664_v24 = vcombine.high %v4654_v10, %v4654_v10  ;;  %v12206_v51 = vrot.slane %v4654_v10, %v15247_v54 }
 0x65a   :  { %v12212_v38 = vrot.slane %v4662_v14, %v15247_v54  ;;  %v12215_v15 = vrot.slane %v4647_v36, %v15247_v54  ;;  %v4851_v10 = vcombine.high %v4843_v16, %v4843_v16  ;;  %v4859_v21 = vrot.slane %v4843_v16, %v15237_v12 }
 0x65b   :  { %v4665_v57 = vcombine.high %v4661_v41, %v4661_v41  ;;  %v12218_v18 = vrot.slane %v4663_v59, %v15247_v54  ;;  %v12224_v19 = vrot.slane %v4664_v24, %v15247_v54  ;;  %v12227_v27 = vrot.slane %v4661_v41, %v15247_v54 }
 0x65c   :  { %v15248_v14 = vunpack.c.l.bf16 %v11945_v45  ;;  %v4707_v59 = vmul.f32 %v15249_v31, %v4669_v26  ;;  %v12235_v44 = vmul.f32 %v15250_v61, %v4669_v26  ;;  %v15251_v16 = vunpack.c.h.bf16 %v11947_v35 }
 0x65d   :  { %v15252_v24 = vunpack.c.l.bf16 %v11949_v40  ;;  %v15253_v41 = vunpack.c.h.bf16 %v11949_v40  ;;  %v15254_v31 = vunpack.c.l.bf16 %v11951_v7  ;;  %v15255_v35 = vunpack.c.l.bf16 %v11956_v32 }
 0x65e   :  { %v4706_v36 = vmul.f32 %v15248_v14, %v4669_v26  ;;  %v12239_v11 = vmul.f32 %v15251_v16, %v4669_v26  ;;  %v12248_v14 = vrot.slane %v4665_v57, %v15247_v54  ;;  %v15256_v16 = vunpack.c.l.bf16 %v11964_v42 }
 0x65f   :  { %v4710_v39 = vmul.f32 %v15252_v24, %v12206_v51  ;;  %v4711_v4 = vmul.f32 %v15253_v41, %v12206_v51  ;;  %v4714_v61 = vmul.f32 %v15254_v31, %v12212_v38  ;;  %v4722_v26 = vmul.f32 %v15255_v35, %v12215_v15 }
 0x660   :  { %v4730_v45 = vmul.f32 %v15256_v16, %v12218_v18  ;;  %v15257_v24 = vunpack.c.h.bf16 %v11964_v42  ;;  %v4852_v41 = vcombine.high %v4850_v30, %v4850_v30  ;;  %v4866_v57 = vrot.slane %v4850_v30, %v15237_v12 }
 0x661   :  { %v4873_v2 = vrot.slane %v4851_v10, %v15237_v12  ;;  %v15258_v31 = vunpack.c.h.bf16 %v11951_v7  ;;  %v15259_v35 = vunpack.c.l.bf16 %v11953_v8  ;;  %v15260_v16 = vunpack.c.h.bf16 %v11953_v8 }
 0x662   :  { %v4731_v40 = vmul.f32 %v15257_v24, %v12218_v18  ;;  %v15261_v24 = vunpack.c.h.bf16 %v11956_v32  ;;  %v15262_v30 = vunpack.c.l.bf16 %v11958_v33  ;;  %v4880_v28 = vrot.slane %v4852_v41, %v15237_v12 }
 0x663   :  { %v4715_v5 = vmul.f32 %v15258_v31, %v12212_v38  ;;  %v4718_v52 = vmul.f32 %v15259_v35, %v12224_v19  ;;  %v4719_v13 = vmul.f32 %v15260_v16, %v12224_v19  ;;  %v4882_v7 = vcombine.high %v4866_v57, %v4866_v57 }
 0x664   :  { %v4723_v42 = vmul.f32 %v15261_v24, %v12215_v15  ;;  %v4726_v10 = vmul.f32 %v15262_v30, %v12227_v27  ;;  %v4883_v31 = vcombine.high %v4873_v2, %v4873_v2  ;;  %v4727_v35 = vmul.f32 %v15263_v37, %v12227_v27 }
 0x665   :  { %v15264_v8 = vunpack.c.l.bf16 %v11966_v48  ;;  %v15265_v32 = vunpack.c.h.bf16 %v11966_v48  ;;  %v4738_v9 = vadd.f32 %v4722_v26, %v4706_v36  ;;  %v4746_v20 = vadd.f32 %v4730_v45, %v4714_v61 }
 0x666   :  { %v4747_v6 = vadd.f32 %v4731_v40, %v4715_v5  ;;  %v4881_v30 = vcombine.high %v4859_v21, %v4859_v21  ;;  %v4884_v22 = vcombine.high %v4880_v28, %v4880_v28  ;;  %v4888_v41 = vrot.slane %v4859_v21, %v15247_v54 }
 0x667   :  { %v4734_v16 = vmul.f32 %v15264_v8, %v12248_v14  ;;  %v4735_v24 = vmul.f32 %v15265_v32, %v12248_v14  ;;  %v12291_v12 = vrot.slane %v4883_v31, %v15247_v54  ;;  %v12294_v37 = vrot.slane %v4866_v57, %v15247_v54 }
 0x668   :  { %v12297_v33 = vrot.slane %v4880_v28, %v15247_v54  ;;  %v4739_v8 = vadd.f32 %v4723_v42, %v4707_v59  ;;  %v4742_v17 = vadd.f32 %v4726_v10, %v4710_v39  ;;  %v12300_v32 = vrot.slane %v4882_v7, %v15247_v54 }
 0x669   :  { %v12303_v45 = vrot.slane %v4884_v22, %v15247_v54  ;;  %v4743_v40 = vadd.f32 %v4727_v35, %v4711_v4  ;;  %v4750_v5 = vadd.f32 %v4734_v16, %v4718_v52  ;;  %v4751_v21 = vadd.f32 %v4735_v24, %v4719_v13 }
 0x66a   :  { %v12306_v36 = vrot.slane %v4873_v2, %v15247_v54  ;;  %v4754_v61 = vadd.f32 %v4746_v20, %v4738_v9  ;;  %v4755_v26 = vadd.f32 %v4747_v6, %v4739_v8  ;;  %v12309_v57 = vrot.slane %v4881_v30, %v15247_v54 }
 0x66b   :  { %15266 = vst [vmem:[#allocation64_spill] sm:$0xff] %v12303_v45  ;;  %v15267_v42 = vunpack.c.l.bf16 %v12004_v1  ;;  %v15268_v7 = vunpack.c.l.bf16 %v11972_v23  ;;  %v15269_v22 = vunpack.c.l.bf16 %v11988_v60  ;;  %v15270_v2 = vunpack.c.l.bf16 %v11990_v0 }
 0x66c   :  { %v15271_v20 = vunpack.c.l.bf16 %v11996_v43  ;;  %v15272_v9 = vunpack.c.h.bf16 %v11990_v0  ;;  %v15273_v59 = vunpack.c.h.bf16 %v11996_v43  ;;  %v15274_v31 = vunpack.c.l.bf16 %v11998_v55 }
 0x66d   :  { %v4953_v39 = vmul.f32 %v15267_v42, %v12303_v45  ;;  %v4925_v28 = vmul.f32 %v15268_v7, %v4888_v41  ;;  %v4937_v52 = vmul.f32 %v15269_v22, %v12291_v12  ;;  %v4941_v13 = vmul.f32 %v15270_v2, %v12294_v37 }
 0x66e   :  { %v4945_v6 = vmul.f32 %v15271_v20, %v12297_v33  ;;  %v4942_v4 = vmul.f32 %v15272_v9, %v12294_v37  ;;  %v4946_v10 = vmul.f32 %v15273_v59, %v12297_v33  ;;  %v4949_v35 = vmul.f32 %v15274_v31, %v12300_v32 }
 0x66f   :  { %v15275_v16 = vunpack.c.h.bf16 %v11998_v55  ;;  %v15276_v30 = vunpack.c.h.bf16 %v11972_v23  ;;  %v15277_v42 = vunpack.c.l.bf16 %v11980_v46  ;;  %v15278_v22 = vunpack.c.h.bf16 %v12004_v1 }
 0x670   :  { %v4969_v20 = vadd.f32 %v4953_v39, %v4937_v52  ;;  %v15279_v9 = vunpack.c.l.bf16 %v11974_v25  ;;  %v15281_v31 = vunpack.c.h.bf16 %v11980_v46  ;;  %v15284_v1 = vunpack.c.h.bf16 %v11974_v25 }
 0x671   :  { %v4950_v24 = vmul.f32 %v15275_v16, %v12300_v32  ;;  %v4926_v8 = vmul.f32 %v15276_v30, %v4888_v41  ;;  %v4929_v7 = vmul.f32 %v15277_v42, %v12306_v36  ;;  %v4954_v2 = vmul.f32 %v15278_v22, %v12303_v45 }
 0x672   :  { %v12347_v59 = vmul.f32 %v15279_v9, %v4888_v41  ;;  %v4930_v16 = vmul.f32 %v15281_v31, %v12306_v36  ;;  %v15282_v30 = vunpack.c.l.bf16 %v11982_v58  ;;  %v15283_v42 = vunpack.c.h.bf16 %v11982_v58 }
 0x673   :  { %v12360_v22 = vmul.f32 %v15284_v1, %v4888_v41  ;;  %v15285_v39 = vunpack.c.h.bf16 %v11988_v60  ;;  %v4957_v9 = vadd.f32 %v4941_v13, %v4925_v28  ;;  %v4961_v0 = vadd.f32 %v4945_v6, %v4929_v7  ;;  %v15373_v60 = vld [vmem:[#allocation72_spill] sm:$0xff] }
 0x674   :  { %15280 = vst [vmem:[#allocation102_spill] sm:$0xff] %v12347_v59  ;;  %v4933_v55 = vmul.f32 %v15282_v30, %v12309_v57  ;;  %v4934_v43 = vmul.f32 %v15283_v42, %v12309_v57  ;;  %v4958_v46 = vadd.f32 %v4942_v4, %v4926_v8  ;;  %v4962_v31 = vadd.f32 %v4946_v10, %v4930_v16 }
 0x675   :  { %v4938_v52 = vmul.f32 %v15285_v39, %v12291_v12  ;;  %v4758_v30 = vadd.f32 %v4750_v5, %v4742_v17  ;;  %v4759_v59 = vadd.f32 %v4751_v21, %v4743_v40  ;;  %v4977_v45 = vadd.f32 %v4969_v20, %v4961_v0 }
 0x676   :  { %v4965_v48 = vadd.f32 %v4949_v35, %v4933_v55  ;;  %v4966_v23 = vadd.f32 %v4950_v24, %v4934_v43  ;;  %v15286_v42 = vunpack.c.l.bf16 %v12084_v47  ;;  %v15287_v1 = vunpack.c.l.bf16 %v12100_v50 }
 0x677   :  { %v4970_v54 = vadd.f32 %v4954_v2, %v4938_v52  ;;  %v15288_v28 = vunpack.c.h.bf16 %v12100_v50  ;;  %v15289_v55 = vunpack.c.l.bf16 %v12108_v63  ;;  %v15290_v17 = vunpack.c.h.bf16 %v12084_v47 }
 0x678   :  { %v4716_v58 = vmul.f32 %v15286_v42, %v12212_v38  ;;  %v4732_v41 = vmul.f32 %v15287_v1, %v12218_v18  ;;  %v15291_v40 = vunpack.c.l.bf16 %v12092_v34  ;;  %v15292_v21 = vunpack.c.l.bf16 %v12094_v53 }
 0x679   :  { %v4733_v13 = vmul.f32 %v15288_v28, %v12218_v18  ;;  %v4736_v43 = vmul.f32 %v15289_v55, %v12248_v14  ;;  %v4717_v0 = vmul.f32 %v15290_v17, %v12212_v38  ;;  %v15293_v4 = vunpack.c.h.bf16 %v12108_v63 }
 0x67a   :  { %v4720_v5 = vmul.f32 %v15291_v40, %v12224_v19  ;;  %v4728_v6 = vmul.f32 %v15292_v21, %v12227_v27  ;;  %v15294_v10 = vunpack.c.h.bf16 %v12092_v34  ;;  %v15295_v24 = vunpack.c.l.bf16 %v12086_v49 }
 0x67b   :  { %v4737_v18 = vmul.f32 %v15293_v4, %v12248_v14  ;;  %v15296_v8 = vunpack.c.h.bf16 %v12086_v49  ;;  %v15297_v2 = vunpack.c.h.bf16 %v12094_v53  ;;  %v4973_v16 = vadd.f32 %v4965_v48, %v4957_v9 }
 0x67c   :  { %v4721_v35 = vmul.f32 %v15294_v10, %v12224_v19  ;;  %v4724_v38 = vmul.f32 %v15295_v24, %v12215_v15  ;;  %v4978_v39 = vadd.f32 %v4970_v54, %v4962_v31  ;;  %v15298_v14 = vunpack.c.l.bf16 %v12078_v3  ;;  %v15306_v24 = vld [vmem:[#allocation86_spill] sm:$0xff] }
 0x67d   :  { %v4725_v7 = vmul.f32 %v15296_v8, %v12215_v15  ;;  %v4729_v20 = vmul.f32 %v15297_v2, %v12227_v27  ;;  %v4752_v42 = vadd.f32 %v4736_v43, %v4720_v5  ;;  %v15299_v19 = vunpack.c.h.bf16 %v12078_v3 }
 0x67e   :  { %v4712_v52 = vmul.f32 %v15298_v14, %v12206_v51  ;;  %v4748_v28 = vadd.f32 %v4732_v41, %v4716_v58  ;;  %v4749_v55 = vadd.f32 %v4733_v13, %v4717_v0  ;;  %v4753_v17 = vadd.f32 %v4737_v18, %v4721_v35 }
 0x67f   :  { %v4713_v1 = vmul.f32 %v15299_v19, %v12206_v51  ;;  %v4974_v40 = vadd.f32 %v4966_v23, %v4958_v46  ;;  %v12407_v15 = vadd.f32 %v4758_v30, %v4754_v61  ;;  %v12409_v21 = vadd.f32 %v4759_v59, %v4755_v26 }
 0x680   :  { %v4744_v27 = vadd.f32 %v4728_v6, %v4712_v52  ;;  %v12411_v48 = vadd.f32 %v4977_v45, %v4973_v16  ;;  %v4740_v54 = vadd.f32 %v4724_v38, %v12235_v44  ;;  %v4741_v9 = vadd.f32 %v4725_v7, %v12239_v11 }
 0x681   :  { %v4745_v31 = vadd.f32 %v4729_v20, %v4713_v1  ;;  %v12415_v5 = vadd.f32 %v4978_v39, %v4974_v40  ;;  %v15300_v58 = vunpack.c.l.bf16 %v12102_v62  ;;  %v15301_v46 = vunpack.c.h.bf16 %v12102_v62  ;;  %v15309_v20 = vld [vmem:[#allocation56_spill] sm:$0xff] }
 0x682   :  { %v4760_v51 = vadd.f32 %v4752_v42, %v4744_v27  ;;  %v4756_v45 = vadd.f32 %v4748_v28, %v4740_v54  ;;  %v4757_v59 = vadd.f32 %v4749_v55, %v4741_v9  ;;  %v15302_v11 = vunpack.c.l.bf16 %v12110_v29  ;;  %v15312_v42 = vld [vmem:[#allocation18_spill] sm:$0xff]  ;;  %v15315_v55 = vld [vmem:[#allocation87_spill] sm:$0xff]  ;;  %v15318_v54 = vld [vmem:[#allocation64_spill] sm:$0xff] }
 0x683   :  { %v4931_v23 = vmul.f32 %v15300_v58, %v12306_v36  ;;  %v4932_v61 = vmul.f32 %v15301_v46, %v12306_v36  ;;  %v4761_v30 = vadd.f32 %v4753_v17, %v4745_v31  ;;  %v15303_v0 = vunpack.c.h.bf16 %v12110_v29  ;;  %v15319_v9 = vld [vmem:[#allocation54_spill] sm:$0xff]  ;;  %v15346_v29 = vld [vmem:[#allocation43_spill] sm:$0xff] }
 0x684   :  { %v4935_v44 = vmul.f32 %v15302_v11, %v12309_v57  ;;  %v15304_v4 = vunpack.c.l.bf16 %v12116_v56  ;;  %v15305_v36 = vunpack.c.h.bf16 %v12116_v56  ;;  %v15307_v38 = vunpack.c.l.bf16 %v15306_v24 }
 0x685   :  { %v4936_v6 = vmul.f32 %v15303_v0, %v12309_v57  ;;  %v15308_v7 = vunpack.c.h.bf16 %v15306_v24  ;;  %v15310_v57 = vunpack.c.l.bf16 %v15309_v20  ;;  %v15311_v39 = vunpack.c.h.bf16 %v15309_v20 }
 0x686   :  { %v4939_v18 = vmul.f32 %v15304_v4, %v12291_v12  ;;  %v4940_v10 = vmul.f32 %v15305_v36, %v12291_v12  ;;  %v4943_v8 = vmul.f32 %v15307_v38, %v12294_v37  ;;  %v12448_v1 = vadd.f32 %v4760_v51, %v4756_v45  ;;  %v15322_v45 = vld [vmem:[#allocation102_spill] sm:$0xff]  ;;  %v15323_v36 = vld [vmem:[#allocation15_spill] sm:$0xff] }
 0x687   :  { %v4944_v2 = vmul.f32 %v15308_v7, %v12294_v37  ;;  %v4947_v16 = vmul.f32 %v15310_v57, %v12297_v33  ;;  %v4948_v14 = vmul.f32 %v15311_v39, %v12297_v33  ;;  %v12450_v28 = vadd.f32 %v4761_v30, %v4757_v59 }
 0x688   :  { %15313 = vst [vmem:[#allocation65_spill] sm:$0xff] %v12448_v1  ;;  %v15316_v17 = vunpack.c.l.bf16 %v15315_v55  ;;  %v15317_v40 = vunpack.c.h.bf16 %v15315_v55  ;;  %v15320_v31 = vunpack.c.l.bf16 %v15319_v9  ;;  %v15321_v46 = vunpack.c.h.bf16 %v15319_v9  ;;  %v15343_v55 = vld [vmem:[#allocation42_spill] sm:$0xff] }
 0x689   :  { %15314 = vst [vmem:[#allocation12_spill] sm:$0xff] %v12450_v28  ;;  %v12467_v59 = vadd.f32 %v4943_v8, %v15322_v45  ;;  %v12470_v30 = vadd.f32 %v4944_v2, %v12360_v22  ;;  %v12474_v11 = vadd.f32 %v4948_v14, %v4932_v61  ;;  %v15331_v45 = vld [vmem:[#allocation130_spill] sm:$0xff]  ;;  %v15344_v20 = vunpack.c.l.bf16 %v15343_v55 }
 0x68a   :  { %v4951_v37 = vmul.f32 %v15316_v17, %v12300_v32  ;;  %v4952_v27 = vmul.f32 %v15317_v40, %v12300_v32  ;;  %v4955_v33 = vmul.f32 %v15320_v31, %v15318_v54  ;;  %v12472_v32 = vadd.f32 %v4947_v16, %v4931_v23  ;;  %v15325_v40 = vld [vmem:[#allocation41_spill] sm:$0xff] }
 0x68b   :  { %v15327_v31 = vunpack.c.h.bf16 %v15325_v40  ;;  %v15345_v24 = vunpack.c.h.bf16 %v15343_v55  ;;  %v15347_v62 = vunpack.c.l.bf16 %v15346_v29  ;;  %v15348_v34 = vunpack.c.h.bf16 %v15346_v29 }
 0x68c   :  { %v12482_v7 = vadd.f32 %v4951_v37, %v4935_v44  ;;  %v12491_v16 = vadd.f32 %v4952_v27, %v4936_v6  ;;  %v12493_v39 = vadd.f32 %v4955_v33, %v4939_v18  ;;  %v15326_v27 = vunpack.c.l.bf16 %v15325_v40 }
 0x68d   :  { %v8177_v43 = vpop.f32.mrb[48].mxu0  ;;  %v15377_v40 = vunpack.c.h.bf16 %v15373_v60 }
 0x68e   :  { %v8178_v26 = vpop.f32.mrb[49].mxu0 }
 0x68f   :  { %v8179_v41 = vadd.f32 %v8178_v26, %v8177_v43  ;;  %v8180_v13 = vpop.f32.mrb[50].mxu0  ;;  %v4956_v26 = vmul.f32 %v15321_v46, %v15318_v54 }
 0x690   :  { %v8181_v35 = vpop.f32.mrb[51].mxu0 }
 0x691   :  { %v5055_v52 = vcombine.high %v8179_v41, %v8179_v41  ;;  %v5062_v12 = vrot.slane %v8179_v41, %v15312_v42  ;;  %v8182_v19 = vadd.f32 %v8181_v35, %v8180_v13  ;;  %v12495_v14 = vadd.f32 %v4956_v26, %v4940_v10 }
 0x693   :  { %v5069_v43 = vrot.slane %v5055_v52, %v15312_v42  ;;  %v5070_v58 = vcombine.high %v5062_v12, %v5062_v12  ;;  %v5078_v51 = vrot.slane %v5062_v12, %v15312_v42  ;;  %v5274_v38 = vcombine.high %v8182_v19, %v8182_v19 }
 0x694   :  { %v5281_v8 = vrot.slane %v8182_v19, %v15312_v42 }
 0x695   :  { %v5071_v41 = vcombine.high %v5069_v43, %v5069_v43  ;;  %v5085_v13 = vrot.slane %v5069_v43, %v15312_v42  ;;  %v5092_v0 = vrot.slane %v5070_v58, %v15312_v42  ;;  %v5100_v4 = vcombine.high %v5078_v51, %v5078_v51  ;;  %v15328_v43 = vld [vmem:[#allocation129_spill] sm:$0xff] }
 0x696   :  { %v12479_v35 = vrot.slane %v5078_v51, %v15323_v36  ;;  %v5288_v6 = vrot.slane %v5274_v38, %v15312_v42  ;;  %v5289_v37 = vcombine.high %v5281_v8, %v5281_v8  ;;  %v5297_v18 = vrot.slane %v5281_v8, %v15312_v42  ;;  %v15334_v38 = vld [vmem:[#allocation45_spill] sm:$0xff] }
 0x697   :  { %v5099_v22 = vrot.slane %v5071_v41, %v15312_v42  ;;  %v5101_v23 = vcombine.high %v5085_v13, %v5085_v13  ;;  %v5102_v2 = vcombine.high %v5092_v0, %v5092_v0  ;;  %v12486_v61 = vrot.slane %v5092_v0, %v15323_v36 }
 0x698   :  { %v12489_v57 = vrot.slane %v5085_v13, %v15323_v36  ;;  %v12498_v44 = vrot.slane %v5100_v4, %v15323_v36  ;;  %v5144_v54 = vmul.f32 %v15326_v27, %v12479_v35  ;;  %v5145_v33 = vmul.f32 %v15327_v31, %v12479_v35 }
 0x699   :  { %v5103_v52 = vcombine.high %v5099_v22, %v5099_v22  ;;  %v12501_v12 = vrot.slane %v5099_v22, %v15323_v36  ;;  %v12504_v19 = vrot.slane %v5101_v23, %v15323_v36  ;;  %v12507_v17 = vrot.slane %v5102_v2, %v15323_v36  ;;  %v15336_v23 = vld [vmem:[#allocation38_spill] sm:$0xff] }
 0x69a   :  { %v15329_v58 = vunpack.c.l.bf16 %v15328_v43  ;;  %v15330_v46 = vunpack.c.h.bf16 %v15328_v43  ;;  %v15332_v41 = vunpack.c.l.bf16 %v15331_v45  ;;  %v15333_v0 = vunpack.c.h.bf16 %v15331_v45  ;;  %v15370_v45 = vld [vmem:[#allocation119_spill] sm:$0xff] }
 0x69b   :  { %v12512_v10 = vrot.slane %v5103_v52, %v15323_v36  ;;  %v15335_v8 = vunpack.c.l.bf16 %v15334_v38  ;;  %v15337_v2 = vunpack.c.l.bf16 %v15336_v23  ;;  %v15338_v27 = vunpack.c.h.bf16 %v15334_v38 }
 0x69c   :  { %v5148_v51 = vmul.f32 %v15329_v58, %v12486_v61  ;;  %v5149_v26 = vmul.f32 %v15330_v46, %v12486_v61  ;;  %v5160_v13 = vmul.f32 %v15332_v41, %v12489_v57  ;;  %v5161_v4 = vmul.f32 %v15333_v0, %v12489_v57  ;;  %v15339_v58 = vld [vmem:[#allocation126_spill] sm:$0xff] }
 0x69d   :  { %15324 = vst [vmem:[#allocation104_spill] sm:$0xff] %v12512_v10  ;;  %v5164_v22 = vmul.f32 %v15335_v8, %v12501_v12  ;;  %v5152_v52 = vmul.f32 %v15337_v2, %v12498_v44  ;;  %v5165_v31 = vmul.f32 %v15338_v27, %v12501_v12  ;;  %v15340_v46 = vunpack.c.l.bf16 %v15339_v58 }
 0x69e   :  { %v15341_v9 = vunpack.c.h.bf16 %v15339_v58  ;;  %v15342_v56 = vunpack.c.h.bf16 %v15336_v23  ;;  %v5156_v2 = vmul.f32 %v15344_v20, %v12507_v17  ;;  %v5157_v27 = vmul.f32 %v15345_v24, %v12507_v17 }
 0x69f   :  { %v5168_v41 = vmul.f32 %v15340_v46, %v12504_v19  ;;  %v5172_v46 = vmul.f32 %v15347_v62, %v12512_v10  ;;  %v5176_v63 = vadd.f32 %v5160_v13, %v5144_v54  ;;  %v5177_v50 = vadd.f32 %v5161_v4, %v5145_v33 }
 0x6a0   :  { %v5169_v0 = vmul.f32 %v15341_v9, %v12504_v19  ;;  %v5153_v8 = vmul.f32 %v15342_v56, %v12498_v44  ;;  %v5173_v9 = vmul.f32 %v15348_v34, %v12512_v10  ;;  %v5180_v53 = vadd.f32 %v5164_v22, %v5148_v51  ;;  %v15354_v22 = vld [vmem:[#allocation44_spill] sm:$0xff] }
 0x6a1   :  { %v5181_v56 = vadd.f32 %v5165_v31, %v5149_v26  ;;  %v5290_v49 = vcombine.high %v5288_v6, %v5288_v6  ;;  %v5304_v47 = vrot.slane %v5288_v6, %v15312_v42  ;;  %v5311_v20 = vrot.slane %v5289_v37, %v15312_v42 }
 0x6a2   :  { %v5184_v3 = vadd.f32 %v5168_v41, %v5152_v52  ;;  %v5185_v58 = vadd.f32 %v5169_v0, %v5153_v8  ;;  %v5319_v24 = vcombine.high %v5297_v18, %v5297_v18  ;;  %v12565_v55 = vrot.slane %v5297_v18, %v15323_v36 }
 0x6a3   :  { %v5318_v62 = vrot.slane %v5290_v49, %v15312_v42  ;;  %v5320_v38 = vcombine.high %v5304_v47, %v5304_v47  ;;  %v5321_v29 = vcombine.high %v5311_v20, %v5311_v20  ;;  %v12569_v34 = vrot.slane %v5311_v20, %v15323_v36  ;;  %v15364_v20 = vld [vmem:[#allocation11_spill] sm:$0xff] }
 0x6a4   :  { %v5188_v54 = vadd.f32 %v5172_v46, %v5156_v2  ;;  %v5189_v33 = vadd.f32 %v5173_v9, %v5157_v27  ;;  %v12572_v51 = vrot.slane %v5319_v24, %v15323_v36  ;;  %v12575_v6 = vrot.slane %v5304_v47, %v15323_v36 }
 0x6a5   :  { %15349 = vst [vmem:[#allocation13_spill] sm:$0xff] %v12569_v34  ;;  %v5322_v37 = vcombine.high %v5318_v62, %v5318_v62  ;;  %v12578_v26 = vrot.slane %v5321_v29, %v15323_v36  ;;  %v12581_v18 = vrot.slane %v5318_v62, %v15323_v36  ;;  %v12584_v49 = vrot.slane %v5320_v38, %v15323_v36  ;;  %v15357_v29 = vld [vmem:[#allocation88_spill] sm:$0xff] }
 0x6a6   :  { %15350 = vst [vmem:[#allocation120_spill] sm:$0xff] %v12572_v51  ;;  %15351 = vst [vmem:[#allocation125_spill] sm:$0xff] %v12575_v6  ;;  %v5192_v13 = vadd.f32 %v5184_v3, %v5176_v63  ;;  %v5193_v4 = vadd.f32 %v5185_v58, %v5177_v50  ;;  %v15355_v52 = vunpack.c.l.bf16 %v15354_v22  ;;  %v15356_v47 = vunpack.c.h.bf16 %v15354_v22  ;;  %v15359_v38 = vld [vmem:[#allocation100_spill] sm:$0xff]  ;;  %v15362_v58 = vld [vmem:[#allocation46_spill] sm:$0xff] }
 0x6a7   :  { %15352 = vst [vmem:[#allocation62_spill] sm:$0xff] %v12581_v18  ;;  %15353 = vst [vmem:[#allocation89_spill] sm:$0xff] %v12584_v49  ;;  %v12593_v0 = vrot.slane %v5322_v37, %v15323_v36  ;;  %v15358_v8 = vunpack.c.l.bf16 %v15357_v29  ;;  %v15360_v27 = vunpack.c.l.bf16 %v15359_v38  ;;  %v15361_v3 = vunpack.c.h.bf16 %v15359_v38 }
 0x6a8   :  { %v5363_v31 = vmul.f32 %v15355_v52, %v12565_v55  ;;  %v5364_v41 = vmul.f32 %v15356_v47, %v12565_v55  ;;  %v15363_v46 = vunpack.c.l.bf16 %v15362_v58  ;;  %v15365_v24 = vunpack.c.l.bf16 %v15364_v20  ;;  %v15367_v47 = vld [vmem:[#allocation109_spill] sm:$0xff] }
 0x6a9   :  { %v5367_v2 = vmul.f32 %v15358_v8, %v12569_v34  ;;  %v5371_v63 = vmul.f32 %v15360_v27, %v12572_v51  ;;  %v5372_v50 = vmul.f32 %v15361_v3, %v12572_v51  ;;  %v15366_v37 = vunpack.c.h.bf16 %v15364_v20 }
 0x6aa   :  { %v5375_v9 = vmul.f32 %v15363_v46, %v12578_v26  ;;  %v5379_v62 = vmul.f32 %v15365_v24, %v12575_v6  ;;  %v15368_v8 = vunpack.c.l.bf16 %v15367_v47  ;;  %v15369_v38 = vunpack.c.h.bf16 %v15367_v47 }
 0x6ab   :  { %v5380_v52 = vmul.f32 %v15366_v37, %v12575_v6  ;;  %v15371_v23 = vunpack.c.l.bf16 %v15370_v45  ;;  %v15372_v43 = vunpack.c.h.bf16 %v15370_v45  ;;  %v15374_v20 = vunpack.c.l.bf16 %v15373_v60 }
 0x6ac   :  { %v5383_v27 = vmul.f32 %v15368_v8, %v12581_v18  ;;  %v5384_v3 = vmul.f32 %v15369_v38, %v12581_v18  ;;  %v15375_v22 = vunpack.c.h.bf16 %v15357_v29  ;;  %v15376_v47 = vunpack.c.h.bf16 %v15362_v58 }
 0x6ad   :  { %v5387_v46 = vmul.f32 %v15371_v23, %v12584_v49  ;;  %v5388_v24 = vmul.f32 %v15372_v43, %v12584_v49  ;;  %v5391_v37 = vmul.f32 %v15374_v20, %v12593_v0  ;;  %v5392_v23 = vmul.f32 %v15377_v40, %v12593_v0 }
 0x6ae   :  { %v5368_v8 = vmul.f32 %v15375_v22, %v12569_v34  ;;  %v5376_v38 = vmul.f32 %v15376_v47, %v12578_v26  ;;  %v5395_v25 = vadd.f32 %v5379_v62, %v5363_v31  ;;  %v5399_v28 = vadd.f32 %v5383_v27, %v5367_v2 }
 0x6af   :  { %v5403_v45 = vadd.f32 %v5387_v46, %v5371_v63  ;;  %v5404_v43 = vadd.f32 %v5388_v24, %v5372_v50  ;;  %v5407_v1 = vadd.f32 %v5391_v37, %v5375_v9  ;;  %v5196_v6 = vadd.f32 %v5188_v54, %v5180_v53 }
 0x6b0   :  { %v5400_v49 = vadd.f32 %v5384_v3, %v5368_v8  ;;  %v5408_v18 = vadd.f32 %v5392_v23, %v5376_v38  ;;  %v5197_v51 = vadd.f32 %v5189_v33, %v5181_v56  ;;  %v5396_v29 = vadd.f32 %v5380_v52, %v5364_v41  ;;  %v15384_v3 = vld [vmem:[#allocation52_spill] sm:$0xff] }
 0x6b1   :  { %v5411_v22 = vadd.f32 %v5403_v45, %v5395_v25  ;;  %v5415_v10 = vadd.f32 %v5407_v1, %v5399_v28  ;;  %v4975_v47 = vadd.f32 %v12482_v7, %v12467_v59  ;;  %v5200_v40 = vadd.f32 %v5196_v6, %v5192_v13 }
 0x6b2   :  { %v5201_v31 = vadd.f32 %v5197_v51, %v5193_v4  ;;  %v5416_v2 = vadd.f32 %v5408_v18, %v5400_v49  ;;  %v5412_v63 = vadd.f32 %v5404_v43, %v5396_v29  ;;  %v4979_v62 = vadd.f32 %v12493_v39, %v12472_v32 }
 0x6b3   :  { %v5419_v9 = vadd.f32 %v5415_v10, %v5411_v22  ;;  %v4980_v53 = vadd.f32 %v12495_v14, %v12474_v11  ;;  %v5204_v59 = vadd.f32 %v5200_v40, %v12407_v15  ;;  %v4976_v10 = vadd.f32 %v12491_v16, %v12470_v30  ;;  %v15390_v40 = vld [vmem:[#allocation94_spill] sm:$0xff] }
 0x6b4   :  { %v5205_v7 = vadd.f32 %v5201_v31, %v12409_v21  ;;  %v5420_v45 = vadd.f32 %v5416_v2, %v5412_v63  ;;  %v15378_v21 = vld [vmem:[#allocation81_spill] sm:$0xff]  ;;  %v15386_v37 = vunpack.c.h.bf16 %v15384_v3  ;;  %v15391_v31 = vunpack.c.l.bf16 %v15390_v40 }
 0x6b5   :  { %v5423_v56 = vadd.f32 %v5419_v9, %v12411_v48  ;;  %v12654_v15 = vadd.f32 %v4980_v53, %v4976_v10  ;;  %v15379_v33 = vunpack.c.l.bf16 %v15378_v21  ;;  %v15380_v6 = vunpack.c.h.bf16 %v15378_v21  ;;  %v15393_v53 = vld [vmem:[#allocation91_spill] sm:$0xff] }
 0x6b6   :  { %v5424_v14 = vadd.f32 %v5420_v45, %v12415_v5  ;;  %v15381_v5 = vld [vmem:[#allocation47_spill] sm:$0xff]  ;;  %v5151_v8 = vmul.f32 %v15386_v37, %v12486_v61  ;;  %v5158_v2 = vmul.f32 %v15391_v31, %v12507_v17  ;;  %v15392_v63 = vunpack.c.h.bf16 %v15390_v40 }
 0x6b7   :  { %v5427_v54 = vadd.f32 %v5423_v56, %v5204_v59  ;;  %v5146_v48 = vmul.f32 %v15379_v33, %v12479_v35  ;;  %v5147_v18 = vmul.f32 %v15380_v6, %v12479_v35  ;;  %v15382_v49 = vunpack.c.l.bf16 %v15381_v5  ;;  %v15397_v56 = vld [vmem:[#allocation127_spill] sm:$0xff] }
 0x6b8   :  { %v15383_v4 = vunpack.c.h.bf16 %v15381_v5  ;;  %v15385_v35 = vunpack.c.l.bf16 %v15384_v3  ;;  %v15398_v10 = vunpack.c.l.bf16 %v15397_v56 }
 0x6b9   :  { %v12667_v13 = vmul.f32 %v15382_v49, %v12565_v55 }
 0x6ba   :  { %v12672_v41 = vmul.f32 %v15383_v4, %v12565_v55  ;;  %v5150_v46 = vmul.f32 %v15385_v35, %v12486_v61  ;;  %v15387_v55 = vld [vmem:[#allocation90_spill] sm:$0xff] }
 0x6bb   :  { %v8183_v20 = vpop.f32.mrb[52].mxu0  ;;  %v15388_v38 = vunpack.c.l.bf16 %v15387_v55  ;;  %v15389_v43 = vunpack.c.h.bf16 %v15387_v55 }
 0x6bc   :  { %v8184_v34 = vpop.f32.mrb[53].mxu0 }
 0x6bd   :  { %v8185_v58 = vadd.f32 %v8184_v34, %v8183_v20  ;;  %v8186_v60 = vpop.f32.mrb[54].mxu0  ;;  %v5154_v23 = vmul.f32 %v15388_v38, %v12498_v44  ;;  %v5155_v20 = vmul.f32 %v15389_v43, %v12498_v44  ;;  %v15408_v38 = vunpack.c.h.bf16 %v15393_v53 }
 0x6be   :  { %v8187_v50 = vpop.f32.mrb[55].mxu0 }
 0x6bf   :  { %v5432_v25 = vcombine.high %v8185_v58, %v8185_v58  ;;  %v5439_v1 = vrot.slane %v8185_v58, %v15312_v42  ;;  %v8188_v28 = vadd.f32 %v8187_v50, %v8186_v60  ;;  %v12652_v60 = vadd.f32 %v4979_v62, %v4975_v47 }
 0x6c0   :  { %v5159_v50 = vmul.f32 %v15392_v63, %v12507_v17  ;;  %v5163_v43 = vmul.f32 %v15408_v38, %v12489_v57 }
 0x6c1   :  { %v5446_v34 = vrot.slane %v5432_v25, %v15312_v42  ;;  %v5447_v32 = vcombine.high %v5439_v1, %v5439_v1  ;;  %v5455_v39 = vrot.slane %v5439_v1, %v15312_v42  ;;  %v5586_v11 = vcombine.high %v8188_v28, %v8188_v28 }
 0x6c2   :  { %v5593_v29 = vrot.slane %v8188_v28, %v15312_v42  ;;  %v15394_v25 = vunpack.c.l.bf16 %v15393_v53 }
 0x6c3   :  { %v5448_v51 = vcombine.high %v5446_v34, %v5446_v34  ;;  %v5462_v30 = vrot.slane %v5446_v34, %v15312_v42  ;;  %v5469_v16 = vrot.slane %v5447_v32, %v15312_v42  ;;  %v5477_v52 = vcombine.high %v5455_v39, %v5455_v39 }
 0x6c4   :  { %v5600_v27 = vrot.slane %v5586_v11, %v15312_v42  ;;  %v5484_v24 = vrot.slane %v5455_v39, %v15323_v36  ;;  %v5601_v61 = vcombine.high %v5593_v29, %v5593_v29  ;;  %v12697_v62 = vrot.slane %v5593_v29, %v15312_v42 }
 0x6c5   :  { %v5476_v58 = vrot.slane %v5448_v51, %v15312_v42  ;;  %v5478_v22 = vcombine.high %v5462_v30, %v5462_v30  ;;  %v5479_v47 = vcombine.high %v5469_v16, %v5469_v16  ;;  %v5162_v1 = vmul.f32 %v15394_v25, %v12489_v57 }
 0x6c6   :  { %v12703_v44 = vrot.slane %v5469_v16, %v15323_v36  ;;  %v12706_v28 = vrot.slane %v5477_v52, %v15323_v36  ;;  %v5602_v59 = vcombine.high %v5600_v27, %v5600_v27  ;;  %v12709_v45 = vrot.slane %v5600_v27, %v15312_v42 }
 0x6c7   :  { %v5480_v9 = vcombine.high %v5476_v58, %v5476_v58  ;;  %v12712_v17 = vrot.slane %v5462_v30, %v15323_v36  ;;  %v12716_v34 = vmul.f32 %v15398_v10, %v5484_v24  ;;  %v15399_v32 = vunpack.c.h.bf16 %v15397_v56  ;;  %v15403_v30 = vld [vmem:[#allocation68_spill] sm:$0xff] }
 0x6c8   :  { %15395 = vst [vmem:[#allocation121_spill] sm:$0xff] %v12706_v28  ;;  %v5428_v11 = vadd.f32 %v5424_v14, %v5205_v7  ;;  %v12723_v33 = vrot.slane %v5479_v47, %v15323_v36  ;;  %v12726_v51 = vrot.slane %v5476_v58, %v15323_v36  ;;  %v12729_v16 = vrot.slane %v5478_v22, %v15323_v36  ;;  %v15409_v22 = vld [vmem:[#allocation92_spill] sm:$0xff] }
 0x6c9   :  { %15396 = vst [vmem:[#allocation97_spill] sm:$0xff] %v12712_v17  ;;  %v12720_v39 = vmul.f32 %v15399_v32, %v5484_v24  ;;  %v15404_v6 = vunpack.c.l.bf16 %v15403_v30  ;;  %v12736_v4 = vrot.slane %v5480_v9, %v15323_v36  ;;  %v15406_v29 = vunpack.c.h.bf16 %v15403_v30  ;;  %v15415_v56 = vld [vmem:[#allocation104_spill] sm:$0xff] }
 0x6ca   :  { %15400 = vst [vmem:[#allocation103_spill] sm:$0xff] %v12723_v33  ;;  %15401 = vst [vmem:[#allocation16_spill] sm:$0xff] %v12726_v51  ;;  %v12743_v7 = vrot.slane %v5601_v61, %v15312_v42  ;;  %v5631_v14 = vcombine.high %v12697_v62, %v12697_v62  ;;  %v12748_v58 = vrot.slane %v5602_v59, %v15312_v42  ;;  %v15410_v47 = vunpack.c.l.bf16 %v15409_v22  ;;  %v15412_v61 = vld [vmem:[#allocation93_spill] sm:$0xff]  ;;  %v15416_v10 = vld [vmem:[#allocation96_spill] sm:$0xff] }
 0x6cb   :  { %15402 = vst [vmem:[#allocation105_spill] sm:$0xff] %v12729_v16  ;;  %v12733_v49 = vmul.f32 %v15404_v6, %v5484_v24  ;;  %v12740_v52 = vmul.f32 %v15406_v29, %v5484_v24  ;;  %v12754_v35 = vrot.slane %v12697_v62, %v15323_v36  ;;  %v6051_v37 = vpack.c.bf16 %v5428_v11, %v5427_v54 }
 0x6cc   :  { %v12758_v24 = vrot.slane %v12709_v45, %v15323_v36  ;;  %v5166_v31 = vmul.f32 %v15410_v47, %v12501_v12  ;;  %v15411_v63 = vunpack.c.h.bf16 %v15409_v22  ;;  %v15413_v54 = vunpack.c.l.bf16 %v15412_v61 }
 0x6cd   :  { %15405 = vst [vmem:[#allocation107_spill] sm:$0xff] %v12733_v49  ;;  %15407 = vst [vmem:[#allocation19_spill] sm:$0xff] %v12740_v52  ;;  %6337 = vmatmul.mubr.bf16.vlgmr.msra.gmra.mrb[52].mxu1 %v6051_v37  ;;  %v15414_v25 = vunpack.c.h.bf16 %v15412_v61  ;;  %v15417_v57 = vunpack.c.l.bf16 %v15416_v10  ;;  %v15418_v11 = vunpack.c.h.bf16 %v15416_v10  ;;  %v15419_v6 = vmov 0   ;;  %v15421_v10 = vld [vmem:[#allocation95_spill] sm:$0xff] }
 0x6ce   :  { %v5167_v9 = vmul.f32 %v15411_v63, %v12501_v12  ;;  %v5170_v62 = vmul.f32 %v15413_v54, %v12504_v19  ;;  %6346 = vmatprep.mubr.bf16.mxu1 %v15419_v6  ;;  %v5178_v12 = vadd.f32 %v5162_v1, %v5146_v48  ;;  %v5179_v29 = vadd.f32 %v5163_v43, %v5147_v18 }
 0x6cf   :  { %v5171_v59 = vmul.f32 %v15414_v25, %v12504_v19  ;;  %v5174_v32 = vmul.f32 %v15417_v57, %v15415_v56  ;;  %v5175_v30 = vmul.f32 %v15418_v11, %v15415_v56  ;;  %v5182_v37 = vadd.f32 %v5166_v31, %v5150_v46  ;;  %v15420_v57 = vld [vmem:[#allocation13_spill] sm:$0xff] }
 0x6d0   :  { %v5183_v38 = vadd.f32 %v5167_v9, %v5151_v8  ;;  %v5186_v47 = vadd.f32 %v5170_v62, %v5154_v23  ;;  %v5633_v19 = vcombine.high %v12743_v7, %v12743_v7  ;;  %v12786_v25 = vrot.slane %v12743_v7, %v15323_v36  ;;  %v15428_v9 = vld [vmem:[#allocation125_spill] sm:$0xff]  ;;  %v15429_v62 = vld [vmem:[#allocation124_spill] sm:$0xff] }
 0x6d1   :  { %v5187_v63 = vadd.f32 %v5171_v59, %v5155_v20  ;;  %v5190_v54 = vadd.f32 %v5174_v32, %v5158_v2  ;;  %v5191_v27 = vadd.f32 %v5175_v30, %v5159_v50  ;;  %v15422_v56 = vunpack.c.l.bf16 %v15421_v10  ;;  %v15424_v2 = vld [vmem:[#allocation120_spill] sm:$0xff]  ;;  %v15425_v50 = vld [vmem:[#allocation122_spill] sm:$0xff] }
 0x6d2   :  { %v15423_v48 = vunpack.c.h.bf16 %v15421_v10  ;;  %v5194_v46 = vadd.f32 %v5186_v47, %v5178_v12  ;;  %v15426_v1 = vunpack.c.l.bf16 %v15425_v50  ;;  %v15427_v7 = vunpack.c.h.bf16 %v15425_v50 }
 0x6d3   :  { %v5369_v11 = vmul.f32 %v15422_v56, %v15420_v57  ;;  %v5195_v8 = vadd.f32 %v5187_v63, %v5179_v29  ;;  %v5198_v23 = vadd.f32 %v5190_v54, %v5182_v37  ;;  %v5199_v20 = vadd.f32 %v5191_v27, %v5183_v38  ;;  %v15432_v37 = vld [vmem:[#allocation62_spill] sm:$0xff]  ;;  %v15433_v27 = vld [vmem:[#allocation99_spill] sm:$0xff]  ;;  %v15436_v56 = vld [vmem:[#allocation89_spill] sm:$0xff] }
 0x6d4   :  { %v5370_v18 = vmul.f32 %v15423_v48, %v15420_v57  ;;  %v5373_v43 = vmul.f32 %v15426_v1, %v15424_v2  ;;  %v5374_v31 = vmul.f32 %v15427_v7, %v15424_v2  ;;  %v15430_v59 = vunpack.c.l.bf16 %v15429_v62  ;;  %v15437_v48 = vld [vmem:[#allocation123_spill] sm:$0xff] }
 0x6d5   :  { %v15431_v30 = vunpack.c.h.bf16 %v15429_v62  ;;  %v5202_v12 = vadd.f32 %v5198_v23, %v5194_v46  ;;  %v5203_v29 = vadd.f32 %v5199_v20, %v5195_v8  ;;  %v15434_v38 = vunpack.c.l.bf16 %v15433_v27 }
 0x6d6   :  { %v5381_v32 = vmul.f32 %v15430_v59, %v15428_v9  ;;  %v15435_v63 = vunpack.c.h.bf16 %v15433_v27  ;;  %v15438_v2 = vunpack.c.l.bf16 %v15437_v48  ;;  %v15439_v7 = vunpack.c.h.bf16 %v15437_v48 }
 0x6d7   :  { %v5382_v57 = vmul.f32 %v15431_v30, %v15428_v9  ;;  %v5385_v47 = vmul.f32 %v15434_v38, %v15432_v37  ;;  %v15440_v9 = vld [vmem:[#allocation101_spill] sm:$0xff]  ;;  %v5634_v10 = vcombine.high %v12748_v58, %v12748_v58 }
 0x6d8   :  { %v5386_v54 = vmul.f32 %v15435_v63, %v15432_v37  ;;  %v5389_v1 = vmul.f32 %v15438_v2, %v15436_v56  ;;  %v5390_v59 = vmul.f32 %v15439_v7, %v15436_v56  ;;  %v15441_v46 = vunpack.c.l.bf16 %v15440_v9  ;;  %v15443_v30 = vld [vmem:[#allocation65_spill] sm:$0xff]  ;;  %v15444_v37 = vld [vmem:[#allocation12_spill] sm:$0xff]  ;;  %v15445_v2 = vld [vmem:[#allocation98_spill] sm:$0xff] }
 0x6d9   :  { %v15442_v23 = vunpack.c.h.bf16 %v15440_v9  ;;  %v12825_v38 = vadd.f32 %v5202_v12, %v15443_v30  ;;  %v12828_v63 = vadd.f32 %v5203_v29, %v15444_v37  ;;  %v15446_v27 = vunpack.c.l.bf16 %v15445_v2 }
 0x6da   :  { %v5393_v8 = vmul.f32 %v15441_v46, %v12593_v0  ;;  %v15447_v56 = vunpack.c.h.bf16 %v15445_v2  ;;  %v5397_v46 = vadd.f32 %v5381_v32, %v12667_v13  ;;  %v5398_v9 = vadd.f32 %v5382_v57, %v12672_v41 }
 0x6db   :  { %v5394_v20 = vmul.f32 %v15442_v23, %v12593_v0  ;;  %v5377_v62 = vmul.f32 %v15446_v27, %v12578_v26  ;;  %v5405_v0 = vadd.f32 %v5389_v1, %v5373_v43  ;;  %v5406_v23 = vadd.f32 %v5390_v59, %v5374_v31 }
 0x6dc   :  { %v5378_v7 = vmul.f32 %v15447_v56, %v12578_v26  ;;  %v5401_v30 = vadd.f32 %v5385_v47, %v5369_v11  ;;  %v5402_v50 = vadd.f32 %v5386_v54, %v5370_v18  ;;  %v12841_v27 = vrot.slane %v5631_v14, %v15323_v36  ;;  %v15448_v26 = vld [vmem:[#allocation48_spill] sm:$0xff] }
 0x6dd   :  { %v5409_v29 = vadd.f32 %v5393_v8, %v5377_v62  ;;  %v15449_v56 = vunpack.c.l.bf16 %v15448_v26  ;;  %v5413_v31 = vadd.f32 %v5405_v0, %v5397_v46  ;;  %v5414_v32 = vadd.f32 %v5406_v23, %v5398_v9 }
 0x6de   :  { %v5410_v37 = vadd.f32 %v5394_v20, %v5378_v7  ;;  %v12850_v62 = vrot.slane %v12748_v58, %v15323_v36  ;;  %v15450_v54 = vcombine.high %v12709_v45, %v12709_v45  ;;  %v12867_v46 = vrot.slane %v5633_v19, %v15323_v36 }
 0x6df   :  { %v12846_v2 = vmul.f32 %v15449_v56, %v12754_v35  ;;  %v5417_v11 = vadd.f32 %v5409_v29, %v5401_v30  ;;  %v15453_v30 = vld [vmem:[#allocation80_spill] sm:$0xff] }
 0x6e0   :  { %v5418_v18 = vadd.f32 %v5410_v37, %v5402_v50  ;;  %v12857_v1 = vrot.slane %v15450_v54, %v15323_v36  ;;  %15452 = vst [vmem:[#allocation14_spill] sm:$0xff] %v12867_v46  ;;  %v15454_v29 = vunpack.c.l.bf16 %v15453_v30 }
 0x6e1   :  { %v5421_v50 = vadd.f32 %v5417_v11, %v5413_v31 }
 0x6e2   :  { %v5422_v9 = vadd.f32 %v5418_v18, %v5414_v32  ;;  %v12878_v37 = vmul.f32 %v15454_v29, %v12754_v35 }
 0x6e3   :  { %v5425_v0 = vadd.f32 %v5421_v50, %v12652_v60 }
 0x6e4   :  { %v8189_v48 = vpop.f32.mrb[56].mxu0  ;;  %v5426_v23 = vadd.f32 %v5422_v9, %v12654_v15  ;;  %15455 = vst [vmem:[#allocation17_spill] sm:$0xff] %v12878_v37 }
 0x6e5   :  { %v8190_v12 = vpop.f32.mrb[57].mxu0 }
 0x6e6   :  { %v8191_v13 = vadd.f32 %v8190_v12, %v8189_v48  ;;  %v8192_v41 = vpop.f32.mrb[58].mxu0  ;;  %v15451_v48 = vunpack.c.h.bf16 %v15448_v26  ;;  %v12873_v12 = vrot.slane %v5634_v10, %v15323_v36  ;;  %v15456_v26 = vunpack.c.h.bf16 %v15453_v30 }
 0x6e7   :  { %v8193_v43 = vpop.f32.mrb[59].mxu0 }
 0x6e8   :  { %v5740_v57 = vcombine.high %v8191_v13, %v8191_v13  ;;  %v5747_v14 = vrot.slane %v8191_v13, %v15312_v42  ;;  %v8194_v47 = vadd.f32 %v8193_v43, %v8192_v41  ;;  %v12862_v59 = vmul.f32 %v15451_v48, %v12754_v35  ;;  %v15460_v43 = vld [vmem:[#allocation128_spill] sm:$0xff]  ;;  %v15464_v48 = vld [vmem:[#allocation41_spill] sm:$0xff] }
 0x6e9   :  { %v12883_v56 = vmul.f32 %v15456_v26, %v12754_v35  ;;  %v15461_v31 = vunpack.c.l.bf16 %v15460_v43  ;;  %v15465_v50 = vunpack.c.l.bf16 %v15464_v48 }
 0x6ea   :  { %v5754_v58 = vrot.slane %v5740_v57, %v15312_v42  ;;  %v5755_v8 = vcombine.high %v5747_v14, %v5747_v14  ;;  %v5763_v20 = vrot.slane %v5747_v14, %v15312_v42  ;;  %v5894_v7 = vcombine.high %v8194_v47, %v8194_v47 }
 0x6eb   :  { %v5901_v45 = vrot.slane %v8194_v47, %v15312_v42  ;;  %15457 = vst [vmem:[#allocation117_spill] sm:$0xff] %v12883_v56  ;;  %v5525_v32 = vmul.f32 %v15461_v31, %v12703_v44  ;;  %v15463_v14 = vunpack.c.h.bf16 %v15460_v43  ;;  %v15479_v56 = vld [vmem:[#allocation44_spill] sm:$0xff] }
 0x6ec   :  { %v5756_v19 = vcombine.high %v5754_v58, %v5754_v58  ;;  %v12885_v13 = vpop.f32.mrb[60].mxu0  ;;  %v5777_v60 = vrot.slane %v5755_v8, %v15312_v42  ;;  %v5792_v15 = vrot.slane %v5763_v20, %v15323_v36  ;;  %v5908_v10 = vrot.slane %v5894_v7, %v15312_v42 }
 0x6ed   :  { %15458 = vst [vmem:[#allocation57_spill] sm:$0xff] %v12885_v13  ;;  %v12890_v41 = vpop.f32.mrb[61].mxu0  ;;  %v5770_v11 = vrot.slane %v5754_v58, %v15312_v42  ;;  %v5909_v18 = vcombine.high %v5901_v45, %v5901_v45  ;;  %v5917_v35 = vrot.slane %v5901_v45, %v15312_v42  ;;  %v5526_v47 = vmul.f32 %v15463_v14, %v12703_v44  ;;  %v15468_v45 = vld [vmem:[#allocation69_spill] sm:$0xff]  ;;  %v15474_v13 = vld [vmem:[#allocation71_spill] sm:$0xff] }
 0x6ee   :  { %15459 = vst [vmem:[#allocation106_spill] sm:$0xff] %v12890_v41  ;;  %v12897_v57 = vpop.f32.mrb[62].mxu0  ;;  %v5784_v54 = vrot.slane %v5756_v19, %v15312_v42  ;;  %v12905_v9 = vmul.f32 %v15465_v50, %v5792_v15  ;;  %v15466_v8 = vunpack.c.h.bf16 %v15464_v48  ;;  %v15469_v30 = vunpack.c.l.bf16 %v15468_v45  ;;  %v15471_v19 = vld [vmem:[#allocation70_spill] sm:$0xff] }
 0x6ef   :  { %15462 = vst [vmem:[#allocation20_spill] sm:$0xff] %v12897_v57  ;;  %v12911_v58 = vpop.f32.mrb[63].mxu0  ;;  %v5785_v26 = vcombine.high %v5763_v20, %v5763_v20  ;;  %v15470_v43 = vunpack.c.h.bf16 %v15468_v45  ;;  %v15472_v14 = vunpack.c.l.bf16 %v15471_v19  ;;  %v15473_v48 = vunpack.c.h.bf16 %v15471_v19 }
 0x6f0   :  { %v12909_v7 = vmul.f32 %v15466_v8, %v5792_v15  ;;  %15467 = vst [vmem:[#allocation108_spill] sm:$0xff] %v12911_v58  ;;  %v5529_v29 = vmul.f32 %v15469_v30, %v12706_v28  ;;  %v5787_v57 = vcombine.high %v5777_v60, %v5777_v60  ;;  %v5910_v41 = vcombine.high %v5908_v10, %v5908_v10 }
 0x6f1   :  { %v5530_v31 = vmul.f32 %v15470_v43, %v12706_v28  ;;  %v5533_v50 = vmul.f32 %v15472_v14, %v12723_v33  ;;  %v5534_v8 = vmul.f32 %v15473_v48, %v12723_v33  ;;  %v5924_v58 = vrot.slane %v5908_v10, %v15312_v42  ;;  %v15477_v10 = vld [vmem:[#allocation30_spill] sm:$0xff] }
 0x6f2   :  { %v15475_v30 = vunpack.c.l.bf16 %v15474_v13  ;;  %v5786_v61 = vcombine.high %v5770_v11, %v5770_v11  ;;  %v5931_v45 = vrot.slane %v5909_v18, %v15312_v42  ;;  %v12931_v43 = vrot.slane %v5917_v35, %v15323_v36 }
 0x6f3   :  { %v15476_v14 = vunpack.c.h.bf16 %v15474_v13  ;;  %v5788_v19 = vcombine.high %v5784_v54, %v5784_v54  ;;  %v12937_v48 = vrot.slane %v5777_v60, %v15323_v36  ;;  %v5939_v22 = vcombine.high %v5917_v35, %v5917_v35 }
 0x6f4   :  { %v5537_v20 = vmul.f32 %v15475_v30, %v12712_v17  ;;  %v15478_v53 = vunpack.c.l.bf16 %v15477_v10  ;;  %v12943_v30 = vrot.slane %v5785_v26, %v15323_v36  ;;  %v5938_v18 = vrot.slane %v5910_v41, %v15312_v42 }
 0x6f5   :  { %v5538_v40 = vmul.f32 %v15476_v14, %v12712_v17  ;;  %v5940_v3 = vcombine.high %v5924_v58, %v5924_v58  ;;  %v15480_v37 = vunpack.c.l.bf16 %v15479_v56  ;;  %v12951_v14 = vpop.f32.mrb[64].mxu0  ;;  %v12954_v60 = vrot.slane %v5787_v57, %v15323_v36 }
 0x6f6   :  { %v5541_v55 = vmul.f32 %v15478_v53, %v12726_v51  ;;  %15481 = vst [vmem:[#allocation21_spill] sm:$0xff] %v12951_v14  ;;  %v12957_v35 = vrot.slane %v5770_v11, %v15323_v36  ;;  %v12960_v53 = vrot.slane %v5784_v54, %v15323_v36  ;;  %v15482_v41 = vunpack.c.h.bf16 %v15479_v56  ;;  %v12967_v42 = vpop.f32.mrb[65].mxu0 }
 0x6f7   :  { %v12949_v13 = vmul.f32 %v15480_v37, %v12931_v43  ;;  %15483 = vst [vmem:[#allocation22_spill] sm:$0xff] %v12967_v42  ;;  %v12970_v37 = vrot.slane %v5786_v61, %v15323_v36  ;;  %v15484_v14 = vunpack.c.l.bf16 %v15378_v21  ;;  %v15486_v11 = vunpack.c.h.bf16 %v15378_v21  ;;  %v12980_v49 = vpop.f32.mrb[66].mxu0 }
 0x6f8   :  { %v12965_v26 = vmul.f32 %v15482_v41, %v12931_v43  ;;  %v5941_v54 = vcombine.high %v5931_v45, %v5931_v45  ;;  %15488 = vst [vmem:[#allocation61_spill] sm:$0xff] %v12980_v49  ;;  %v12983_v56 = vrot.slane %v5788_v19, %v15323_v36  ;;  %v12986_v41 = vrot.slane %v5931_v45, %v15323_v36 }
 0x6f9   :  { %v12974_v57 = vmul.f32 %v15484_v14, %v5792_v15  ;;  %v12978_v52 = vmul.f32 %v15486_v11, %v5792_v15  ;;  %v12989_v61 = vrot.slane %v5939_v22, %v15323_v36  ;;  %v12992_v42 = vrot.slane %v5924_v58, %v15323_v36  ;;  %v12994_v14 = vpop.f32.mrb[67].mxu0  ;;  %v15491_v58 = vld [vmem:[#allocation33_spill] sm:$0xff] }
 0x6fa   :  { %15489 = vst [vmem:[#allocation60_spill] sm:$0xff] %v12994_v14  ;;  %v5942_v21 = vcombine.high %v5938_v18, %v5938_v18  ;;  %v12997_v15 = vrot.slane %v5938_v18, %v15323_v36  ;;  %v13000_v11 = vrot.slane %v5940_v3, %v15323_v36  ;;  %v5429_v19 = vadd.f32 %v5425_v0, %v12825_v38 }
 0x6fb   :  { %15485 = vst [vmem:[#allocation10_spill] sm:$0xff] %v12974_v57  ;;  %15487 = vst [vmem:[#allocation23_spill] sm:$0xff] %v12978_v52  ;;  %v5430_v45 = vadd.f32 %v5426_v23, %v12828_v63  ;;  %v15490_v22 = vunpack.c.h.bf16 %v15477_v10  ;;  %v15492_v52 = vunpack.c.l.bf16 %v15491_v58  ;;  %v15493_v14 = vunpack.c.h.bf16 %v15491_v58  ;;  %v15496_v63 = vld [vmem:[#allocation73_spill] sm:$0xff] }
 0x6fc   :  { %v13014_v33 = vrot.slane %v5941_v54, %v15323_v36  ;;  %v15494_v3 = vunpack.c.l.bf16 %v15381_v5  ;;  %v15497_v0 = vunpack.c.l.bf16 %v15496_v63  ;;  %v15498_v10 = vunpack.c.h.bf16 %v15496_v63  ;;  %v15499_v5 = vld [vmem:[#allocation76_spill] sm:$0xff] }
 0x6fd   :  { %v5542_v49 = vmul.f32 %v15490_v22, %v12726_v51  ;;  %v5545_v57 = vmul.f32 %v15492_v52, %v12729_v16  ;;  %v5546_v18 = vmul.f32 %v15493_v14, %v12729_v16  ;;  %v6052_v22 = vpack.c.bf16 %v5430_v45, %v5429_v19  ;;  %v15510_v19 = vld [vmem:[#allocation34_spill] sm:$0xff] }
 0x6fe   :  { %v13019_v38 = vmul.f32 %v15494_v3, %v12931_v43  ;;  %v5549_v23 = vmul.f32 %v15497_v0, %v12736_v4  ;;  %v5550_v52 = vmul.f32 %v15498_v10, %v12736_v4  ;;  %v5553_v58 = vadd.f32 %v5537_v20, %v12716_v34  ;;  %v15508_v20 = vld [vmem:[#allocation39_spill] sm:$0xff] }
 0x6ff   :  { %v5557_v14 = vadd.f32 %v5541_v55, %v5525_v32  ;;  %v5561_v16 = vadd.f32 %v5545_v57, %v5529_v29  ;;  %v5558_v54 = vadd.f32 %v5542_v49, %v5526_v47  ;;  %v5562_v51 = vadd.f32 %v5546_v18, %v5530_v31  ;;  %6347 = vmatmul.mubr.bf16.gmra.mrb[56].mxu1 %v6052_v22  ;;  %v15502_v47 = vld [vmem:[#allocation40_spill] sm:$0xff] }
 0x700   :  { %15495 = vst [vmem:[#allocation110_spill] sm:$0xff] %v13019_v38  ;;  %v5565_v17 = vadd.f32 %v5549_v23, %v5533_v50  ;;  %v5566_v28 = vadd.f32 %v5550_v52, %v5534_v8  ;;  %v13029_v3 = vrot.slane %v5942_v21, %v15323_v36  ;;  %v5554_v38 = vadd.f32 %v5538_v40, %v12720_v39  ;;  %v15513_v22 = vld [vmem:[#allocation36_spill] sm:$0xff]  ;;  %v15520_v36 = vld [vmem:[#allocation129_spill] sm:$0xff] }
 0x701   :  { %v5569_v0 = vadd.f32 %v5561_v16, %v5553_v58  ;;  %v15500_v63 = vunpack.c.l.bf16 %v15499_v5  ;;  %6356 = vmatprep.mubr.bf16.mxu1 %v15419_v6  ;;  %v15501_v49 = vunpack.c.h.bf16 %v15499_v5  ;;  %v15503_v29 = vunpack.c.l.bf16 %v15502_v47  ;;  %v15505_v16 = vld [vmem:[#allocation118_spill] sm:$0xff] }
 0x702   :  { %v5573_v34 = vadd.f32 %v5565_v17, %v5557_v14  ;;  %v5574_v55 = vadd.f32 %v5566_v28, %v5558_v54  ;;  %v15504_v40 = vunpack.c.h.bf16 %v15502_v47  ;;  %v15506_v50 = vunpack.c.l.bf16 %v15505_v16 }
 0x703   :  { %v5679_v10 = vmul.f32 %v15500_v63, %v12786_v25  ;;  %v5680_v32 = vmul.f32 %v15501_v49, %v12786_v25  ;;  %v5683_v31 = vmul.f32 %v15503_v29, %v12841_v27  ;;  %v15507_v17 = vunpack.c.h.bf16 %v15505_v16 }
 0x704   :  { %v5684_v39 = vmul.f32 %v15504_v40, %v12841_v27  ;;  %v5691_v8 = vmul.f32 %v15506_v50, %v12758_v24  ;;  %v15509_v5 = vunpack.c.l.bf16 %v15508_v20  ;;  %v5570_v21 = vadd.f32 %v5562_v51, %v5554_v38  ;;  %v15517_v38 = vld [vmem:[#allocation37_spill] sm:$0xff] }
 0x705   :  { %v5692_v28 = vmul.f32 %v15507_v17, %v12758_v24  ;;  %v15511_v45 = vunpack.c.l.bf16 %v15510_v19  ;;  %v15512_v23 = vunpack.c.h.bf16 %v15508_v20  ;;  %v15514_v58 = vunpack.c.l.bf16 %v15513_v22 }
 0x706   :  { %v5695_v57 = vmul.f32 %v15509_v5, %v12850_v62  ;;  %v15515_v54 = vunpack.c.h.bf16 %v15510_v19  ;;  %v15516_v49 = vunpack.c.h.bf16 %v15513_v22  ;;  %v15518_v47 = vunpack.c.l.bf16 %v15517_v38 }
 0x707   :  { %v5687_v18 = vmul.f32 %v15511_v45, %v12867_v46  ;;  %v5696_v52 = vmul.f32 %v15512_v23, %v12850_v62  ;;  %v5699_v14 = vmul.f32 %v15514_v58, %v12857_v1  ;;  %v15519_v40 = vunpack.c.h.bf16 %v15517_v38 }
 0x708   :  { %v5688_v63 = vmul.f32 %v15515_v54, %v12867_v46  ;;  %v5700_v51 = vmul.f32 %v15516_v49, %v12857_v1  ;;  %v5703_v29 = vmul.f32 %v15518_v47, %v12873_v12  ;;  %v5577_v50 = vadd.f32 %v5573_v34, %v5569_v0 }
 0x709   :  { %v5704_v16 = vmul.f32 %v15519_v40, %v12873_v12  ;;  %v5578_v17 = vadd.f32 %v5574_v55, %v5570_v21  ;;  %v5707_v20 = vadd.f32 %v5691_v8, %v12846_v2  ;;  %v5715_v5 = vadd.f32 %v5699_v14, %v5683_v31  ;;  %v15523_v2 = vld [vmem:[#allocation38_spill] sm:$0xff] }
 0x70a   :  { %v5708_v19 = vadd.f32 %v5692_v28, %v12862_v59  ;;  %v5711_v45 = vadd.f32 %v5695_v57, %v5679_v10  ;;  %v5716_v23 = vadd.f32 %v5700_v51, %v5684_v39  ;;  %v5719_v58 = vadd.f32 %v5703_v29, %v5687_v18  ;;  %v15526_v39 = vld [vmem:[#allocation130_spill] sm:$0xff] }
 0x70b   :  { %v5712_v22 = vadd.f32 %v5696_v52, %v5680_v32  ;;  %v5720_v54 = vadd.f32 %v5704_v16, %v5688_v63  ;;  %v5723_v49 = vadd.f32 %v5715_v5, %v5707_v20  ;;  %v15521_v47 = vunpack.c.l.bf16 %v15520_v36  ;;  %v15531_v14 = vld [vmem:[#allocation42_spill] sm:$0xff] }
 0x70c   :  { %v5724_v6 = vadd.f32 %v5716_v23, %v5708_v19  ;;  %v15522_v0 = vunpack.c.h.bf16 %v15520_v36  ;;  %v15524_v55 = vunpack.c.l.bf16 %v15523_v2  ;;  %v15525_v59 = vunpack.c.h.bf16 %v15523_v2  ;;  %v15529_v36 = vld [vmem:[#allocation45_spill] sm:$0xff]  ;;  %v15535_v20 = vld [vmem:[#allocation126_spill] sm:$0xff] }
 0x70d   :  { %v5833_v46 = vmul.f32 %v15521_v47, %v12937_v48  ;;  %v5727_v32 = vadd.f32 %v5719_v58, %v5711_v45  ;;  %v15527_v8 = vunpack.c.l.bf16 %v15526_v39  ;;  %v15528_v57 = vunpack.c.h.bf16 %v15526_v39  ;;  %v15538_v58 = vld [vmem:[#allocation43_spill] sm:$0xff] }
 0x70e   :  { %v5834_v34 = vmul.f32 %v15522_v0, %v12937_v48  ;;  %v5837_v31 = vmul.f32 %v15524_v55, %v12943_v30  ;;  %v5838_v10 = vmul.f32 %v15525_v59, %v12943_v30  ;;  %v15530_v18 = vunpack.c.l.bf16 %v15529_v36 }
 0x70f   :  { %v5845_v28 = vmul.f32 %v15527_v8, %v12957_v35  ;;  %v5846_v21 = vmul.f32 %v15528_v57, %v12957_v35  ;;  %v15532_v63 = vunpack.c.l.bf16 %v15531_v14  ;;  %v15533_v38 = vunpack.c.h.bf16 %v15531_v14 }
 0x710   :  { %v5849_v52 = vmul.f32 %v15530_v18, %v12960_v53  ;;  %v15534_v40 = vunpack.c.h.bf16 %v15529_v36  ;;  %v15536_v5 = vunpack.c.l.bf16 %v15535_v20  ;;  %v15537_v45 = vunpack.c.h.bf16 %v15535_v20  ;;  %v15541_v20 = vld [vmem:[#allocation88_spill] sm:$0xff] }
 0x711   :  { %v5841_v51 = vmul.f32 %v15532_v63, %v12954_v60  ;;  %v5842_v29 = vmul.f32 %v15533_v38, %v12954_v60  ;;  %v15539_v47 = vunpack.c.l.bf16 %v15538_v58  ;;  %v15540_v2 = vunpack.c.h.bf16 %v15538_v58 }
 0x712   :  { %v5850_v16 = vmul.f32 %v15534_v40, %v12960_v53  ;;  %v5853_v19 = vmul.f32 %v15536_v5, %v12970_v37  ;;  %v5854_v23 = vmul.f32 %v15537_v45, %v12970_v37  ;;  %v5861_v59 = vadd.f32 %v5845_v28, %v12905_v9  ;;  %v15544_v9 = vld [vmem:[#allocation100_spill] sm:$0xff]  ;;  %v15547_v28 = vld [vmem:[#allocation46_spill] sm:$0xff] }
 0x713   :  { %v5857_v0 = vmul.f32 %v15539_v47, %v12983_v56  ;;  %v5858_v55 = vmul.f32 %v15540_v2, %v12983_v56  ;;  %v5728_v39 = vadd.f32 %v5720_v54, %v5712_v22  ;;  %v5862_v8 = vadd.f32 %v5846_v21, %v12909_v7 }
 0x714   :  { %v5865_v57 = vadd.f32 %v5849_v52, %v5833_v46  ;;  %v5869_v36 = vadd.f32 %v5853_v19, %v5837_v31  ;;  %v5866_v18 = vadd.f32 %v5850_v16, %v5834_v34  ;;  %v5870_v14 = vadd.f32 %v5854_v23, %v5838_v10 }
 0x715   :  { %v5873_v63 = vadd.f32 %v5857_v0, %v5841_v51  ;;  %v5874_v38 = vadd.f32 %v5858_v55, %v5842_v29  ;;  %v15542_v5 = vunpack.c.l.bf16 %v15541_v20  ;;  %v15543_v58 = vunpack.c.h.bf16 %v15541_v20  ;;  %v15549_v51 = vld [vmem:[#allocation11_spill] sm:$0xff]  ;;  %v15552_v0 = vld [vmem:[#allocation109_spill] sm:$0xff] }
 0x716   :  { %v5877_v40 = vadd.f32 %v5869_v36, %v5861_v59  ;;  %v15545_v22 = vunpack.c.l.bf16 %v15544_v9  ;;  %v5878_v7 = vadd.f32 %v5870_v14, %v5862_v8  ;;  %v15546_v34 = vunpack.c.h.bf16 %v15544_v9 }
 0x717   :  { %v5987_v45 = vmul.f32 %v15542_v5, %v12986_v41  ;;  %v5988_v47 = vmul.f32 %v15543_v58, %v12986_v41  ;;  %v5881_v46 = vadd.f32 %v5873_v63, %v5865_v57  ;;  %v5882_v31 = vadd.f32 %v5874_v38, %v5866_v18  ;;  %v15555_v18 = vld [vmem:[#allocation119_spill] sm:$0xff]  ;;  %v15558_v5 = vld [vmem:[#allocation72_spill] sm:$0xff] }
 0x718   :  { %v5991_v54 = vmul.f32 %v15545_v22, %v12989_v61  ;;  %v5992_v10 = vmul.f32 %v15546_v34, %v12989_v61  ;;  %v15548_v21 = vunpack.c.l.bf16 %v15547_v28  ;;  %v15550_v29 = vunpack.c.l.bf16 %v15549_v51 }
 0x719   :  { %v15551_v19 = vunpack.c.h.bf16 %v15549_v51  ;;  %v15553_v2 = vunpack.c.l.bf16 %v15552_v0  ;;  %v5885_v59 = vadd.f32 %v5881_v46, %v5877_v40  ;;  %v5886_v8 = vadd.f32 %v5882_v31, %v5878_v7 }
 0x71a   :  { %v5995_v52 = vmul.f32 %v15548_v21, %v13014_v33  ;;  %v5999_v16 = vmul.f32 %v15550_v29, %v12992_v42  ;;  %v15554_v57 = vunpack.c.h.bf16 %v15552_v0  ;;  %v15556_v14 = vunpack.c.l.bf16 %v15555_v18 }
 0x71b   :  { %v6000_v23 = vmul.f32 %v15551_v19, %v12992_v42  ;;  %v6003_v55 = vmul.f32 %v15553_v2, %v12997_v15  ;;  %v15557_v38 = vunpack.c.h.bf16 %v15555_v18  ;;  %v15559_v58 = vunpack.c.l.bf16 %v15558_v5 }
 0x71c   :  { %v6004_v36 = vmul.f32 %v15554_v57, %v12997_v15  ;;  %v6007_v63 = vmul.f32 %v15556_v14, %v13000_v11  ;;  %v15560_v40 = vunpack.c.h.bf16 %v15558_v5  ;;  %v6015_v7 = vadd.f32 %v5999_v16, %v12949_v13  ;;  %v15562_v13 = vld [vmem:[#allocation74_spill] sm:$0xff] }
 0x71d   :  { %v6008_v20 = vmul.f32 %v15557_v38, %v13000_v11  ;;  %v6011_v9 = vmul.f32 %v15559_v58, %v13029_v3  ;;  %v5889_v46 = vadd.f32 %v5885_v59, %v5577_v50  ;;  %v5890_v31 = vadd.f32 %v5886_v8, %v5578_v17  ;;  %v15565_v59 = vld [vmem:[#allocation75_spill] sm:$0xff] }
 0x71e   :  { %v6012_v22 = vmul.f32 %v15560_v40, %v13029_v3  ;;  %v15561_v34 = vunpack.c.h.bf16 %v15547_v28  ;;  %v6016_v51 = vadd.f32 %v6000_v23, %v12965_v26  ;;  %v6019_v29 = vadd.f32 %v6003_v55, %v5987_v45  ;;  %v15564_v28 = vld [vmem:[#allocation121_spill] sm:$0xff]  ;;  %v15572_v23 = vld [vmem:[#allocation16_spill] sm:$0xff]  ;;  %v15573_v55 = vld [vmem:[#allocation78_spill] sm:$0xff] }
 0x71f   :  { %v6023_v19 = vadd.f32 %v6007_v63, %v5991_v54  ;;  %v6024_v0 = vadd.f32 %v6008_v20, %v5992_v10  ;;  %v6027_v2 = vadd.f32 %v6011_v9, %v5995_v52  ;;  %v5731_v57 = vadd.f32 %v5727_v32, %v5723_v49  ;;  %v15568_v49 = vld [vmem:[#allocation97_spill] sm:$0xff] }
 0x720   :  { %v5996_v21 = vmul.f32 %v15561_v34, %v13014_v33  ;;  %v5732_v18 = vadd.f32 %v5728_v39, %v5724_v6  ;;  %v6020_v14 = vadd.f32 %v6004_v36, %v5988_v47  ;;  %v15563_v50 = vunpack.c.l.bf16 %v15562_v13  ;;  %v15569_v6 = vld [vmem:[#allocation77_spill] sm:$0xff]  ;;  %v15577_v34 = vld [vmem:[#allocation79_spill] sm:$0xff] }
 0x721   :  { %v6031_v5 = vadd.f32 %v6023_v19, %v6015_v7  ;;  %v6032_v58 = vadd.f32 %v6024_v0, %v6016_v51  ;;  %v6035_v40 = vadd.f32 %v6027_v2, %v6019_v29  ;;  %v15566_v8 = vunpack.c.l.bf16 %v15565_v59  ;;  %v15576_v7 = vld [vmem:[#allocation105_spill] sm:$0xff] }
 0x722   :  { %v6028_v38 = vadd.f32 %v6012_v22, %v5996_v21  ;;  %v5527_v17 = vmul.f32 %v15563_v50, %v12703_v44  ;;  %v15567_v45 = vunpack.c.h.bf16 %v15565_v59  ;;  %v15570_v32 = vunpack.c.l.bf16 %v15569_v6  ;;  %v15580_v0 = vld [vmem:[#allocation85_spill] sm:$0xff] }
 0x723   :  { %v5531_v26 = vmul.f32 %v15566_v8, %v15564_v28  ;;  %v6039_v47 = vadd.f32 %v6035_v40, %v6031_v5  ;;  %v15571_v10 = vunpack.c.h.bf16 %v15569_v6  ;;  %v15574_v36 = vunpack.c.l.bf16 %v15573_v55  ;;  %v15582_v5 = vld [vmem:[#allocation103_spill] sm:$0xff]  ;;  %v15583_v40 = vld [vmem:[#allocation49_spill] sm:$0xff] }
 0x724   :  { %v6036_v16 = vadd.f32 %v6028_v38, %v6020_v14  ;;  %v5532_v54 = vmul.f32 %v15567_v45, %v15564_v28  ;;  %v5539_v39 = vmul.f32 %v15570_v32, %v15568_v49  ;;  %v15575_v20 = vunpack.c.h.bf16 %v15573_v55  ;;  %v15588_v32 = vld [vmem:[#allocation107_spill] sm:$0xff] }
 0x725   :  { %v5540_v52 = vmul.f32 %v15571_v10, %v15568_v49  ;;  %v5543_v63 = vmul.f32 %v15574_v36, %v15572_v23  ;;  %v15578_v21 = vunpack.c.l.bf16 %v15577_v34  ;;  %v15579_v29 = vunpack.c.h.bf16 %v15577_v34 }
 0x726   :  { %v5544_v9 = vmul.f32 %v15575_v20, %v15572_v23  ;;  %v6040_v22 = vadd.f32 %v6036_v16, %v6032_v58  ;;  %v15581_v2 = vunpack.c.l.bf16 %v15580_v0  ;;  %v6043_v38 = vadd.f32 %v6039_v47, %v5731_v57 }
 0x727   :  { %v5547_v51 = vmul.f32 %v15578_v21, %v15576_v7  ;;  %v5548_v19 = vmul.f32 %v15579_v29, %v15576_v7  ;;  %v15584_v50 = vunpack.c.l.bf16 %v15583_v40  ;;  %v15585_v58 = vunpack.c.h.bf16 %v15583_v40  ;;  %v15589_v7 = vld [vmem:[#allocation19_spill] sm:$0xff]  ;;  %v15601_v40 = vld [vmem:[#allocation56_spill] sm:$0xff] }
 0x728   :  { %v5551_v14 = vmul.f32 %v15581_v2, %v12736_v4  ;;  %v15586_v59 = vunpack.c.h.bf16 %v15580_v0  ;;  %v6044_v45 = vadd.f32 %v6040_v22, %v5732_v18  ;;  %v15587_v49 = vunpack.c.h.bf16 %v15562_v13  ;;  %v15590_v0 = vld [vmem:[#allocation47_spill] sm:$0xff]  ;;  %v15598_v2 = vld [vmem:[#allocation86_spill] sm:$0xff] }
 0x729   :  { %v5535_v28 = vmul.f32 %v15584_v50, %v15582_v5  ;;  %v5536_v16 = vmul.f32 %v15585_v58, %v15582_v5  ;;  %v5555_v10 = vadd.f32 %v5539_v39, %v15588_v32  ;;  %v5563_v57 = vadd.f32 %v5547_v51, %v5531_v26  ;;  %v15609_v32 = vld [vmem:[#allocation84_spill] sm:$0xff] }
 0x72a   :  { %v5552_v8 = vmul.f32 %v15586_v59, %v12736_v4  ;;  %v5528_v6 = vmul.f32 %v15587_v49, %v12703_v44  ;;  %v6047_v47 = vadd.f32 %v6043_v38, %v5889_v46  ;;  %v5564_v23 = vadd.f32 %v5548_v19, %v5532_v54  ;;  %v15592_v44 = vld [vmem:[#allocation82_spill] sm:$0xff]  ;;  %v15604_v59 = vld [vmem:[#allocation87_spill] sm:$0xff] }
 0x72b   :  { %v5567_v55 = vadd.f32 %v5551_v14, %v5535_v28  ;;  %v6048_v20 = vadd.f32 %v6044_v45, %v5890_v31  ;;  %v5556_v34 = vadd.f32 %v5540_v52, %v15589_v7  ;;  %v5559_v21 = vadd.f32 %v5543_v63, %v5527_v17  ;;  %v15595_v17 = vld [vmem:[#allocation83_spill] sm:$0xff] }
 0x72c   :  { %v5568_v36 = vadd.f32 %v5552_v8, %v5536_v16  ;;  %v5560_v29 = vadd.f32 %v5544_v9, %v5528_v6  ;;  %v15591_v4 = vunpack.c.h.bf16 %v15590_v0  ;;  %v5571_v22 = vadd.f32 %v5563_v57, %v5555_v10  ;;  %v15616_v0 = vld [vmem:[#allocation117_spill] sm:$0xff] }
 0x72d   :  { %v15593_v13 = vunpack.c.l.bf16 %v15592_v44  ;;  %v15594_v46 = vunpack.c.h.bf16 %v15592_v44  ;;  %v6053_v54 = vpack.c.bf16 %v6048_v20, %v6047_v47  ;;  %v5572_v31 = vadd.f32 %v5564_v23, %v5556_v34 }
 0x72e   :  { %v13212_v18 = vmul.f32 %v15591_v4, %v12931_v43  ;;  %v5575_v51 = vadd.f32 %v5567_v55, %v5559_v21  ;;  %v5576_v52 = vadd.f32 %v5568_v36, %v5560_v29  ;;  %v15596_v63 = vunpack.c.l.bf16 %v15595_v17  ;;  %v15615_v21 = vld [vmem:[#allocation17_spill] sm:$0xff] }
 0x72f   :  { %v5681_v39 = vmul.f32 %v15593_v13, %v12786_v25  ;;  %v5682_v26 = vmul.f32 %v15594_v46, %v12786_v25  ;;  %v15597_v43 = vunpack.c.h.bf16 %v15595_v17  ;;  %v15599_v14 = vunpack.c.l.bf16 %v15598_v2  ;;  %6357 = vmatmul.mubr.bf16.gmra.mrb[44].mxu1 %v6053_v54 }
 0x730   :  { %v5685_v9 = vmul.f32 %v15596_v63, %v12841_v27  ;;  %v15600_v5 = vunpack.c.h.bf16 %v15598_v2  ;;  %v15602_v50 = vunpack.c.l.bf16 %v15601_v40  ;;  %v15603_v58 = vunpack.c.h.bf16 %v15601_v40 }
 0x731   :  { %v5686_v19 = vmul.f32 %v15597_v43, %v12841_v27  ;;  %v5693_v38 = vmul.f32 %v15599_v14, %v12758_v24  ;;  %v15605_v27 = vunpack.c.l.bf16 %v15604_v59  ;;  %v15606_v45 = vunpack.c.h.bf16 %v15604_v59  ;;  %v15617_v43 = vld [vmem:[#allocation52_spill] sm:$0xff] }
 0x732   :  { %v5694_v25 = vmul.f32 %v15600_v5, %v12758_v24  ;;  %v5697_v28 = vmul.f32 %v15602_v50, %v12850_v62  ;;  %v5698_v16 = vmul.f32 %v15603_v58, %v12850_v62  ;;  %v15607_v6 = vmov 0   ;;  %v15608_v24 = vld [vmem:[#allocation14_spill] sm:$0xff] }
 0x733   :  { %v5701_v8 = vmul.f32 %v15605_v27, %v12857_v1  ;;  %v5702_v49 = vmul.f32 %v15606_v45, %v12857_v1  ;;  %6366 = vmatprep.mubr.bf16.mxu1 %v15607_v6  ;;  %v15610_v10 = vunpack.c.l.bf16 %v15609_v32  ;;  %v15611_v47 = vunpack.c.h.bf16 %v15609_v32  ;;  %v15612_v62 = vld [vmem:[#allocation54_spill] sm:$0xff] }
 0x734   :  { %v15613_v55 = vunpack.c.l.bf16 %v15612_v62  ;;  %v15614_v20 = vunpack.c.h.bf16 %v15612_v62  ;;  %v5579_v34 = vadd.f32 %v5575_v51, %v5571_v22  ;;  %v5580_v1 = vadd.f32 %v5576_v52, %v5572_v31  ;;  %v15620_v51 = vld [vmem:[#allocation90_spill] sm:$0xff] }
 0x735   :  { %v5689_v57 = vmul.f32 %v15610_v10, %v15608_v24  ;;  %v5690_v23 = vmul.f32 %v15611_v47, %v15608_v24  ;;  %v5709_v29 = vadd.f32 %v5693_v38, %v15615_v21  ;;  %v5710_v4 = vadd.f32 %v5694_v25, %v15616_v0  ;;  %v15629_v27 = vld [vmem:[#allocation94_spill] sm:$0xff]  ;;  %v15632_v24 = vld [vmem:[#allocation93_spill] sm:$0xff]  ;;  %v15635_v47 = vld [vmem:[#allocation96_spill] sm:$0xff] }
 0x736   :  { %v5705_v36 = vmul.f32 %v15613_v55, %v12873_v12  ;;  %v5706_v7 = vmul.f32 %v15614_v20, %v12873_v12  ;;  %v5713_v44 = vadd.f32 %v5697_v28, %v5681_v39  ;;  %v5714_v13 = vadd.f32 %v5698_v16, %v5682_v26 }
 0x737   :  { %v5717_v17 = vadd.f32 %v5701_v8, %v5685_v9  ;;  %v5718_v63 = vadd.f32 %v5702_v49, %v5686_v19  ;;  %v15618_v2 = vunpack.c.l.bf16 %v15617_v43  ;;  %v15619_v5 = vunpack.c.h.bf16 %v15617_v43  ;;  %v15623_v9 = vld [vmem:[#allocation91_spill] sm:$0xff] }
 0x738   :  { %v5721_v46 = vadd.f32 %v5705_v36, %v5689_v57  ;;  %v5722_v54 = vadd.f32 %v5706_v7, %v5690_v23  ;;  %v15621_v52 = vunpack.c.l.bf16 %v15620_v51  ;;  %v15622_v39 = vunpack.c.h.bf16 %v15620_v51  ;;  %v15638_v36 = vld [vmem:[#allocation10_spill] sm:$0xff]  ;;  %v15639_v7 = vld [vmem:[#allocation23_spill] sm:$0xff] }
 0x739   :  { %v5835_v14 = vmul.f32 %v15618_v2, %v12937_v48  ;;  %v5836_v12 = vmul.f32 %v15619_v5, %v12937_v48  ;;  %v15624_v19 = vunpack.c.l.bf16 %v15623_v9  ;;  %v15625_v40 = vunpack.c.h.bf16 %v15623_v9  ;;  %v15626_v48 = vld [vmem:[#allocation92_spill] sm:$0xff] }
 0x73a   :  { %v5729_v22 = vadd.f32 %v5721_v46, %v5713_v44  ;;  %v5730_v31 = vadd.f32 %v5722_v54, %v5714_v13  ;;  %v5839_v38 = vmul.f32 %v15621_v52, %v12943_v30  ;;  %v5840_v26 = vmul.f32 %v15622_v39, %v12943_v30  ;;  %v15643_v39 = vld [vmem:[#allocation122_spill] sm:$0xff] }
 0x73b   :  { %v5847_v25 = vmul.f32 %v15624_v19, %v12957_v35  ;;  %v5848_v50 = vmul.f32 %v15625_v40, %v12957_v35  ;;  %v15627_v28 = vunpack.c.l.bf16 %v15626_v48  ;;  %v15628_v16 = vunpack.c.h.bf16 %v15626_v48 }
 0x73c   :  { %v15630_v8 = vunpack.c.l.bf16 %v15629_v27  ;;  %v15631_v45 = vunpack.c.h.bf16 %v15629_v27  ;;  %v15633_v32 = vunpack.c.l.bf16 %v15632_v24  ;;  %v15634_v10 = vunpack.c.h.bf16 %v15632_v24 }
 0x73d   :  { %v5851_v58 = vmul.f32 %v15627_v28, %v12960_v53  ;;  %v5852_v59 = vmul.f32 %v15628_v16, %v12960_v53  ;;  %v15636_v23 = vunpack.c.l.bf16 %v15635_v47  ;;  %v15637_v62 = vunpack.c.h.bf16 %v15635_v47  ;;  %v15649_v28 = vld [vmem:[#allocation124_spill] sm:$0xff] }
 0x73e   :  { %v5843_v30 = vmul.f32 %v15630_v8, %v12954_v60  ;;  %v5844_v49 = vmul.f32 %v15631_v45, %v12954_v60  ;;  %v5855_v35 = vmul.f32 %v15633_v32, %v12970_v37  ;;  %v5856_v57 = vmul.f32 %v15634_v10, %v12970_v37  ;;  %v15640_v37 = vld [vmem:[#allocation95_spill] sm:$0xff] }
 0x73f   :  { %v5859_v53 = vmul.f32 %v15636_v23, %v12983_v56  ;;  %v5860_v55 = vmul.f32 %v15637_v62, %v12983_v56  ;;  %v5863_v20 = vadd.f32 %v5847_v25, %v15638_v36  ;;  %v5864_v60 = vadd.f32 %v5848_v50, %v15639_v7  ;;  %v15646_v25 = vld [vmem:[#allocation98_spill] sm:$0xff] }
 0x740   :  { %v5867_v21 = vadd.f32 %v5851_v58, %v5835_v14  ;;  %v5868_v0 = vadd.f32 %v5852_v59, %v5836_v12  ;;  %v5871_v44 = vadd.f32 %v5855_v35, %v5839_v38  ;;  %v5872_v13 = vadd.f32 %v5856_v57, %v5840_v26  ;;  %v15661_v36 = vld [vmem:[#allocation110_spill] sm:$0xff] }
 0x741   :  { %v5875_v46 = vadd.f32 %v5859_v53, %v5843_v30  ;;  %v5876_v54 = vadd.f32 %v5860_v55, %v5844_v49  ;;  %v15641_v43 = vunpack.c.l.bf16 %v15640_v37  ;;  %v15642_v5 = vunpack.c.h.bf16 %v15640_v37 }
 0x742   :  { %v5879_v52 = vadd.f32 %v5871_v44, %v5863_v20  ;;  %v5880_v56 = vadd.f32 %v5872_v13, %v5864_v60  ;;  %v15644_v9 = vunpack.c.l.bf16 %v15643_v39  ;;  %v15645_v14 = vunpack.c.h.bf16 %v15643_v39 }
 0x743   :  { %v5989_v2 = vmul.f32 %v15641_v43, %v12986_v41  ;;  %v5990_v51 = vmul.f32 %v15642_v5, %v12986_v41  ;;  %v5883_v38 = vadd.f32 %v5875_v46, %v5867_v21  ;;  %v5884_v26 = vadd.f32 %v5876_v54, %v5868_v0 }
 0x744   :  { %v5993_v19 = vmul.f32 %v15644_v9, %v12989_v61  ;;  %v5994_v12 = vmul.f32 %v15645_v14, %v12989_v61  ;;  %v15647_v40 = vunpack.c.l.bf16 %v15646_v25  ;;  %v15648_v48 = vunpack.c.h.bf16 %v15646_v25  ;;  %v15652_v61 = vld [vmem:[#allocation99_spill] sm:$0xff] }
 0x745   :  { %v15650_v58 = vunpack.c.l.bf16 %v15649_v28  ;;  %v15651_v59 = vunpack.c.h.bf16 %v15649_v28  ;;  %v15653_v8 = vunpack.c.l.bf16 %v15652_v61  ;;  %v15654_v45 = vunpack.c.h.bf16 %v15652_v61 }
 0x746   :  { %v5997_v50 = vmul.f32 %v15647_v40, %v13014_v33  ;;  %v5998_v41 = vmul.f32 %v15648_v48, %v13014_v33  ;;  %v5887_v24 = vadd.f32 %v5883_v38, %v5879_v52  ;;  %v5888_v32 = vadd.f32 %v5884_v26, %v5880_v56  ;;  %v15655_v33 = vld [vmem:[#allocation123_spill] sm:$0xff]  ;;  %v15664_v26 = vld [vmem:[#allocation20_spill] sm:$0xff] }
 0x747   :  { %v6001_v16 = vmul.f32 %v15650_v58, %v12992_v42  ;;  %v6002_v27 = vmul.f32 %v15651_v59, %v12992_v42  ;;  %v6005_v30 = vmul.f32 %v15653_v8, %v12997_v15  ;;  %v6006_v49 = vmul.f32 %v15654_v45, %v12997_v15  ;;  %v15658_v42 = vld [vmem:[#allocation101_spill] sm:$0xff]  ;;  %v15665_v40 = vld [vmem:[#allocation108_spill] sm:$0xff] }
 0x748   :  { %v15656_v35 = vunpack.c.l.bf16 %v15655_v33  ;;  %v15657_v57 = vunpack.c.h.bf16 %v15655_v33  ;;  %v15659_v23 = vunpack.c.l.bf16 %v15658_v42  ;;  %v15660_v62 = vunpack.c.h.bf16 %v15658_v42  ;;  %v15666_v8 = vld [vmem:[#allocation21_spill] sm:$0xff] }
 0x749   :  { %v6017_v15 = vadd.f32 %v6001_v16, %v15661_v36  ;;  %v6018_v20 = vadd.f32 %v6002_v27, %v13212_v18  ;;  %v5891_v7 = vadd.f32 %v5887_v24, %v5579_v34  ;;  %v5892_v60 = vadd.f32 %v5888_v32, %v5580_v1  ;;  %v15668_v33 = vld [vmem:[#allocation61_spill] sm:$0xff] }
 0x74a   :  { %v6009_v10 = vmul.f32 %v15656_v35, %v13000_v11  ;;  %v6010_v47 = vmul.f32 %v15657_v57, %v13000_v11  ;;  %v6013_v53 = vmul.f32 %v15659_v23, %v13029_v3  ;;  %v6014_v55 = vmul.f32 %v15660_v62, %v13029_v3 }
 0x74b   :  { %v6021_v21 = vadd.f32 %v6005_v30, %v5989_v2  ;;  %v6022_v0 = vadd.f32 %v6006_v49, %v5990_v51  ;;  %v5725_v54 = vadd.f32 %v5717_v17, %v5709_v29  ;;  %v5726_v37 = vadd.f32 %v5718_v63, %v5710_v4  ;;  %v6085_v51 = vpop.permute.xlu0 %6084  ;;  %v6090_v4 = vpop.permute.xlu1 %6089  ;;  %v15663_v17 = vld [vmem:[#allocation106_spill] sm:$0xff] }
 0x74c   :  { %v6025_v44 = vadd.f32 %v6009_v10, %v5993_v19  ;;  %v6026_v13 = vadd.f32 %v6010_v47, %v5994_v12  ;;  %v6029_v46 = vadd.f32 %v6013_v53, %v5997_v50  ;;  %v6030_v11 = vadd.f32 %v6014_v55, %v5998_v41  ;;  %v15662_v19 = vld [vmem:[#allocation57_spill] sm:$0xff]  ;;  %v15667_v49 = vld [vmem:[#allocation22_spill] sm:$0xff]  ;;  %v15669_v47 = vld [vmem:[#allocation60_spill] sm:$0xff] }
 0x74d   :  { %v5733_v39 = vadd.f32 %v5729_v22, %v5725_v54  ;;  %v5734_v3 = vadd.f32 %v5730_v31, %v5726_v37  ;;  %v6153_v29 = vadd.f32 %v15662_v19, %v6085_v51  ;;  %v6155_v63 = vadd.f32 %v15663_v17, %v6085_v51 }
 0x74e   :  { %v6033_v43 = vadd.f32 %v6025_v44, %v6017_v15  ;;  %v6034_v5 = vadd.f32 %v6026_v13, %v6018_v20  ;;  %v6037_v52 = vadd.f32 %v6029_v46, %v6021_v21  ;;  %v6038_v56 = vadd.f32 %v6030_v11, %v6022_v0  ;;  %v8451_v21 = vld [vmem:[%s13473_s8 + $0x10] sm:$0xff]   ;;  %v8452_v0 = vld [vmem:[%s13473_s8 + $0x18] sm:$0xff]  }
 0x74f   :  { %v6157_v22 = vadd.f32 %v15664_v26, %v6090_v4  ;;  %v6159_v50 = vadd.f32 %v15665_v40, %v6090_v4  ;;  %v6095_v61 = vpop.permute.xlu0 %6094  ;;  %v6100_v45 = vpop.permute.xlu1 %6099 }
 0x750   :  { %v6041_v9 = vadd.f32 %v6037_v52, %v6033_v43  ;;  %v6042_v14 = vadd.f32 %v6038_v56, %v6034_v5  ;;  %v6163_v30 = vadd.f32 %v15666_v8, %v6095_v61  ;;  %v6165_v24 = vadd.f32 %v15667_v49, %v6095_v61 }
 0x751   :  { %v6167_v35 = vadd.f32 %v15668_v33, %v6100_v45  ;;  %v6169_v42 = vadd.f32 %v15669_v47, %v6100_v45 }
 0x752   :  { %v6045_v38 = vadd.f32 %v6041_v9, %v5733_v39  ;;  %v6046_v18 = vadd.f32 %v6042_v14, %v5734_v3 }
 0x753   :  { %v6400_v19 = vpop.permute.xlu0 %6399 }
 0x754   :  { %v6049_v34 = vadd.f32 %v6045_v38, %v5891_v7  ;;  %v6050_v1 = vadd.f32 %v6046_v18, %v5892_v60  ;;  %v8449_v7 = vld [vmem:[%s13473_s8] sm:$0xff]   ;;  %v8450_v60 = vld [vmem:[%s13473_s8 + $0x8] sm:$0xff]  }
 0x756   :  { %v6054_v2 = vpack.c.bf16 %v6050_v1, %v6049_v34 }
 0x757   :  { %v6410_v40 = vpop.permute.xlu0 %6409 }
 0x758   :  { %6367 = vmatmul.mubr.bf16.gmra.mrb[48].mxu1 %v6054_v2 }
 0x759   :  { %6880 = vmatprep.mubr.bf16.mxu1 %v15607_v6 }
 0x7a0   :  { %v6338_v12 = vpop.f32.mrb[52].mxu1 }
 0x7a1   :  { %v6339_v31 = vadd.f32 %v6338_v12, %v6153_v29  ;;  %v6340_v25 = vpop.f32.mrb[53].mxu1 }
 0x7a2   :  { %v6341_v48 = vadd.f32 %v6340_v25, %v6155_v63  ;;  %v6342_v41 = vpop.f32.mrb[54].mxu1  ;;  %v6405_v63 = vpop.permute.xlu1 %6404 }
 0x7a3   :  { %v6343_v28 = vadd.f32 %v6342_v41, %v6157_v22  ;;  %v6344_v58 = vpop.f32.mrb[55].mxu1 }
 0x7a4   :  { %v6345_v16 = vadd.f32 %v6344_v58, %v6159_v50 }
 0x7a5   :  { %v6377_v59 = vpack.c.bf16 %v6343_v28, %v6339_v31 }
 0x7a6   :  { %v6378_v27 = vpack.c.bf16 %v6345_v16, %v6341_v48  ;;  %v6415_v28 = vpop.permute.xlu1 %6414 }
 0x7a8   :  { %6469 = vmatprep.subr.bf16.mxu0 %v6378_v27 }
 0x7a9   :  { %6470 = vmatpush1.bf16.msra.mxu0 %v6377_v59 }
 0x7aa   :  { %v6425_v47 = vpop.permute.xlu1 %6424 }
 0x7d2   :  { %v6348_v32 = vpop.f32.mrb[56].mxu1 }
 0x7d3   :  { %v6349_v10 = vadd.f32 %v6348_v32, %v6163_v30  ;;  %v6350_v57 = vpop.f32.mrb[57].mxu1 }
 0x7d4   :  { %v6351_v23 = vadd.f32 %v6350_v57, %v6165_v24  ;;  %v6352_v53 = vpop.f32.mrb[58].mxu1  ;;  %v6420_v24 = vpop.permute.xlu0 %6419 }
 0x7d5   :  { %v6353_v62 = vadd.f32 %v6352_v53, %v6167_v35  ;;  %v6354_v55 = vpop.f32.mrb[59].mxu1 }
 0x7d6   :  { %v6355_v36 = vadd.f32 %v6354_v55, %v6169_v42 }
 0x7d7   :  { %v6379_v15 = vpack.c.bf16 %v6353_v62, %v6349_v10 }
 0x7d8   :  { %v6380_v20 = vpack.c.bf16 %v6355_v36, %v6351_v23 }
 0x7da   :  { %6471 = vmatprep.subr.bf16.mxu0 %v6380_v20 }
 0x7db   :  { %6472 = vmatpush1.bf16.msra.mxu0 %v6379_v15 }
 0x7de   :  { %7112 = vmatmul.mubr.msk.bf16.vlgmr.msra.gmra.mrb[68].mxu0 %vm2023_vm3, %v8449_v7 }
 0x7df   :  { %6511 = vmatprep.mubr.bf16.mxu0 %v15607_v6 }
 0x7e6   :  { %7113 = vmatmul.mubr.msk.bf16.gmra.mrb[72].mxu0 %vm2023_vm3, %v8450_v60  ;;  %v6430_v60 = vpop.permute.xlu0 %6429 }
 0x7e7   :  { %6521 = vmatprep.mubr.bf16.mxu0 %v15607_v6 }
 0x7ee   :  { %7114 = vmatmul.mubr.msk.bf16.gmra.mrb[76].mxu0 %vm2023_vm3, %v8451_v21 }
 0x7ef   :  { %6531 = vmatprep.mubr.bf16.mxu0 %v15607_v6 }
 0x7f6   :  { %7115 = vmatmul.mubr.msk.bf16.gmra.mrb[80].mxu0 %vm2023_vm3, %v8452_v0 }
 0x7f7   :  { %6613 = vmatprep.mubr.bf16.mxu0 %v15607_v6 }
 0x802   :  { %v6358_v44 = vpop.f32.mrb[44].mxu1 }
 0x803   :  { %v6360_v13 = vpop.f32.mrb[45].mxu1  ;;  %v13374_v11 = vadd.f32 %v6358_v44, %v6085_v51 }
 0x804   :  { %v6362_v46 = vpop.f32.mrb[46].mxu1  ;;  %v13379_v43 = vadd.f32 %v6360_v13, %v6085_v51 }
 0x805   :  { %v13376_v54 = vadd.f32 %v6362_v46, %v6090_v4  ;;  %v6364_v37 = vpop.f32.mrb[47].mxu1 }
 0x806   :  { %v13381_v5 = vadd.f32 %v6364_v37, %v6090_v4  ;;  %v6435_v37 = vpop.permute.xlu1 %6434 }
 0x807   :  { %v6645_v52 = vpack.c.bf16 %v13376_v54, %v13374_v11  ;;  %v8454_v11 = vld [vmem:[%s13473_s8 + $0x8] sm:$0xff]   ;;  %v8455_v54 = vld [vmem:[%s13473_s8 + $0x10] sm:$0xff]  }
 0x808   :  { %v6646_v56 = vpack.c.bf16 %v13381_v5, %v13379_v43  ;;  %v8456_v43 = vld [vmem:[%s13473_s8 + $0x18] sm:$0xff]   ;;  %v6668_v5 = vpop.permute.xlu0 %6667 }
 0x82b   :  { %v6368_v39 = vpop.f32.mrb[48].mxu1 }
 0x82c   :  { %v6370_v3 = vpop.f32.mrb[49].mxu1  ;;  %v13388_v14 = vadd.f32 %v6368_v39, %v6095_v61 }
 0x82d   :  { %v6372_v9 = vpop.f32.mrb[50].mxu1  ;;  %v13392_v34 = vadd.f32 %v6370_v3, %v6095_v61 }
 0x82e   :  { %v13390_v38 = vadd.f32 %v6372_v9, %v6100_v45  ;;  %v6374_v18 = vpop.f32.mrb[51].mxu1 }
 0x82f   :  { %v13394_v1 = vadd.f32 %v6374_v18, %v6100_v45 }
 0x830   :  { %v6647_v2 = vpack.c.bf16 %v13390_v38, %v13388_v14 }
 0x831   :  { %v6648_v51 = vpack.c.bf16 %v13394_v1, %v13392_v34  ;;  %v15670_v34 = vld [vmem:[#allocation15_spill] sm:$0xff] }
 0x8b1   :  { %v6503_v29 = vpop.f32.mrb[68].mxu0 }
 0x8b2   :  { %v6504_v4 = vadd.f32 %v6503_v29, %v6400_v19  ;;  %v6505_v17 = vpop.f32.mrb[69].mxu0 }
 0x8b3   :  { %v6506_v12 = vadd.f32 %v6505_v17, %v6400_v19  ;;  %v6507_v26 = vpop.f32.mrb[70].mxu0 }
 0x8b4   :  { %8521 = vtanh.f32 %v6504_v4  ;;  %v6508_v22 = vadd.f32 %v6507_v26, %v6405_v63  ;;  %v6509_v31 = vpop.f32.mrb[71].mxu0 }
 0x8b5   :  { %8523 = vtanh.f32 %v6506_v12  ;;  %v6510_v25 = vadd.f32 %v6509_v31, %v6405_v63 }
 0x8b6   :  { %8525 = vtanh.f32 %v6508_v22 }
 0x8b7   :  { %8527 = vtanh.f32 %v6510_v25 }
 0x8b9   :  { %v6513_v50 = vpop.f32.mrb[72].mxu0 }
 0x8ba   :  { %v6514_v48 = vadd.f32 %v6513_v50, %v6410_v40  ;;  %v6515_v41 = vpop.f32.mrb[73].mxu0 }
 0x8bb   :  { %v6516_v58 = vadd.f32 %v6515_v41, %v6410_v40  ;;  %v6517_v16 = vpop.f32.mrb[74].mxu0  ;;  %v6558_v41 = vld [vmem:[%s13475_s10] sm:$0x1] }
 0x8bc   :  { %8529 = vtanh.f32 %v6514_v48  ;;  %v6518_v59 = vadd.f32 %v6517_v16, %v6415_v28  ;;  %v6519_v27 = vpop.f32.mrb[75].mxu0 }
 0x8bd   :  { %8531 = vtanh.f32 %v6516_v58  ;;  %v6520_v61 = vadd.f32 %v6519_v27, %v6415_v28  ;;  %v8453_v28 = vld [vmem:[%s13473_s8] sm:$0xff]  }
 0x8be   :  { %v8522_v8 = vpop.eup %8521  ;;  %8533 = vtanh.f32 %v6518_v59 }
 0x8bf   :  { %v8524_v30 = vpop.eup %8523  ;;  %8535 = vtanh.f32 %v6520_v61  ;;  %v15671_v61 = vld [vmem:[#allocation18_spill] sm:$0xff] }
 0x8c0   :  { %v8526_v45 = vpop.eup %8525 }
 0x8c1   :  { %v8528_v49 = vpop.eup %8527  ;;  %v6523_v32 = vpop.f32.mrb[76].mxu0  ;;  %v6559_v33 = vpack.c.bf16 %v8526_v45, %v8522_v8 }
 0x8c2   :  { %v6524_v35 = vadd.f32 %v6523_v32, %v6420_v24  ;;  %v6525_v10 = vpop.f32.mrb[77].mxu0  ;;  %v6560_v57 = vpack.c.bf16 %v8528_v49, %v8524_v30  ;;  %v15672_v30 = vlaneseq }
 0x8c3   :  { %v6526_v42 = vadd.f32 %v6525_v10, %v6420_v24  ;;  %v6527_v23 = vpop.f32.mrb[78].mxu0 }
 0x8c4   :  { %8537 = vtanh.f32 %v6524_v35  ;;  %v6528_v53 = vadd.f32 %v6527_v23, %v6425_v47  ;;  %v6529_v62 = vpop.f32.mrb[79].mxu0  ;;  %6581 = vmatprep.subr.bf16.mxu0 %v6560_v57  ;;  %vm13441_vm5 = vcmp.lt.s32.totalorder %v15672_v30, 256  ;;  %v6673_v35 = vpop.permute.xlu1 %6672 }
 0x8c5   :  { %8539 = vtanh.f32 %v6526_v42  ;;  %v6530_v55 = vadd.f32 %v6529_v62, %v6425_v47  ;;  %6582 = vmatpush1.bf16.msra.mxu0 %v6559_v33 }
 0x8c6   :  { %v8530_v36 = vpop.eup %8529  ;;  %8541 = vtanh.f32 %v6528_v53 }
 0x8c7   :  { %v8532_v15 = vpop.eup %8531  ;;  %8543 = vtanh.f32 %v6530_v55 }
 0x8c8   :  { %v8534_v20 = vpop.eup %8533 }
 0x8c9   :  { %v8536_v7 = vpop.eup %8535  ;;  %v6533_v21 = vpop.f32.mrb[80].mxu0  ;;  %v6561_v0 = vpack.c.bf16 %v8534_v20, %v8530_v36 }
 0x8ca   :  { %v6534_v44 = vadd.f32 %v6533_v21, %v6430_v60  ;;  %v6535_v13 = vpop.f32.mrb[81].mxu0  ;;  %v6562_v46 = vpack.c.bf16 %v8536_v7, %v8532_v15  ;;  %v6683_v36 = vpop.permute.xlu1 %6682 }
 0x8cb   :  { %v6536_v39 = vadd.f32 %v6535_v13, %v6430_v60  ;;  %v6537_v3 = vpop.f32.mrb[82].mxu0 }
 0x8cc   :  { %8545 = vtanh.f32 %v6534_v44  ;;  %v6538_v9 = vadd.f32 %v6537_v3, %v6435_v37  ;;  %v6539_v18 = vpop.f32.mrb[83].mxu0  ;;  %6583 = vmatprep.subr.bf16.mxu0 %v6562_v46 }
 0x8cd   :  { %8547 = vtanh.f32 %v6536_v39  ;;  %v6540_v19 = vadd.f32 %v6539_v18, %v6435_v37  ;;  %6584 = vmatpush1.bf16.msra.mxu0 %v6561_v0 }
 0x8ce   :  { %v8538_v29 = vpop.eup %8537  ;;  %8549 = vtanh.f32 %v6538_v9 }
 0x8cf   :  { %v8540_v4 = vpop.eup %8539  ;;  %8551 = vtanh.f32 %v6540_v19  ;;  %v6693_v19 = vpop.permute.xlu1 %6692 }
 0x8d0   :  { %v8542_v17 = vpop.eup %8541 }
 0x8d1   :  { %v8544_v63 = vpop.eup %8543  ;;  %v6563_v12 = vpack.c.bf16 %v8542_v17, %v8538_v29 }
 0x8d2   :  { %v6564_v26 = vpack.c.bf16 %v8544_v63, %v8540_v4 }
 0x8d4   :  { %6585 = vmatprep.subr.bf16.mxu0 %v6564_v26 }
 0x8d5   :  { %6586 = vmatpush1.bf16.msra.mxu0 %v6563_v12 }
 0x8d6   :  { %v8546_v22 = vpop.eup %8545 }
 0x8d7   :  { %v8548_v31 = vpop.eup %8547 }
 0x8d8   :  { %v8550_v25 = vpop.eup %8549 }
 0x8d9   :  { %v8552_v40 = vpop.eup %8551  ;;  %v6565_v50 = vpack.c.bf16 %v8550_v25, %v8546_v22 }
 0x8da   :  { %v6566_v48 = vpack.c.bf16 %v8552_v40, %v8548_v31 }
 0x8dc   :  { %6587 = vmatprep.subr.bf16.mxu0 %v6566_v48 }
 0x8dd   :  { %6588 = vmatpush1.bf16.msra.mxu0 %v6565_v50 }
 0x8de   :  { %6737 = vmatprep.subr.bf16.mxu0 %v6646_v56 }
 0x8e0   :  { %7116 = vmatmul.mubr.msk.bf16.vlgmr.msra.gmra.mrb[84].mxu0 %vm6577_vm4, %v6558_v41 }
 0x8e1   :  { %6738 = vmatpush1.bf16.msra.mxu0 %v6645_v52  ;;  %6769 = vmatprep.mubr.bf16.mxu0 %v15607_v6  ;;  %v6678_v52 = vpop.permute.xlu0 %6677 }
 0x8e2   :  { %6739 = vmatprep.subr.bf16.mxu0 %v6648_v51 }
 0x8e5   :  { %6740 = vmatpush1.bf16.msra.mxu0 %v6647_v2  ;;  %v6688_v56 = vpop.permute.xlu0 %6687 }
 0x8e8   :  { %7121 = vmatmul.mubr.msk.bf16.vlgmr.msra.gmra.mrb[88].mxu0 %vm2023_vm3, %v8453_v28 }
 0x8e9   :  { %6779 = vmatprep.mubr.bf16.mxu0 %v15607_v6  ;;  %v13436_v14 = vpop.permute.xlu0 %6697 }
 0x8ed   :  { %v6571_v38 = vpop.permute.xlu0 %6570 }
 0x8ee   :  { %v6576_v1 = vrot.slane %v6571_v38, %v15670_v34 }
 0x8f0   :  { %7122 = vmatmul.mubr.msk.bf16.gmra.mrb[92].mxu0 %vm2023_vm3, %v8454_v11  ;;  %v6703_v11 = vpop.permute.xlu1 %6702 }
 0x8f1   :  { %6789 = vmatprep.mubr.bf16.mxu0 %v15607_v6 }
 0x8f8   :  { %7123 = vmatmul.mubr.msk.bf16.gmra.mrb[96].mxu0 %vm2023_vm3, %v8455_v54 }
 0x8f9   :  { %6799 = vmatprep.mubr.bf16.mxu0 %v15607_v6 }
 0x900   :  { %7124 = vmatmul.mubr.msk.bf16.gmra.mrb[100].mxu0 %vm2023_vm3, %v8456_v43 }
 0x9b3   :  { %v6615_v2 = vpop.f32.mrb[84].mxu0 }
 0x9b4   :  { %v6616_v51 = vadd.f32 %v6615_v2, %v6576_v1  ;;  %v6617_v58 = vpop.f32.mrb[85].mxu0 }
 0x9b5   :  { %v6618_v16 = vadd.f32 %v6617_v58, %v6576_v1  ;;  %v6619_v59 = vpop.f32.mrb[86].mxu0 }
 0x9b6   :  { %v6620_v6 = vpop.f32.mrb[87].mxu0 }
 0x9b7   :  { %v6624_v27 = vcombine.low %v6616_v51, %v6618_v16 }
 0x9b9   :  { %v6631_v8 = vrot.slane %v6624_v27, %v15671_v61 }
 0x9bb   :  { %v6638_v49 = vrot.slane %v6631_v8, %v15671_v61  ;;  %v6771_v24 = vpop.f32.mrb[88].mxu0 }
 0x9bc   :  { %v6772_v32 = vadd.f32 %v6771_v24, %v6668_v5  ;;  %v6773_v33 = vpop.f32.mrb[89].mxu0  ;;  %v6839_v24 = vpop.permute.xlu1 %6838 }
 0x9bd   :  { %6644 = vst.msk [vmem:[%s13477_s12] sm:$0x3] %vm13441_vm5, %v6638_v49  ;;  %v6774_v10 = vadd.f32 %v6773_v33, %v6668_v5  ;;  %v6775_v57 = vpop.f32.mrb[90].mxu0  ;;  %v6826_v49 = vld [vmem:[%s13475_s10] sm:$0x1] }
 0x9be   :  { %8553 = vtanh.f32 %v6772_v32  ;;  %v6776_v47 = vadd.f32 %v6775_v57, %v6673_v35  ;;  %v6777_v42 = vpop.f32.mrb[91].mxu0  ;;  %v6844_v32 = vrot.slane %v6839_v24, %v15670_v34 }
 0x9bf   :  { %8555 = vtanh.f32 %v6774_v10  ;;  %v6778_v23 = vadd.f32 %v6777_v42, %v6673_v35 }
 0x9c0   :  { %8557 = vtanh.f32 %v6776_v47 }
 0x9c1   :  { %8559 = vtanh.f32 %v6778_v23 }
 0x9c3   :  { %v6781_v53 = vpop.f32.mrb[92].mxu0 }
 0x9c4   :  { %v6782_v62 = vadd.f32 %v6781_v53, %v6678_v52  ;;  %v6783_v55 = vpop.f32.mrb[93].mxu0 }
 0x9c5   :  { %v6784_v15 = vadd.f32 %v6783_v55, %v6678_v52  ;;  %v6785_v20 = vpop.f32.mrb[94].mxu0 }
 0x9c6   :  { %8561 = vtanh.f32 %v6782_v62  ;;  %v6786_v7 = vadd.f32 %v6785_v20, %v6683_v36  ;;  %v6787_v60 = vpop.f32.mrb[95].mxu0 }
 0x9c7   :  { %8563 = vtanh.f32 %v6784_v15  ;;  %v6788_v21 = vadd.f32 %v6787_v60, %v6683_v36 }
 0x9c8   :  { %v8554_v0 = vpop.eup %8553  ;;  %8565 = vtanh.f32 %v6786_v7 }
 0x9c9   :  { %v8556_v44 = vpop.eup %8555  ;;  %8567 = vtanh.f32 %v6788_v21 }
 0x9ca   :  { %v8558_v13 = vpop.eup %8557 }
 0x9cb   :  { %v8560_v46 = vpop.eup %8559  ;;  %v6791_v37 = vpop.f32.mrb[96].mxu0  ;;  %v6827_v39 = vpack.c.bf16 %v8558_v13, %v8554_v0 }
 0x9cc   :  { %v6792_v3 = vadd.f32 %v6791_v37, %v6688_v56  ;;  %v6793_v9 = vpop.f32.mrb[97].mxu0  ;;  %v6828_v18 = vpack.c.bf16 %v8560_v46, %v8556_v44 }
 0x9cd   :  { %v6794_v29 = vadd.f32 %v6793_v9, %v6688_v56  ;;  %v6795_v4 = vpop.f32.mrb[98].mxu0 }
 0x9ce   :  { %8569 = vtanh.f32 %v6792_v3  ;;  %v6796_v17 = vadd.f32 %v6795_v4, %v6693_v19  ;;  %v6797_v63 = vpop.f32.mrb[99].mxu0  ;;  %6848 = vmatprep.subr.bf16.mxu1 %v6828_v18 }
 0x9cf   :  { %8571 = vtanh.f32 %v6794_v29  ;;  %v6798_v12 = vadd.f32 %v6797_v63, %v6693_v19  ;;  %6849 = vmatpush1.bf16.msra.mxu1 %v6827_v39 }
 0x9d0   :  { %v8562_v26 = vpop.eup %8561  ;;  %8573 = vtanh.f32 %v6796_v17 }
 0x9d1   :  { %v8564_v22 = vpop.eup %8563  ;;  %8575 = vtanh.f32 %v6798_v12 }
 0x9d2   :  { %v8566_v31 = vpop.eup %8565 }
 0x9d3   :  { %v8568_v25 = vpop.eup %8567  ;;  %v6801_v40 = vpop.f32.mrb[100].mxu0  ;;  %v6829_v50 = vpack.c.bf16 %v8566_v31, %v8562_v26 }
 0x9d4   :  { %v6802_v48 = vadd.f32 %v6801_v40, %v13436_v14  ;;  %v6803_v41 = vpop.f32.mrb[101].mxu0  ;;  %v6830_v28 = vpack.c.bf16 %v8568_v25, %v8564_v22 }
 0x9d5   :  { %v6804_v54 = vadd.f32 %v6803_v41, %v13436_v14  ;;  %v6805_v43 = vpop.f32.mrb[102].mxu0 }
 0x9d6   :  { %8577 = vtanh.f32 %v6802_v48  ;;  %v6806_v5 = vadd.f32 %v6805_v43, %v6703_v11  ;;  %v6807_v52 = vpop.f32.mrb[103].mxu0  ;;  %6850 = vmatprep.subr.bf16.mxu1 %v6830_v28 }
 0x9d7   :  { %8579 = vtanh.f32 %v6804_v54  ;;  %v6808_v56 = vadd.f32 %v6807_v52, %v6703_v11  ;;  %6851 = vmatpush1.bf16.msra.mxu1 %v6829_v50 }
 0x9d8   :  { %v8570_v38 = vpop.eup %8569  ;;  %8581 = vtanh.f32 %v6806_v5 }
 0x9d9   :  { %v8572_v1 = vpop.eup %8571  ;;  %8583 = vtanh.f32 %v6808_v56 }
 0x9da   :  { %v8574_v2 = vpop.eup %8573 }
 0x9db   :  { %v8576_v51 = vpop.eup %8575  ;;  %v6831_v58 = vpack.c.bf16 %v8574_v2, %v8570_v38 }
 0x9dc   :  { %v6832_v16 = vpack.c.bf16 %v8576_v51, %v8572_v1 }
 0x9de   :  { %6852 = vmatprep.subr.bf16.mxu1 %v6832_v16 }
 0x9df   :  { %6853 = vmatpush1.bf16.msra.mxu1 %v6831_v58 }
 0x9e0   :  { %v8578_v59 = vpop.eup %8577 }
 0x9e1   :  { %v8580_v14 = vpop.eup %8579 }
 0x9e2   :  { %v8582_v6 = vpop.eup %8581 }
 0x9e3   :  { %v8584_v27 = vpop.eup %8583  ;;  %v6833_v8 = vpack.c.bf16 %v8582_v6, %v8578_v59 }
 0x9e4   :  { %v6834_v30 = vpack.c.bf16 %v8584_v27, %v8580_v14 }
 0x9e6   :  { %6854 = vmatprep.subr.bf16.mxu1 %v6834_v30 }
 0x9e7   :  { %6855 = vmatpush1.bf16.msra.mxu1 %v6833_v8 }
 0x9ea   :  { %7125 = vmatmul.mubr.msk.bf16.vlgmr.msra.gmra.mrb[60].mxu1 %vm6577_vm4, %v6826_v49 }
 0xabd   :  { %v6882_v33 = vpop.f32.mrb[60].mxu1 }
 0xabe   :  { %v6883_v35 = vadd.f32 %v6882_v33, %v6844_v32  ;;  %v6884_v10 = vpop.f32.mrb[61].mxu1 }
 0xabf   :  { %v6885_v57 = vadd.f32 %v6884_v10, %v6844_v32  ;;  %v6886_v47 = vpop.f32.mrb[62].mxu1 }
 0xac0   :  { %v6887_v42 = vpop.f32.mrb[63].mxu1 }
 0xac1   :  { %v6891_v23 = vcombine.low %v6883_v35, %v6885_v57 }
 0xac3   :  { %v6898_v53 = vrot.slane %v6891_v23, %v15671_v61 }
 0xac5   :  { %v6905_v62 = vrot.slane %v6898_v53, %v15671_v61 }
 0xac7   :  { %7126 = vst.msk [vmem:[%s13477_s12 + $0x2] sm:$0x3] %vm13441_vm5, %v6905_v62 }
 0xac8   :  { %6913 = vsyncpa [#allocation4], 1 }
 0xac9   :  { %6914 = vsyncpa [#allocation6], 1 }

</bundles_post_ra>
